<compile_context>
chip_gen: v5e
topology: v5e:2x2
jax: 0.10.0
libtpu: 0.0.40
codegen_flags: <defaults>
</compile_context>

<pallas_src>
import math

import jax
import jax.numpy as jnp
from jax import lax
from jax.experimental import pallas as pl
from jax.experimental.pallas import tpu as pltpu


# ------------------------------ helpers ------------------------------

def _round_up(x, m):
    return (x + m - 1) // m * m


def _full_spec(shape):
    n = len(shape)
    return pl.BlockSpec(shape, lambda i, n=n: (0,) * n)


def _single_block_call(kernel, inputs, out_shapes):
    """One grid step; every operand/result is a single full VMEM block (all tiny)."""
    res = pl.pallas_call(
        kernel,
        out_shape=tuple(jax.ShapeDtypeStruct(s, jnp.float32) for s in out_shapes),
        grid=(1,),
        in_specs=[_full_spec(x.shape) for x in inputs],
        out_specs=tuple(_full_spec(s) for s in out_shapes),
        compiler_params=pltpu.CompilerParams(
            dimension_semantics=("arbitrary",)),
    )(*inputs)
    if not isinstance(res, (tuple, list)):
        res = (res,)
    return tuple(res)


# ---------------------------- Pallas kernels ----------------------------

def _bn_epilogue(y, gamma, beta, m_true, m_padded, use_tanh):
    """Training-mode BatchNorm over axis 1 (biased stats, eps=1e-5) + optional tanh.

    Lane padding beyond m_true is masked out of the statistics; padded output
    columns are sliced away by the wrapper."""
    inv_m = 1.0 / float(m_true)
    if m_padded > m_true:
        mask = (lax.broadcasted_iota(jnp.int32, (1, m_padded), 1)
                < m_true).astype(jnp.float32)
        mean = jnp.sum(y * mask, axis=1, keepdims=True) * inv_m
        d = (y - mean) * mask
    else:
        mean = jnp.sum(y, axis=1, keepdims=True) * inv_m
        d = y - mean
    var = jnp.sum(d * d, axis=1, keepdims=True) * inv_m
    out = (y - mean) * lax.rsqrt(var + 1e-5) * gamma + beta
    return jnp.tanh(out) if use_tanh else out


def _make_conv_bn_kernel(m_true, m_padded, use_tanh=False):
    """Fused (W @ patches + bias) -> BatchNorm (-> tanh). Output [Cout, Mp]."""
    def kernel(w_ref, p_ref, bias_ref, g_ref, b_ref, o_ref):
        y = jnp.dot(w_ref[...], p_ref[...],
                    preferred_element_type=jnp.float32) + bias_ref[...]
        o_ref[...] = _bn_epilogue(y, g_ref[...], b_ref[...],
                                  m_true, m_padded, use_tanh)
    return kernel


def _make_conv_bn_matmul_kernel(m_true, m_padded):
    """Fused (W @ patches + bias) -> BN -> act, plus next-layer cols = W2 @ act."""
    def kernel(w_ref, p_ref, bias_ref, g_ref, b_ref, w2_ref, act_ref, cols_ref):
        y = jnp.dot(w_ref[...], p_ref[...],
                    preferred_element_type=jnp.float32) + bias_ref[...]
        act = _bn_epilogue(y, g_ref[...], b_ref[...], m_true, m_padded, False)
        act_ref[...] = act
        cols_ref[...] = jnp.dot(w2_ref[...], act,
                                preferred_element_type=jnp.float32)
    return kernel


def _make_bias_bn_matmul_kernel(m_true, m_padded):
    """Fused (x + bias) -> BN -> act, plus next-layer cols = W2 @ act."""
    def kernel(x_ref, bias_ref, g_ref, b_ref, w2_ref, cols_ref):
        y = x_ref[...] + bias_ref[...]
        act = _bn_epilogue(y, g_ref[...], b_ref[...], m_true, m_padded, False)
        cols_ref[...] = jnp.dot(w2_ref[...], act,
                                preferred_element_type=jnp.float32)
    return kernel


def _make_bias_bn_kernel(m_true, m_padded, use_tanh):
    """Fused (x + bias) -> BatchNorm (-> tanh) on a [C, Mp] block."""
    def kernel(x_ref, bias_ref, g_ref, b_ref, o_ref):
        y = x_ref[...] + bias_ref[...]
        o_ref[...] = _bn_epilogue(y, g_ref[...], b_ref[...],
                                  m_true, m_padded, use_tanh)
    return kernel


def _maxpool_kernel(x_ref, o_ref):
    # x: [8 window offsets (sublanes), Mp (lanes)] -> [1, Mp]; lane-dense output.
    o_ref[...] = jnp.max(x_ref[...], axis=0, keepdims=True)


# ----------------------------- layer wrappers -----------------------------

def _im2col(x_c, ksize, stride, padding):
    """x_c: [Cin, N, D, H, W] -> patches [K = Cin*kd*kh*kw, M = N*Do*Ho*Wo].

    K ordering (Cin major, then kd,kh,kw) matches w.reshape(Cout, -1); channel-major
    layout means no minor-dim transposes are needed (stack + contiguous reshape)."""
    Cin, N, D, H, W = x_c.shape
    kd, kh, kw = ksize
    sd, sh, sw = stride
    pd, ph, pw = padding
    xp = jnp.pad(x_c, ((0, 0), (0, 0), (pd, pd), (ph, ph), (pw, pw)))
    Do = (D + 2 * pd - kd) // sd + 1
    Ho = (H + 2 * ph - kh) // sh + 1
    Wo = (W + 2 * pw - kw) // sw + 1
    slices = []
    for i in range(kd):
        for j in range(kh):
            for l in range(kw):
                slices.append(xp[:, :, i:i + sd * (Do - 1) + 1:sd,
                                       j:j + sh * (Ho - 1) + 1:sh,
                                       l:l + sw * (Wo - 1) + 1:sw])
    p = jnp.stack(slices, axis=1)                     # [Cin, k^3, N, Do, Ho, Wo]
    return p.reshape(Cin * kd * kh * kw, N * Do * Ho * Wo), (Do, Ho, Wo)


def _conv_matmul_inputs(x_c, w, stride, padding):
    """Build padded [Cout, Kp] weight and [Kp, Mp] patch matrices."""
    Cout = w.shape[0]
    patches, (Do, Ho, Wo) = _im2col(x_c, w.shape[2:], stride, padding)
    K, M = patches.shape
    Kp = _round_up(K, 8)
    Mp = _round_up(M, 128)
    wm = w.reshape(Cout, K)
    if Kp != K:
        wm = jnp.pad(wm, ((0, 0), (0, Kp - K)))
    if Kp != K or Mp != M:
        patches = jnp.pad(patches, ((0, Kp - K), (0, Mp - M)))
    return wm, patches, M, Mp, (Do, Ho, Wo)


def conv3d_bn(x_c, w, b, stride, padding, gamma, beta, use_tanh=False):
    """Fused Conv3d + bias + BatchNorm3d (+tanh).

    x_c: [Cin, N, D, H, W]; w: [Cout, Cin, kd, kh, kw] (PyTorch Conv3d layout).
    Returns [Cout, N, Do, Ho, Wo]."""
    Cout = w.shape[0]
    N = x_c.shape[1]
    wm, patches, M, Mp, (Do, Ho, Wo) = _conv_matmul_inputs(x_c, w, stride, padding)
    out, = _single_block_call(
        _make_conv_bn_kernel(M, Mp, use_tanh),
        [wm, patches, b.reshape(Cout, 1), gamma.reshape(Cout, 1),
         beta.reshape(Cout, 1)],
        [(Cout, Mp)])
    return out[:, :M].reshape(Cout, N, Do, Ho, Wo)


def conv3d_bn_then_convt_cols(x_c, w, b, stride, padding, gamma, beta, wt_next):
    """Fused Conv3d+bias+BN producing the activation AND the following
    ConvTranspose3d matmul cols = W_next^T @ act (both outputs from one kernel)."""
    Cout = w.shape[0]
    N = x_c.shape[1]
    wm, patches, M, Mp, (Do, Ho, Wo) = _conv_matmul_inputs(x_c, w, stride, padding)
    R = wt_next.size // wt_next.shape[0]
    w2 = wt_next.reshape(wt_next.shape[0], R).T        # [R, Cout]
    act, cols = _single_block_call(
        _make_conv_bn_matmul_kernel(M, Mp),
        [wm, patches, b.reshape(Cout, 1), gamma.reshape(Cout, 1),
         beta.reshape(Cout, 1), w2],
        [(Cout, Mp), (R, Mp)])
    act = act[:, :M].reshape(Cout, N, Do, Ho, Wo)
    return act, cols[:, :M]


def bias_bn_then_convt_cols(x_c, b, gamma, beta, wt_next):
    """Fused (convT bias + BN) and the next ConvTranspose3d matmul cols = W^T @ act.

    x_c: [C, N, D, H, W]; wt_next: [C, Cout, kd, kh, kw] (PyTorch ConvTranspose layout).
    Returns cols [Cout*kd*kh*kw, N*D*H*W]."""
    C = x_c.shape[0]
    M = x_c.size // C
    Mp = _round_up(M, 128)
    x2 = x_c.reshape(C, M)
    if Mp != M:
        x2 = jnp.pad(x2, ((0, 0), (0, Mp - M)))
    R = wt_next.size // wt_next.shape[0]
    w2 = wt_next.reshape(C, R).T                       # [R, C]
    cols, = _single_block_call(
        _make_bias_bn_matmul_kernel(M, Mp),
        [x2, b.reshape(C, 1), gamma.reshape(C, 1), beta.reshape(C, 1), w2],
        [(R, Mp)])
    return cols[:, :M]


def bias_bn3d(x_c, b, gamma, beta, use_tanh=False):
    """Fused conv-transpose bias + training-mode BatchNorm3d (+tanh). x_c: [C,N,D,H,W]."""
    C = x_c.shape[0]
    M = x_c.size // C
    Mp = _round_up(M, 128)
    x2 = x_c.reshape(C, M)
    if Mp != M:
        x2 = jnp.pad(x2, ((0, 0), (0, Mp - M)))
    out, = _single_block_call(
        _make_bias_bn_kernel(M, Mp, use_tanh),
        [x2, b.reshape(C, 1), gamma.reshape(C, 1), beta.reshape(C, 1)],
        [(C, Mp)])
    return out[:, :M].reshape(x_c.shape)


def col2im_convt(cols, wt, in_spatial, stride, padding, N):
    """Scatter the ConvTranspose cols back to [Cout, N, Do, Ho, Wo] via interior-dilated
    lax.pad placements (pure XLA data movement, no extra MXU work)."""
    _, Cout, kd, kh, kw = wt.shape
    D, H, W = in_spatial
    sd, sh, sw = stride
    pd, ph, pw = padding
    cols = cols.reshape(Cout, kd, kh, kw, N, D, H, W)
    Df = (D - 1) * sd + kd
    Hf = (H - 1) * sh + kh
    Wf = (W - 1) * sw + kw
    acc = jnp.zeros((Cout, N, Df, Hf, Wf), jnp.float32)
    zero = jnp.float32(0)
    # TODO(synk): col2im scatter-add stays in XLA; a strided in-kernel scatter would be
    # cross-lane data movement with no clean Pallas win at these sizes.
    for i in range(kd):
        for j in range(kh):
            for l in range(kw):
                cfg = ((0, 0, 0), (0, 0, 0),
                       (i, Df - i - (sd * (D - 1) + 1), sd - 1),
                       (j, Hf - j - (sh * (H - 1) + 1), sh - 1),
                       (l, Wf - l - (sw * (W - 1) + 1), sw - 1))
                acc = acc + lax.pad(cols[:, i, j, l], zero, cfg)
    return acc[:, :, pd:Df - pd, ph:Hf - ph, pw:Wf - pw]


def maxpool3d_2x2x2(x_c):
    """MaxPool3d(kernel=2, stride=2), floor semantics. x_c: [C, N, D, H, W]."""
    C, N, D, H, W = x_c.shape
    Do, Ho, Wo = D // 2, H // 2, W // 2
    xc = x_c[:, :, :Do * 2, :Ho * 2, :Wo * 2]
    windows = [xc[:, :, i::2, j::2, l::2]
               for i in range(2) for j in range(2) for l in range(2)]
    M = C * N * Do * Ho * Wo
    Mp = _round_up(M, 128)
    xs = jnp.stack(windows, axis=0).reshape(8, M)     # window offsets on sublanes
    if Mp != M:
        xs = jnp.pad(xs, ((0, 0), (0, Mp - M)))
    out, = _single_block_call(_maxpool_kernel, [xs], [(1, Mp)])
    return out[:, :M].reshape(C, N, Do, Ho, Wo)


# ----------------------------- parameters -----------------------------

def _xavier_normal(key, shape, gain):
    receptive = 1
    for s in shape[2:]:
        receptive *= s
    fan_in = shape[1] * receptive
    fan_out = shape[0] * receptive
    std = gain * math.sqrt(2.0 / (fan_in + fan_out))
    return std * jax.random.normal(key, shape, jnp.float32)


def init_params(key):
    gain = math.sqrt(2.0)
    keys = jax.random.split(key, 12)
    p = {}
    # encoder conv weights: [Cout, Cin, kd, kh, kw]
    p["e1_w"] = _xavier_normal(keys[0], (8, 1, 3, 3, 3), gain)
    p["e1_b"] = 0.01 * jax.random.normal(keys[1], (8,), jnp.float32)
    p["e2_w"] = _xavier_normal(keys[2], (16, 8, 3, 3, 3), gain)
    p["e2_b"] = 0.01 * jax.random.normal(keys[3], (16,), jnp.float32)
    p["e3_w"] = _xavier_normal(keys[4], (16, 16, 3, 3, 3), gain)
    p["e3_b"] = 0.01 * jax.random.normal(keys[5], (16,), jnp.float32)
    # decoder conv-transpose weights: [Cin, Cout, kd, kh, kw]
    p["d1_w"] = _xavier_normal(keys[6], (16, 16, 5, 3, 4), gain)
    p["d1_b"] = 0.01 * jax.random.normal(keys[7], (16,), jnp.float32)
    p["d2_w"] = _xavier_normal(keys[8], (16, 8, 5, 5, 5), gain)
    p["d2_b"] = 0.01 * jax.random.normal(keys[9], (8,), jnp.float32)
    p["d3_w"] = _xavier_normal(keys[10], (8, 1, 2, 2, 2), gain)
    p["d3_b"] = 0.01 * jax.random.normal(keys[11], (1,), jnp.float32)
    # batchnorm affine params (PyTorch default: gamma=1, beta=0)
    for name, c in [("bn_e1", 8), ("bn_e2", 16), ("bn_e3", 16),
                    ("bn_d1", 16), ("bn_d2", 8), ("bn_d3", 1)]:
        p[name + "_g"] = jnp.ones((c,), jnp.float32)
        p[name + "_b"] = jnp.zeros((c,), jnp.float32)
    return p


# ----------------------------- forward pass -----------------------------

def cnn_autoencoder_forward(params, x):
    """x: [N, C, D, H, W] (NCDHW). Returns (encoder_feature, decoder_result)."""
    xc = jnp.transpose(x, (1, 0, 2, 3, 4)).astype(jnp.float32)   # [C, N, D, H, W]
    N = x.shape[0]

    # encoder: Conv(1->8, k3, s3, p1)+BN, MaxPool2, Conv(8->16, k3, s2, p1)+BN,
    #          Conv(16->16, k3, s1, p1)+BN
    h = conv3d_bn(xc, params["e1_w"], params["e1_b"], (3, 3, 3), (1, 1, 1),
                  params["bn_e1_g"], params["bn_e1_b"])
    h = maxpool3d_2x2x2(h)
    h = conv3d_bn(h, params["e2_w"], params["e2_b"], (2, 2, 2), (1, 1, 1),
                  params["bn_e2_g"], params["bn_e2_b"])

    # encoder conv3 + BN fused with decoder ConvT1's matmul (dual-output kernel).
    enc_c, cols1 = conv3d_bn_then_convt_cols(
        h, params["e3_w"], params["e3_b"], (1, 1, 1), (1, 1, 1),
        params["bn_e3_g"], params["bn_e3_b"], params["d1_w"])
    d1_pre = col2im_convt(cols1, params["d1_w"], enc_c.shape[2:],
                          (2, 2, 2), (0, 0, 0), N)

    # decoder: ConvT(16->16,(5,3,4),s2)+BN, ConvT(16->8,5,s2,p1)+BN,
    #          ConvT(8->1,2,s2,p1)+BN+Tanh — each BN fused with the next ConvT matmul.
    cols2 = bias_bn_then_convt_cols(d1_pre, params["d1_b"],
                                    params["bn_d1_g"], params["bn_d1_b"],
                                    params["d2_w"])
    d2_pre = col2im_convt(cols2, params["d2_w"], d1_pre.shape[2:],
                          (2, 2, 2), (1, 1, 1), N)

    cols3 = bias_bn_then_convt_cols(d2_pre, params["d2_b"],
                                    params["bn_d2_g"], params["bn_d2_b"],
                                    params["d3_w"])
    d3_pre = col2im_convt(cols3, params["d3_w"], d2_pre.shape[2:],
                          (2, 2, 2), (1, 1, 1), N)

    dec_c = bias_bn3d(d3_pre, params["d3_b"], params["bn_d3_g"], params["bn_d3_b"],
                      use_tanh=True)

    enc = jnp.transpose(enc_c, (1, 0, 2, 3, 4))
    dec = jnp.transpose(dec_c, (1, 0, 2, 3, 4))
    return enc, dec


if __name__ == "__main__":
    key = jax.random.PRNGKey(0)
    pkey, xkey = jax.random.split(key)
    params = init_params(pkey)
    x = jax.random.normal(xkey, (2, 1, 16, 16, 16), jnp.float32)  # NCDHW

    fwd = jax.jit(cnn_autoencoder_forward)
    enc, dec = fwd(params, x)
    jax.block_until_ready((enc, dec))

    assert enc.shape == (2, 16, 2, 2, 2), enc.shape
    assert dec.shape == (2, 1, 28, 20, 24), dec.shape
    assert bool(jnp.all(jnp.isfinite(enc))) and bool(jnp.all(jnp.isfinite(dec)))
    print("KERNEL_OK")
</pallas_src>

<mosaic_0001>
module attributes {stable_mosaic.version = 11 : i64} {
  func.func @kernel(%arg0: i32, %arg1: memref<8x32xf32, #tpu.memory_space<vmem>>, %arg2: memref<32x512xf32, #tpu.memory_space<vmem>>, %arg3: memref<8x1xf32, #tpu.memory_space<vmem>>, %arg4: memref<8x1xf32, #tpu.memory_space<vmem>>, %arg5: memref<8x1xf32, #tpu.memory_space<vmem>>, %arg6: memref<8x512xf32, #tpu.memory_space<vmem>>) attributes {dimension_semantics = [#tpu.dimension_semantics<arbitrary>], iteration_bounds = array<i64: 1>, scalar_prefetch = 0 : i64, scratch_operands = 0 : i64, tpu.core_type = #tpu.core_type<tc>, window_params = [{pipeline_mode = #tpu.pipeline_mode<synchronous>, transform_indices = @transform_0, window_bounds = array<i64: 8, 32>}, {pipeline_mode = #tpu.pipeline_mode<synchronous>, transform_indices = @transform_1, window_bounds = array<i64: 32, 512>}, {pipeline_mode = #tpu.pipeline_mode<synchronous>, transform_indices = @transform_2, window_bounds = array<i64: 8, 1>}, {pipeline_mode = #tpu.pipeline_mode<synchronous>, transform_indices = @transform_3, window_bounds = array<i64: 8, 1>}, {pipeline_mode = #tpu.pipeline_mode<synchronous>, transform_indices = @transform_4, window_bounds = array<i64: 8, 1>}, {pipeline_mode = #tpu.pipeline_mode<synchronous>, transform_indices = @transform_5, window_bounds = array<i64: 8, 512>}]} {
    %c0 = arith.constant 0 : index
    %c0_0 = arith.constant 0 : index
    %0 = vector.load %arg1[%c0, %c0_0] : memref<8x32xf32, #tpu.memory_space<vmem>>, vector<8x32xf32>
    %c0_1 = arith.constant 0 : index
    %c0_2 = arith.constant 0 : index
    %1 = vector.load %arg2[%c0_1, %c0_2] : memref<32x512xf32, #tpu.memory_space<vmem>>, vector<32x512xf32>
    %cst = arith.constant dense<0.000000e+00> : vector<8x512xf32>
    %2 = tpu.matmul %0, %1, %cst {dimension_numbers = #tpu.dot_dimension_numbers<[1], [0], [0], [1], [0, 0, 1, 1], [], []>} : vector<8x32xf32>, vector<32x512xf32>, vector<8x512xf32> -> vector<8x512xf32>
    %c0_3 = arith.constant 0 : index
    %c0_4 = arith.constant 0 : index
    %3 = vector.load %arg3[%c0_3, %c0_4] : memref<8x1xf32, #tpu.memory_space<vmem>>, vector<8x1xf32>
    %4 = vector.broadcast %3 : vector<8x1xf32> to vector<8x512xf32>
    %5 = arith.addf %2, %4 : vector<8x512xf32>
    %c0_5 = arith.constant 0 : index
    %c0_6 = arith.constant 0 : index
    %6 = vector.load %arg4[%c0_5, %c0_6] : memref<8x1xf32, #tpu.memory_space<vmem>>, vector<8x1xf32>
    %c0_7 = arith.constant 0 : index
    %c0_8 = arith.constant 0 : index
    %7 = vector.load %arg5[%c0_7, %c0_8] : memref<8x1xf32, #tpu.memory_space<vmem>>, vector<8x1xf32>
    %8 = tpu.iota {dimensions = array<i32: 1>} : vector<1x512xi32>
    %c432_i32 = arith.constant 432 : i32
    %9 = vector.broadcast %c432_i32 : i32 to vector<1x512xi32>
    %10 = arith.cmpi slt, %8, %9 : vector<1x512xi32>
    %11 = arith.extui %10 : vector<1x512xi1> to vector<1x512xi32>
    %12 = arith.sitofp %11 : vector<1x512xi32> to vector<1x512xf32>
    %13 = vector.broadcast %12 : vector<1x512xf32> to vector<8x512xf32>
    %14 = arith.mulf %5, %13 : vector<8x512xf32>
    %cst_9 = arith.constant dense<0.000000e+00> : vector<8xf32>
    %15 = vector.multi_reduction <add>, %14, %cst_9 [1] : vector<8x512xf32> to vector<8xf32>
    %16 = vector.shape_cast %15 : vector<8xf32> to vector<8x1xf32>
    %cst_10 = arith.constant 0.00231481483 : f32
    %17 = vector.broadcast %cst_10 : f32 to vector<8x1xf32>
    %18 = arith.mulf %16, %17 : vector<8x1xf32>
    %19 = vector.broadcast %18 : vector<8x1xf32> to vector<8x512xf32>
    %20 = arith.subf %5, %19 : vector<8x512xf32>
    %21 = vector.broadcast %12 : vector<1x512xf32> to vector<8x512xf32>
    %22 = arith.mulf %20, %21 : vector<8x512xf32>
    %23 = arith.mulf %22, %22 : vector<8x512xf32>
    %cst_11 = arith.constant dense<0.000000e+00> : vector<8xf32>
    %24 = vector.multi_reduction <add>, %23, %cst_11 [1] : vector<8x512xf32> to vector<8xf32>
    %25 = vector.shape_cast %24 : vector<8xf32> to vector<8x1xf32>
    %cst_12 = arith.constant 0.00231481483 : f32
    %26 = vector.broadcast %cst_12 : f32 to vector<8x1xf32>
    %27 = arith.mulf %25, %26 : vector<8x1xf32>
    %28 = vector.broadcast %18 : vector<8x1xf32> to vector<8x512xf32>
    %29 = arith.subf %5, %28 : vector<8x512xf32>
    %cst_13 = arith.constant 9.99999974E-6 : f32
    %30 = vector.broadcast %cst_13 : f32 to vector<8x1xf32>
    %31 = arith.addf %27, %30 : vector<8x1xf32>
    %32 = math.rsqrt %31 : vector<8x1xf32>
    %33 = vector.broadcast %32 : vector<8x1xf32> to vector<8x512xf32>
    %34 = arith.mulf %29, %33 : vector<8x512xf32>
    %35 = vector.broadcast %6 : vector<8x1xf32> to vector<8x512xf32>
    %36 = arith.mulf %34, %35 : vector<8x512xf32>
    %37 = vector.broadcast %7 : vector<8x1xf32> to vector<8x512xf32>
    %38 = arith.addf %36, %37 : vector<8x512xf32>
    %c0_14 = arith.constant 0 : index
    %c0_15 = arith.constant 0 : index
    %39 = vector.load %arg6[%c0_14, %c0_15] : memref<8x512xf32, #tpu.memory_space<vmem>>, vector<8x512xf32>
    tpu.vector_store %arg6[%c0_14, %c0_15], %38 {strides = array<i32>} : memref<8x512xf32, #tpu.memory_space<vmem>>, vector<8x512xf32>,
    return
  }
  func.func @transform_0(%arg0: i32) -> (i32, i32) {
    %c0_i32 = arith.constant 0 : i32
    %c0_i32_0 = arith.constant 0 : i32
    %c0_i32_1 = arith.constant 0 : i32
    return %c0_i32, %c0_i32_0 : i32, i32
  }
  func.func @transform_1(%arg0: i32) -> (i32, i32) {
    %c0_i32 = arith.constant 0 : i32
    %c0_i32_0 = arith.constant 0 : i32
    %c0_i32_1 = arith.constant 0 : i32
    return %c0_i32, %c0_i32_0 : i32, i32
  }
  func.func @transform_2(%arg0: i32) -> (i32, i32) {
    %c0_i32 = arith.constant 0 : i32
    %c0_i32_0 = arith.constant 0 : i32
    %c0_i32_1 = arith.constant 0 : i32
    return %c0_i32, %c0_i32_0 : i32, i32
  }
  func.func @transform_3(%arg0: i32) -> (i32, i32) {
    %c0_i32 = arith.constant 0 : i32
    %c0_i32_0 = arith.constant 0 : i32
    %c0_i32_1 = arith.constant 0 : i32
    return %c0_i32, %c0_i32_0 : i32, i32
  }
  func.func @transform_4(%arg0: i32) -> (i32, i32) {
    %c0_i32 = arith.constant 0 : i32
    %c0_i32_0 = arith.constant 0 : i32
    %c0_i32_1 = arith.constant 0 : i32
    return %c0_i32, %c0_i32_0 : i32, i32
  }
  func.func @transform_5(%arg0: i32) -> (i32, i32) {
    %c0_i32 = arith.constant 0 : i32
    %c0_i32_0 = arith.constant 0 : i32
    %c0_i32_1 = arith.constant 0 : i32
    return %c0_i32, %c0_i32_0 : i32, i32
  }
}

module attributes {stable_mosaic.version = 11 : i64} {
  func.func @_maxpool_kernel(%arg0: i32, %arg1: memref<8x512xf32, #tpu.memory_space<vmem>>, %arg2: memref<1x512xf32, #tpu.memory_space<vmem>>) attributes {dimension_semantics = [#tpu.dimension_semantics<arbitrary>], iteration_bounds = array<i64: 1>, scalar_prefetch = 0 : i64, scratch_operands = 0 : i64, tpu.core_type = #tpu.core_type<tc>, window_params = [{pipeline_mode = #tpu.pipeline_mode<synchronous>, transform_indices = @transform_0, window_bounds = array<i64: 8, 512>}, {pipeline_mode = #tpu.pipeline_mode<synchronous>, transform_indices = @transform_1, window_bounds = array<i64: 1, 512>}]} {
    %c0 = arith.constant 0 : index
    %c0_0 = arith.constant 0 : index
    %0 = vector.load %arg1[%c0, %c0_0] : memref<8x512xf32, #tpu.memory_space<vmem>>, vector<8x512xf32>
    %cst = arith.constant dense<0xFF800000> : vector<512xf32>
    %1 = vector.multi_reduction <maximumf>, %0, %cst [0] : vector<8x512xf32> to vector<512xf32>
    %2 = vector.shape_cast %1 : vector<512xf32> to vector<1x512xf32>
    %c0_1 = arith.constant 0 : index
    %c0_2 = arith.constant 0 : index
    %3 = vector.load %arg2[%c0_1, %c0_2] : memref<1x512xf32, #tpu.memory_space<vmem>>, vector<1x512xf32>
    tpu.vector_store %arg2[%c0_1, %c0_2], %2 {strides = array<i32>} : memref<1x512xf32, #tpu.memory_space<vmem>>, vector<1x512xf32>,
    return
  }
  func.func @transform_0(%arg0: i32) -> (i32, i32) {
    %c0_i32 = arith.constant 0 : i32
    %c0_i32_0 = arith.constant 0 : i32
    %c0_i32_1 = arith.constant 0 : i32
    return %c0_i32, %c0_i32_0 : i32, i32
  }
  func.func @transform_1(%arg0: i32) -> (i32, i32) {
    %c0_i32 = arith.constant 0 : i32
    %c0_i32_0 = arith.constant 0 : i32
    %c0_i32_1 = arith.constant 0 : i32
    return %c0_i32, %c0_i32_0 : i32, i32
  }
}

module attributes {stable_mosaic.version = 11 : i64} {
  func.func @kernel(%arg0: i32, %arg1: memref<16x216xf32, #tpu.memory_space<vmem>>, %arg2: memref<216x128xf32, #tpu.memory_space<vmem>>, %arg3: memref<16x1xf32, #tpu.memory_space<vmem>>, %arg4: memref<16x1xf32, #tpu.memory_space<vmem>>, %arg5: memref<16x1xf32, #tpu.memory_space<vmem>>, %arg6: memref<16x128xf32, #tpu.memory_space<vmem>>) attributes {dimension_semantics = [#tpu.dimension_semantics<arbitrary>], iteration_bounds = array<i64: 1>, scalar_prefetch = 0 : i64, scratch_operands = 0 : i64, tpu.core_type = #tpu.core_type<tc>, window_params = [{pipeline_mode = #tpu.pipeline_mode<synchronous>, transform_indices = @transform_0, window_bounds = array<i64: 16, 216>}, {pipeline_mode = #tpu.pipeline_mode<synchronous>, transform_indices = @transform_1, window_bounds = array<i64: 216, 128>}, {pipeline_mode = #tpu.pipeline_mode<synchronous>, transform_indices = @transform_2, window_bounds = array<i64: 16, 1>}, {pipeline_mode = #tpu.pipeline_mode<synchronous>, transform_indices = @transform_3, window_bounds = array<i64: 16, 1>}, {pipeline_mode = #tpu.pipeline_mode<synchronous>, transform_indices = @transform_4, window_bounds = array<i64: 16, 1>}, {pipeline_mode = #tpu.pipeline_mode<synchronous>, transform_indices = @transform_5, window_bounds = array<i64: 16, 128>}]} {
    %c0 = arith.constant 0 : index
    %c0_0 = arith.constant 0 : index
    %0 = vector.load %arg1[%c0, %c0_0] : memref<16x216xf32, #tpu.memory_space<vmem>>, vector<16x216xf32>
    %c0_1 = arith.constant 0 : index
    %c0_2 = arith.constant 0 : index
    %1 = vector.load %arg2[%c0_1, %c0_2] : memref<216x128xf32, #tpu.memory_space<vmem>>, vector<216x128xf32>
    %cst = arith.constant dense<0.000000e+00> : vector<16x128xf32>
    %2 = tpu.matmul %0, %1, %cst {dimension_numbers = #tpu.dot_dimension_numbers<[1], [0], [0], [1], [0, 0, 1, 1], [], []>} : vector<16x216xf32>, vector<216x128xf32>, vector<16x128xf32> -> vector<16x128xf32>
    %c0_3 = arith.constant 0 : index
    %c0_4 = arith.constant 0 : index
    %3 = vector.load %arg3[%c0_3, %c0_4] : memref<16x1xf32, #tpu.memory_space<vmem>>, vector<16x1xf32>
    %4 = vector.broadcast %3 : vector<16x1xf32> to vector<16x128xf32>
    %5 = arith.addf %2, %4 : vector<16x128xf32>
    %c0_5 = arith.constant 0 : index
    %c0_6 = arith.constant 0 : index
    %6 = vector.load %arg4[%c0_5, %c0_6] : memref<16x1xf32, #tpu.memory_space<vmem>>, vector<16x1xf32>
    %c0_7 = arith.constant 0 : index
    %c0_8 = arith.constant 0 : index
    %7 = vector.load %arg5[%c0_7, %c0_8] : memref<16x1xf32, #tpu.memory_space<vmem>>, vector<16x1xf32>
    %8 = tpu.iota {dimensions = array<i32: 1>} : vector<1x128xi32>
    %c16_i32 = arith.constant 16 : i32
    %9 = vector.broadcast %c16_i32 : i32 to vector<1x128xi32>
    %10 = arith.cmpi slt, %8, %9 : vector<1x128xi32>
    %11 = arith.extui %10 : vector<1x128xi1> to vector<1x128xi32>
    %12 = arith.sitofp %11 : vector<1x128xi32> to vector<1x128xf32>
    %13 = vector.broadcast %12 : vector<1x128xf32> to vector<16x128xf32>
    %14 = arith.mulf %5, %13 : vector<16x128xf32>
    %cst_9 = arith.constant dense<0.000000e+00> : vector<16xf32>
    %15 = vector.multi_reduction <add>, %14, %cst_9 [1] : vector<16x128xf32> to vector<16xf32>
    %16 = vector.shape_cast %15 : vector<16xf32> to vector<16x1xf32>
    %cst_10 = arith.constant 6.250000e-02 : f32
    %17 = vector.broadcast %cst_10 : f32 to vector<16x1xf32>
    %18 = arith.mulf %16, %17 : vector<16x1xf32>
    %19 = vector.broadcast %18 : vector<16x1xf32> to vector<16x128xf32>
    %20 = arith.subf %5, %19 : vector<16x128xf32>
    %21 = vector.broadcast %12 : vector<1x128xf32> to vector<16x128xf32>
    %22 = arith.mulf %20, %21 : vector<16x128xf32>
    %23 = arith.mulf %22, %22 : vector<16x128xf32>
    %cst_11 = arith.constant dense<0.000000e+00> : vector<16xf32>
    %24 = vector.multi_reduction <add>, %23, %cst_11 [1] : vector<16x128xf32> to vector<16xf32>
    %25 = vector.shape_cast %24 : vector<16xf32> to vector<16x1xf32>
    %cst_12 = arith.constant 6.250000e-02 : f32
    %26 = vector.broadcast %cst_12 : f32 to vector<16x1xf32>
    %27 = arith.mulf %25, %26 : vector<16x1xf32>
    %28 = vector.broadcast %18 : vector<16x1xf32> to vector<16x128xf32>
    %29 = arith.subf %5, %28 : vector<16x128xf32>
    %cst_13 = arith.constant 9.99999974E-6 : f32
    %30 = vector.broadcast %cst_13 : f32 to vector<16x1xf32>
    %31 = arith.addf %27, %30 : vector<16x1xf32>
    %32 = math.rsqrt %31 : vector<16x1xf32>
    %33 = vector.broadcast %32 : vector<16x1xf32> to vector<16x128xf32>
    %34 = arith.mulf %29, %33 : vector<16x128xf32>
    %35 = vector.broadcast %6 : vector<16x1xf32> to vector<16x128xf32>
    %36 = arith.mulf %34, %35 : vector<16x128xf32>
    %37 = vector.broadcast %7 : vector<16x1xf32> to vector<16x128xf32>
    %38 = arith.addf %36, %37 : vector<16x128xf32>
    %c0_14 = arith.constant 0 : index
    %c0_15 = arith.constant 0 : index
    %39 = vector.load %arg6[%c0_14, %c0_15] : memref<16x128xf32, #tpu.memory_space<vmem>>, vector<16x128xf32>
    tpu.vector_store %arg6[%c0_14, %c0_15], %38 {strides = array<i32>} : memref<16x128xf32, #tpu.memory_space<vmem>>, vector<16x128xf32>,
    return
  }
  func.func @transform_0(%arg0: i32) -> (i32, i32) {
    %c0_i32 = arith.constant 0 : i32
    %c0_i32_0 = arith.constant 0 : i32
    %c0_i32_1 = arith.constant 0 : i32
    return %c0_i32, %c0_i32_0 : i32, i32
  }
  func.func @transform_1(%arg0: i32) -> (i32, i32) {
    %c0_i32 = arith.constant 0 : i32
    %c0_i32_0 = arith.constant 0 : i32
    %c0_i32_1 = arith.constant 0 : i32
    return %c0_i32, %c0_i32_0 : i32, i32
  }
  func.func @transform_2(%arg0: i32) -> (i32, i32) {
    %c0_i32 = arith.constant 0 : i32
    %c0_i32_0 = arith.constant 0 : i32
    %c0_i32_1 = arith.constant 0 : i32
    return %c0_i32, %c0_i32_0 : i32, i32
  }
  func.func @transform_3(%arg0: i32) -> (i32, i32) {
    %c0_i32 = arith.constant 0 : i32
    %c0_i32_0 = arith.constant 0 : i32
    %c0_i32_1 = arith.constant 0 : i32
    return %c0_i32, %c0_i32_0 : i32, i32
  }
  func.func @transform_4(%arg0: i32) -> (i32, i32) {
    %c0_i32 = arith.constant 0 : i32
    %c0_i32_0 = arith.constant 0 : i32
    %c0_i32_1 = arith.constant 0 : i32
    return %c0_i32, %c0_i32_0 : i32, i32
  }
  func.func @transform_5(%arg0: i32) -> (i32, i32) {
    %c0_i32 = arith.constant 0 : i32
    %c0_i32_0 = arith.constant 0 : i32
    %c0_i32_1 = arith.constant 0 : i32
    return %c0_i32, %c0_i32_0 : i32, i32
  }
}

module attributes {stable_mosaic.version = 11 : i64} {
  func.func @kernel(%arg0: i32, %arg1: memref<16x432xf32, #tpu.memory_space<vmem>>, %arg2: memref<432x128xf32, #tpu.memory_space<vmem>>, %arg3: memref<16x1xf32, #tpu.memory_space<vmem>>, %arg4: memref<16x1xf32, #tpu.memory_space<vmem>>, %arg5: memref<16x1xf32, #tpu.memory_space<vmem>>, %arg6: memref<960x16xf32, #tpu.memory_space<vmem>>, %arg7: memref<16x128xf32, #tpu.memory_space<vmem>>, %arg8: memref<960x128xf32, #tpu.memory_space<vmem>>) attributes {dimension_semantics = [#tpu.dimension_semantics<arbitrary>], iteration_bounds = array<i64: 1>, scalar_prefetch = 0 : i64, scratch_operands = 0 : i64, tpu.core_type = #tpu.core_type<tc>, window_params = [{pipeline_mode = #tpu.pipeline_mode<synchronous>, transform_indices = @transform_0, window_bounds = array<i64: 16, 432>}, {pipeline_mode = #tpu.pipeline_mode<synchronous>, transform_indices = @transform_1, window_bounds = array<i64: 432, 128>}, {pipeline_mode = #tpu.pipeline_mode<synchronous>, transform_indices = @transform_2, window_bounds = array<i64: 16, 1>}, {pipeline_mode = #tpu.pipeline_mode<synchronous>, transform_indices = @transform_3, window_bounds = array<i64: 16, 1>}, {pipeline_mode = #tpu.pipeline_mode<synchronous>, transform_indices = @transform_4, window_bounds = array<i64: 16, 1>}, {pipeline_mode = #tpu.pipeline_mode<synchronous>, transform_indices = @transform_5, window_bounds = array<i64: 960, 16>}, {pipeline_mode = #tpu.pipeline_mode<synchronous>, transform_indices = @transform_6, window_bounds = array<i64: 16, 128>}, {pipeline_mode = #tpu.pipeline_mode<synchronous>, transform_indices = @transform_7, window_bounds = array<i64: 960, 128>}]} {
    %c0 = arith.constant 0 : index
    %c0_0 = arith.constant 0 : index
    %0 = vector.load %arg1[%c0, %c0_0] : memref<16x432xf32, #tpu.memory_space<vmem>>, vector<16x432xf32>
    %c0_1 = arith.constant 0 : index
    %c0_2 = arith.constant 0 : index
    %1 = vector.load %arg2[%c0_1, %c0_2] : memref<432x128xf32, #tpu.memory_space<vmem>>, vector<432x128xf32>
    %cst = arith.constant dense<0.000000e+00> : vector<16x128xf32>
    %2 = tpu.matmul %0, %1, %cst {dimension_numbers = #tpu.dot_dimension_numbers<[1], [0], [0], [1], [0, 0, 1, 1], [], []>} : vector<16x432xf32>, vector<432x128xf32>, vector<16x128xf32> -> vector<16x128xf32>
    %c0_3 = arith.constant 0 : index
    %c0_4 = arith.constant 0 : index
    %3 = vector.load %arg3[%c0_3, %c0_4] : memref<16x1xf32, #tpu.memory_space<vmem>>, vector<16x1xf32>
    %4 = vector.broadcast %3 : vector<16x1xf32> to vector<16x128xf32>
    %5 = arith.addf %2, %4 : vector<16x128xf32>
    %c0_5 = arith.constant 0 : index
    %c0_6 = arith.constant 0 : index
    %6 = vector.load %arg4[%c0_5, %c0_6] : memref<16x1xf32, #tpu.memory_space<vmem>>, vector<16x1xf32>
    %c0_7 = arith.constant 0 : index
    %c0_8 = arith.constant 0 : index
    %7 = vector.load %arg5[%c0_7, %c0_8] : memref<16x1xf32, #tpu.memory_space<vmem>>, vector<16x1xf32>
    %8 = tpu.iota {dimensions = array<i32: 1>} : vector<1x128xi32>
    %c16_i32 = arith.constant 16 : i32
    %9 = vector.broadcast %c16_i32 : i32 to vector<1x128xi32>
    %10 = arith.cmpi slt, %8, %9 : vector<1x128xi32>
    %11 = arith.extui %10 : vector<1x128xi1> to vector<1x128xi32>
    %12 = arith.sitofp %11 : vector<1x128xi32> to vector<1x128xf32>
    %13 = vector.broadcast %12 : vector<1x128xf32> to vector<16x128xf32>
    %14 = arith.mulf %5, %13 : vector<16x128xf32>
    %cst_9 = arith.constant dense<0.000000e+00> : vector<16xf32>
    %15 = vector.multi_reduction <add>, %14, %cst_9 [1] : vector<16x128xf32> to vector<16xf32>
    %16 = vector.shape_cast %15 : vector<16xf32> to vector<16x1xf32>
    %cst_10 = arith.constant 6.250000e-02 : f32
    %17 = vector.broadcast %cst_10 : f32 to vector<16x1xf32>
    %18 = arith.mulf %16, %17 : vector<16x1xf32>
    %19 = vector.broadcast %18 : vector<16x1xf32> to vector<16x128xf32>
    %20 = arith.subf %5, %19 : vector<16x128xf32>
    %21 = vector.broadcast %12 : vector<1x128xf32> to vector<16x128xf32>
    %22 = arith.mulf %20, %21 : vector<16x128xf32>
    %23 = arith.mulf %22, %22 : vector<16x128xf32>
    %cst_11 = arith.constant dense<0.000000e+00> : vector<16xf32>
    %24 = vector.multi_reduction <add>, %23, %cst_11 [1] : vector<16x128xf32> to vector<16xf32>
    %25 = vector.shape_cast %24 : vector<16xf32> to vector<16x1xf32>
    %cst_12 = arith.constant 6.250000e-02 : f32
    %26 = vector.broadcast %cst_12 : f32 to vector<16x1xf32>
    %27 = arith.mulf %25, %26 : vector<16x1xf32>
    %28 = vector.broadcast %18 : vector<16x1xf32> to vector<16x128xf32>
    %29 = arith.subf %5, %28 : vector<16x128xf32>
    %cst_13 = arith.constant 9.99999974E-6 : f32
    %30 = vector.broadcast %cst_13 : f32 to vector<16x1xf32>
    %31 = arith.addf %27, %30 : vector<16x1xf32>
    %32 = math.rsqrt %31 : vector<16x1xf32>
    %33 = vector.broadcast %32 : vector<16x1xf32> to vector<16x128xf32>
    %34 = arith.mulf %29, %33 : vector<16x128xf32>
    %35 = vector.broadcast %6 : vector<16x1xf32> to vector<16x128xf32>
    %36 = arith.mulf %34, %35 : vector<16x128xf32>
    %37 = vector.broadcast %7 : vector<16x1xf32> to vector<16x128xf32>
    %38 = arith.addf %36, %37 : vector<16x128xf32>
    %c0_14 = arith.constant 0 : index
    %c0_15 = arith.constant 0 : index
    %39 = vector.load %arg7[%c0_14, %c0_15] : memref<16x128xf32, #tpu.memory_space<vmem>>, vector<16x128xf32>
    tpu.vector_store %arg7[%c0_14, %c0_15], %38 {strides = array<i32>} : memref<16x128xf32, #tpu.memory_space<vmem>>, vector<16x128xf32>,
    %c0_16 = arith.constant 0 : index
    %c0_17 = arith.constant 0 : index
    %40 = vector.load %arg6[%c0_16, %c0_17] : memref<960x16xf32, #tpu.memory_space<vmem>>, vector<960x16xf32>
    %cst_18 = arith.constant dense<0.000000e+00> : vector<960x128xf32>
    %41 = tpu.matmul %40, %38, %cst_18 {dimension_numbers = #tpu.dot_dimension_numbers<[1], [0], [0], [1], [0, 0, 1, 1], [], []>} : vector<960x16xf32>, vector<16x128xf32>, vector<960x128xf32> -> vector<960x128xf32>
    %c0_19 = arith.constant 0 : index
    %c0_20 = arith.constant 0 : index
    %42 = vector.load %arg8[%c0_19, %c0_20] : memref<960x128xf32, #tpu.memory_space<vmem>>, vector<960x128xf32>
    tpu.vector_store %arg8[%c0_19, %c0_20], %41 {strides = array<i32>} : memref<960x128xf32, #tpu.memory_space<vmem>>, vector<960x128xf32>,
    return
  }
  func.func @transform_0(%arg0: i32) -> (i32, i32) {
    %c0_i32 = arith.constant 0 : i32
    %c0_i32_0 = arith.constant 0 : i32
    %c0_i32_1 = arith.constant 0 : i32
    return %c0_i32, %c0_i32_0 : i32, i32
  }
  func.func @transform_1(%arg0: i32) -> (i32, i32) {
    %c0_i32 = arith.constant 0 : i32
    %c0_i32_0 = arith.constant 0 : i32
    %c0_i32_1 = arith.constant 0 : i32
    return %c0_i32, %c0_i32_0 : i32, i32
  }
  func.func @transform_2(%arg0: i32) -> (i32, i32) {
    %c0_i32 = arith.constant 0 : i32
    %c0_i32_0 = arith.constant 0 : i32
    %c0_i32_1 = arith.constant 0 : i32
    return %c0_i32, %c0_i32_0 : i32, i32
  }
  func.func @transform_3(%arg0: i32) -> (i32, i32) {
    %c0_i32 = arith.constant 0 : i32
    %c0_i32_0 = arith.constant 0 : i32
    %c0_i32_1 = arith.constant 0 : i32
    return %c0_i32, %c0_i32_0 : i32, i32
  }
  func.func @transform_4(%arg0: i32) -> (i32, i32) {
    %c0_i32 = arith.constant 0 : i32
    %c0_i32_0 = arith.constant 0 : i32
    %c0_i32_1 = arith.constant 0 : i32
    return %c0_i32, %c0_i32_0 : i32, i32
  }
  func.func @transform_5(%arg0: i32) -> (i32, i32) {
    %c0_i32 = arith.constant 0 : i32
    %c0_i32_0 = arith.constant 0 : i32
    %c0_i32_1 = arith.constant 0 : i32
    return %c0_i32, %c0_i32_0 : i32, i32
  }
  func.func @transform_6(%arg0: i32) -> (i32, i32) {
    %c0_i32 = arith.constant 0 : i32
    %c0_i32_0 = arith.constant 0 : i32
    %c0_i32_1 = arith.constant 0 : i32
    return %c0_i32, %c0_i32_0 : i32, i32
  }
  func.func @transform_7(%arg0: i32) -> (i32, i32) {
    %c0_i32 = arith.constant 0 : i32
    %c0_i32_0 = arith.constant 0 : i32
    %c0_i32_1 = arith.constant 0 : i32
    return %c0_i32, %c0_i32_0 : i32, i32
  }
}

module attributes {stable_mosaic.version = 11 : i64} {
  func.func @kernel(%arg0: i32, %arg1: memref<16x512xf32, #tpu.memory_space<vmem>>, %arg2: memref<16x1xf32, #tpu.memory_space<vmem>>, %arg3: memref<16x1xf32, #tpu.memory_space<vmem>>, %arg4: memref<16x1xf32, #tpu.memory_space<vmem>>, %arg5: memref<1000x16xf32, #tpu.memory_space<vmem>>, %arg6: memref<1000x512xf32, #tpu.memory_space<vmem>>) attributes {dimension_semantics = [#tpu.dimension_semantics<arbitrary>], iteration_bounds = array<i64: 1>, scalar_prefetch = 0 : i64, scratch_operands = 0 : i64, tpu.core_type = #tpu.core_type<tc>, window_params = [{pipeline_mode = #tpu.pipeline_mode<synchronous>, transform_indices = @transform_0, window_bounds = array<i64: 16, 512>}, {pipeline_mode = #tpu.pipeline_mode<synchronous>, transform_indices = @transform_1, window_bounds = array<i64: 16, 1>}, {pipeline_mode = #tpu.pipeline_mode<synchronous>, transform_indices = @transform_2, window_bounds = array<i64: 16, 1>}, {pipeline_mode = #tpu.pipeline_mode<synchronous>, transform_indices = @transform_3, window_bounds = array<i64: 16, 1>}, {pipeline_mode = #tpu.pipeline_mode<synchronous>, transform_indices = @transform_4, window_bounds = array<i64: 1000, 16>}, {pipeline_mode = #tpu.pipeline_mode<synchronous>, transform_indices = @transform_5, window_bounds = array<i64: 1000, 512>}]} {
    %c0 = arith.constant 0 : index
    %c0_0 = arith.constant 0 : index
    %0 = vector.load %arg1[%c0, %c0_0] : memref<16x512xf32, #tpu.memory_space<vmem>>, vector<16x512xf32>
    %c0_1 = arith.constant 0 : index
    %c0_2 = arith.constant 0 : index
    %1 = vector.load %arg2[%c0_1, %c0_2] : memref<16x1xf32, #tpu.memory_space<vmem>>, vector<16x1xf32>
    %2 = vector.broadcast %1 : vector<16x1xf32> to vector<16x512xf32>
    %3 = arith.addf %0, %2 : vector<16x512xf32>
    %c0_3 = arith.constant 0 : index
    %c0_4 = arith.constant 0 : index
    %4 = vector.load %arg3[%c0_3, %c0_4] : memref<16x1xf32, #tpu.memory_space<vmem>>, vector<16x1xf32>
    %c0_5 = arith.constant 0 : index
    %c0_6 = arith.constant 0 : index
    %5 = vector.load %arg4[%c0_5, %c0_6] : memref<16x1xf32, #tpu.memory_space<vmem>>, vector<16x1xf32>
    %6 = tpu.iota {dimensions = array<i32: 1>} : vector<1x512xi32>
    %c420_i32 = arith.constant 420 : i32
    %7 = vector.broadcast %c420_i32 : i32 to vector<1x512xi32>
    %8 = arith.cmpi slt, %6, %7 : vector<1x512xi32>
    %9 = arith.extui %8 : vector<1x512xi1> to vector<1x512xi32>
    %10 = arith.sitofp %9 : vector<1x512xi32> to vector<1x512xf32>
    %11 = vector.broadcast %10 : vector<1x512xf32> to vector<16x512xf32>
    %12 = arith.mulf %3, %11 : vector<16x512xf32>
    %cst = arith.constant dense<0.000000e+00> : vector<16xf32>
    %13 = vector.multi_reduction <add>, %12, %cst [1] : vector<16x512xf32> to vector<16xf32>
    %14 = vector.shape_cast %13 : vector<16xf32> to vector<16x1xf32>
    %cst_7 = arith.constant 0.00238095247 : f32
    %15 = vector.broadcast %cst_7 : f32 to vector<16x1xf32>
    %16 = arith.mulf %14, %15 : vector<16x1xf32>
    %17 = vector.broadcast %16 : vector<16x1xf32> to vector<16x512xf32>
    %18 = arith.subf %3, %17 : vector<16x512xf32>
    %19 = vector.broadcast %10 : vector<1x512xf32> to vector<16x512xf32>
    %20 = arith.mulf %18, %19 : vector<16x512xf32>
    %21 = arith.mulf %20, %20 : vector<16x512xf32>
    %cst_8 = arith.constant dense<0.000000e+00> : vector<16xf32>
    %22 = vector.multi_reduction <add>, %21, %cst_8 [1] : vector<16x512xf32> to vector<16xf32>
    %23 = vector.shape_cast %22 : vector<16xf32> to vector<16x1xf32>
    %cst_9 = arith.constant 0.00238095247 : f32
    %24 = vector.broadcast %cst_9 : f32 to vector<16x1xf32>
    %25 = arith.mulf %23, %24 : vector<16x1xf32>
    %26 = vector.broadcast %16 : vector<16x1xf32> to vector<16x512xf32>
    %27 = arith.subf %3, %26 : vector<16x512xf32>
    %cst_10 = arith.constant 9.99999974E-6 : f32
    %28 = vector.broadcast %cst_10 : f32 to vector<16x1xf32>
    %29 = arith.addf %25, %28 : vector<16x1xf32>
    %30 = math.rsqrt %29 : vector<16x1xf32>
    %31 = vector.broadcast %30 : vector<16x1xf32> to vector<16x512xf32>
    %32 = arith.mulf %27, %31 : vector<16x512xf32>
    %33 = vector.broadcast %4 : vector<16x1xf32> to vector<16x512xf32>
    %34 = arith.mulf %32, %33 : vector<16x512xf32>
    %35 = vector.broadcast %5 : vector<16x1xf32> to vector<16x512xf32>
    %36 = arith.addf %34, %35 : vector<16x512xf32>
    %c0_11 = arith.constant 0 : index
    %c0_12 = arith.constant 0 : index
    %37 = vector.load %arg5[%c0_11, %c0_12] : memref<1000x16xf32, #tpu.memory_space<vmem>>, vector<1000x16xf32>
    %cst_13 = arith.constant dense<0.000000e+00> : vector<1000x512xf32>
    %38 = tpu.matmul %37, %36, %cst_13 {dimension_numbers = #tpu.dot_dimension_numbers<[1], [0], [0], [1], [0, 0, 1, 1], [], []>} : vector<1000x16xf32>, vector<16x512xf32>, vector<1000x512xf32> -> vector<1000x512xf32>
    %c0_14 = arith.constant 0 : index
    %c0_15 = arith.constant 0 : index
    %39 = vector.load %arg6[%c0_14, %c0_15] : memref<1000x512xf32, #tpu.memory_space<vmem>>, vector<1000x512xf32>
    tpu.vector_store %arg6[%c0_14, %c0_15], %38 {strides = array<i32>} : memref<1000x512xf32, #tpu.memory_space<vmem>>, vector<1000x512xf32>,
    return
  }
  func.func @transform_0(%arg0: i32) -> (i32, i32) {
    %c0_i32 = arith.constant 0 : i32
    %c0_i32_0 = arith.constant 0 : i32
    %c0_i32_1 = arith.constant 0 : i32
    return %c0_i32, %c0_i32_0 : i32, i32
  }
  func.func @transform_1(%arg0: i32) -> (i32, i32) {
    %c0_i32 = arith.constant 0 : i32
    %c0_i32_0 = arith.constant 0 : i32
    %c0_i32_1 = arith.constant 0 : i32
    return %c0_i32, %c0_i32_0 : i32, i32
  }
  func.func @transform_2(%arg0: i32) -> (i32, i32) {
    %c0_i32 = arith.constant 0 : i32
    %c0_i32_0 = arith.constant 0 : i32
    %c0_i32_1 = arith.constant 0 : i32
    return %c0_i32, %c0_i32_0 : i32, i32
  }
  func.func @transform_3(%arg0: i32) -> (i32, i32) {
    %c0_i32 = arith.constant 0 : i32
    %c0_i32_0 = arith.constant 0 : i32
    %c0_i32_1 = arith.constant 0 : i32
    return %c0_i32, %c0_i32_0 : i32, i32
  }
  func.func @transform_4(%arg0: i32) -> (i32, i32) {
    %c0_i32 = arith.constant 0 : i32
    %c0_i32_0 = arith.constant 0 : i32
    %c0_i32_1 = arith.constant 0 : i32
    return %c0_i32, %c0_i32_0 : i32, i32
  }
  func.func @transform_5(%arg0: i32) -> (i32, i32) {
    %c0_i32 = arith.constant 0 : i32
    %c0_i32_0 = arith.constant 0 : i32
    %c0_i32_1 = arith.constant 0 : i32
    return %c0_i32, %c0_i32_0 : i32, i32
  }
}

module attributes {stable_mosaic.version = 11 : i64} {
  func.func @kernel(%arg0: i32, %arg1: memref<8x4352xf32, #tpu.memory_space<vmem>>, %arg2: memref<8x1xf32, #tpu.memory_space<vmem>>, %arg3: memref<8x1xf32, #tpu.memory_space<vmem>>, %arg4: memref<8x1xf32, #tpu.memory_space<vmem>>, %arg5: memref<8x8xf32, #tpu.memory_space<vmem>>, %arg6: memref<8x4352xf32, #tpu.memory_space<vmem>>) attributes {dimension_semantics = [#tpu.dimension_semantics<arbitrary>], iteration_bounds = array<i64: 1>, scalar_prefetch = 0 : i64, scratch_operands = 0 : i64, tpu.core_type = #tpu.core_type<tc>, window_params = [{pipeline_mode = #tpu.pipeline_mode<synchronous>, transform_indices = @transform_0, window_bounds = array<i64: 8, 4352>}, {pipeline_mode = #tpu.pipeline_mode<synchronous>, transform_indices = @transform_1, window_bounds = array<i64: 8, 1>}, {pipeline_mode = #tpu.pipeline_mode<synchronous>, transform_indices = @transform_2, window_bounds = array<i64: 8, 1>}, {pipeline_mode = #tpu.pipeline_mode<synchronous>, transform_indices = @transform_3, window_bounds = array<i64: 8, 1>}, {pipeline_mode = #tpu.pipeline_mode<synchronous>, transform_indices = @transform_4, window_bounds = array<i64: 8, 8>}, {pipeline_mode = #tpu.pipeline_mode<synchronous>, transform_indices = @transform_5, window_bounds = array<i64: 8, 4352>}]} {
    %c0 = arith.constant 0 : index
    %c0_0 = arith.constant 0 : index
    %0 = vector.load %arg1[%c0, %c0_0] : memref<8x4352xf32, #tpu.memory_space<vmem>>, vector<8x4352xf32>
    %c0_1 = arith.constant 0 : index
    %c0_2 = arith.constant 0 : index
    %1 = vector.load %arg2[%c0_1, %c0_2] : memref<8x1xf32, #tpu.memory_space<vmem>>, vector<8x1xf32>
    %2 = vector.broadcast %1 : vector<8x1xf32> to vector<8x4352xf32>
    %3 = arith.addf %0, %2 : vector<8x4352xf32>
    %c0_3 = arith.constant 0 : index
    %c0_4 = arith.constant 0 : index
    %4 = vector.load %arg3[%c0_3, %c0_4] : memref<8x1xf32, #tpu.memory_space<vmem>>, vector<8x1xf32>
    %c0_5 = arith.constant 0 : index
    %c0_6 = arith.constant 0 : index
    %5 = vector.load %arg4[%c0_5, %c0_6] : memref<8x1xf32, #tpu.memory_space<vmem>>, vector<8x1xf32>
    %6 = tpu.iota {dimensions = array<i32: 1>} : vector<1x4352xi32>
    %c4290_i32 = arith.constant 4290 : i32
    %7 = vector.broadcast %c4290_i32 : i32 to vector<1x4352xi32>
    %8 = arith.cmpi slt, %6, %7 : vector<1x4352xi32>
    %9 = arith.extui %8 : vector<1x4352xi1> to vector<1x4352xi32>
    %10 = arith.sitofp %9 : vector<1x4352xi32> to vector<1x4352xf32>
    %11 = vector.broadcast %10 : vector<1x4352xf32> to vector<8x4352xf32>
    %12 = arith.mulf %3, %11 : vector<8x4352xf32>
    %cst = arith.constant dense<0.000000e+00> : vector<8xf32>
    %13 = vector.multi_reduction <add>, %12, %cst [1] : vector<8x4352xf32> to vector<8xf32>
    %14 = vector.shape_cast %13 : vector<8xf32> to vector<8x1xf32>
    %cst_7 = arith.constant 2.33100232E-4 : f32
    %15 = vector.broadcast %cst_7 : f32 to vector<8x1xf32>
    %16 = arith.mulf %14, %15 : vector<8x1xf32>
    %17 = vector.broadcast %16 : vector<8x1xf32> to vector<8x4352xf32>
    %18 = arith.subf %3, %17 : vector<8x4352xf32>
    %19 = vector.broadcast %10 : vector<1x4352xf32> to vector<8x4352xf32>
    %20 = arith.mulf %18, %19 : vector<8x4352xf32>
    %21 = arith.mulf %20, %20 : vector<8x4352xf32>
    %cst_8 = arith.constant dense<0.000000e+00> : vector<8xf32>
    %22 = vector.multi_reduction <add>, %21, %cst_8 [1] : vector<8x4352xf32> to vector<8xf32>
    %23 = vector.shape_cast %22 : vector<8xf32> to vector<8x1xf32>
    %cst_9 = arith.constant 2.33100232E-4 : f32
    %24 = vector.broadcast %cst_9 : f32 to vector<8x1xf32>
    %25 = arith.mulf %23, %24 : vector<8x1xf32>
    %26 = vector.broadcast %16 : vector<8x1xf32> to vector<8x4352xf32>
    %27 = arith.subf %3, %26 : vector<8x4352xf32>
    %cst_10 = arith.constant 9.99999974E-6 : f32
    %28 = vector.broadcast %cst_10 : f32 to vector<8x1xf32>
    %29 = arith.addf %25, %28 : vector<8x1xf32>
    %30 = math.rsqrt %29 : vector<8x1xf32>
    %31 = vector.broadcast %30 : vector<8x1xf32> to vector<8x4352xf32>
    %32 = arith.mulf %27, %31 : vector<8x4352xf32>
    %33 = vector.broadcast %4 : vector<8x1xf32> to vector<8x4352xf32>
    %34 = arith.mulf %32, %33 : vector<8x4352xf32>
    %35 = vector.broadcast %5 : vector<8x1xf32> to vector<8x4352xf32>
    %36 = arith.addf %34, %35 : vector<8x4352xf32>
    %c0_11 = arith.constant 0 : index
    %c0_12 = arith.constant 0 : index
    %37 = vector.load %arg5[%c0_11, %c0_12] : memref<8x8xf32, #tpu.memory_space<vmem>>, vector<8x8xf32>
    %cst_13 = arith.constant dense<0.000000e+00> : vector<8x4352xf32>
    %38 = tpu.matmul %37, %36, %cst_13 {dimension_numbers = #tpu.dot_dimension_numbers<[1], [0], [0], [1], [0, 0, 1, 1], [], []>} : vector<8x8xf32>, vector<8x4352xf32>, vector<8x4352xf32> -> vector<8x4352xf32>
    %c0_14 = arith.constant 0 : index
    %c0_15 = arith.constant 0 : index
    %39 = vector.load %arg6[%c0_14, %c0_15] : memref<8x4352xf32, #tpu.memory_space<vmem>>, vector<8x4352xf32>
    tpu.vector_store %arg6[%c0_14, %c0_15], %38 {strides = array<i32>} : memref<8x4352xf32, #tpu.memory_space<vmem>>, vector<8x4352xf32>,
    return
  }
  func.func @transform_0(%arg0: i32) -> (i32, i32) {
    %c0_i32 = arith.constant 0 : i32
    %c0_i32_0 = arith.constant 0 : i32
    %c0_i32_1 = arith.constant 0 : i32
    return %c0_i32, %c0_i32_0 : i32, i32
  }
  func.func @transform_1(%arg0: i32) -> (i32, i32) {
    %c0_i32 = arith.constant 0 : i32
    %c0_i32_0 = arith.constant 0 : i32
    %c0_i32_1 = arith.constant 0 : i32
    return %c0_i32, %c0_i32_0 : i32, i32
  }
  func.func @transform_2(%arg0: i32) -> (i32, i32) {
    %c0_i32 = arith.constant 0 : i32
    %c0_i32_0 = arith.constant 0 : i32
    %c0_i32_1 = arith.constant 0 : i32
    return %c0_i32, %c0_i32_0 : i32, i32
  }
  func.func @transform_3(%arg0: i32) -> (i32, i32) {
    %c0_i32 = arith.constant 0 : i32
    %c0_i32_0 = arith.constant 0 : i32
    %c0_i32_1 = arith.constant 0 : i32
    return %c0_i32, %c0_i32_0 : i32, i32
  }
  func.func @transform_4(%arg0: i32) -> (i32, i32) {
    %c0_i32 = arith.constant 0 : i32
    %c0_i32_0 = arith.constant 0 : i32
    %c0_i32_1 = arith.constant 0 : i32
    return %c0_i32, %c0_i32_0 : i32, i32
  }
  func.func @transform_5(%arg0: i32) -> (i32, i32) {
    %c0_i32 = arith.constant 0 : i32
    %c0_i32_0 = arith.constant 0 : i32
    %c0_i32_1 = arith.constant 0 : i32
    return %c0_i32, %c0_i32_0 : i32, i32
  }
}

module attributes {stable_mosaic.version = 11 : i64} {
  func.func @kernel(%arg0: i32, %arg1: memref<1x26880xf32, #tpu.memory_space<vmem>>, %arg2: memref<1x1xf32, #tpu.memory_space<vmem>>, %arg3: memref<1x1xf32, #tpu.memory_space<vmem>>, %arg4: memref<1x1xf32, #tpu.memory_space<vmem>>, %arg5: memref<1x26880xf32, #tpu.memory_space<vmem>>) attributes {dimension_semantics = [#tpu.dimension_semantics<arbitrary>], iteration_bounds = array<i64: 1>, scalar_prefetch = 0 : i64, scratch_operands = 0 : i64, tpu.core_type = #tpu.core_type<tc>, window_params = [{pipeline_mode = #tpu.pipeline_mode<synchronous>, transform_indices = @transform_0, window_bounds = array<i64: 1, 26880>}, {pipeline_mode = #tpu.pipeline_mode<synchronous>, transform_indices = @transform_1, window_bounds = array<i64: 1, 1>}, {pipeline_mode = #tpu.pipeline_mode<synchronous>, transform_indices = @transform_2, window_bounds = array<i64: 1, 1>}, {pipeline_mode = #tpu.pipeline_mode<synchronous>, transform_indices = @transform_3, window_bounds = array<i64: 1, 1>}, {pipeline_mode = #tpu.pipeline_mode<synchronous>, transform_indices = @transform_4, window_bounds = array<i64: 1, 26880>}]} {
    %c0 = arith.constant 0 : index
    %c0_0 = arith.constant 0 : index
    %0 = vector.load %arg1[%c0, %c0_0] : memref<1x26880xf32, #tpu.memory_space<vmem>>, vector<1x26880xf32>
    %c0_1 = arith.constant 0 : index
    %c0_2 = arith.constant 0 : index
    %1 = vector.load %arg2[%c0_1, %c0_2] : memref<1x1xf32, #tpu.memory_space<vmem>>, vector<1x1xf32>
    %2 = vector.broadcast %1 : vector<1x1xf32> to vector<1x26880xf32>
    %3 = arith.addf %0, %2 : vector<1x26880xf32>
    %c0_3 = arith.constant 0 : index
    %c0_4 = arith.constant 0 : index
    %4 = vector.load %arg3[%c0_3, %c0_4] : memref<1x1xf32, #tpu.memory_space<vmem>>, vector<1x1xf32>
    %c0_5 = arith.constant 0 : index
    %c0_6 = arith.constant 0 : index
    %5 = vector.load %arg4[%c0_5, %c0_6] : memref<1x1xf32, #tpu.memory_space<vmem>>, vector<1x1xf32>
    %cst = arith.constant dense<0.000000e+00> : vector<1xf32>
    %6 = vector.multi_reduction <add>, %3, %cst [1] : vector<1x26880xf32> to vector<1xf32>
    %7 = vector.shape_cast %6 : vector<1xf32> to vector<1x1xf32>
    %cst_7 = arith.constant 3.72023824E-5 : f32
    %8 = vector.broadcast %cst_7 : f32 to vector<1x1xf32>
    %9 = arith.mulf %7, %8 : vector<1x1xf32>
    %10 = vector.broadcast %9 : vector<1x1xf32> to vector<1x26880xf32>
    %11 = arith.subf %3, %10 : vector<1x26880xf32>
    %12 = arith.mulf %11, %11 : vector<1x26880xf32>
    %cst_8 = arith.constant dense<0.000000e+00> : vector<1xf32>
    %13 = vector.multi_reduction <add>, %12, %cst_8 [1] : vector<1x26880xf32> to vector<1xf32>
    %14 = vector.shape_cast %13 : vector<1xf32> to vector<1x1xf32>
    %cst_9 = arith.constant 3.72023824E-5 : f32
    %15 = vector.broadcast %cst_9 : f32 to vector<1x1xf32>
    %16 = arith.mulf %14, %15 : vector<1x1xf32>
    %17 = vector.broadcast %9 : vector<1x1xf32> to vector<1x26880xf32>
    %18 = arith.subf %3, %17 : vector<1x26880xf32>
    %cst_10 = arith.constant 9.99999974E-6 : f32
    %19 = vector.broadcast %cst_10 : f32 to vector<1x1xf32>
    %20 = arith.addf %16, %19 : vector<1x1xf32>
    %21 = math.rsqrt %20 : vector<1x1xf32>
    %22 = vector.broadcast %21 : vector<1x1xf32> to vector<1x26880xf32>
    %23 = arith.mulf %18, %22 : vector<1x26880xf32>
    %24 = vector.broadcast %4 : vector<1x1xf32> to vector<1x26880xf32>
    %25 = arith.mulf %23, %24 : vector<1x26880xf32>
    %26 = vector.broadcast %5 : vector<1x1xf32> to vector<1x26880xf32>
    %27 = arith.addf %25, %26 : vector<1x26880xf32>
    %28 = math.tanh %27 : vector<1x26880xf32>
    %c0_11 = arith.constant 0 : index
    %c0_12 = arith.constant 0 : index
    %29 = vector.load %arg5[%c0_11, %c0_12] : memref<1x26880xf32, #tpu.memory_space<vmem>>, vector<1x26880xf32>
    tpu.vector_store %arg5[%c0_11, %c0_12], %28 {strides = array<i32>} : memref<1x26880xf32, #tpu.memory_space<vmem>>, vector<1x26880xf32>,
    return
  }
  func.func @transform_0(%arg0: i32) -> (i32, i32) {
    %c0_i32 = arith.constant 0 : i32
    %c0_i32_0 = arith.constant 0 : i32
    %c0_i32_1 = arith.constant 0 : i32
    return %c0_i32, %c0_i32_0 : i32, i32
  }
  func.func @transform_1(%arg0: i32) -> (i32, i32) {
    %c0_i32 = arith.constant 0 : i32
    %c0_i32_0 = arith.constant 0 : i32
    %c0_i32_1 = arith.constant 0 : i32
    return %c0_i32, %c0_i32_0 : i32, i32
  }
  func.func @transform_2(%arg0: i32) -> (i32, i32) {
    %c0_i32 = arith.constant 0 : i32
    %c0_i32_0 = arith.constant 0 : i32
    %c0_i32_1 = arith.constant 0 : i32
    return %c0_i32, %c0_i32_0 : i32, i32
  }
  func.func @transform_3(%arg0: i32) -> (i32, i32) {
    %c0_i32 = arith.constant 0 : i32
    %c0_i32_0 = arith.constant 0 : i32
    %c0_i32_1 = arith.constant 0 : i32
    return %c0_i32, %c0_i32_0 : i32, i32
  }
  func.func @transform_4(%arg0: i32) -> (i32, i32) {
    %c0_i32 = arith.constant 0 : i32
    %c0_i32_0 = arith.constant 0 : i32
    %c0_i32_1 = arith.constant 0 : i32
    return %c0_i32, %c0_i32_0 : i32, i32
  }
}

</mosaic_0001>

<bundles_post_ra>
// kernel: cnn_autoencoder_forward.7
= control target key start
LH: loop header
LB: loop body
LE: loop exit
PB: predicated region body
PF: predicated region fallthrough
CT: control target
= control target key end

     0   :  { %v227_v3 = vmov 0   ;;  %vm43_vm0 = vcmask 261120   ;;  %v129_v19 = vlaneseq  ;;  %v228_v30 = vmov 0.0   ;;  %s331_s1 = inlined_call_operand.vmem [shape: f32[32,512], index: 1, kind: input, shape index: {}]   ;;  %s332_s0 = inlined_call_operand.vmem [shape: f32[8,32], index: 0, kind: input, shape index: {}]   ;;  %s333_s2 = inlined_call_operand.vmem [shape: f32[8,1], index: 2, kind: input, shape index: {}]   ;;  %s334_s4 = inlined_call_operand.vmem [shape: f32[8,1], index: 4, kind: input, shape index: {}]   ;;  %s335_s3 = inlined_call_operand.vmem [shape: f32[8,1], index: 3, kind: input, shape index: {}]   ;;  %s336_s5 = inlined_call_operand.vmem [shape: f32[8,512], index: 5, kind: output, shape index: {}]  }
   0x1   :  { %v35_v0 = vld [vmem:[%s331_s1 + $0x70] sm:$0xff]  ;;  %v36_v1 = vld [vmem:[%s331_s1 + $0x78] sm:$0xff]  ;;  %222 = vset.pattern.permute.xlu0 %v227_v3  ;;  %223 = vset.pattern.permute.xlu1 %v227_v3  ;;  %v33_v5 = vld [vmem:[%s331_s1 + $0x60] sm:$0xff] }
   0x2   :  { %v31_v2 = vld [vmem:[%s331_s1 + $0x50] sm:$0xff]  ;;  %99 = vmatpush.msra.mxu2 %v35_v0  ;;  %119 = vmatpush.msra.mxu3 %v36_v1  ;;  %v32_v4 = vld [vmem:[%s331_s1 + $0x58] sm:$0xff]  ;;  %v34_v6 = vld [vmem:[%s331_s1 + $0x68] sm:$0xff]  ;;  %v130_v20 = vand.u32 127, %v129_v19 }
   0x3   :  { %59 = vmatpush.msra.mxu0 %v33_v5  ;;  %79 = vmatpush.msra.mxu1 %v34_v6  ;;  %v27_v7 = vld [vmem:[%s331_s1 + $0x30] sm:$0xff]  ;;  %v28_v8 = vld [vmem:[%s331_s1 + $0x38] sm:$0xff]  ;;  %v29_v9 = vld [vmem:[%s331_s1 + $0x40] sm:$0xff] }
   0x4   :  { %100 = vmatpush.msra.mxu2 %v31_v2  ;;  %120 = vmatpush.msra.mxu3 %v32_v4  ;;  %v30_v10 = vld [vmem:[%s331_s1 + $0x48] sm:$0xff]  ;;  %v23_v11 = vld [vmem:[%s331_s1 + $0x10] sm:$0xff]  ;;  %v24_v12 = vld [vmem:[%s331_s1 + $0x18] sm:$0xff]  ;;  %v133_v21 = vadd.s32 384, %v130_v20 }
   0x5   :  { %60 = vmatpush.msra.mxu0 %v29_v9  ;;  %80 = vmatpush.msra.mxu1 %v30_v10  ;;  %v25_v13 = vld [vmem:[%s331_s1 + $0x20] sm:$0xff]  ;;  %v26_v14 = vld [vmem:[%s331_s1 + $0x28] sm:$0xff] }
   0x6   :  { %101 = vmatpush.msra.mxu2 %v27_v7  ;;  %121 = vmatpush.msra.mxu3 %v28_v8  ;;  %v20_v15 = vld [vmem:[%s332_s0] sm:$0xff]  ;;  %v22_v17 = vld [vmem:[%s331_s1 + $0x8] sm:$0xff]  ;;  %vm137_vm1 = vcmp.lt.s32.totalorder %v133_v21, 432 }
   0x7   :  { %61 = vmatpush.msra.mxu0 %v25_v13  ;;  %81 = vmatpush.msra.mxu1 %v26_v14  ;;  %v21_v16 = vld [vmem:[%s331_s1] sm:$0xff]  ;;  %v219_v31 = vsel %vm137_vm1, 1.0, %v228_v30 }
   0x8   :  { %102 = vmatpush.msra.mxu2 %v23_v11  ;;  %122 = vmatpush.msra.mxu3 %v24_v12  ;;  %v37_v18 = vld [vmem:[%s333_s2] sm:$0xff] }
   0x9   :  { %217 = vmatmul.msk.f32.vlgmr.msra.gmra.mxu2 %vm43_vm0, %v20_v15  ;;  %218 = vmatmul.msk.f32.vlgmr.msra.gmra.mxu3 %vm43_vm0, %v20_v15  ;;  %v128_v46 = vld [vmem:[%s334_s4] sm:$0xff] }
   0xa   :  { %62 = vmatpush.msra.mxu0 %v21_v16  ;;  %82 = vmatpush.msra.mxu1 %v22_v17  ;;  %v127_v52 = vld [vmem:[%s335_s3] sm:$0xff] }
   0xb   :  { %215 = vmatmul.msk.f32.vlgmr.msra.gmra.mxu0 %vm43_vm0, %v20_v15  ;;  %216 = vmatmul.msk.f32.vlgmr.msra.gmra.mxu1 %vm43_vm0, %v20_v15 }
   0xc   :  { %40 = vperm.xlu0 %222, %v37_v18   ;;  %224 = vset.pattern.permute.xlu2 %v227_v3 }
   0xd   :  { %200 = vperm.xlu2 %224, %v128_v46  }
  0x67   :  { %v201_v4 = vpop.permute.xlu2 %200 }
  0x7e   :  { %v41_v22 = vpop.permute.xlu0 %40 }
  0x88   :  { %v64_v23 = vpop.f32.mrf.mxu0  ;;  %v84_v24 = vpop.f32.mrf.mxu1 }
  0x89   :  { %v65_v25 = vadd.f32 %v64_v23, %v41_v22  ;;  %v85_v26 = vadd.f32 %v84_v24, %v41_v22 }
  0x8b   :  { %v150_v27 = vadd.f32 %v85_v26, %v65_v25 }
  0x8c   :  { %v104_v28 = vpop.f32.mrf.mxu2  ;;  %v124_v29 = vpop.f32.mrf.mxu3 }
  0x8d   :  { %v105_v32 = vadd.f32 %v104_v28, %v41_v22  ;;  %v125_v33 = vadd.f32 %v124_v29, %v41_v22 }
  0x8f   :  { %v151_v34 = vadd.f32 %v150_v27, %v105_v32  ;;  %v149_v35 = vmul.f32 %v219_v31, %v125_v33 }
  0x91   :  { %v152_v36 = vadd.f32 %v151_v34, %v149_v35 }
  0x93   :  { %153 = vadd.xlane.f32.xlu0 %v152_v36 }
 0x106   :  { %v154_v37 = vpop.xlane.xlu0 %153 }
 0x107   :  { %v155_v38 = vmul.f32 0.0023148148, %v154_v37 }
 0x109   :  { %v156_v39 = vsub.f32 %v65_v25, %v155_v38  ;;  %v157_v40 = vsub.f32 %v85_v26, %v155_v38  ;;  %v158_v41 = vsub.f32 %v105_v32, %v155_v38  ;;  %v159_v42 = vsub.f32 %v125_v33, %v155_v38 }
 0x10b   :  { %v163_v43 = vmul.f32 %v219_v31, %v159_v42  ;;  %v164_v44 = vmul.f32 %v156_v39, %v156_v39  ;;  %v165_v45 = vmul.f32 %v157_v40, %v157_v40  ;;  %v166_v47 = vmul.f32 %v158_v41, %v158_v41 }
 0x10d   :  { %v168_v48 = vadd.f32 %v165_v45, %v164_v44  ;;  %v167_v49 = vmul.f32 %v163_v43, %v163_v43 }
 0x10f   :  { %v169_v50 = vadd.f32 %v168_v48, %v166_v47 }
 0x111   :  { %v170_v51 = vadd.f32 %v169_v50, %v167_v49 }
 0x113   :  { %171 = vadd.xlane.f32.xlu1 %v170_v51 }
 0x12c   :  { %191 = vperm.xlu1 %223, %v127_v52  }
 0x186   :  { %v172_v53 = vpop.xlane.xlu1 %171 }
 0x187   :  { %v173_v54 = vmul.f32 0.0023148148, %v172_v53 }
 0x189   :  { %v174_v55 = vadd.f32 1e-05, %v173_v54 }
 0x18b   :  { %225 = vrsqrt.f32 %v174_v55  ;;  %vm181_vm3 = vweird.f32 %v174_v55 }
 0x191   :  { %v226_v56 = vpop.eup %225 }
 0x192   :  { %v176_v57 = vmul.f32 %v226_v56, %v174_v55  ;;  %vm182_vm2 = vweird.f32 %v226_v56 }
 0x193   :  { %vm183_vm4 = vmor %vm181_vm3, %vm182_vm2 }
 0x194   :  { %v177_v58 = vmul.f32 %v226_v56, %v176_v57 }
 0x196   :  { %v178_v59 = vmul.f32 0.5, %v177_v58 }
 0x198   :  { %v179_v60 = vsub.f32 1.5, %v178_v59 }
 0x19a   :  { %v180_v61 = vmul.f32 %v226_v56, %v179_v60 }
 0x19c   :  { %v184_v62 = vsel %vm183_vm4, %v226_v56, %v180_v61 }
 0x19d   :  { %v185_v63 = vmul.f32 %v184_v62, %v156_v39  ;;  %v186_v0 = vmul.f32 %v184_v62, %v157_v40  ;;  %v187_v1 = vmul.f32 %v184_v62, %v158_v41  ;;  %v188_v2 = vmul.f32 %v184_v62, %v159_v42 }
 0x19e   :  { %v192_v3 = vpop.permute.xlu1 %191 }
 0x19f   :  { %v194_v5 = vmul.f32 %v192_v3, %v185_v63  ;;  %v195_v6 = vmul.f32 %v192_v3, %v186_v0  ;;  %v196_v7 = vmul.f32 %v192_v3, %v187_v1  ;;  %v197_v8 = vmul.f32 %v192_v3, %v188_v2 }
 0x1a1   :  { %v203_v9 = vadd.f32 %v201_v4, %v194_v5  ;;  %v204_v10 = vadd.f32 %v201_v4, %v195_v6  ;;  %v205_v11 = vadd.f32 %v201_v4, %v196_v7  ;;  %v206_v12 = vadd.f32 %v201_v4, %v197_v8 }
 0x1a3   :  { %207 = vst [vmem:[%s336_s5] sm:$0xff] %v203_v9 }
 0x1a4   :  { %208 = vst [vmem:[%s336_s5 + $0x8] sm:$0xff] %v204_v10 }
 0x1a5   :  { %209 = vst [vmem:[%s336_s5 + $0x10] sm:$0xff] %v205_v11 }
 0x1a6   :  { %210 = vst [vmem:[%s336_s5 + $0x18] sm:$0xff] %v206_v12 }

// kernel: cnn_autoencoder_forward.8
= control target key start
LH: loop header
LB: loop body
LE: loop exit
PB: predicated region body
PF: predicated region fallthrough
CT: control target
= control target key end

     0   :  { %v50_v27 = vlaneseq  ;;  %vm43_vm0 = vcmask 1040384   ;;  %vm45_vm1 = vcmask 1042434   ;;  %vm47_vm2 = vcmask 1041408   ;;  %s84_s0 = inlined_call_operand.vmem [shape: f32[8,512], index: 0, kind: input, shape index: {}]   ;;  %s85_s1 = inlined_call_operand.vmem [shape: f32[1,512], index: 1, kind: output, shape index: {}]  }
   0x1   :  { %v8_v0 = vld [vmem:[%s84_s0] sm:$0xff]  ;;  %v9_v1 = vld [vmem:[%s84_s0 + $0x8] sm:$0xff]  ;;  %v10_v2 = vld [vmem:[%s84_s0 + $0x10] sm:$0xff] }
   0x2   :  { %v11_v3 = vld [vmem:[%s84_s0 + $0x18] sm:$0xff]  ;;  %v12_v4 = vrot.slane %v8_v0, 4  ;;  %v18_v5 = vrot.slane %v9_v1, 4  ;;  %v24_v6 = vrot.slane %v10_v2, 4  ;;  %vm52_vm3 = vcmp.lt.s32.totalorder %v50_v27, 512 }
   0x3   :  { %v30_v7 = vrot.slane %v11_v3, 4 }
   0x4   :  { %v13_v8 = vmax.f32 %v8_v0, %v12_v4  ;;  %v19_v9 = vmax.f32 %v9_v1, %v18_v5  ;;  %v25_v10 = vmax.f32 %v10_v2, %v24_v6 }
   0x5   :  { %v31_v11 = vmax.f32 %v11_v3, %v30_v7 }
   0x6   :  { %v14_v12 = vrot.slane %v13_v8, 2  ;;  %v20_v13 = vrot.slane %v19_v9, 2  ;;  %v26_v14 = vrot.slane %v25_v10, 2 }
   0x7   :  { %v32_v15 = vrot.slane %v31_v11, 2 }
   0x8   :  { %v15_v16 = vmax.f32 %v13_v8, %v14_v12  ;;  %v21_v17 = vmax.f32 %v19_v9, %v20_v13  ;;  %v27_v18 = vmax.f32 %v25_v10, %v26_v14 }
   0x9   :  { %v33_v19 = vmax.f32 %v31_v11, %v32_v15 }
   0xa   :  { %v16_v20 = vrot.slane %v15_v16, 1  ;;  %v22_v21 = vrot.slane %v21_v17, 1  ;;  %v28_v22 = vrot.slane %v27_v18, 1 }
   0xb   :  { %v34_v23 = vrot.slane %v33_v19, 1 }
   0xc   :  { %v17_v24 = vmax.f32 %v15_v16, %v16_v20  ;;  %v23_v25 = vmax.f32 %v21_v17, %v22_v21  ;;  %v29_v26 = vmax.f32 %v27_v18, %v28_v22 }
   0xd   :  { %v35_v28 = vmax.f32 %v33_v19, %v34_v23 }
   0xe   :  { %v40_v29 = vrot.slane %v23_v25, 7  ;;  %v41_v30 = vrot.slane %v29_v26, 6 }
   0xf   :  { %v42_v31 = vrot.slane %v35_v28, 5 }
  0x10   :  { %v44_v32 = vsel %vm43_vm0, %v17_v24, %v40_v29 }
  0x11   :  { %v46_v33 = vsel %vm45_vm1, %v41_v30, %v42_v31 }
  0x12   :  { %v48_v34 = vsel %vm47_vm2, %v44_v32, %v46_v33 }
  0x13   :  { %54 = vst.msk [vmem:[%s85_s1] sm:$0xf] %vm52_vm3, %v48_v34 }

// kernel: cnn_autoencoder_forward.9
= control target key start
LH: loop header
LB: loop body
LE: loop exit
PB: predicated region body
PF: predicated region fallthrough
CT: control target
= control target key end

     0   :  { %v227_v2 = vmov 0   ;;  %vm63_vm0 = vcmask 719872   ;;  %v120_v36 = vlaneseq  ;;  %v228_v42 = vmov 0.0   ;;  %s378_s1 = inlined_call_operand.vmem [shape: f32[216,128], index: 1, kind: input, shape index: {}]   ;;  %s379_s2 = inlined_call_operand.vmem [shape: f32[16,1], index: 2, kind: input, shape index: {}]   ;;  %s380_s3 = inlined_call_operand.vmem [shape: f32[16,1], index: 3, kind: input, shape index: {}]   ;;  %s381_s0 = inlined_call_operand.vmem [shape: f32[16,216], index: 0, kind: input, shape index: {}]   ;;  %s382_s4 = inlined_call_operand.vmem [shape: f32[16,1], index: 4, kind: input, shape index: {}]   ;;  %s383_s5 = inlined_call_operand.vmem [shape: f32[16,128], index: 5, kind: output, shape index: {}]  }
   0x1   :  { %v39_v0 = vld [vmem:[%s378_s1 + $0x78] sm:$0xff]  ;;  %v38_v1 = vld [vmem:[%s378_s1 + $0x70] sm:$0xff]  ;;  %220 = vset.pattern.permute.xlu0 %v227_v2  ;;  %221 = vset.pattern.permute.xlu1 %v227_v2  ;;  %v37_v3 = vld [vmem:[%s378_s1 + $0x68] sm:$0xff] }
   0x2   :  { %70 = vmatpush.msra.mxu0 %v39_v0  ;;  %202 = vmatpush.msra.mxu2 %v39_v0  ;;  %v50_v4 = vld [vmem:[%s378_s1 + $0xd0] sm:$0xff]  ;;  %v49_v5 = vld [vmem:[%s378_s1 + $0xc8] sm:$0xff]  ;;  %v36_v6 = vld [vmem:[%s378_s1 + $0x60] sm:$0xff]  ;;  %v121_v38 = vand.u32 127, %v120_v36 }
   0x3   :  { %222 = vset.pattern.permute.xlu2 %v227_v2  ;;  %98 = vmatpush.msra.mxu1 %v50_v4  ;;  %v51_v7 = vld [vmem:[%s379_s2] sm:$0xff]  ;;  %v35_v9 = vld [vmem:[%s378_s1 + $0x58] sm:$0xff]  ;;  %v34_v11 = vld [vmem:[%s378_s1 + $0x50] sm:$0xff] }
   0x4   :  { %71 = vmatpush.msra.mxu0 %v38_v1  ;;  %203 = vmatpush.msra.mxu2 %v38_v1  ;;  %v48_v8 = vld [vmem:[%s378_s1 + $0xc0] sm:$0xff]  ;;  %v47_v10 = vld [vmem:[%s378_s1 + $0xb8] sm:$0xff]  ;;  %v46_v12 = vld [vmem:[%s378_s1 + $0xb0] sm:$0xff]  ;;  %vm122_vm1 = vcmp.lt.s32.totalorder %v121_v38, 16 }
   0x5   :  { %99 = vmatpush.msra.mxu1 %v49_v5  ;;  %55 = vperm.xlu0 %220, %v51_v7   ;;  %v33_v13 = vld [vmem:[%s378_s1 + $0x48] sm:$0xff]  ;;  %v32_v16 = vld [vmem:[%s378_s1 + $0x40] sm:$0xff]  ;;  %v31_v18 = vld [vmem:[%s378_s1 + $0x38] sm:$0xff]  ;;  %v201_v43 = vsel %vm122_vm1, 1.0, %v228_v42 }
   0x6   :  { %72 = vmatpush.msra.mxu0 %v37_v3  ;;  %204 = vmatpush.msra.mxu2 %v37_v3  ;;  %v45_v14 = vld [vmem:[%s378_s1 + $0xa8] sm:$0xff]  ;;  %v44_v17 = vld [vmem:[%s378_s1 + $0xa0] sm:$0xff]  ;;  %v43_v19 = vld [vmem:[%s378_s1 + $0x98] sm:$0xff] }
   0x7   :  { %100 = vmatpush.msra.mxu1 %v48_v8  ;;  %v52_v15 = vld [vmem:[%s379_s2 + $0x8] sm:$0xff]  ;;  %v30_v20 = vld [vmem:[%s378_s1 + $0x30] sm:$0xff]  ;;  %v116_v24 = vld [vmem:[%s380_s3] sm:$0xff] }
   0x8   :  { %73 = vmatpush.msra.mxu0 %v36_v6  ;;  %205 = vmatpush.msra.mxu2 %v36_v6  ;;  %v42_v21 = vld [vmem:[%s378_s1 + $0x90] sm:$0xff]  ;;  %v29_v22 = vld [vmem:[%s378_s1 + $0x28] sm:$0xff]  ;;  %v28_v25 = vld [vmem:[%s378_s1 + $0x20] sm:$0xff] }
   0x9   :  { %101 = vmatpush.msra.mxu1 %v47_v10  ;;  %v41_v23 = vld [vmem:[%s378_s1 + $0x88] sm:$0xff]  ;;  %v40_v26 = vld [vmem:[%s378_s1 + $0x80] sm:$0xff]  ;;  %v27_v27 = vld [vmem:[%s378_s1 + $0x18] sm:$0xff] }
   0xa   :  { %74 = vmatpush.msra.mxu0 %v35_v9  ;;  %206 = vmatpush.msra.mxu2 %v35_v9  ;;  %v21_v28 = vld [vmem:[%s381_s0 + $0x8] sm:$0xff]  ;;  %v26_v29 = vld [vmem:[%s378_s1 + $0x10] sm:$0xff]  ;;  %v24_v32 = vld [vmem:[%s378_s1] sm:$0xff] }
   0xb   :  { %102 = vmatpush.msra.mxu1 %v46_v12  ;;  %v25_v30 = vld [vmem:[%s378_s1 + $0x8] sm:$0xff]  ;;  %v20_v33 = vld [vmem:[%s381_s0] sm:$0xff]  ;;  %v22_v34 = vld [vmem:[%s381_s0 + $0x10] sm:$0xff] }
   0xc   :  { %75 = vmatpush.msra.mxu0 %v34_v11  ;;  %207 = vmatpush.msra.mxu2 %v34_v11  ;;  %v119_v31 = vld [vmem:[%s382_s4 + $0x8] sm:$0xff]  ;;  %v23_v35 = vld [vmem:[%s381_s0 + $0x18] sm:$0xff]  ;;  %v118_v63 = vld [vmem:[%s382_s4] sm:$0xff] }
   0xd   :  { %103 = vmatpush.msra.mxu1 %v45_v14  ;;  %60 = vperm.xlu0 %220, %v52_v15   ;;  %v117_v52 = vld [vmem:[%s380_s3 + $0x8] sm:$0xff] }
   0xe   :  { %76 = vmatpush.msra.mxu0 %v33_v13  ;;  %208 = vmatpush.msra.mxu2 %v33_v13 }
   0xf   :  { %104 = vmatpush.msra.mxu1 %v44_v17 }
  0x10   :  { %77 = vmatpush.msra.mxu0 %v32_v16  ;;  %209 = vmatpush.msra.mxu2 %v32_v16 }
  0x11   :  { %105 = vmatpush.msra.mxu1 %v43_v19 }
  0x12   :  { %78 = vmatpush.msra.mxu0 %v31_v18  ;;  %210 = vmatpush.msra.mxu2 %v31_v18 }
  0x13   :  { %106 = vmatpush.msra.mxu1 %v42_v21 }
  0x14   :  { %79 = vmatpush.msra.mxu0 %v30_v20  ;;  %211 = vmatpush.msra.mxu2 %v30_v20 }
  0x15   :  { %107 = vmatpush.msra.mxu1 %v41_v23  ;;  %171 = vperm.xlu0 %220, %v116_v24  }
  0x16   :  { %80 = vmatpush.msra.mxu0 %v29_v22  ;;  %212 = vmatpush.msra.mxu2 %v29_v22 }
  0x17   :  { %108 = vmatpush.msra.mxu1 %v40_v26 }
  0x18   :  { %81 = vmatpush.msra.mxu0 %v28_v25  ;;  %213 = vmatpush.msra.mxu2 %v28_v25 }
  0x19   :  { %199 = vmatmul.msk.f32.vlgmr.msra.gmra.mxu1 %vm63_vm0, %v21_v28 }
  0x1a   :  { %82 = vmatpush.msra.mxu0 %v27_v27  ;;  %214 = vmatpush.msra.mxu2 %v27_v27 }
  0x1c   :  { %83 = vmatpush.msra.mxu0 %v26_v29  ;;  %215 = vmatpush.msra.mxu2 %v26_v29 }
  0x1d   :  { %188 = vperm.xlu0 %220, %v119_v31  }
  0x1e   :  { %84 = vmatpush.msra.mxu0 %v25_v30  ;;  %216 = vmatpush.msra.mxu2 %v25_v30 }
  0x20   :  { %85 = vmatpush.msra.mxu0 %v24_v32  ;;  %217 = vmatpush.msra.mxu2 %v24_v32 }
  0x21   :  { %86 = vmatmul.f32.vlgmr.msra.gmra.mxu0 %v20_v33  ;;  %89 = vmatmul.f32.vlgmr.msra.gmra.mxu2 %v22_v34 }
  0x22   :  { %200 = vmatmul.msk.f32.gmra.mxu1 %vm63_vm0, %v23_v35 }
  0x77   :  { %v56_v37 = vpop.permute.xlu0 %55 }
  0x7f   :  { %v61_v45 = vpop.permute.xlu0 %60 }
  0x87   :  { %v172_v17 = vpop.permute.xlu0 %171 }
  0x8f   :  { %v189_v28 = vpop.permute.xlu0 %188 }
  0x96   :  { %v110_v39 = vpop.f32.mrf.mxu1 }
  0x9e   :  { %v87_v40 = vpop.f32.mrf.mxu0 }
  0x9f   :  { %v88_v41 = vadd.f32 %v87_v40, %v56_v37  ;;  %v113_v48 = vpop.f32.mrf.mxu1 }
  0xa1   :  { %v111_v44 = vadd.f32 %v110_v39, %v88_v41 }
  0xa3   :  { %v125_v46 = vmul.f32 %v201_v43, %v111_v44 }
  0xa4   :  { %v90_v47 = vpop.f32.mrf.mxu2 }
  0xa5   :  { %v91_v49 = vadd.f32 %v90_v47, %v61_v45  ;;  %127 = vadd.xlane.f32.xlu1 %v125_v46 }
  0xa7   :  { %v114_v50 = vadd.f32 %v113_v48, %v91_v49 }
  0xa9   :  { %v126_v51 = vmul.f32 %v201_v43, %v114_v50 }
  0xad   :  { %129 = vadd.xlane.f32.xlu1 %v126_v51 }
  0xc6   :  { %176 = vperm.xlu1 %221, %v117_v52  }
 0x118   :  { %v128_v53 = vpop.xlane.xlu1 %127 }
 0x119   :  { %v131_v54 = vmul.f32 0.0625, %v128_v53 }
 0x11b   :  { %v133_v55 = vsub.f32 %v111_v44, %v131_v54 }
 0x11d   :  { %v135_v56 = vmul.f32 %v201_v43, %v133_v55 }
 0x11f   :  { %v137_v57 = vmul.f32 %v135_v56, %v135_v56 }
 0x120   :  { %v130_v58 = vpop.xlane.xlu1 %129 }
 0x121   :  { %v132_v59 = vmul.f32 0.0625, %v130_v58  ;;  %139 = vadd.xlane.f32.xlu2 %v137_v57 }
 0x123   :  { %v134_v60 = vsub.f32 %v114_v50, %v132_v59 }
 0x125   :  { %v136_v61 = vmul.f32 %v201_v43, %v134_v60 }
 0x127   :  { %v138_v62 = vmul.f32 %v136_v61, %v136_v61 }
 0x129   :  { %141 = vadd.xlane.f32.xlu2 %v138_v62 }
 0x138   :  { %v177_v25 = vpop.permute.xlu1 %176 }
 0x141   :  { %183 = vperm.xlu2 %222, %v118_v63  }
 0x194   :  { %v140_v0 = vpop.xlane.xlu2 %139 }
 0x195   :  { %v143_v1 = vmul.f32 0.0625, %v140_v0 }
 0x197   :  { %v145_v2 = vadd.f32 1e-05, %v143_v1 }
 0x199   :  { %223 = vrsqrt.f32 %v145_v2  ;;  %vm153_vm3 = vweird.f32 %v145_v2 }
 0x19c   :  { %v142_v3 = vpop.xlane.xlu2 %141 }
 0x19d   :  { %v144_v4 = vmul.f32 0.0625, %v142_v3 }
 0x19f   :  { %v224_v5 = vpop.eup %223  ;;  %v146_v6 = vadd.f32 1e-05, %v144_v4 }
 0x1a0   :  { %v148_v7 = vmul.f32 %v224_v5, %v145_v2  ;;  %vm154_vm2 = vweird.f32 %v224_v5 }
 0x1a1   :  { %225 = vrsqrt.f32 %v146_v6  ;;  %vm155_vm4 = vmor %vm153_vm3, %vm154_vm2  ;;  %vm163_vm6 = vweird.f32 %v146_v6 }
 0x1a2   :  { %v149_v8 = vmul.f32 %v224_v5, %v148_v7 }
 0x1a4   :  { %v150_v9 = vmul.f32 0.5, %v149_v8  ;;  %v184_v19 = vpop.permute.xlu2 %183 }
 0x1a6   :  { %v151_v10 = vsub.f32 1.5, %v150_v9 }
 0x1a7   :  { %v226_v11 = vpop.eup %225 }
 0x1a8   :  { %v158_v12 = vmul.f32 %v226_v11, %v146_v6  ;;  %v152_v13 = vmul.f32 %v224_v5, %v151_v10  ;;  %vm164_vm5 = vweird.f32 %v226_v11 }
 0x1a9   :  { %vm165_vm7 = vmor %vm163_vm6, %vm164_vm5 }
 0x1aa   :  { %v159_v14 = vmul.f32 %v226_v11, %v158_v12  ;;  %v156_v15 = vsel %vm155_vm4, %v224_v5, %v152_v13 }
 0x1ab   :  { %v167_v16 = vmul.f32 %v156_v15, %v133_v55 }
 0x1ac   :  { %v160_v18 = vmul.f32 0.5, %v159_v14 }
 0x1ad   :  { %v179_v20 = vmul.f32 %v172_v17, %v167_v16 }
 0x1ae   :  { %v161_v21 = vsub.f32 1.5, %v160_v18 }
 0x1af   :  { %v191_v22 = vadd.f32 %v184_v19, %v179_v20 }
 0x1b0   :  { %v162_v23 = vmul.f32 %v226_v11, %v161_v21 }
 0x1b1   :  { %193 = vst [vmem:[%s383_s5] sm:$0xff] %v191_v22 }
 0x1b2   :  { %v166_v24 = vsel %vm165_vm7, %v226_v11, %v162_v23 }
 0x1b3   :  { %v168_v26 = vmul.f32 %v166_v24, %v134_v60 }
 0x1b5   :  { %v180_v27 = vmul.f32 %v177_v25, %v168_v26 }
 0x1b7   :  { %v192_v29 = vadd.f32 %v189_v28, %v180_v27 }
 0x1b9   :  { %194 = vst [vmem:[%s383_s5 + $0x8] sm:$0xff] %v192_v29 }

// kernel: cnn_autoencoder_forward.10
= control target key start
LH: loop header
LB: loop body
LE: loop exit
PB: predicated region body
PF: predicated region fallthrough
CT: control target
= control target key end

     0   :  { %v1445_v8 = vmov 0   ;;  %s2539_s0 = inlined_call_operand.vmem [shape: f32[16,432], index: 0, kind: input, shape index: {}]   ;;  %s2540_s1 = inlined_call_operand.vmem [shape: f32[432,128], index: 1, kind: input, shape index: {}]   ;;  %s2541_s2 = inlined_call_operand.vmem [shape: f32[16,1], index: 2, kind: input, shape index: {}]   ;;  %s2542_s3 = inlined_call_operand.vmem [shape: f32[16,1], index: 3, kind: input, shape index: {}]   ;;  %s2543_s4 = inlined_call_operand.vmem [shape: f32[16,1], index: 4, kind: input, shape index: {}]   ;;  %s2544_s5 = inlined_call_operand.vmem [shape: f32[960,16], index: 5, kind: input, shape index: {}]   ;;  %s2545_s6 = inlined_call_operand.hbm [shape: f32[16,128], index: 6, kind: output, shape index: {0}]   ;;  %s2546_s7 = inlined_call_operand.vmem [shape: f32[960,128], index: 7, kind: output, shape index: {1}]  }
   0x1   :  { %v81_v0 = vld [vmem:[%s2540_s1 + $0x178] sm:$0xff]  ;;  %v80_v2 = vld [vmem:[%s2540_s1 + $0x170] sm:$0xff]  ;;  %v79_v5 = vld [vmem:[%s2540_s1 + $0x168] sm:$0xff]  ;;  %1412 = vset.pattern.permute.xlu0 %v1445_v8  ;;  %1413 = vset.pattern.permute.xlu1 %v1445_v8 }
   0x2   :  { %v49_v1 = vld [vmem:[%s2540_s1 + $0x78] sm:$0xff]  ;;  %153 = vmatpush.msra.mxu2 %v81_v0  ;;  %v48_v3 = vld [vmem:[%s2540_s1 + $0x70] sm:$0xff]  ;;  %v47_v6 = vld [vmem:[%s2540_s1 + $0x68] sm:$0xff]  ;;  %1414 = vset.pattern.permute.xlu2 %v1445_v8 }
   0x3   :  { %107 = vmatpush.msra.mxu0 %v49_v1  ;;  %v65_v4 = vld [vmem:[%s2540_s1 + $0xf8] sm:$0xff]  ;;  %v64_v7 = vld [vmem:[%s2540_s1 + $0xf0] sm:$0xff]  ;;  %v63_v9 = vld [vmem:[%s2540_s1 + $0xe8] sm:$0xff] }
   0x4   :  { %130 = vmatpush.msra.mxu1 %v65_v4  ;;  %154 = vmatpush.msra.mxu2 %v80_v2  ;;  %v78_v10 = vld [vmem:[%s2540_s1 + $0x160] sm:$0xff]  ;;  %v77_v13 = vld [vmem:[%s2540_s1 + $0x158] sm:$0xff]  ;;  %v76_v16 = vld [vmem:[%s2540_s1 + $0x150] sm:$0xff] }
   0x5   :  { %108 = vmatpush.msra.mxu0 %v48_v3  ;;  %v46_v11 = vld [vmem:[%s2540_s1 + $0x60] sm:$0xff]  ;;  %v45_v14 = vld [vmem:[%s2540_s1 + $0x58] sm:$0xff]  ;;  %v44_v17 = vld [vmem:[%s2540_s1 + $0x50] sm:$0xff] }
   0x6   :  { %131 = vmatpush.msra.mxu1 %v64_v7  ;;  %155 = vmatpush.msra.mxu2 %v79_v5  ;;  %v62_v12 = vld [vmem:[%s2540_s1 + $0xe0] sm:$0xff]  ;;  %v61_v15 = vld [vmem:[%s2540_s1 + $0xd8] sm:$0xff]  ;;  %v60_v18 = vld [vmem:[%s2540_s1 + $0xd0] sm:$0xff] }
   0x7   :  { %109 = vmatpush.msra.mxu0 %v47_v6  ;;  %v75_v19 = vld [vmem:[%s2540_s1 + $0x148] sm:$0xff]  ;;  %v74_v23 = vld [vmem:[%s2540_s1 + $0x140] sm:$0xff]  ;;  %v85_v27 = vld [vmem:[%s2540_s1 + $0x198] sm:$0xff] }
   0x8   :  { %132 = vmatpush.msra.mxu1 %v63_v9  ;;  %156 = vmatpush.msra.mxu2 %v78_v10  ;;  %v43_v20 = vld [vmem:[%s2540_s1 + $0x48] sm:$0xff]  ;;  %v42_v24 = vld [vmem:[%s2540_s1 + $0x40] sm:$0xff]  ;;  %v73_v28 = vld [vmem:[%s2540_s1 + $0x138] sm:$0xff] }
   0x9   :  { %110 = vmatpush.msra.mxu0 %v46_v11  ;;  %v59_v21 = vld [vmem:[%s2540_s1 + $0xc8] sm:$0xff]  ;;  %v86_v25 = vld [vmem:[%s2540_s1 + $0x1a0] sm:$0xff]  ;;  %v41_v29 = vld [vmem:[%s2540_s1 + $0x38] sm:$0xff] }
   0xa   :  { %133 = vmatpush.msra.mxu1 %v62_v12  ;;  %157 = vmatpush.msra.mxu2 %v77_v13  ;;  %v87_v22 = vld [vmem:[%s2540_s1 + $0x1a8] sm:$0xff]  ;;  %v58_v26 = vld [vmem:[%s2540_s1 + $0xc0] sm:$0xff]  ;;  %v57_v30 = vld [vmem:[%s2540_s1 + $0xb8] sm:$0xff] }
   0xb   :  { %111 = vmatpush.msra.mxu0 %v45_v14  ;;  %186 = vmatpush.msra.mxu3 %v87_v22  ;;  %v89_v31 = vld [vmem:[%s2541_s2 + $0x8] sm:$0xff]  ;;  %v72_v32 = vld [vmem:[%s2540_s1 + $0x130] sm:$0xff]  ;;  %v70_v40 = vld [vmem:[%s2540_s1 + $0x120] sm:$0xff] }
   0xc   :  { %134 = vmatpush.msra.mxu1 %v61_v15  ;;  %158 = vmatpush.msra.mxu2 %v76_v16  ;;  %v40_v33 = vld [vmem:[%s2540_s1 + $0x30] sm:$0xff]  ;;  %v71_v36 = vld [vmem:[%s2540_s1 + $0x128] sm:$0xff]  ;;  %v38_v41 = vld [vmem:[%s2540_s1 + $0x20] sm:$0xff] }
   0xd   :  { %112 = vmatpush.msra.mxu0 %v44_v17  ;;  %187 = vmatpush.msra.mxu3 %v86_v25  ;;  %v56_v34 = vld [vmem:[%s2540_s1 + $0xb0] sm:$0xff]  ;;  %v39_v37 = vld [vmem:[%s2540_s1 + $0x28] sm:$0xff]  ;;  %v54_v42 = vld [vmem:[%s2540_s1 + $0xa0] sm:$0xff] }
   0xe   :  { %135 = vmatpush.msra.mxu1 %v60_v18  ;;  %159 = vmatpush.msra.mxu2 %v75_v19  ;;  %v84_v35 = vld [vmem:[%s2540_s1 + $0x190] sm:$0xff]  ;;  %v55_v38 = vld [vmem:[%s2540_s1 + $0xa8] sm:$0xff]  ;;  %v82_v43 = vld [vmem:[%s2540_s1 + $0x180] sm:$0xff] }
   0xf   :  { %113 = vmatpush.msra.mxu0 %v43_v20  ;;  %188 = vmatpush.msra.mxu3 %v85_v27  ;;  %v83_v39 = vld [vmem:[%s2540_s1 + $0x188] sm:$0xff]  ;;  %v69_v44 = vld [vmem:[%s2540_s1 + $0x118] sm:$0xff] }
  0x10   :  { %136 = vmatpush.msra.mxu1 %v59_v21  ;;  %160 = vmatpush.msra.mxu2 %v74_v23  ;;  %v37_v45 = vld [vmem:[%s2540_s1 + $0x18] sm:$0xff] }
  0x11   :  { %114 = vmatpush.msra.mxu0 %v42_v24  ;;  %97 = vperm.xlu0 %1412, %v89_v31  }
  0x12   :  { %137 = vmatpush.msra.mxu1 %v58_v26  ;;  %161 = vmatpush.msra.mxu2 %v73_v28 }
  0x13   :  { %115 = vmatpush.msra.mxu0 %v41_v29  ;;  %189 = vmatpush.msra.mxu3 %v84_v35 }
  0x14   :  { %138 = vmatpush.msra.mxu1 %v57_v30  ;;  %162 = vmatpush.msra.mxu2 %v72_v32 }
  0x15   :  { %116 = vmatpush.msra.mxu0 %v40_v33  ;;  %190 = vmatpush.msra.mxu3 %v83_v39 }
  0x16   :  { %139 = vmatpush.msra.mxu1 %v56_v34  ;;  %163 = vmatpush.msra.mxu2 %v71_v36 }
  0x17   :  { %117 = vmatpush.msra.mxu0 %v39_v37 }
  0x18   :  { %140 = vmatpush.msra.mxu1 %v55_v38 }
  0x19   :  { %13 = vsyncpa [#allocation3], 0  ;;  %164 = vmatpush.msra.mxu2 %v70_v40  ;;  %118 = vmatpush.msra.mxu0 %v38_v41  ;;  %v53_v46 = vld [vmem:[%s2540_s1 + $0x98] sm:$0xff]  ;;  %vm100_vm0 = vcmask 392192   ;;  %v68_v48 = vld [vmem:[%s2540_s1 + $0x110] sm:$0xff]  ;;  %v203_v8 = vlaneseq  ;;  %v1446_v21 = vmov 0.0  }
  0x1a   :  { %v29_v47 = vld [vmem:[%s2539_s0 + $0x18] sm:$0xff]  ;;  %141 = vmatpush.msra.mxu1 %v54_v42  ;;  %v36_v49 = vld [vmem:[%s2540_s1 + $0x10] sm:$0xff]  ;;  %191 = vmatpush.msra.mxu3 %v82_v43  ;;  %v88_v51 = vld [vmem:[%s2541_s2] sm:$0xff]  ;;  %vm398_vm8 = vcmask 130048   ;;  %s1262_s19 = sshll.u32 %s2545_s6, 4  ;;  %s1448_s27 = smov 128   ;;  %s1263_s19 = int_to_ptr.hbm [resolvable:$true] %s1262_s19 }
  0x1b   :  { %165 = vmatpush.msra.mxu2 %v69_v44  ;;  %119 = vmatpush.msra.mxu0 %v37_v45  ;;  %v52_v50 = vld [vmem:[%s2540_s1 + $0x90] sm:$0xff]  ;;  %v67_v52 = vld [vmem:[%s2540_s1 + $0x108] sm:$0xff]  ;;  %v66_v55 = vld [vmem:[%s2540_s1 + $0x100] sm:$0xff]  ;;  %v204_v15 = vand.u32 127, %v203_v8  ;;  %s1449_s28 = smov 8  }
  0x1c   :  { %142 = vmatpush.msra.mxu1 %v53_v46  ;;  %v35_v53 = vld [vmem:[%s2540_s1 + $0x8] sm:$0xff]  ;;  %1278 = vmatmul.msk.f32.vlgmr.msra.gmra.mxu3 %vm100_vm0, %v29_v47  ;;  %v34_v56 = vld [vmem:[%s2540_s1] sm:$0xff]  ;;  %v28_v57 = vld [vmem:[%s2539_s0 + $0x10] sm:$0xff] }
  0x1d   :  { %166 = vmatpush.msra.mxu2 %v68_v48  ;;  %120 = vmatpush.msra.mxu0 %v36_v49  ;;  %v51_v54 = vld [vmem:[%s2540_s1 + $0x88] sm:$0xff]  ;;  %v26_v58 = vld [vmem:[%s2539_s0] sm:$0xff]  ;;  %v33_v61 = vld [vmem:[%s2539_s0 + $0x38] sm:$0xff]  ;;  %vm205_vm1 = vcmp.lt.s32.totalorder %v204_v15, 16 }
  0x1e   :  { %143 = vmatpush.msra.mxu1 %v52_v50  ;;  %92 = vperm.xlu0 %1412, %v88_v51   ;;  %v50_v59 = vld [vmem:[%s2540_s1 + $0x80] sm:$0xff]  ;;  %v27_v60 = vld [vmem:[%s2539_s0 + $0x8] sm:$0xff]  ;;  %v32_v63 = vld [vmem:[%s2539_s0 + $0x30] sm:$0xff]  ;;  %v1280_v22 = vsel %vm205_vm1, 1.0, %v1446_v21 }
  0x1f   :  { %167 = vmatpush.msra.mxu2 %v67_v52  ;;  %121 = vmatpush.msra.mxu0 %v35_v53  ;;  %v200_v62 = vld [vmem:[%s2542_s3 + $0x8] sm:$0xff]  ;;  %v30_v0 = vld [vmem:[%s2539_s0 + $0x20] sm:$0xff] }
  0x20   :  { %144 = vmatpush.msra.mxu1 %v51_v54  ;;  %v31_v1 = vld [vmem:[%s2539_s0 + $0x28] sm:$0xff]  ;;  %v201_v2 = vld [vmem:[%s2543_s4] sm:$0xff] }
  0x21   :  { %168 = vmatpush.msra.mxu2 %v66_v55  ;;  %122 = vmatpush.msra.mxu0 %v34_v56  ;;  %v199_v27 = vld [vmem:[%s2542_s3] sm:$0xff]  ;;  %v202_v38 = vld [vmem:[%s2543_s4 + $0x8] sm:$0xff]  ;;  %s1447_s3 = smov [#allocation2]  }
  0x22   :  { %169 = vmatmul.f32.vlgmr.msra.gmra.mxu2 %v28_v57  ;;  %123 = vmatmul.f32.vlgmr.msra.gmra.mxu0 %v26_v58  ;;  %v338_v8 = vld [vmem:[%s2544_s5 + $0x1e0] sm:$0xff]  ;;  %s1260_s4 = sshll.u32 %s1447_s3, 4  ;;  %s1261_s4 = int_to_ptr.vmem [resolvable:$true] %s1260_s4 }
  0x23   :  { %145 = vmatpush.msra.mxu1 %v50_v59  ;;  %v310_v15 = vld [vmem:[%s2544_s5 + $0x100] sm:$0xff] }
  0x24   :  { %146 = vmatmul.f32.vlgmr.msra.gmra.mxu1 %v27_v60  ;;  %1279 = vmatmul.msk.f32.gmra.mxu3 %vm100_vm0, %v33_v61  ;;  %v370_v21 = vld [vmem:[%s2544_s5 + $0x2e0] sm:$0xff] }
  0x26   :  { %259 = vperm.xlu0 %1412, %v200_v62  }
  0x2a   :  { %172 = vmatmul.f32.gmra.mxu2 %v32_v63  ;;  %126 = vmatmul.f32.gmra.mxu0 %v30_v0 }
  0x2c   :  { %149 = vmatmul.f32.gmra.mxu1 %v31_v1 }
  0x2e   :  { %266 = vperm.xlu0 %1412, %v201_v2  }
  0x83   :  { %v98_v3 = vpop.permute.xlu0 %97 }
  0x90   :  { %v93_v11 = vpop.permute.xlu0 %92 }
  0x98   :  { %v260_v48 = vpop.permute.xlu0 %259 }
  0x9f   :  { %v124_v4 = vpop.f32.mrf.mxu0  ;;  %v193_v6 = vpop.f32.mrf.mxu3 }
  0xa0   :  { %v125_v13 = vadd.f32 %v124_v4, %v93_v11  ;;  %v267_v60 = vpop.permute.xlu0 %266  ;;  %v309_v11 = vld [vmem:[%s2544_s5 + $0xf8] sm:$0xff] }
  0xa1   :  { %v147_v5 = vpop.f32.mrf.mxu1 }
  0xa2   :  { %v148_v18 = vadd.f32 %v147_v5, %v125_v13  ;;  %v366_v5 = vld [vmem:[%s2544_s5 + $0x2c0] sm:$0xff]  ;;  %v368_v13 = vld [vmem:[%s2544_s5 + $0x2d0] sm:$0xff] }
  0xa5   :  { %v170_v7 = vpop.f32.mrf.mxu2 }
  0xa6   :  { %v171_v23 = vadd.f32 %v170_v7, %v148_v18  ;;  %v308_v7 = vld [vmem:[%s2544_s5 + $0xf0] sm:$0xff]  ;;  %v281_v18 = vld [vmem:[%s2544_s5 + $0x18] sm:$0xff] }
  0xa7   :  { %v127_v9 = vpop.f32.mrf.mxu0  ;;  %v196_v17 = vpop.f32.mrf.mxu3 }
  0xa8   :  { %v128_v10 = vadd.f32 %v127_v9, %v98_v3  ;;  %v194_v25 = vadd.f32 %v193_v6, %v171_v23  ;;  %v278_v6 = vld [vmem:[%s2544_s5] sm:$0xff]  ;;  %v367_v9 = vld [vmem:[%s2544_s5 + $0x2c8] sm:$0xff]  ;;  %v312_v23 = vld [vmem:[%s2544_s5 + $0x110] sm:$0xff] }
  0xa9   :  { %v150_v12 = vpop.f32.mrf.mxu1 }
  0xaa   :  { %v151_v14 = vadd.f32 %v150_v12, %v128_v10  ;;  %v208_v26 = vmul.f32 %v1280_v22, %v194_v25  ;;  %v279_v10 = vld [vmem:[%s2544_s5 + $0x8] sm:$0xff] }
  0xab   :  { %v339_v12 = vld [vmem:[%s2544_s5 + $0x1e8] sm:$0xff] }
  0xad   :  { %v173_v16 = vpop.f32.mrf.mxu2 }
  0xae   :  { %v174_v19 = vadd.f32 %v173_v16, %v151_v14  ;;  %v280_v14 = vld [vmem:[%s2544_s5 + $0x10] sm:$0xff] }
  0xaf   :  { %v340_v16 = vld [vmem:[%s2544_s5 + $0x1f0] sm:$0xff] }
  0xb0   :  { %v197_v20 = vadd.f32 %v196_v17, %v174_v19  ;;  %v369_v17 = vld [vmem:[%s2544_s5 + $0x2d8] sm:$0xff]  ;;  %v311_v19 = vld [vmem:[%s2544_s5 + $0x108] sm:$0xff] }
  0xb2   :  { %v209_v24 = vmul.f32 %v1280_v22, %v197_v20 }
  0xb4   :  { %212 = vadd.xlane.f32.xlu1 %v209_v24  ;;  %v342_v24 = vld [vmem:[%s2544_s5 + $0x200] sm:$0xff] }
  0xbc   :  { %210 = vadd.xlane.f32.xlu1 %v208_v26  ;;  %v283_v26 = vld [vmem:[%s2544_s5 + $0x28] sm:$0xff] }
  0xd5   :  { %254 = vperm.xlu1 %1413, %v199_v27   ;;  %v313_v27 = vld [vmem:[%s2544_s5 + $0x118] sm:$0xff] }
 0x127   :  { %v213_v28 = vpop.xlane.xlu1 %212 }
 0x128   :  { %v215_v31 = vmul.f32 0.0625, %v213_v28  ;;  %v343_v28 = vld [vmem:[%s2544_s5 + $0x208] sm:$0xff] }
 0x12a   :  { %v217_v34 = vsub.f32 %v197_v20, %v215_v31  ;;  %v341_v20 = vld [vmem:[%s2544_s5 + $0x1f8] sm:$0xff]  ;;  %v314_v31 = vld [vmem:[%s2544_s5 + $0x120] sm:$0xff] }
 0x12c   :  { %v219_v36 = vmul.f32 %v1280_v22, %v217_v34 }
 0x12e   :  { %v221_v37 = vmul.f32 %v219_v36, %v219_v36  ;;  %v345_v36 = vld [vmem:[%s2544_s5 + $0x218] sm:$0xff] }
 0x12f   :  { %v211_v29 = vpop.xlane.xlu1 %210 }
 0x130   :  { %v214_v30 = vmul.f32 0.0625, %v211_v29  ;;  %v372_v29 = vld [vmem:[%s2544_s5 + $0x2f0] sm:$0xff] }
 0x132   :  { %v216_v32 = vsub.f32 %v194_v25, %v214_v30  ;;  %v371_v25 = vld [vmem:[%s2544_s5 + $0x2e8] sm:$0xff]  ;;  %v284_v30 = vld [vmem:[%s2544_s5 + $0x30] sm:$0xff] }
 0x134   :  { %v218_v33 = vmul.f32 %v1280_v22, %v216_v32  ;;  %v282_v22 = vld [vmem:[%s2544_s5 + $0x20] sm:$0xff] }
 0x136   :  { %v220_v35 = vmul.f32 %v218_v33, %v218_v33  ;;  %v373_v33 = vld [vmem:[%s2544_s5 + $0x2f8] sm:$0xff] }
 0x138   :  { %222 = vadd.xlane.f32.xlu2 %v220_v35  ;;  %v315_v35 = vld [vmem:[%s2544_s5 + $0x128] sm:$0xff] }
 0x140   :  { %224 = vadd.xlane.f32.xlu2 %v221_v37  ;;  %v374_v37 = vld [vmem:[%s2544_s5 + $0x300] sm:$0xff] }
 0x147   :  { %v255_v56 = vpop.permute.xlu1 %254 }
 0x158   :  { %271 = vperm.xlu2 %1414, %v202_v38   ;;  %v286_v38 = vld [vmem:[%s2544_s5 + $0x40] sm:$0xff] }
 0x1ab   :  { %v223_v39 = vpop.xlane.xlu2 %222 }
 0x1ac   :  { %v226_v40 = vmul.f32 0.0625, %v223_v39  ;;  %v316_v39 = vld [vmem:[%s2544_s5 + $0x130] sm:$0xff] }
 0x1ae   :  { %v228_v41 = vadd.f32 1e-05, %v226_v40  ;;  %v346_v40 = vld [vmem:[%s2544_s5 + $0x220] sm:$0xff] }
 0x1b0   :  { %1415 = vrsqrt.f32 %v228_v41  ;;  %vm236_vm3 = vweird.f32 %v228_v41 }
 0x1b3   :  { %v225_v42 = vpop.xlane.xlu2 %224 }
 0x1b4   :  { %v227_v43 = vmul.f32 0.0625, %v225_v42  ;;  %v287_v42 = vld [vmem:[%s2544_s5 + $0x48] sm:$0xff] }
 0x1b6   :  { %v1416_v44 = vpop.eup %1415  ;;  %v229_v45 = vadd.f32 1e-05, %v227_v43  ;;  %v317_v43 = vld [vmem:[%s2544_s5 + $0x138] sm:$0xff] }
 0x1b7   :  { %v231_v46 = vmul.f32 %v1416_v44, %v228_v41  ;;  %vm237_vm2 = vweird.f32 %v1416_v44  ;;  %v375_v41 = vld [vmem:[%s2544_s5 + $0x308] sm:$0xff] }
 0x1b8   :  { %1417 = vrsqrt.f32 %v229_v45  ;;  %vm238_vm4 = vmor %vm236_vm3, %vm237_vm2  ;;  %vm246_vm6 = vweird.f32 %v229_v45 }
 0x1b9   :  { %v232_v47 = vmul.f32 %v1416_v44, %v231_v46  ;;  %v288_v46 = vld [vmem:[%s2544_s5 + $0x50] sm:$0xff] }
 0x1bb   :  { %v233_v49 = vmul.f32 0.5, %v232_v47  ;;  %v272_v2 = vpop.permute.xlu2 %271  ;;  %v318_v47 = vld [vmem:[%s2544_s5 + $0x140] sm:$0xff] }
 0x1bd   :  { %v234_v50 = vsub.f32 1.5, %v233_v49  ;;  %v377_v49 = vld [vmem:[%s2544_s5 + $0x318] sm:$0xff] }
 0x1be   :  { %v1418_v51 = vpop.eup %1417 }
 0x1bf   :  { %v241_v52 = vmul.f32 %v1418_v51, %v229_v45  ;;  %v235_v53 = vmul.f32 %v1416_v44, %v234_v50  ;;  %vm247_vm5 = vweird.f32 %v1418_v51  ;;  %v376_v45 = vld [vmem:[%s2544_s5 + $0x310] sm:$0xff]  ;;  %v289_v50 = vld [vmem:[%s2544_s5 + $0x58] sm:$0xff] }
 0x1c0   :  { %vm248_vm7 = vmor %vm246_vm6, %vm247_vm5 }
 0x1c1   :  { %v242_v54 = vmul.f32 %v1418_v51, %v241_v52  ;;  %v239_v55 = vsel %vm238_vm4, %v1416_v44, %v235_v53  ;;  %v347_v44 = vld [vmem:[%s2544_s5 + $0x228] sm:$0xff]  ;;  %v349_v52 = vld [vmem:[%s2544_s5 + $0x238] sm:$0xff]  ;;  %v378_v53 = vld [vmem:[%s2544_s5 + $0x320] sm:$0xff] }
 0x1c2   :  { %v250_v57 = vmul.f32 %v239_v55, %v216_v32  ;;  %v344_v32 = vld [vmem:[%s2544_s5 + $0x210] sm:$0xff] }
 0x1c3   :  { %v243_v58 = vmul.f32 0.5, %v242_v54  ;;  %v290_v54 = vld [vmem:[%s2544_s5 + $0x60] sm:$0xff]  ;;  %v320_v55 = vld [vmem:[%s2544_s5 + $0x150] sm:$0xff] }
 0x1c4   :  { %v262_v59 = vmul.f32 %v255_v56, %v250_v57  ;;  %v350_v56 = vld [vmem:[%s2544_s5 + $0x240] sm:$0xff]  ;;  %v379_v57 = vld [vmem:[%s2544_s5 + $0x328] sm:$0xff] }
 0x1c5   :  { %v244_v61 = vsub.f32 1.5, %v243_v58  ;;  %v291_v58 = vld [vmem:[%s2544_s5 + $0x68] sm:$0xff] }
 0x1c6   :  { %v274_v62 = vadd.f32 %v267_v60, %v262_v59  ;;  %v321_v59 = vld [vmem:[%s2544_s5 + $0x158] sm:$0xff]  ;;  %v351_v60 = vld [vmem:[%s2544_s5 + $0x248] sm:$0xff] }
 0x1c7   :  { %v245_v63 = vmul.f32 %v1418_v51, %v244_v61  ;;  %v380_v61 = vld [vmem:[%s2544_s5 + $0x330] sm:$0xff] }
 0x1c8   :  { %276 = vst [vmem:[#allocation2] sm:$0xff] %v274_v62 }
 0x1c9   :  { %v249_v0 = vsel %vm248_vm7, %v1418_v51, %v245_v63  ;;  %v319_v51 = vld [vmem:[%s2544_s5 + $0x148] sm:$0xff]  ;;  %v322_v63 = vld [vmem:[%s2544_s5 + $0x160] sm:$0xff] }
 0x1ca   :  { %v251_v1 = vmul.f32 %v249_v0, %v217_v34  ;;  %v285_v34 = vld [vmem:[%s2544_s5 + $0x38] sm:$0xff]  ;;  %v352_v0 = vld [vmem:[%s2544_s5 + $0x250] sm:$0xff] }
 0x1cc   :  { %v263_v3 = vmul.f32 %v260_v48, %v251_v1  ;;  %v348_v48 = vld [vmem:[%s2544_s5 + $0x230] sm:$0xff]  ;;  %v381_v1 = vld [vmem:[%s2544_s5 + $0x338] sm:$0xff] }
 0x1ce   :  { %v275_v4 = vadd.f32 %v272_v2, %v263_v3  ;;  %v293_v2 = vld [vmem:[%s2544_s5 + $0x78] sm:$0xff]  ;;  %v323_v3 = vld [vmem:[%s2544_s5 + $0x168] sm:$0xff] }
 0x1d0   :  { %277 = vst [vmem:[#allocation2 + $0x8] sm:$0xff] %v275_v4  ;;  %773 = vmatpush.msrb.mxu0 %v275_v4  ;;  %1401 = vmatpush.msrb.mxu1 %v275_v4 }
 0x1d1   :  { %1402 = vmatpush.msrb.mxu2 %v275_v4  ;;  %1403 = vmatpush.msrb.mxu3 %v275_v4  ;;  %v353_v4 = vld [vmem:[%s2544_s5 + $0x258] sm:$0xff] }
 0x1d2   :  { %774 = vmatpush.msrb.mxu0 %v274_v62  ;;  %1404 = vmatpush.msrb.mxu1 %v274_v62  ;;  %1268 = dma.vmem_to_hbm [thread:$0]  %s1261_s4, 256, %s1263_s19, [#allocation3], %s1448_s27, %s1448_s27, %s1449_s28  }
 0x1d3   :  { %1405 = vmatpush.msrb.mxu2 %v274_v62  ;;  %1406 = vmatpush.msrb.mxu3 %v274_v62  ;;  %v292_v62 = vld [vmem:[%s2544_s5 + $0x70] sm:$0xff] }
 0x1d4   :  { %1369 = vmatmul.msk.f32.vlgmr.msrb.gmra.mxu3 %vm398_vm8, %v366_v5  ;;  %1281 = vmatmul.msk.f32.vlgmr.msrb.gmra.mxu0 %vm398_vm8, %v278_v6  ;;  %v382_v5 = vld [vmem:[%s2544_s5 + $0x340] sm:$0xff] }
 0x1d5   :  { %1311 = vmatmul.msk.f32.vlgmr.msrb.gmra.mxu1 %vm398_vm8, %v308_v7  ;;  %1341 = vmatmul.msk.f32.vlgmr.msrb.gmra.mxu2 %vm398_vm8, %v338_v8  ;;  %v294_v7 = vld [vmem:[%s2544_s5 + $0x80] sm:$0xff] }
 0x1dc   :  { %1370 = vmatmul.msk.f32.gmra.mxu3 %vm398_vm8, %v367_v9  ;;  %1282 = vmatmul.msk.f32.gmra.mxu0 %vm398_vm8, %v279_v10  ;;  %v324_v9 = vld [vmem:[%s2544_s5 + $0x170] sm:$0xff]  ;;  %v354_v10 = vld [vmem:[%s2544_s5 + $0x260] sm:$0xff] }
 0x1dd   :  { %1312 = vmatmul.msk.f32.gmra.mxu1 %vm398_vm8, %v309_v11  ;;  %1342 = vmatmul.msk.f32.gmra.mxu2 %vm398_vm8, %v339_v12 }
 0x1e4   :  { %1371 = vmatmul.msk.f32.gmra.mxu3 %vm398_vm8, %v368_v13  ;;  %1283 = vmatmul.msk.f32.gmra.mxu0 %vm398_vm8, %v280_v14  ;;  %v383_v13 = vld [vmem:[%s2544_s5 + $0x348] sm:$0xff] }
 0x1e5   :  { %1313 = vmatmul.msk.f32.gmra.mxu1 %vm398_vm8, %v310_v15  ;;  %1343 = vmatmul.msk.f32.gmra.mxu2 %vm398_vm8, %v340_v16  ;;  %v295_v15 = vld [vmem:[%s2544_s5 + $0x88] sm:$0xff] }
 0x1ec   :  { %1372 = vmatmul.msk.f32.gmra.mxu3 %vm398_vm8, %v369_v17  ;;  %1284 = vmatmul.msk.f32.gmra.mxu0 %vm398_vm8, %v281_v18  ;;  %v325_v17 = vld [vmem:[%s2544_s5 + $0x178] sm:$0xff]  ;;  %v355_v18 = vld [vmem:[%s2544_s5 + $0x268] sm:$0xff] }
 0x1ed   :  { %1314 = vmatmul.msk.f32.gmra.mxu1 %vm398_vm8, %v311_v19  ;;  %1344 = vmatmul.msk.f32.gmra.mxu2 %vm398_vm8, %v341_v20 }
 0x1f4   :  { %1373 = vmatmul.msk.f32.gmra.mxu3 %vm398_vm8, %v370_v21  ;;  %1285 = vmatmul.msk.f32.gmra.mxu0 %vm398_vm8, %v282_v22  ;;  %v384_v21 = vld [vmem:[%s2544_s5 + $0x350] sm:$0xff] }
 0x1f5   :  { %1315 = vmatmul.msk.f32.gmra.mxu1 %vm398_vm8, %v312_v23  ;;  %1345 = vmatmul.msk.f32.gmra.mxu2 %vm398_vm8, %v342_v24  ;;  %v296_v23 = vld [vmem:[%s2544_s5 + $0x90] sm:$0xff] }
 0x1fc   :  { %1374 = vmatmul.msk.f32.gmra.mxu3 %vm398_vm8, %v371_v25  ;;  %1286 = vmatmul.msk.f32.gmra.mxu0 %vm398_vm8, %v283_v26  ;;  %v326_v25 = vld [vmem:[%s2544_s5 + $0x180] sm:$0xff]  ;;  %v356_v26 = vld [vmem:[%s2544_s5 + $0x270] sm:$0xff] }
 0x1fd   :  { %1316 = vmatmul.msk.f32.gmra.mxu1 %vm398_vm8, %v313_v27  ;;  %1346 = vmatmul.msk.f32.gmra.mxu2 %vm398_vm8, %v343_v28 }
 0x204   :  { %1375 = vmatmul.msk.f32.gmra.mxu3 %vm398_vm8, %v372_v29  ;;  %1287 = vmatmul.msk.f32.gmra.mxu0 %vm398_vm8, %v284_v30  ;;  %v385_v29 = vld [vmem:[%s2544_s5 + $0x358] sm:$0xff] }
 0x205   :  { %1317 = vmatmul.msk.f32.gmra.mxu1 %vm398_vm8, %v314_v31  ;;  %1347 = vmatmul.msk.f32.gmra.mxu2 %vm398_vm8, %v344_v32  ;;  %v297_v31 = vld [vmem:[%s2544_s5 + $0x98] sm:$0xff] }
 0x20c   :  { %1376 = vmatmul.msk.f32.gmra.mxu3 %vm398_vm8, %v373_v33  ;;  %1288 = vmatmul.msk.f32.gmra.mxu0 %vm398_vm8, %v285_v34  ;;  %v327_v33 = vld [vmem:[%s2544_s5 + $0x188] sm:$0xff]  ;;  %v357_v34 = vld [vmem:[%s2544_s5 + $0x278] sm:$0xff] }
 0x20d   :  { %1318 = vmatmul.msk.f32.gmra.mxu1 %vm398_vm8, %v315_v35  ;;  %1348 = vmatmul.msk.f32.gmra.mxu2 %vm398_vm8, %v345_v36 }
 0x214   :  { %1377 = vmatmul.msk.f32.gmra.mxu3 %vm398_vm8, %v374_v37  ;;  %1289 = vmatmul.msk.f32.gmra.mxu0 %vm398_vm8, %v286_v38  ;;  %v386_v37 = vld [vmem:[%s2544_s5 + $0x360] sm:$0xff] }
 0x215   :  { %1319 = vmatmul.msk.f32.gmra.mxu1 %vm398_vm8, %v316_v39  ;;  %1349 = vmatmul.msk.f32.gmra.mxu2 %vm398_vm8, %v346_v40  ;;  %v298_v39 = vld [vmem:[%s2544_s5 + $0xa0] sm:$0xff] }
 0x21c   :  { %1378 = vmatmul.msk.f32.gmra.mxu3 %vm398_vm8, %v375_v41  ;;  %1290 = vmatmul.msk.f32.gmra.mxu0 %vm398_vm8, %v287_v42  ;;  %v328_v41 = vld [vmem:[%s2544_s5 + $0x190] sm:$0xff]  ;;  %v358_v42 = vld [vmem:[%s2544_s5 + $0x280] sm:$0xff] }
 0x21d   :  { %1320 = vmatmul.msk.f32.gmra.mxu1 %vm398_vm8, %v317_v43  ;;  %1350 = vmatmul.msk.f32.gmra.mxu2 %vm398_vm8, %v347_v44 }
 0x224   :  { %1379 = vmatmul.msk.f32.gmra.mxu3 %vm398_vm8, %v376_v45  ;;  %1291 = vmatmul.msk.f32.gmra.mxu0 %vm398_vm8, %v288_v46  ;;  %v387_v45 = vld [vmem:[%s2544_s5 + $0x368] sm:$0xff] }
 0x225   :  { %1321 = vmatmul.msk.f32.gmra.mxu1 %vm398_vm8, %v318_v47  ;;  %1351 = vmatmul.msk.f32.gmra.mxu2 %vm398_vm8, %v348_v48  ;;  %v299_v47 = vld [vmem:[%s2544_s5 + $0xa8] sm:$0xff] }
 0x22c   :  { %1380 = vmatmul.msk.f32.gmra.mxu3 %vm398_vm8, %v377_v49  ;;  %1292 = vmatmul.msk.f32.gmra.mxu0 %vm398_vm8, %v289_v50  ;;  %v329_v49 = vld [vmem:[%s2544_s5 + $0x198] sm:$0xff]  ;;  %v359_v50 = vld [vmem:[%s2544_s5 + $0x288] sm:$0xff] }
 0x22d   :  { %1322 = vmatmul.msk.f32.gmra.mxu1 %vm398_vm8, %v319_v51  ;;  %1352 = vmatmul.msk.f32.gmra.mxu2 %vm398_vm8, %v349_v52 }
 0x234   :  { %1381 = vmatmul.msk.f32.gmra.mxu3 %vm398_vm8, %v378_v53  ;;  %1293 = vmatmul.msk.f32.gmra.mxu0 %vm398_vm8, %v290_v54  ;;  %v388_v53 = vld [vmem:[%s2544_s5 + $0x370] sm:$0xff] }
 0x235   :  { %1323 = vmatmul.msk.f32.gmra.mxu1 %vm398_vm8, %v320_v55  ;;  %1353 = vmatmul.msk.f32.gmra.mxu2 %vm398_vm8, %v350_v56  ;;  %v300_v55 = vld [vmem:[%s2544_s5 + $0xb0] sm:$0xff] }
 0x23c   :  { %1382 = vmatmul.msk.f32.gmra.mxu3 %vm398_vm8, %v379_v57  ;;  %1294 = vmatmul.msk.f32.gmra.mxu0 %vm398_vm8, %v291_v58  ;;  %v330_v57 = vld [vmem:[%s2544_s5 + $0x1a0] sm:$0xff]  ;;  %v360_v58 = vld [vmem:[%s2544_s5 + $0x290] sm:$0xff] }
 0x23d   :  { %1324 = vmatmul.msk.f32.gmra.mxu1 %vm398_vm8, %v321_v59  ;;  %1354 = vmatmul.msk.f32.gmra.mxu2 %vm398_vm8, %v351_v60 }
 0x244   :  { %1383 = vmatmul.msk.f32.gmra.mxu3 %vm398_vm8, %v380_v61  ;;  %1295 = vmatmul.msk.f32.gmra.mxu0 %vm398_vm8, %v292_v62  ;;  %v389_v61 = vld [vmem:[%s2544_s5 + $0x378] sm:$0xff] }
 0x245   :  { %1325 = vmatmul.msk.f32.gmra.mxu1 %vm398_vm8, %v322_v63  ;;  %1355 = vmatmul.msk.f32.gmra.mxu2 %vm398_vm8, %v352_v0  ;;  %v301_v63 = vld [vmem:[%s2544_s5 + $0xb8] sm:$0xff] }
 0x24c   :  { %1384 = vmatmul.msk.f32.gmra.mxu3 %vm398_vm8, %v381_v1  ;;  %1296 = vmatmul.msk.f32.gmra.mxu0 %vm398_vm8, %v293_v2  ;;  %v331_v1 = vld [vmem:[%s2544_s5 + $0x1a8] sm:$0xff]  ;;  %v361_v2 = vld [vmem:[%s2544_s5 + $0x298] sm:$0xff] }
 0x24d   :  { %1326 = vmatmul.msk.f32.gmra.mxu1 %vm398_vm8, %v323_v3  ;;  %1356 = vmatmul.msk.f32.gmra.mxu2 %vm398_vm8, %v353_v4 }
 0x251   :  { %v776_v6 = vpop.f32.mrf.mxu0 }
 0x252   :  { %1136 = vst [vmem:[%s2546_s7] sm:$0xff] %v776_v6  ;;  %v866_v8 = vpop.f32.mrf.mxu1 }
 0x253   :  { %1166 = vst [vmem:[%s2546_s7 + $0xf0] sm:$0xff] %v866_v8 }
 0x254   :  { %1385 = vmatmul.msk.f32.gmra.mxu3 %vm398_vm8, %v382_v5  ;;  %1297 = vmatmul.msk.f32.gmra.mxu0 %vm398_vm8, %v294_v7  ;;  %v390_v5 = vld [vmem:[%s2544_s5 + $0x380] sm:$0xff] }
 0x255   :  { %1327 = vmatmul.msk.f32.gmra.mxu1 %vm398_vm8, %v324_v9  ;;  %1357 = vmatmul.msk.f32.gmra.mxu2 %vm398_vm8, %v354_v10  ;;  %v302_v7 = vld [vmem:[%s2544_s5 + $0xc0] sm:$0xff]  ;;  %v332_v9 = vld [vmem:[%s2544_s5 + $0x1b0] sm:$0xff] }
 0x256   :  { %v362_v10 = vld [vmem:[%s2544_s5 + $0x2a0] sm:$0xff] }
 0x257   :  { %v1040_v11 = vpop.f32.mrf.mxu3 }
 0x258   :  { %1224 = vst [vmem:[%s2546_s7 + $0x2c0] sm:$0xff] %v1040_v11  ;;  %v956_v12 = vpop.f32.mrf.mxu2 }
 0x259   :  { %v779_v14 = vpop.f32.mrf.mxu0  ;;  %1196 = vst [vmem:[%s2546_s7 + $0x1e0] sm:$0xff] %v956_v12 }
 0x25a   :  { %1137 = vst [vmem:[%s2546_s7 + $0x8] sm:$0xff] %v779_v14  ;;  %v869_v16 = vpop.f32.mrf.mxu1 }
 0x25b   :  { %1167 = vst [vmem:[%s2546_s7 + $0xf8] sm:$0xff] %v869_v16 }
 0x25c   :  { %1386 = vmatmul.msk.f32.gmra.mxu3 %vm398_vm8, %v383_v13  ;;  %1298 = vmatmul.msk.f32.gmra.mxu0 %vm398_vm8, %v295_v15  ;;  %v391_v13 = vld [vmem:[%s2544_s5 + $0x388] sm:$0xff] }
 0x25d   :  { %1328 = vmatmul.msk.f32.gmra.mxu1 %vm398_vm8, %v325_v17  ;;  %1358 = vmatmul.msk.f32.gmra.mxu2 %vm398_vm8, %v355_v18  ;;  %v303_v15 = vld [vmem:[%s2544_s5 + $0xc8] sm:$0xff]  ;;  %v333_v17 = vld [vmem:[%s2544_s5 + $0x1b8] sm:$0xff] }
 0x25e   :  { %v363_v18 = vld [vmem:[%s2544_s5 + $0x2a8] sm:$0xff] }
 0x25f   :  { %v1043_v19 = vpop.f32.mrf.mxu3 }
 0x260   :  { %1225 = vst [vmem:[%s2546_s7 + $0x2c8] sm:$0xff] %v1043_v19  ;;  %v959_v20 = vpop.f32.mrf.mxu2 }
 0x261   :  { %v782_v22 = vpop.f32.mrf.mxu0  ;;  %1197 = vst [vmem:[%s2546_s7 + $0x1e8] sm:$0xff] %v959_v20 }
 0x262   :  { %1138 = vst [vmem:[%s2546_s7 + $0x10] sm:$0xff] %v782_v22  ;;  %v872_v24 = vpop.f32.mrf.mxu1 }
 0x263   :  { %1168 = vst [vmem:[%s2546_s7 + $0x100] sm:$0xff] %v872_v24 }
 0x264   :  { %1387 = vmatmul.msk.f32.gmra.mxu3 %vm398_vm8, %v384_v21  ;;  %1299 = vmatmul.msk.f32.gmra.mxu0 %vm398_vm8, %v296_v23  ;;  %v392_v21 = vld [vmem:[%s2544_s5 + $0x390] sm:$0xff] }
 0x265   :  { %1329 = vmatmul.msk.f32.gmra.mxu1 %vm398_vm8, %v326_v25  ;;  %1359 = vmatmul.msk.f32.gmra.mxu2 %vm398_vm8, %v356_v26  ;;  %v304_v23 = vld [vmem:[%s2544_s5 + $0xd0] sm:$0xff]  ;;  %v334_v25 = vld [vmem:[%s2544_s5 + $0x1c0] sm:$0xff] }
 0x266   :  { %v364_v26 = vld [vmem:[%s2544_s5 + $0x2b0] sm:$0xff] }
 0x267   :  { %v1046_v27 = vpop.f32.mrf.mxu3 }
 0x268   :  { %1226 = vst [vmem:[%s2546_s7 + $0x2d0] sm:$0xff] %v1046_v27  ;;  %v962_v28 = vpop.f32.mrf.mxu2 }
 0x269   :  { %v785_v30 = vpop.f32.mrf.mxu0  ;;  %1198 = vst [vmem:[%s2546_s7 + $0x1f0] sm:$0xff] %v962_v28 }
 0x26a   :  { %1139 = vst [vmem:[%s2546_s7 + $0x18] sm:$0xff] %v785_v30  ;;  %v875_v32 = vpop.f32.mrf.mxu1 }
 0x26b   :  { %1169 = vst [vmem:[%s2546_s7 + $0x108] sm:$0xff] %v875_v32 }
 0x26c   :  { %1388 = vmatmul.msk.f32.gmra.mxu3 %vm398_vm8, %v385_v29  ;;  %1300 = vmatmul.msk.f32.gmra.mxu0 %vm398_vm8, %v297_v31  ;;  %v393_v29 = vld [vmem:[%s2544_s5 + $0x398] sm:$0xff] }
 0x26d   :  { %1330 = vmatmul.msk.f32.gmra.mxu1 %vm398_vm8, %v327_v33  ;;  %1360 = vmatmul.msk.f32.gmra.mxu2 %vm398_vm8, %v357_v34  ;;  %v305_v31 = vld [vmem:[%s2544_s5 + $0xd8] sm:$0xff]  ;;  %v335_v33 = vld [vmem:[%s2544_s5 + $0x1c8] sm:$0xff] }
 0x26e   :  { %v365_v34 = vld [vmem:[%s2544_s5 + $0x2b8] sm:$0xff] }
 0x26f   :  { %v1049_v35 = vpop.f32.mrf.mxu3 }
 0x270   :  { %1227 = vst [vmem:[%s2546_s7 + $0x2d8] sm:$0xff] %v1049_v35  ;;  %v965_v36 = vpop.f32.mrf.mxu2 }
 0x271   :  { %v788_v38 = vpop.f32.mrf.mxu0  ;;  %1199 = vst [vmem:[%s2546_s7 + $0x1f8] sm:$0xff] %v965_v36 }
 0x272   :  { %1140 = vst [vmem:[%s2546_s7 + $0x20] sm:$0xff] %v788_v38  ;;  %v878_v40 = vpop.f32.mrf.mxu1 }
 0x273   :  { %1170 = vst [vmem:[%s2546_s7 + $0x110] sm:$0xff] %v878_v40 }
 0x274   :  { %1389 = vmatmul.msk.f32.gmra.mxu3 %vm398_vm8, %v386_v37  ;;  %1301 = vmatmul.msk.f32.gmra.mxu0 %vm398_vm8, %v298_v39  ;;  %v394_v37 = vld [vmem:[%s2544_s5 + $0x3a0] sm:$0xff] }
 0x275   :  { %1331 = vmatmul.msk.f32.gmra.mxu1 %vm398_vm8, %v328_v41  ;;  %1361 = vmatmul.msk.f32.gmra.mxu2 %vm398_vm8, %v358_v42  ;;  %v306_v39 = vld [vmem:[%s2544_s5 + $0xe0] sm:$0xff]  ;;  %v336_v41 = vld [vmem:[%s2544_s5 + $0x1d0] sm:$0xff] }
 0x277   :  { %v1052_v43 = vpop.f32.mrf.mxu3 }
 0x278   :  { %1228 = vst [vmem:[%s2546_s7 + $0x2e0] sm:$0xff] %v1052_v43  ;;  %v968_v44 = vpop.f32.mrf.mxu2 }
 0x279   :  { %v791_v46 = vpop.f32.mrf.mxu0  ;;  %1200 = vst [vmem:[%s2546_s7 + $0x200] sm:$0xff] %v968_v44  ;;  %v395_v44 = vld [vmem:[%s2544_s5 + $0x3a8] sm:$0xff] }
 0x27a   :  { %1141 = vst [vmem:[%s2546_s7 + $0x28] sm:$0xff] %v791_v46  ;;  %v881_v48 = vpop.f32.mrf.mxu1  ;;  %v307_v46 = vld [vmem:[%s2544_s5 + $0xe8] sm:$0xff] }
 0x27b   :  { %1171 = vst [vmem:[%s2546_s7 + $0x118] sm:$0xff] %v881_v48  ;;  %v337_v48 = vld [vmem:[%s2544_s5 + $0x1d8] sm:$0xff] }
 0x27c   :  { %1390 = vmatmul.msk.f32.gmra.mxu3 %vm398_vm8, %v387_v45  ;;  %1302 = vmatmul.msk.f32.gmra.mxu0 %vm398_vm8, %v299_v47 }
 0x27d   :  { %1332 = vmatmul.msk.f32.gmra.mxu1 %vm398_vm8, %v329_v49  ;;  %1362 = vmatmul.msk.f32.gmra.mxu2 %vm398_vm8, %v359_v50 }
 0x27f   :  { %v1055_v51 = vpop.f32.mrf.mxu3 }
 0x280   :  { %1229 = vst [vmem:[%s2546_s7 + $0x2e8] sm:$0xff] %v1055_v51  ;;  %v971_v52 = vpop.f32.mrf.mxu2  ;;  %v396_v51 = vld [vmem:[%s2544_s5 + $0x3b0] sm:$0xff] }
 0x281   :  { %v794_v54 = vpop.f32.mrf.mxu0  ;;  %1201 = vst [vmem:[%s2546_s7 + $0x208] sm:$0xff] %v971_v52 }
 0x282   :  { %1142 = vst [vmem:[%s2546_s7 + $0x30] sm:$0xff] %v794_v54  ;;  %v884_v56 = vpop.f32.mrf.mxu1 }
 0x283   :  { %1172 = vst [vmem:[%s2546_s7 + $0x120] sm:$0xff] %v884_v56  ;;  %v397_v56 = vld [vmem:[%s2544_s5 + $0x3b8] sm:$0xff] }
 0x284   :  { %1391 = vmatmul.msk.f32.gmra.mxu3 %vm398_vm8, %v388_v53  ;;  %1303 = vmatmul.msk.f32.gmra.mxu0 %vm398_vm8, %v300_v55 }
 0x285   :  { %1333 = vmatmul.msk.f32.gmra.mxu1 %vm398_vm8, %v330_v57  ;;  %1363 = vmatmul.msk.f32.gmra.mxu2 %vm398_vm8, %v360_v58 }
 0x287   :  { %v1058_v59 = vpop.f32.mrf.mxu3 }
 0x288   :  { %1230 = vst [vmem:[%s2546_s7 + $0x2f0] sm:$0xff] %v1058_v59  ;;  %v974_v60 = vpop.f32.mrf.mxu2 }
 0x289   :  { %v797_v62 = vpop.f32.mrf.mxu0  ;;  %1202 = vst [vmem:[%s2546_s7 + $0x210] sm:$0xff] %v974_v60 }
 0x28a   :  { %1143 = vst [vmem:[%s2546_s7 + $0x38] sm:$0xff] %v797_v62  ;;  %v887_v0 = vpop.f32.mrf.mxu1 }
 0x28b   :  { %1173 = vst [vmem:[%s2546_s7 + $0x128] sm:$0xff] %v887_v0 }
 0x28c   :  { %1392 = vmatmul.msk.f32.gmra.mxu3 %vm398_vm8, %v389_v61  ;;  %1304 = vmatmul.msk.f32.gmra.mxu0 %vm398_vm8, %v301_v63 }
 0x28d   :  { %1334 = vmatmul.msk.f32.gmra.mxu1 %vm398_vm8, %v331_v1  ;;  %1364 = vmatmul.msk.f32.gmra.mxu2 %vm398_vm8, %v361_v2 }
 0x28f   :  { %v1061_v3 = vpop.f32.mrf.mxu3 }
 0x290   :  { %1231 = vst [vmem:[%s2546_s7 + $0x2f8] sm:$0xff] %v1061_v3  ;;  %v977_v4 = vpop.f32.mrf.mxu2 }
 0x291   :  { %v800_v6 = vpop.f32.mrf.mxu0  ;;  %1203 = vst [vmem:[%s2546_s7 + $0x218] sm:$0xff] %v977_v4 }
 0x292   :  { %1144 = vst [vmem:[%s2546_s7 + $0x40] sm:$0xff] %v800_v6  ;;  %v890_v8 = vpop.f32.mrf.mxu1 }
 0x293   :  { %1174 = vst [vmem:[%s2546_s7 + $0x130] sm:$0xff] %v890_v8 }
 0x294   :  { %1393 = vmatmul.msk.f32.gmra.mxu3 %vm398_vm8, %v390_v5  ;;  %1305 = vmatmul.msk.f32.gmra.mxu0 %vm398_vm8, %v302_v7 }
 0x295   :  { %1335 = vmatmul.msk.f32.gmra.mxu1 %vm398_vm8, %v332_v9  ;;  %1365 = vmatmul.msk.f32.gmra.mxu2 %vm398_vm8, %v362_v10 }
 0x297   :  { %v1064_v11 = vpop.f32.mrf.mxu3 }
 0x298   :  { %1232 = vst [vmem:[%s2546_s7 + $0x300] sm:$0xff] %v1064_v11  ;;  %v980_v12 = vpop.f32.mrf.mxu2 }
 0x299   :  { %v803_v14 = vpop.f32.mrf.mxu0  ;;  %1204 = vst [vmem:[%s2546_s7 + $0x220] sm:$0xff] %v980_v12 }
 0x29a   :  { %1145 = vst [vmem:[%s2546_s7 + $0x48] sm:$0xff] %v803_v14  ;;  %v893_v16 = vpop.f32.mrf.mxu1 }
 0x29b   :  { %1175 = vst [vmem:[%s2546_s7 + $0x138] sm:$0xff] %v893_v16 }
 0x29c   :  { %1394 = vmatmul.msk.f32.gmra.mxu3 %vm398_vm8, %v391_v13  ;;  %1306 = vmatmul.msk.f32.gmra.mxu0 %vm398_vm8, %v303_v15 }
 0x29d   :  { %1336 = vmatmul.msk.f32.gmra.mxu1 %vm398_vm8, %v333_v17  ;;  %1366 = vmatmul.msk.f32.gmra.mxu2 %vm398_vm8, %v363_v18 }
 0x29f   :  { %v1067_v19 = vpop.f32.mrf.mxu3 }
 0x2a0   :  { %1233 = vst [vmem:[%s2546_s7 + $0x308] sm:$0xff] %v1067_v19  ;;  %v983_v20 = vpop.f32.mrf.mxu2 }
 0x2a1   :  { %v806_v22 = vpop.f32.mrf.mxu0  ;;  %1205 = vst [vmem:[%s2546_s7 + $0x228] sm:$0xff] %v983_v20 }
 0x2a2   :  { %1146 = vst [vmem:[%s2546_s7 + $0x50] sm:$0xff] %v806_v22  ;;  %v896_v24 = vpop.f32.mrf.mxu1 }
 0x2a3   :  { %1176 = vst [vmem:[%s2546_s7 + $0x140] sm:$0xff] %v896_v24 }
 0x2a4   :  { %1395 = vmatmul.msk.f32.gmra.mxu3 %vm398_vm8, %v392_v21  ;;  %1307 = vmatmul.msk.f32.gmra.mxu0 %vm398_vm8, %v304_v23 }
 0x2a5   :  { %1337 = vmatmul.msk.f32.gmra.mxu1 %vm398_vm8, %v334_v25  ;;  %1367 = vmatmul.msk.f32.gmra.mxu2 %vm398_vm8, %v364_v26 }
 0x2a7   :  { %v1070_v27 = vpop.f32.mrf.mxu3 }
 0x2a8   :  { %1234 = vst [vmem:[%s2546_s7 + $0x310] sm:$0xff] %v1070_v27  ;;  %v986_v28 = vpop.f32.mrf.mxu2 }
 0x2a9   :  { %v809_v30 = vpop.f32.mrf.mxu0  ;;  %1206 = vst [vmem:[%s2546_s7 + $0x230] sm:$0xff] %v986_v28 }
 0x2aa   :  { %1147 = vst [vmem:[%s2546_s7 + $0x58] sm:$0xff] %v809_v30  ;;  %v899_v32 = vpop.f32.mrf.mxu1 }
 0x2ab   :  { %1177 = vst [vmem:[%s2546_s7 + $0x148] sm:$0xff] %v899_v32 }
 0x2ac   :  { %1396 = vmatmul.msk.f32.gmra.mxu3 %vm398_vm8, %v393_v29  ;;  %1308 = vmatmul.msk.f32.gmra.mxu0 %vm398_vm8, %v305_v31 }
 0x2ad   :  { %1338 = vmatmul.msk.f32.gmra.mxu1 %vm398_vm8, %v335_v33  ;;  %1368 = vmatmul.msk.f32.gmra.mxu2 %vm398_vm8, %v365_v34 }
 0x2af   :  { %v1073_v35 = vpop.f32.mrf.mxu3 }
 0x2b0   :  { %1235 = vst [vmem:[%s2546_s7 + $0x318] sm:$0xff] %v1073_v35  ;;  %v989_v36 = vpop.f32.mrf.mxu2 }
 0x2b1   :  { %v812_v38 = vpop.f32.mrf.mxu0  ;;  %1207 = vst [vmem:[%s2546_s7 + $0x238] sm:$0xff] %v989_v36 }
 0x2b2   :  { %1148 = vst [vmem:[%s2546_s7 + $0x60] sm:$0xff] %v812_v38  ;;  %v902_v40 = vpop.f32.mrf.mxu1 }
 0x2b3   :  { %1178 = vst [vmem:[%s2546_s7 + $0x150] sm:$0xff] %v902_v40 }
 0x2b4   :  { %1397 = vmatmul.msk.f32.gmra.mxu3 %vm398_vm8, %v394_v37  ;;  %1309 = vmatmul.msk.f32.gmra.mxu0 %vm398_vm8, %v306_v39 }
 0x2b5   :  { %1339 = vmatmul.msk.f32.gmra.mxu1 %vm398_vm8, %v336_v41 }
 0x2b7   :  { %v1076_v42 = vpop.f32.mrf.mxu3 }
 0x2b8   :  { %1236 = vst [vmem:[%s2546_s7 + $0x320] sm:$0xff] %v1076_v42  ;;  %v992_v43 = vpop.f32.mrf.mxu2 }
 0x2b9   :  { %v815_v45 = vpop.f32.mrf.mxu0  ;;  %1208 = vst [vmem:[%s2546_s7 + $0x240] sm:$0xff] %v992_v43 }
 0x2ba   :  { %1149 = vst [vmem:[%s2546_s7 + $0x68] sm:$0xff] %v815_v45  ;;  %v905_v47 = vpop.f32.mrf.mxu1 }
 0x2bb   :  { %1179 = vst [vmem:[%s2546_s7 + $0x158] sm:$0xff] %v905_v47 }
 0x2bc   :  { %1398 = vmatmul.msk.f32.gmra.mxu3 %vm398_vm8, %v395_v44  ;;  %1310 = vmatmul.msk.f32.gmra.mxu0 %vm398_vm8, %v307_v46 }
 0x2bd   :  { %1340 = vmatmul.msk.f32.gmra.mxu1 %vm398_vm8, %v337_v48 }
 0x2bf   :  { %v1079_v49 = vpop.f32.mrf.mxu3 }
 0x2c0   :  { %1237 = vst [vmem:[%s2546_s7 + $0x328] sm:$0xff] %v1079_v49  ;;  %v995_v50 = vpop.f32.mrf.mxu2 }
 0x2c1   :  { %v818_v52 = vpop.f32.mrf.mxu0  ;;  %1209 = vst [vmem:[%s2546_s7 + $0x248] sm:$0xff] %v995_v50 }
 0x2c2   :  { %1150 = vst [vmem:[%s2546_s7 + $0x70] sm:$0xff] %v818_v52  ;;  %v908_v53 = vpop.f32.mrf.mxu1 }
 0x2c3   :  { %1180 = vst [vmem:[%s2546_s7 + $0x160] sm:$0xff] %v908_v53 }
 0x2c4   :  { %1399 = vmatmul.msk.f32.gmra.mxu3 %vm398_vm8, %v396_v51 }
 0x2c7   :  { %v1082_v54 = vpop.f32.mrf.mxu3 }
 0x2c8   :  { %1238 = vst [vmem:[%s2546_s7 + $0x330] sm:$0xff] %v1082_v54  ;;  %v998_v55 = vpop.f32.mrf.mxu2 }
 0x2c9   :  { %v821_v57 = vpop.f32.mrf.mxu0  ;;  %1210 = vst [vmem:[%s2546_s7 + $0x250] sm:$0xff] %v998_v55 }
 0x2ca   :  { %1151 = vst [vmem:[%s2546_s7 + $0x78] sm:$0xff] %v821_v57  ;;  %v911_v58 = vpop.f32.mrf.mxu1 }
 0x2cb   :  { %1181 = vst [vmem:[%s2546_s7 + $0x168] sm:$0xff] %v911_v58 }
 0x2cc   :  { %1400 = vmatmul.msk.f32.gmra.mxu3 %vm398_vm8, %v397_v56 }
 0x2cf   :  { %v1085_v59 = vpop.f32.mrf.mxu3 }
 0x2d0   :  { %1239 = vst [vmem:[%s2546_s7 + $0x338] sm:$0xff] %v1085_v59  ;;  %v1001_v60 = vpop.f32.mrf.mxu2 }
 0x2d1   :  { %v824_v61 = vpop.f32.mrf.mxu0  ;;  %1211 = vst [vmem:[%s2546_s7 + $0x258] sm:$0xff] %v1001_v60 }
 0x2d2   :  { %1152 = vst [vmem:[%s2546_s7 + $0x80] sm:$0xff] %v824_v61  ;;  %v914_v62 = vpop.f32.mrf.mxu1 }
 0x2d3   :  { %1182 = vst [vmem:[%s2546_s7 + $0x170] sm:$0xff] %v914_v62 }
 0x2d7   :  { %v1088_v63 = vpop.f32.mrf.mxu3 }
 0x2d8   :  { %1240 = vst [vmem:[%s2546_s7 + $0x340] sm:$0xff] %v1088_v63  ;;  %v1004_v0 = vpop.f32.mrf.mxu2 }
 0x2d9   :  { %v827_v1 = vpop.f32.mrf.mxu0  ;;  %1212 = vst [vmem:[%s2546_s7 + $0x260] sm:$0xff] %v1004_v0 }
 0x2da   :  { %1153 = vst [vmem:[%s2546_s7 + $0x88] sm:$0xff] %v827_v1  ;;  %v917_v2 = vpop.f32.mrf.mxu1 }
 0x2db   :  { %1183 = vst [vmem:[%s2546_s7 + $0x178] sm:$0xff] %v917_v2 }
 0x2df   :  { %v1091_v3 = vpop.f32.mrf.mxu3 }
 0x2e0   :  { %1241 = vst [vmem:[%s2546_s7 + $0x348] sm:$0xff] %v1091_v3  ;;  %v1007_v4 = vpop.f32.mrf.mxu2 }
 0x2e1   :  { %v830_v5 = vpop.f32.mrf.mxu0  ;;  %1213 = vst [vmem:[%s2546_s7 + $0x268] sm:$0xff] %v1007_v4 }
 0x2e2   :  { %1154 = vst [vmem:[%s2546_s7 + $0x90] sm:$0xff] %v830_v5  ;;  %v920_v6 = vpop.f32.mrf.mxu1 }
 0x2e3   :  { %1184 = vst [vmem:[%s2546_s7 + $0x180] sm:$0xff] %v920_v6 }
 0x2e7   :  { %v1094_v7 = vpop.f32.mrf.mxu3 }
 0x2e8   :  { %1242 = vst [vmem:[%s2546_s7 + $0x350] sm:$0xff] %v1094_v7  ;;  %v1010_v8 = vpop.f32.mrf.mxu2 }
 0x2e9   :  { %v833_v9 = vpop.f32.mrf.mxu0  ;;  %1214 = vst [vmem:[%s2546_s7 + $0x270] sm:$0xff] %v1010_v8 }
 0x2ea   :  { %1155 = vst [vmem:[%s2546_s7 + $0x98] sm:$0xff] %v833_v9  ;;  %v923_v10 = vpop.f32.mrf.mxu1 }
 0x2eb   :  { %1185 = vst [vmem:[%s2546_s7 + $0x188] sm:$0xff] %v923_v10 }
 0x2ef   :  { %v1097_v11 = vpop.f32.mrf.mxu3 }
 0x2f0   :  { %1243 = vst [vmem:[%s2546_s7 + $0x358] sm:$0xff] %v1097_v11  ;;  %v1013_v12 = vpop.f32.mrf.mxu2 }
 0x2f1   :  { %v836_v13 = vpop.f32.mrf.mxu0  ;;  %1215 = vst [vmem:[%s2546_s7 + $0x278] sm:$0xff] %v1013_v12 }
 0x2f2   :  { %1156 = vst [vmem:[%s2546_s7 + $0xa0] sm:$0xff] %v836_v13  ;;  %v926_v14 = vpop.f32.mrf.mxu1 }
 0x2f3   :  { %1186 = vst [vmem:[%s2546_s7 + $0x190] sm:$0xff] %v926_v14 }
 0x2f7   :  { %v1100_v15 = vpop.f32.mrf.mxu3 }
 0x2f8   :  { %1244 = vst [vmem:[%s2546_s7 + $0x360] sm:$0xff] %v1100_v15  ;;  %v1016_v16 = vpop.f32.mrf.mxu2 }
 0x2f9   :  { %v839_v17 = vpop.f32.mrf.mxu0  ;;  %1216 = vst [vmem:[%s2546_s7 + $0x280] sm:$0xff] %v1016_v16 }
 0x2fa   :  { %1157 = vst [vmem:[%s2546_s7 + $0xa8] sm:$0xff] %v839_v17  ;;  %v929_v18 = vpop.f32.mrf.mxu1 }
 0x2fb   :  { %1187 = vst [vmem:[%s2546_s7 + $0x198] sm:$0xff] %v929_v18 }
 0x2ff   :  { %v1103_v19 = vpop.f32.mrf.mxu3 }
 0x300   :  { %1245 = vst [vmem:[%s2546_s7 + $0x368] sm:$0xff] %v1103_v19  ;;  %v1019_v20 = vpop.f32.mrf.mxu2 }
 0x301   :  { %v842_v21 = vpop.f32.mrf.mxu0  ;;  %1217 = vst [vmem:[%s2546_s7 + $0x288] sm:$0xff] %v1019_v20 }
 0x302   :  { %1158 = vst [vmem:[%s2546_s7 + $0xb0] sm:$0xff] %v842_v21  ;;  %v932_v22 = vpop.f32.mrf.mxu1 }
 0x303   :  { %1188 = vst [vmem:[%s2546_s7 + $0x1a0] sm:$0xff] %v932_v22 }
 0x307   :  { %v1106_v23 = vpop.f32.mrf.mxu3 }
 0x308   :  { %1246 = vst [vmem:[%s2546_s7 + $0x370] sm:$0xff] %v1106_v23  ;;  %v1022_v24 = vpop.f32.mrf.mxu2 }
 0x309   :  { %v845_v25 = vpop.f32.mrf.mxu0  ;;  %1218 = vst [vmem:[%s2546_s7 + $0x290] sm:$0xff] %v1022_v24 }
 0x30a   :  { %1159 = vst [vmem:[%s2546_s7 + $0xb8] sm:$0xff] %v845_v25  ;;  %v935_v26 = vpop.f32.mrf.mxu1 }
 0x30b   :  { %1189 = vst [vmem:[%s2546_s7 + $0x1a8] sm:$0xff] %v935_v26 }
 0x30f   :  { %v1109_v27 = vpop.f32.mrf.mxu3 }
 0x310   :  { %1247 = vst [vmem:[%s2546_s7 + $0x378] sm:$0xff] %v1109_v27  ;;  %v1025_v28 = vpop.f32.mrf.mxu2 }
 0x311   :  { %v848_v29 = vpop.f32.mrf.mxu0  ;;  %1219 = vst [vmem:[%s2546_s7 + $0x298] sm:$0xff] %v1025_v28 }
 0x312   :  { %1160 = vst [vmem:[%s2546_s7 + $0xc0] sm:$0xff] %v848_v29  ;;  %v938_v30 = vpop.f32.mrf.mxu1 }
 0x313   :  { %1190 = vst [vmem:[%s2546_s7 + $0x1b0] sm:$0xff] %v938_v30 }
 0x317   :  { %v1112_v31 = vpop.f32.mrf.mxu3 }
 0x318   :  { %1248 = vst [vmem:[%s2546_s7 + $0x380] sm:$0xff] %v1112_v31  ;;  %v1028_v32 = vpop.f32.mrf.mxu2 }
 0x319   :  { %v851_v33 = vpop.f32.mrf.mxu0  ;;  %1220 = vst [vmem:[%s2546_s7 + $0x2a0] sm:$0xff] %v1028_v32 }
 0x31a   :  { %1161 = vst [vmem:[%s2546_s7 + $0xc8] sm:$0xff] %v851_v33  ;;  %v941_v34 = vpop.f32.mrf.mxu1 }
 0x31b   :  { %1191 = vst [vmem:[%s2546_s7 + $0x1b8] sm:$0xff] %v941_v34 }
 0x31f   :  { %v1115_v35 = vpop.f32.mrf.mxu3 }
 0x320   :  { %1249 = vst [vmem:[%s2546_s7 + $0x388] sm:$0xff] %v1115_v35  ;;  %v1031_v36 = vpop.f32.mrf.mxu2 }
 0x321   :  { %v854_v37 = vpop.f32.mrf.mxu0  ;;  %1221 = vst [vmem:[%s2546_s7 + $0x2a8] sm:$0xff] %v1031_v36 }
 0x322   :  { %1162 = vst [vmem:[%s2546_s7 + $0xd0] sm:$0xff] %v854_v37  ;;  %v944_v38 = vpop.f32.mrf.mxu1 }
 0x323   :  { %1192 = vst [vmem:[%s2546_s7 + $0x1c0] sm:$0xff] %v944_v38 }
 0x327   :  { %v1118_v39 = vpop.f32.mrf.mxu3 }
 0x328   :  { %1250 = vst [vmem:[%s2546_s7 + $0x390] sm:$0xff] %v1118_v39  ;;  %v1034_v40 = vpop.f32.mrf.mxu2 }
 0x329   :  { %v857_v41 = vpop.f32.mrf.mxu0  ;;  %1222 = vst [vmem:[%s2546_s7 + $0x2b0] sm:$0xff] %v1034_v40 }
 0x32a   :  { %1163 = vst [vmem:[%s2546_s7 + $0xd8] sm:$0xff] %v857_v41  ;;  %v947_v42 = vpop.f32.mrf.mxu1 }
 0x32b   :  { %1193 = vst [vmem:[%s2546_s7 + $0x1c8] sm:$0xff] %v947_v42 }
 0x32f   :  { %v1121_v43 = vpop.f32.mrf.mxu3 }
 0x330   :  { %1251 = vst [vmem:[%s2546_s7 + $0x398] sm:$0xff] %v1121_v43  ;;  %v1037_v44 = vpop.f32.mrf.mxu2 }
 0x331   :  { %v860_v45 = vpop.f32.mrf.mxu0  ;;  %1223 = vst [vmem:[%s2546_s7 + $0x2b8] sm:$0xff] %v1037_v44 }
 0x332   :  { %1164 = vst [vmem:[%s2546_s7 + $0xe0] sm:$0xff] %v860_v45  ;;  %v950_v46 = vpop.f32.mrf.mxu1 }
 0x333   :  { %1194 = vst [vmem:[%s2546_s7 + $0x1d0] sm:$0xff] %v950_v46 }
 0x337   :  { %v1124_v47 = vpop.f32.mrf.mxu3 }
 0x338   :  { %1252 = vst [vmem:[%s2546_s7 + $0x3a0] sm:$0xff] %v1124_v47 }
 0x339   :  { %v863_v48 = vpop.f32.mrf.mxu0 }
 0x33a   :  { %1165 = vst [vmem:[%s2546_s7 + $0xe8] sm:$0xff] %v863_v48  ;;  %v953_v49 = vpop.f32.mrf.mxu1 }
 0x33b   :  { %1195 = vst [vmem:[%s2546_s7 + $0x1d8] sm:$0xff] %v953_v49 }
 0x33f   :  { %v1127_v50 = vpop.f32.mrf.mxu3 }
 0x340   :  { %1253 = vst [vmem:[%s2546_s7 + $0x3a8] sm:$0xff] %v1127_v50 }
 0x347   :  { %v1130_v51 = vpop.f32.mrf.mxu3 }
 0x348   :  { %1254 = vst [vmem:[%s2546_s7 + $0x3b0] sm:$0xff] %v1130_v51 }
 0x34f   :  { %v1133_v52 = vpop.f32.mrf.mxu3 }
 0x350   :  { %1255 = vst [vmem:[%s2546_s7 + $0x3b8] sm:$0xff] %v1133_v52 }
 0x351   :  { %1443 = dma.done.wait [#allocation3], 256  }
 0x352   :  { %1444 = vsyncadd [#allocation3], 4294967040 }
 0x353   :  { %1277 = vsyncpa [#allocation3], 1 }

// kernel: cnn_autoencoder_forward.11
= control target key start
LH: loop header
LB: loop body
LE: loop exit
PB: predicated region body
PF: predicated region fallthrough
CT: control target
= control target key end

     0   :  { %v3274_v0 = vmov 0   ;;  %v52_v5 = vlaneseq  ;;  %v3275_v16 = vmov 0.0   ;;  %vm316_vm7 = vcmask 130048   ;;  %s5742_s1 = inlined_call_operand.vmem [shape: f32[16,1], index: 1, kind: input, shape index: {}]   ;;  %s5743_s2 = inlined_call_operand.vmem [shape: f32[16,1], index: 2, kind: input, shape index: {}]   ;;  %s5744_s3 = inlined_call_operand.vmem [shape: f32[16,1], index: 3, kind: input, shape index: {}]   ;;  %s5745_s0 = inlined_call_operand.vmem [shape: f32[16,512], index: 0, kind: input, shape index: {}]   ;;  %s5746_s4 = inlined_call_operand.vmem [shape: f32[1000,16], index: 4, kind: input, shape index: {}]   ;;  %s5747_s5 = inlined_call_operand.vmem [shape: f32[1000,512], index: 5, kind: output, shape index: {}]  }
   0x1   :  { %3267 = vset.pattern.permute.xlu0 %v3274_v0  ;;  %v29_v1 = vld [vmem:[%s5742_s1 + $0x8] sm:$0xff]  ;;  %3268 = vset.pattern.permute.xlu1 %v3274_v0  ;;  %v28_v2 = vld [vmem:[%s5742_s1] sm:$0xff]  ;;  %v27_v10 = vld [vmem:[%s5745_s0 + $0x38] sm:$0xff] }
   0x2   :  { %37 = vperm.xlu0 %3267, %v29_v1   ;;  %3269 = vset.pattern.permute.xlu2 %v3274_v0  ;;  %v49_v3 = vld [vmem:[%s5743_s2 + $0x8] sm:$0xff]  ;;  %v50_v4 = vld [vmem:[%s5744_s3] sm:$0xff]  ;;  %v53_v6 = vand.u32 127, %v52_v5  ;;  %v26_v12 = vld [vmem:[%s5745_s0 + $0x30] sm:$0xff] }
   0x3   :  { %v24_v8 = vld [vmem:[%s5745_s0 + $0x20] sm:$0xff]  ;;  %v25_v9 = vld [vmem:[%s5745_s0 + $0x28] sm:$0xff]  ;;  %v23_v24 = vld [vmem:[%s5745_s0 + $0x18] sm:$0xff] }
   0x4   :  { %v56_v7 = vadd.s32 384, %v53_v6  ;;  %v20_v22 = vld [vmem:[%s5745_s0] sm:$0xff]  ;;  %v21_v23 = vld [vmem:[%s5745_s0 + $0x8] sm:$0xff]  ;;  %v22_v27 = vld [vmem:[%s5745_s0 + $0x10] sm:$0xff] }
   0x5   :  { %v48_v36 = vld [vmem:[%s5743_s2] sm:$0xff]  ;;  %v51_v1 = vld [vmem:[%s5744_s3 + $0x8] sm:$0xff] }
   0x6   :  { %vm60_vm0 = vcmp.lt.s32.totalorder %v56_v7, 420 }
   0x7   :  { %v2764_v17 = vsel %vm60_vm0, 1.0, %v3275_v16 }
   0xa   :  { %32 = vperm.xlu0 %3267, %v28_v2  }
  0x12   :  { %162 = vperm.xlu0 %3267, %v49_v3  }
  0x1a   :  { %175 = vperm.xlu0 %3267, %v50_v4  }
  0x74   :  { %v38_v11 = vpop.permute.xlu0 %37 }
  0x75   :  { %v44_v13 = vadd.f32 %v38_v11, %v24_v8  ;;  %v45_v14 = vadd.f32 %v38_v11, %v25_v9  ;;  %v47_v15 = vadd.f32 %v38_v11, %v27_v10  ;;  %v46_v18 = vadd.f32 %v38_v11, %v26_v12 }
  0x77   :  { %v82_v19 = vadd.f32 %v45_v14, %v44_v13  ;;  %v76_v20 = vmul.f32 %v2764_v17, %v47_v15 }
  0x79   :  { %v83_v21 = vadd.f32 %v82_v19, %v46_v18 }
  0x7b   :  { %v84_v25 = vadd.f32 %v83_v21, %v76_v20 }
  0x7c   :  { %v33_v26 = vpop.permute.xlu0 %32 }
  0x7d   :  { %v40_v28 = vadd.f32 %v33_v26, %v20_v22  ;;  %v41_v29 = vadd.f32 %v33_v26, %v21_v23  ;;  %85 = vadd.xlane.f32.xlu1 %v84_v25  ;;  %v43_v30 = vadd.f32 %v33_v26, %v23_v24  ;;  %v42_v31 = vadd.f32 %v33_v26, %v22_v27 }
  0x7f   :  { %v77_v32 = vadd.f32 %v41_v29, %v40_v28  ;;  %v72_v33 = vmul.f32 %v2764_v17, %v43_v30 }
  0x81   :  { %v78_v34 = vadd.f32 %v77_v32, %v42_v31 }
  0x83   :  { %v79_v35 = vadd.f32 %v78_v34, %v72_v33 }
  0x84   :  { %v163_v22 = vpop.permute.xlu0 %162 }
  0x85   :  { %80 = vadd.xlane.f32.xlu1 %v79_v35 }
  0x9e   :  { %157 = vperm.xlu1 %3268, %v48_v36  }
  0xf0   :  { %v86_v37 = vpop.xlane.xlu1 %85 }
  0xf1   :  { %v88_v38 = vmul.f32 0.0023809525, %v86_v37 }
  0xf3   :  { %v93_v39 = vsub.f32 %v44_v13, %v88_v38  ;;  %v94_v40 = vsub.f32 %v45_v14, %v88_v38  ;;  %v95_v41 = vsub.f32 %v46_v18, %v88_v38  ;;  %v96_v42 = vsub.f32 %v47_v15, %v88_v38 }
  0xf5   :  { %v104_v43 = vmul.f32 %v2764_v17, %v96_v42  ;;  %v109_v44 = vmul.f32 %v93_v39, %v93_v39  ;;  %v110_v45 = vmul.f32 %v94_v40, %v94_v40  ;;  %v111_v46 = vmul.f32 %v95_v41, %v95_v41 }
  0xf7   :  { %v118_v47 = vadd.f32 %v110_v45, %v109_v44  ;;  %v112_v50 = vmul.f32 %v104_v43, %v104_v43  ;;  %v176_v45 = vpop.permute.xlu0 %175 }
  0xf8   :  { %v81_v48 = vpop.xlane.xlu1 %80 }
  0xf9   :  { %v87_v49 = vmul.f32 0.0023809525, %v81_v48  ;;  %v119_v51 = vadd.f32 %v118_v47, %v111_v46 }
  0xfb   :  { %v3345_v52 = vsub.f32 %v40_v28, %v87_v49  ;;  %v3347_v53 = vsub.f32 %v41_v29, %v87_v49  ;;  %v120_v54 = vadd.f32 %v119_v51, %v112_v50  ;;  %v3349_v55 = vsub.f32 %v42_v31, %v87_v49  ;;  %v191_v50 = vld [vmem:[%s5746_s4] sm:$0xff]  ;;  %v192_v51 = vld [vmem:[%s5746_s4 + $0x8] sm:$0xff] }
  0xfc   :  { %v3351_v56 = vsub.f32 %v43_v30, %v87_v49 }
  0xfd   :  { %121 = vadd.xlane.f32.xlu2 %v120_v54  ;;  %v105_v57 = vmul.f32 %v3345_v52, %v3345_v52  ;;  %v106_v58 = vmul.f32 %v3347_v53, %v3347_v53  ;;  %v107_v60 = vmul.f32 %v3349_v55, %v3349_v55  ;;  %v195_v54 = vld [vmem:[%s5746_s4 + $0x20] sm:$0xff] }
  0xfe   :  { %v100_v59 = vmul.f32 %v2764_v17, %v3351_v56 }
  0xff   :  { %v113_v61 = vadd.f32 %v106_v58, %v105_v57  ;;  %v198_v57 = vld [vmem:[%s5746_s4 + $0x38] sm:$0xff]  ;;  %v199_v58 = vld [vmem:[%s5746_s4 + $0x40] sm:$0xff] }
 0x100   :  { %v108_v62 = vmul.f32 %v100_v59, %v100_v59  ;;  %v200_v59 = vld [vmem:[%s5746_s4 + $0x48] sm:$0xff] }
 0x101   :  { %v114_v63 = vadd.f32 %v113_v61, %v107_v60  ;;  %v201_v60 = vld [vmem:[%s5746_s4 + $0x50] sm:$0xff]  ;;  %v202_v61 = vld [vmem:[%s5746_s4 + $0x58] sm:$0xff] }
 0x103   :  { %v115_v0 = vadd.f32 %v114_v63, %v108_v62  ;;  %v203_v62 = vld [vmem:[%s5746_s4 + $0x60] sm:$0xff]  ;;  %v204_v63 = vld [vmem:[%s5746_s4 + $0x68] sm:$0xff] }
 0x105   :  { %116 = vadd.xlane.f32.xlu2 %v115_v0  ;;  %v205_v0 = vld [vmem:[%s5746_s4 + $0x70] sm:$0xff] }
 0x110   :  { %v158_v36 = vpop.permute.xlu1 %157 }
 0x11d   :  { %180 = vperm.xlu2 %3269, %v51_v1   ;;  %v206_v1 = vld [vmem:[%s5746_s4 + $0x78] sm:$0xff] }
 0x170   :  { %v122_v2 = vpop.xlane.xlu2 %121 }
 0x171   :  { %v124_v3 = vmul.f32 0.0023809525, %v122_v2  ;;  %v207_v2 = vld [vmem:[%s5746_s4 + $0x80] sm:$0xff] }
 0x173   :  { %v126_v4 = vadd.f32 1e-05, %v124_v3 }
 0x175   :  { %3270 = vrsqrt.f32 %v126_v4  ;;  %vm143_vm2 = vweird.f32 %v126_v4 }
 0x178   :  { %v117_v5 = vpop.xlane.xlu2 %116 }
 0x179   :  { %v123_v6 = vmul.f32 0.0023809525, %v117_v5 }
 0x17b   :  { %v3271_v7 = vpop.eup %3270  ;;  %v125_v8 = vadd.f32 1e-05, %v123_v6 }
 0x17c   :  { %v138_v9 = vmul.f32 %v3271_v7, %v126_v4  ;;  %vm144_vm1 = vweird.f32 %v3271_v7 }
 0x17d   :  { %3272 = vrsqrt.f32 %v125_v8  ;;  %vm145_vm3 = vmor %vm143_vm2, %vm144_vm1  ;;  %vm133_vm5 = vweird.f32 %v125_v8 }
 0x17e   :  { %v139_v10 = vmul.f32 %v3271_v7, %v138_v9 }
 0x180   :  { %v140_v11 = vmul.f32 0.5, %v139_v10  ;;  %v181_v24 = vpop.permute.xlu2 %180 }
 0x182   :  { %v141_v12 = vsub.f32 1.5, %v140_v11 }
 0x183   :  { %v3273_v13 = vpop.eup %3272 }
 0x184   :  { %v142_v14 = vmul.f32 %v3271_v7, %v141_v12  ;;  %v128_v15 = vmul.f32 %v3273_v13, %v125_v8  ;;  %vm134_vm4 = vweird.f32 %v3273_v13  ;;  %v209_v12 = vld [vmem:[%s5746_s4 + $0x90] sm:$0xff] }
 0x185   :  { %vm135_vm6 = vmor %vm133_vm5, %vm134_vm4 }
 0x186   :  { %v129_v16 = vmul.f32 %v3273_v13, %v128_v15  ;;  %v146_v17 = vsel %vm145_vm3, %v3271_v7, %v142_v14  ;;  %v208_v7 = vld [vmem:[%s5746_s4 + $0x88] sm:$0xff] }
 0x187   :  { %v151_v18 = vmul.f32 %v146_v17, %v93_v39  ;;  %v152_v19 = vmul.f32 %v146_v17, %v94_v40  ;;  %v153_v20 = vmul.f32 %v146_v17, %v95_v41  ;;  %v154_v21 = vmul.f32 %v146_v17, %v96_v42  ;;  %v210_v17 = vld [vmem:[%s5746_s4 + $0x98] sm:$0xff] }
 0x188   :  { %v130_v23 = vmul.f32 0.5, %v129_v16 }
 0x189   :  { %v169_v25 = vmul.f32 %v163_v22, %v151_v18  ;;  %v170_v26 = vmul.f32 %v163_v22, %v152_v19  ;;  %v171_v27 = vmul.f32 %v163_v22, %v153_v20  ;;  %v172_v28 = vmul.f32 %v163_v22, %v154_v21  ;;  %v211_v22 = vld [vmem:[%s5746_s4 + $0xa0] sm:$0xff] }
 0x18a   :  { %v131_v29 = vsub.f32 1.5, %v130_v23 }
 0x18b   :  { %v187_v30 = vadd.f32 %v181_v24, %v169_v25  ;;  %v188_v31 = vadd.f32 %v181_v24, %v170_v26  ;;  %v189_v32 = vadd.f32 %v181_v24, %v171_v27  ;;  %v190_v33 = vadd.f32 %v181_v24, %v172_v28  ;;  %v212_v27 = vld [vmem:[%s5746_s4 + $0xa8] sm:$0xff] }
 0x18c   :  { %v132_v34 = vmul.f32 %v3273_v13, %v131_v29 }
 0x18d   :  { %706 = vmatpush.msra.mxu0 %v187_v30  ;;  %1098 = vmatpush.msra.mxu1 %v188_v31 }
 0x18e   :  { %v136_v35 = vsel %vm135_vm6, %v3273_v13, %v132_v34  ;;  %1490 = vmatpush.msra.mxu2 %v189_v32  ;;  %1882 = vmatpush.msra.mxu3 %v190_v33  ;;  %v213_v32 = vld [vmem:[%s5746_s4 + $0xb0] sm:$0xff] }
 0x18f   :  { %v147_v37 = vmul.f32 %v136_v35, %v3345_v52  ;;  %v148_v38 = vmul.f32 %v136_v35, %v3347_v53  ;;  %v149_v39 = vmul.f32 %v136_v35, %v3349_v55  ;;  %v150_v40 = vmul.f32 %v136_v35, %v3351_v56  ;;  %v193_v52 = vld [vmem:[%s5746_s4 + $0x10] sm:$0xff]  ;;  %v194_v53 = vld [vmem:[%s5746_s4 + $0x18] sm:$0xff]  ;;  %v196_v55 = vld [vmem:[%s5746_s4 + $0x28] sm:$0xff] }
 0x190   :  { %v197_v56 = vld [vmem:[%s5746_s4 + $0x30] sm:$0xff] }
 0x191   :  { %v165_v41 = vmul.f32 %v158_v36, %v147_v37  ;;  %v166_v42 = vmul.f32 %v158_v36, %v148_v38  ;;  %v167_v43 = vmul.f32 %v158_v36, %v149_v39  ;;  %v168_v44 = vmul.f32 %v158_v36, %v150_v40  ;;  %v214_v37 = vld [vmem:[%s5746_s4 + $0xb8] sm:$0xff] }
 0x193   :  { %v183_v46 = vadd.f32 %v176_v45, %v165_v41  ;;  %v184_v47 = vadd.f32 %v176_v45, %v166_v42  ;;  %v185_v48 = vadd.f32 %v176_v45, %v167_v43  ;;  %v186_v49 = vadd.f32 %v176_v45, %v168_v44  ;;  %v215_v42 = vld [vmem:[%s5746_s4 + $0xc0] sm:$0xff] }
 0x195   :  { %707 = vmatpush.msra.mxu0 %v183_v46  ;;  %1099 = vmatpush.msra.mxu1 %v184_v47  ;;  %v216_v47 = vld [vmem:[%s5746_s4 + $0xc8] sm:$0xff] }
 0x196   :  { %1491 = vmatpush.msra.mxu2 %v185_v48  ;;  %1883 = vmatpush.msra.mxu3 %v186_v49 }
 0x197   :  { %3015 = vmatmul.msk.f32.vlgmr.msra.gmra.mxu2 %vm316_vm7, %v191_v50  ;;  %3140 = vmatmul.msk.f32.vlgmr.msra.gmra.mxu3 %vm316_vm7, %v191_v50 }
 0x198   :  { %2765 = vmatmul.msk.f32.vlgmr.msra.gmra.mxu0 %vm316_vm7, %v191_v50  ;;  %2890 = vmatmul.msk.f32.vlgmr.msra.gmra.mxu1 %vm316_vm7, %v191_v50 }
 0x19f   :  { %3016 = vmatmul.msk.f32.gmra.mxu2 %vm316_vm7, %v192_v51  ;;  %3141 = vmatmul.msk.f32.gmra.mxu3 %vm316_vm7, %v192_v51 }
 0x1a0   :  { %2766 = vmatmul.msk.f32.gmra.mxu0 %vm316_vm7, %v192_v51  ;;  %2891 = vmatmul.msk.f32.gmra.mxu1 %vm316_vm7, %v192_v51 }
 0x1a7   :  { %3017 = vmatmul.msk.f32.gmra.mxu2 %vm316_vm7, %v193_v52  ;;  %3142 = vmatmul.msk.f32.gmra.mxu3 %vm316_vm7, %v193_v52 }
 0x1a8   :  { %2767 = vmatmul.msk.f32.gmra.mxu0 %vm316_vm7, %v193_v52  ;;  %2892 = vmatmul.msk.f32.gmra.mxu1 %vm316_vm7, %v193_v52  ;;  %v217_v52 = vld [vmem:[%s5746_s4 + $0xd0] sm:$0xff] }
 0x1af   :  { %3018 = vmatmul.msk.f32.gmra.mxu2 %vm316_vm7, %v194_v53  ;;  %3143 = vmatmul.msk.f32.gmra.mxu3 %vm316_vm7, %v194_v53 }
 0x1b0   :  { %2768 = vmatmul.msk.f32.gmra.mxu0 %vm316_vm7, %v194_v53  ;;  %2893 = vmatmul.msk.f32.gmra.mxu1 %vm316_vm7, %v194_v53 }
 0x1b7   :  { %3019 = vmatmul.msk.f32.gmra.mxu2 %vm316_vm7, %v195_v54  ;;  %3144 = vmatmul.msk.f32.gmra.mxu3 %vm316_vm7, %v195_v54 }
 0x1b8   :  { %2769 = vmatmul.msk.f32.gmra.mxu0 %vm316_vm7, %v195_v54  ;;  %2894 = vmatmul.msk.f32.gmra.mxu1 %vm316_vm7, %v195_v54 }
 0x1bf   :  { %3020 = vmatmul.msk.f32.gmra.mxu2 %vm316_vm7, %v196_v55  ;;  %3145 = vmatmul.msk.f32.gmra.mxu3 %vm316_vm7, %v196_v55 }
 0x1c0   :  { %2770 = vmatmul.msk.f32.gmra.mxu0 %vm316_vm7, %v196_v55  ;;  %2895 = vmatmul.msk.f32.gmra.mxu1 %vm316_vm7, %v196_v55 }
 0x1c7   :  { %3021 = vmatmul.msk.f32.gmra.mxu2 %vm316_vm7, %v197_v56  ;;  %3146 = vmatmul.msk.f32.gmra.mxu3 %vm316_vm7, %v197_v56 }
 0x1c8   :  { %2771 = vmatmul.msk.f32.gmra.mxu0 %vm316_vm7, %v197_v56  ;;  %2896 = vmatmul.msk.f32.gmra.mxu1 %vm316_vm7, %v197_v56 }
 0x1cf   :  { %3022 = vmatmul.msk.f32.gmra.mxu2 %vm316_vm7, %v198_v57  ;;  %3147 = vmatmul.msk.f32.gmra.mxu3 %vm316_vm7, %v198_v57 }
 0x1d0   :  { %2772 = vmatmul.msk.f32.gmra.mxu0 %vm316_vm7, %v198_v57  ;;  %2897 = vmatmul.msk.f32.gmra.mxu1 %vm316_vm7, %v198_v57  ;;  %v218_v57 = vld [vmem:[%s5746_s4 + $0xd8] sm:$0xff] }
 0x1d7   :  { %3023 = vmatmul.msk.f32.gmra.mxu2 %vm316_vm7, %v199_v58  ;;  %3148 = vmatmul.msk.f32.gmra.mxu3 %vm316_vm7, %v199_v58 }
 0x1d8   :  { %2773 = vmatmul.msk.f32.gmra.mxu0 %vm316_vm7, %v199_v58  ;;  %2898 = vmatmul.msk.f32.gmra.mxu1 %vm316_vm7, %v199_v58 }
 0x1df   :  { %3024 = vmatmul.msk.f32.gmra.mxu2 %vm316_vm7, %v200_v59  ;;  %3149 = vmatmul.msk.f32.gmra.mxu3 %vm316_vm7, %v200_v59 }
 0x1e0   :  { %2774 = vmatmul.msk.f32.gmra.mxu0 %vm316_vm7, %v200_v59  ;;  %2899 = vmatmul.msk.f32.gmra.mxu1 %vm316_vm7, %v200_v59 }
 0x1e7   :  { %3025 = vmatmul.msk.f32.gmra.mxu2 %vm316_vm7, %v201_v60  ;;  %3150 = vmatmul.msk.f32.gmra.mxu3 %vm316_vm7, %v201_v60 }
 0x1e8   :  { %2775 = vmatmul.msk.f32.gmra.mxu0 %vm316_vm7, %v201_v60  ;;  %2900 = vmatmul.msk.f32.gmra.mxu1 %vm316_vm7, %v201_v60 }
 0x1ef   :  { %3026 = vmatmul.msk.f32.gmra.mxu2 %vm316_vm7, %v202_v61  ;;  %3151 = vmatmul.msk.f32.gmra.mxu3 %vm316_vm7, %v202_v61 }
 0x1f0   :  { %2776 = vmatmul.msk.f32.gmra.mxu0 %vm316_vm7, %v202_v61  ;;  %2901 = vmatmul.msk.f32.gmra.mxu1 %vm316_vm7, %v202_v61 }
 0x1f7   :  { %3027 = vmatmul.msk.f32.gmra.mxu2 %vm316_vm7, %v203_v62  ;;  %3152 = vmatmul.msk.f32.gmra.mxu3 %vm316_vm7, %v203_v62 }
 0x1f8   :  { %2777 = vmatmul.msk.f32.gmra.mxu0 %vm316_vm7, %v203_v62  ;;  %2902 = vmatmul.msk.f32.gmra.mxu1 %vm316_vm7, %v203_v62  ;;  %v219_v62 = vld [vmem:[%s5746_s4 + $0xe0] sm:$0xff] }
 0x1ff   :  { %3028 = vmatmul.msk.f32.gmra.mxu2 %vm316_vm7, %v204_v63  ;;  %3153 = vmatmul.msk.f32.gmra.mxu3 %vm316_vm7, %v204_v63 }
 0x200   :  { %2778 = vmatmul.msk.f32.gmra.mxu0 %vm316_vm7, %v204_v63  ;;  %2903 = vmatmul.msk.f32.gmra.mxu1 %vm316_vm7, %v204_v63 }
 0x207   :  { %3029 = vmatmul.msk.f32.gmra.mxu2 %vm316_vm7, %v205_v0  ;;  %3154 = vmatmul.msk.f32.gmra.mxu3 %vm316_vm7, %v205_v0 }
 0x208   :  { %2779 = vmatmul.msk.f32.gmra.mxu0 %vm316_vm7, %v205_v0  ;;  %2904 = vmatmul.msk.f32.gmra.mxu1 %vm316_vm7, %v205_v0 }
 0x20f   :  { %3030 = vmatmul.msk.f32.gmra.mxu2 %vm316_vm7, %v206_v1  ;;  %3155 = vmatmul.msk.f32.gmra.mxu3 %vm316_vm7, %v206_v1 }
 0x210   :  { %2780 = vmatmul.msk.f32.gmra.mxu0 %vm316_vm7, %v206_v1  ;;  %2905 = vmatmul.msk.f32.gmra.mxu1 %vm316_vm7, %v206_v1 }
 0x215   :  { %v709_v3 = vpop.f32.mrf.mxu0  ;;  %v1101_v4 = vpop.f32.mrf.mxu1 }
 0x216   :  { %2260 = vst [vmem:[%s5747_s5] sm:$0xff] %v709_v3  ;;  %v220_v3 = vld [vmem:[%s5746_s4 + $0xe8] sm:$0xff] }
 0x217   :  { %3031 = vmatmul.msk.f32.gmra.mxu2 %vm316_vm7, %v207_v2  ;;  %3156 = vmatmul.msk.f32.gmra.mxu3 %vm316_vm7, %v207_v2  ;;  %2261 = vst [vmem:[%s5747_s5 + $0x8] sm:$0xff] %v1101_v4 }
 0x218   :  { %2781 = vmatmul.msk.f32.gmra.mxu0 %vm316_vm7, %v207_v2  ;;  %2906 = vmatmul.msk.f32.gmra.mxu1 %vm316_vm7, %v207_v2 }
 0x21a   :  { %v1493_v5 = vpop.f32.mrf.mxu2  ;;  %v1885_v6 = vpop.f32.mrf.mxu3 }
 0x21b   :  { %2262 = vst [vmem:[%s5747_s5 + $0x10] sm:$0xff] %v1493_v5 }
 0x21c   :  { %2263 = vst [vmem:[%s5747_s5 + $0x18] sm:$0xff] %v1885_v6 }
 0x21d   :  { %v712_v8 = vpop.f32.mrf.mxu0  ;;  %v1104_v9 = vpop.f32.mrf.mxu1 }
 0x21e   :  { %2264 = vst [vmem:[%s5747_s5 + $0x20] sm:$0xff] %v712_v8  ;;  %v221_v8 = vld [vmem:[%s5746_s4 + $0xf0] sm:$0xff] }
 0x21f   :  { %3032 = vmatmul.msk.f32.gmra.mxu2 %vm316_vm7, %v208_v7  ;;  %3157 = vmatmul.msk.f32.gmra.mxu3 %vm316_vm7, %v208_v7  ;;  %2265 = vst [vmem:[%s5747_s5 + $0x28] sm:$0xff] %v1104_v9 }
 0x220   :  { %2782 = vmatmul.msk.f32.gmra.mxu0 %vm316_vm7, %v208_v7  ;;  %2907 = vmatmul.msk.f32.gmra.mxu1 %vm316_vm7, %v208_v7 }
 0x222   :  { %v1496_v10 = vpop.f32.mrf.mxu2  ;;  %v1888_v11 = vpop.f32.mrf.mxu3 }
 0x223   :  { %2266 = vst [vmem:[%s5747_s5 + $0x30] sm:$0xff] %v1496_v10 }
 0x224   :  { %2267 = vst [vmem:[%s5747_s5 + $0x38] sm:$0xff] %v1888_v11 }
 0x225   :  { %v715_v13 = vpop.f32.mrf.mxu0  ;;  %v1107_v14 = vpop.f32.mrf.mxu1 }
 0x226   :  { %2268 = vst [vmem:[%s5747_s5 + $0x40] sm:$0xff] %v715_v13  ;;  %v222_v13 = vld [vmem:[%s5746_s4 + $0xf8] sm:$0xff] }
 0x227   :  { %3033 = vmatmul.msk.f32.gmra.mxu2 %vm316_vm7, %v209_v12  ;;  %3158 = vmatmul.msk.f32.gmra.mxu3 %vm316_vm7, %v209_v12  ;;  %2269 = vst [vmem:[%s5747_s5 + $0x48] sm:$0xff] %v1107_v14 }
 0x228   :  { %2783 = vmatmul.msk.f32.gmra.mxu0 %vm316_vm7, %v209_v12  ;;  %2908 = vmatmul.msk.f32.gmra.mxu1 %vm316_vm7, %v209_v12 }
 0x22a   :  { %v1499_v15 = vpop.f32.mrf.mxu2  ;;  %v1891_v16 = vpop.f32.mrf.mxu3 }
 0x22b   :  { %2270 = vst [vmem:[%s5747_s5 + $0x50] sm:$0xff] %v1499_v15 }
 0x22c   :  { %2271 = vst [vmem:[%s5747_s5 + $0x58] sm:$0xff] %v1891_v16 }
 0x22d   :  { %v718_v18 = vpop.f32.mrf.mxu0  ;;  %v1110_v19 = vpop.f32.mrf.mxu1 }
 0x22e   :  { %2272 = vst [vmem:[%s5747_s5 + $0x60] sm:$0xff] %v718_v18  ;;  %v223_v18 = vld [vmem:[%s5746_s4 + $0x100] sm:$0xff] }
 0x22f   :  { %3034 = vmatmul.msk.f32.gmra.mxu2 %vm316_vm7, %v210_v17  ;;  %3159 = vmatmul.msk.f32.gmra.mxu3 %vm316_vm7, %v210_v17  ;;  %2273 = vst [vmem:[%s5747_s5 + $0x68] sm:$0xff] %v1110_v19 }
 0x230   :  { %2784 = vmatmul.msk.f32.gmra.mxu0 %vm316_vm7, %v210_v17  ;;  %2909 = vmatmul.msk.f32.gmra.mxu1 %vm316_vm7, %v210_v17 }
 0x232   :  { %v1502_v20 = vpop.f32.mrf.mxu2  ;;  %v1894_v21 = vpop.f32.mrf.mxu3 }
 0x233   :  { %2274 = vst [vmem:[%s5747_s5 + $0x70] sm:$0xff] %v1502_v20 }
 0x234   :  { %2275 = vst [vmem:[%s5747_s5 + $0x78] sm:$0xff] %v1894_v21 }
 0x235   :  { %v721_v23 = vpop.f32.mrf.mxu0  ;;  %v1113_v24 = vpop.f32.mrf.mxu1 }
 0x236   :  { %2276 = vst [vmem:[%s5747_s5 + $0x80] sm:$0xff] %v721_v23  ;;  %v224_v23 = vld [vmem:[%s5746_s4 + $0x108] sm:$0xff] }
 0x237   :  { %3035 = vmatmul.msk.f32.gmra.mxu2 %vm316_vm7, %v211_v22  ;;  %3160 = vmatmul.msk.f32.gmra.mxu3 %vm316_vm7, %v211_v22  ;;  %2277 = vst [vmem:[%s5747_s5 + $0x88] sm:$0xff] %v1113_v24 }
 0x238   :  { %2785 = vmatmul.msk.f32.gmra.mxu0 %vm316_vm7, %v211_v22  ;;  %2910 = vmatmul.msk.f32.gmra.mxu1 %vm316_vm7, %v211_v22 }
 0x23a   :  { %v1505_v25 = vpop.f32.mrf.mxu2  ;;  %v1897_v26 = vpop.f32.mrf.mxu3 }
 0x23b   :  { %2278 = vst [vmem:[%s5747_s5 + $0x90] sm:$0xff] %v1505_v25 }
 0x23c   :  { %2279 = vst [vmem:[%s5747_s5 + $0x98] sm:$0xff] %v1897_v26 }
 0x23d   :  { %v724_v28 = vpop.f32.mrf.mxu0  ;;  %v1116_v29 = vpop.f32.mrf.mxu1 }
 0x23e   :  { %2280 = vst [vmem:[%s5747_s5 + $0xa0] sm:$0xff] %v724_v28  ;;  %v225_v28 = vld [vmem:[%s5746_s4 + $0x110] sm:$0xff] }
 0x23f   :  { %3036 = vmatmul.msk.f32.gmra.mxu2 %vm316_vm7, %v212_v27  ;;  %3161 = vmatmul.msk.f32.gmra.mxu3 %vm316_vm7, %v212_v27  ;;  %2281 = vst [vmem:[%s5747_s5 + $0xa8] sm:$0xff] %v1116_v29 }
 0x240   :  { %2786 = vmatmul.msk.f32.gmra.mxu0 %vm316_vm7, %v212_v27  ;;  %2911 = vmatmul.msk.f32.gmra.mxu1 %vm316_vm7, %v212_v27 }
 0x242   :  { %v1508_v30 = vpop.f32.mrf.mxu2  ;;  %v1900_v31 = vpop.f32.mrf.mxu3 }
 0x243   :  { %2282 = vst [vmem:[%s5747_s5 + $0xb0] sm:$0xff] %v1508_v30 }
 0x244   :  { %2283 = vst [vmem:[%s5747_s5 + $0xb8] sm:$0xff] %v1900_v31 }
 0x245   :  { %v727_v33 = vpop.f32.mrf.mxu0  ;;  %v1119_v34 = vpop.f32.mrf.mxu1 }
 0x246   :  { %2284 = vst [vmem:[%s5747_s5 + $0xc0] sm:$0xff] %v727_v33  ;;  %v226_v33 = vld [vmem:[%s5746_s4 + $0x118] sm:$0xff] }
 0x247   :  { %3037 = vmatmul.msk.f32.gmra.mxu2 %vm316_vm7, %v213_v32  ;;  %3162 = vmatmul.msk.f32.gmra.mxu3 %vm316_vm7, %v213_v32  ;;  %2285 = vst [vmem:[%s5747_s5 + $0xc8] sm:$0xff] %v1119_v34 }
 0x248   :  { %2787 = vmatmul.msk.f32.gmra.mxu0 %vm316_vm7, %v213_v32  ;;  %2912 = vmatmul.msk.f32.gmra.mxu1 %vm316_vm7, %v213_v32 }
 0x24a   :  { %v1511_v35 = vpop.f32.mrf.mxu2  ;;  %v1903_v36 = vpop.f32.mrf.mxu3 }
 0x24b   :  { %2286 = vst [vmem:[%s5747_s5 + $0xd0] sm:$0xff] %v1511_v35 }
 0x24c   :  { %2287 = vst [vmem:[%s5747_s5 + $0xd8] sm:$0xff] %v1903_v36 }
 0x24d   :  { %v730_v38 = vpop.f32.mrf.mxu0  ;;  %v1122_v39 = vpop.f32.mrf.mxu1 }
 0x24e   :  { %2288 = vst [vmem:[%s5747_s5 + $0xe0] sm:$0xff] %v730_v38  ;;  %v227_v38 = vld [vmem:[%s5746_s4 + $0x120] sm:$0xff] }
 0x24f   :  { %3038 = vmatmul.msk.f32.gmra.mxu2 %vm316_vm7, %v214_v37  ;;  %3163 = vmatmul.msk.f32.gmra.mxu3 %vm316_vm7, %v214_v37  ;;  %2289 = vst [vmem:[%s5747_s5 + $0xe8] sm:$0xff] %v1122_v39 }
 0x250   :  { %2788 = vmatmul.msk.f32.gmra.mxu0 %vm316_vm7, %v214_v37  ;;  %2913 = vmatmul.msk.f32.gmra.mxu1 %vm316_vm7, %v214_v37 }
 0x252   :  { %v1514_v40 = vpop.f32.mrf.mxu2  ;;  %v1906_v41 = vpop.f32.mrf.mxu3 }
 0x253   :  { %2290 = vst [vmem:[%s5747_s5 + $0xf0] sm:$0xff] %v1514_v40 }
 0x254   :  { %2291 = vst [vmem:[%s5747_s5 + $0xf8] sm:$0xff] %v1906_v41 }
 0x255   :  { %v733_v43 = vpop.f32.mrf.mxu0  ;;  %v1125_v44 = vpop.f32.mrf.mxu1 }
 0x256   :  { %2292 = vst [vmem:[%s5747_s5 + $0x100] sm:$0xff] %v733_v43  ;;  %v228_v43 = vld [vmem:[%s5746_s4 + $0x128] sm:$0xff] }
 0x257   :  { %3039 = vmatmul.msk.f32.gmra.mxu2 %vm316_vm7, %v215_v42  ;;  %3164 = vmatmul.msk.f32.gmra.mxu3 %vm316_vm7, %v215_v42  ;;  %2293 = vst [vmem:[%s5747_s5 + $0x108] sm:$0xff] %v1125_v44 }
 0x258   :  { %2789 = vmatmul.msk.f32.gmra.mxu0 %vm316_vm7, %v215_v42  ;;  %2914 = vmatmul.msk.f32.gmra.mxu1 %vm316_vm7, %v215_v42 }
 0x25a   :  { %v1517_v45 = vpop.f32.mrf.mxu2  ;;  %v1909_v46 = vpop.f32.mrf.mxu3 }
 0x25b   :  { %2294 = vst [vmem:[%s5747_s5 + $0x110] sm:$0xff] %v1517_v45 }
 0x25c   :  { %2295 = vst [vmem:[%s5747_s5 + $0x118] sm:$0xff] %v1909_v46 }
 0x25d   :  { %v736_v48 = vpop.f32.mrf.mxu0  ;;  %v1128_v49 = vpop.f32.mrf.mxu1 }
 0x25e   :  { %2296 = vst [vmem:[%s5747_s5 + $0x120] sm:$0xff] %v736_v48  ;;  %v229_v48 = vld [vmem:[%s5746_s4 + $0x130] sm:$0xff] }
 0x25f   :  { %3040 = vmatmul.msk.f32.gmra.mxu2 %vm316_vm7, %v216_v47  ;;  %3165 = vmatmul.msk.f32.gmra.mxu3 %vm316_vm7, %v216_v47  ;;  %2297 = vst [vmem:[%s5747_s5 + $0x128] sm:$0xff] %v1128_v49 }
 0x260   :  { %2790 = vmatmul.msk.f32.gmra.mxu0 %vm316_vm7, %v216_v47  ;;  %2915 = vmatmul.msk.f32.gmra.mxu1 %vm316_vm7, %v216_v47 }
 0x262   :  { %v1520_v50 = vpop.f32.mrf.mxu2  ;;  %v1912_v51 = vpop.f32.mrf.mxu3 }
 0x263   :  { %2298 = vst [vmem:[%s5747_s5 + $0x130] sm:$0xff] %v1520_v50 }
 0x264   :  { %2299 = vst [vmem:[%s5747_s5 + $0x138] sm:$0xff] %v1912_v51 }
 0x265   :  { %v739_v53 = vpop.f32.mrf.mxu0  ;;  %v1131_v54 = vpop.f32.mrf.mxu1 }
 0x266   :  { %2300 = vst [vmem:[%s5747_s5 + $0x140] sm:$0xff] %v739_v53  ;;  %v230_v53 = vld [vmem:[%s5746_s4 + $0x138] sm:$0xff] }
 0x267   :  { %3041 = vmatmul.msk.f32.gmra.mxu2 %vm316_vm7, %v217_v52  ;;  %3166 = vmatmul.msk.f32.gmra.mxu3 %vm316_vm7, %v217_v52  ;;  %2301 = vst [vmem:[%s5747_s5 + $0x148] sm:$0xff] %v1131_v54 }
 0x268   :  { %2791 = vmatmul.msk.f32.gmra.mxu0 %vm316_vm7, %v217_v52  ;;  %2916 = vmatmul.msk.f32.gmra.mxu1 %vm316_vm7, %v217_v52 }
 0x26a   :  { %v1523_v55 = vpop.f32.mrf.mxu2  ;;  %v1915_v56 = vpop.f32.mrf.mxu3 }
 0x26b   :  { %2302 = vst [vmem:[%s5747_s5 + $0x150] sm:$0xff] %v1523_v55 }
 0x26c   :  { %2303 = vst [vmem:[%s5747_s5 + $0x158] sm:$0xff] %v1915_v56 }
 0x26d   :  { %v742_v58 = vpop.f32.mrf.mxu0  ;;  %v1134_v59 = vpop.f32.mrf.mxu1 }
 0x26e   :  { %2304 = vst [vmem:[%s5747_s5 + $0x160] sm:$0xff] %v742_v58  ;;  %v231_v58 = vld [vmem:[%s5746_s4 + $0x140] sm:$0xff] }
 0x26f   :  { %3042 = vmatmul.msk.f32.gmra.mxu2 %vm316_vm7, %v218_v57  ;;  %3167 = vmatmul.msk.f32.gmra.mxu3 %vm316_vm7, %v218_v57  ;;  %2305 = vst [vmem:[%s5747_s5 + $0x168] sm:$0xff] %v1134_v59 }
 0x270   :  { %2792 = vmatmul.msk.f32.gmra.mxu0 %vm316_vm7, %v218_v57  ;;  %2917 = vmatmul.msk.f32.gmra.mxu1 %vm316_vm7, %v218_v57 }
 0x272   :  { %v1526_v60 = vpop.f32.mrf.mxu2  ;;  %v1918_v61 = vpop.f32.mrf.mxu3 }
 0x273   :  { %2306 = vst [vmem:[%s5747_s5 + $0x170] sm:$0xff] %v1526_v60 }
 0x274   :  { %2307 = vst [vmem:[%s5747_s5 + $0x178] sm:$0xff] %v1918_v61 }
 0x275   :  { %v745_v63 = vpop.f32.mrf.mxu0  ;;  %v1137_v0 = vpop.f32.mrf.mxu1 }
 0x276   :  { %2308 = vst [vmem:[%s5747_s5 + $0x180] sm:$0xff] %v745_v63  ;;  %v232_v63 = vld [vmem:[%s5746_s4 + $0x148] sm:$0xff] }
 0x277   :  { %3043 = vmatmul.msk.f32.gmra.mxu2 %vm316_vm7, %v219_v62  ;;  %3168 = vmatmul.msk.f32.gmra.mxu3 %vm316_vm7, %v219_v62  ;;  %2309 = vst [vmem:[%s5747_s5 + $0x188] sm:$0xff] %v1137_v0 }
 0x278   :  { %2793 = vmatmul.msk.f32.gmra.mxu0 %vm316_vm7, %v219_v62  ;;  %2918 = vmatmul.msk.f32.gmra.mxu1 %vm316_vm7, %v219_v62 }
 0x27a   :  { %v1529_v1 = vpop.f32.mrf.mxu2  ;;  %v1921_v2 = vpop.f32.mrf.mxu3 }
 0x27b   :  { %2310 = vst [vmem:[%s5747_s5 + $0x190] sm:$0xff] %v1529_v1 }
 0x27c   :  { %2311 = vst [vmem:[%s5747_s5 + $0x198] sm:$0xff] %v1921_v2 }
 0x27d   :  { %v748_v4 = vpop.f32.mrf.mxu0  ;;  %v1140_v5 = vpop.f32.mrf.mxu1 }
 0x27e   :  { %2312 = vst [vmem:[%s5747_s5 + $0x1a0] sm:$0xff] %v748_v4  ;;  %v233_v4 = vld [vmem:[%s5746_s4 + $0x150] sm:$0xff] }
 0x27f   :  { %3044 = vmatmul.msk.f32.gmra.mxu2 %vm316_vm7, %v220_v3  ;;  %3169 = vmatmul.msk.f32.gmra.mxu3 %vm316_vm7, %v220_v3  ;;  %2313 = vst [vmem:[%s5747_s5 + $0x1a8] sm:$0xff] %v1140_v5 }
 0x280   :  { %2794 = vmatmul.msk.f32.gmra.mxu0 %vm316_vm7, %v220_v3  ;;  %2919 = vmatmul.msk.f32.gmra.mxu1 %vm316_vm7, %v220_v3 }
 0x282   :  { %v1532_v6 = vpop.f32.mrf.mxu2  ;;  %v1924_v7 = vpop.f32.mrf.mxu3 }
 0x283   :  { %2314 = vst [vmem:[%s5747_s5 + $0x1b0] sm:$0xff] %v1532_v6 }
 0x284   :  { %2315 = vst [vmem:[%s5747_s5 + $0x1b8] sm:$0xff] %v1924_v7 }
 0x285   :  { %v751_v9 = vpop.f32.mrf.mxu0  ;;  %v1143_v10 = vpop.f32.mrf.mxu1 }
 0x286   :  { %2316 = vst [vmem:[%s5747_s5 + $0x1c0] sm:$0xff] %v751_v9  ;;  %v234_v9 = vld [vmem:[%s5746_s4 + $0x158] sm:$0xff] }
 0x287   :  { %3045 = vmatmul.msk.f32.gmra.mxu2 %vm316_vm7, %v221_v8  ;;  %3170 = vmatmul.msk.f32.gmra.mxu3 %vm316_vm7, %v221_v8  ;;  %2317 = vst [vmem:[%s5747_s5 + $0x1c8] sm:$0xff] %v1143_v10 }
 0x288   :  { %2795 = vmatmul.msk.f32.gmra.mxu0 %vm316_vm7, %v221_v8  ;;  %2920 = vmatmul.msk.f32.gmra.mxu1 %vm316_vm7, %v221_v8 }
 0x28a   :  { %v1535_v11 = vpop.f32.mrf.mxu2  ;;  %v1927_v12 = vpop.f32.mrf.mxu3 }
 0x28b   :  { %2318 = vst [vmem:[%s5747_s5 + $0x1d0] sm:$0xff] %v1535_v11 }
 0x28c   :  { %2319 = vst [vmem:[%s5747_s5 + $0x1d8] sm:$0xff] %v1927_v12 }
 0x28d   :  { %v754_v14 = vpop.f32.mrf.mxu0  ;;  %v1146_v15 = vpop.f32.mrf.mxu1 }
 0x28e   :  { %2320 = vst [vmem:[%s5747_s5 + $0x1e0] sm:$0xff] %v754_v14  ;;  %v235_v14 = vld [vmem:[%s5746_s4 + $0x160] sm:$0xff] }
 0x28f   :  { %3046 = vmatmul.msk.f32.gmra.mxu2 %vm316_vm7, %v222_v13  ;;  %3171 = vmatmul.msk.f32.gmra.mxu3 %vm316_vm7, %v222_v13  ;;  %2321 = vst [vmem:[%s5747_s5 + $0x1e8] sm:$0xff] %v1146_v15 }
 0x290   :  { %2796 = vmatmul.msk.f32.gmra.mxu0 %vm316_vm7, %v222_v13  ;;  %2921 = vmatmul.msk.f32.gmra.mxu1 %vm316_vm7, %v222_v13 }
 0x292   :  { %v1538_v16 = vpop.f32.mrf.mxu2  ;;  %v1930_v17 = vpop.f32.mrf.mxu3 }
 0x293   :  { %2322 = vst [vmem:[%s5747_s5 + $0x1f0] sm:$0xff] %v1538_v16 }
 0x294   :  { %2323 = vst [vmem:[%s5747_s5 + $0x1f8] sm:$0xff] %v1930_v17 }
 0x295   :  { %v757_v19 = vpop.f32.mrf.mxu0  ;;  %v1149_v20 = vpop.f32.mrf.mxu1 }
 0x296   :  { %2324 = vst [vmem:[%s5747_s5 + $0x200] sm:$0xff] %v757_v19  ;;  %v236_v19 = vld [vmem:[%s5746_s4 + $0x168] sm:$0xff] }
 0x297   :  { %3047 = vmatmul.msk.f32.gmra.mxu2 %vm316_vm7, %v223_v18  ;;  %3172 = vmatmul.msk.f32.gmra.mxu3 %vm316_vm7, %v223_v18  ;;  %2325 = vst [vmem:[%s5747_s5 + $0x208] sm:$0xff] %v1149_v20 }
 0x298   :  { %2797 = vmatmul.msk.f32.gmra.mxu0 %vm316_vm7, %v223_v18  ;;  %2922 = vmatmul.msk.f32.gmra.mxu1 %vm316_vm7, %v223_v18 }
 0x29a   :  { %v1541_v21 = vpop.f32.mrf.mxu2  ;;  %v1933_v22 = vpop.f32.mrf.mxu3 }
 0x29b   :  { %2326 = vst [vmem:[%s5747_s5 + $0x210] sm:$0xff] %v1541_v21 }
 0x29c   :  { %2327 = vst [vmem:[%s5747_s5 + $0x218] sm:$0xff] %v1933_v22 }
 0x29d   :  { %v760_v24 = vpop.f32.mrf.mxu0  ;;  %v1152_v25 = vpop.f32.mrf.mxu1 }
 0x29e   :  { %2328 = vst [vmem:[%s5747_s5 + $0x220] sm:$0xff] %v760_v24  ;;  %v237_v24 = vld [vmem:[%s5746_s4 + $0x170] sm:$0xff] }
 0x29f   :  { %3048 = vmatmul.msk.f32.gmra.mxu2 %vm316_vm7, %v224_v23  ;;  %3173 = vmatmul.msk.f32.gmra.mxu3 %vm316_vm7, %v224_v23  ;;  %2329 = vst [vmem:[%s5747_s5 + $0x228] sm:$0xff] %v1152_v25 }
 0x2a0   :  { %2798 = vmatmul.msk.f32.gmra.mxu0 %vm316_vm7, %v224_v23  ;;  %2923 = vmatmul.msk.f32.gmra.mxu1 %vm316_vm7, %v224_v23 }
 0x2a2   :  { %v1544_v26 = vpop.f32.mrf.mxu2  ;;  %v1936_v27 = vpop.f32.mrf.mxu3 }
 0x2a3   :  { %2330 = vst [vmem:[%s5747_s5 + $0x230] sm:$0xff] %v1544_v26 }
 0x2a4   :  { %2331 = vst [vmem:[%s5747_s5 + $0x238] sm:$0xff] %v1936_v27 }
 0x2a5   :  { %v763_v29 = vpop.f32.mrf.mxu0  ;;  %v1155_v30 = vpop.f32.mrf.mxu1 }
 0x2a6   :  { %2332 = vst [vmem:[%s5747_s5 + $0x240] sm:$0xff] %v763_v29  ;;  %v238_v29 = vld [vmem:[%s5746_s4 + $0x178] sm:$0xff] }
 0x2a7   :  { %3049 = vmatmul.msk.f32.gmra.mxu2 %vm316_vm7, %v225_v28  ;;  %3174 = vmatmul.msk.f32.gmra.mxu3 %vm316_vm7, %v225_v28  ;;  %2333 = vst [vmem:[%s5747_s5 + $0x248] sm:$0xff] %v1155_v30 }
 0x2a8   :  { %2799 = vmatmul.msk.f32.gmra.mxu0 %vm316_vm7, %v225_v28  ;;  %2924 = vmatmul.msk.f32.gmra.mxu1 %vm316_vm7, %v225_v28 }
 0x2aa   :  { %v1547_v31 = vpop.f32.mrf.mxu2  ;;  %v1939_v32 = vpop.f32.mrf.mxu3 }
 0x2ab   :  { %2334 = vst [vmem:[%s5747_s5 + $0x250] sm:$0xff] %v1547_v31 }
 0x2ac   :  { %2335 = vst [vmem:[%s5747_s5 + $0x258] sm:$0xff] %v1939_v32 }
 0x2ad   :  { %v766_v34 = vpop.f32.mrf.mxu0  ;;  %v1158_v35 = vpop.f32.mrf.mxu1 }
 0x2ae   :  { %2336 = vst [vmem:[%s5747_s5 + $0x260] sm:$0xff] %v766_v34  ;;  %v239_v34 = vld [vmem:[%s5746_s4 + $0x180] sm:$0xff] }
 0x2af   :  { %3050 = vmatmul.msk.f32.gmra.mxu2 %vm316_vm7, %v226_v33  ;;  %3175 = vmatmul.msk.f32.gmra.mxu3 %vm316_vm7, %v226_v33  ;;  %2337 = vst [vmem:[%s5747_s5 + $0x268] sm:$0xff] %v1158_v35 }
 0x2b0   :  { %2800 = vmatmul.msk.f32.gmra.mxu0 %vm316_vm7, %v226_v33  ;;  %2925 = vmatmul.msk.f32.gmra.mxu1 %vm316_vm7, %v226_v33 }
 0x2b2   :  { %v1550_v36 = vpop.f32.mrf.mxu2  ;;  %v1942_v37 = vpop.f32.mrf.mxu3 }
 0x2b3   :  { %2338 = vst [vmem:[%s5747_s5 + $0x270] sm:$0xff] %v1550_v36 }
 0x2b4   :  { %2339 = vst [vmem:[%s5747_s5 + $0x278] sm:$0xff] %v1942_v37 }
 0x2b5   :  { %v769_v39 = vpop.f32.mrf.mxu0  ;;  %v1161_v40 = vpop.f32.mrf.mxu1 }
 0x2b6   :  { %2340 = vst [vmem:[%s5747_s5 + $0x280] sm:$0xff] %v769_v39  ;;  %v240_v39 = vld [vmem:[%s5746_s4 + $0x188] sm:$0xff] }
 0x2b7   :  { %3051 = vmatmul.msk.f32.gmra.mxu2 %vm316_vm7, %v227_v38  ;;  %3176 = vmatmul.msk.f32.gmra.mxu3 %vm316_vm7, %v227_v38  ;;  %2341 = vst [vmem:[%s5747_s5 + $0x288] sm:$0xff] %v1161_v40 }
 0x2b8   :  { %2801 = vmatmul.msk.f32.gmra.mxu0 %vm316_vm7, %v227_v38  ;;  %2926 = vmatmul.msk.f32.gmra.mxu1 %vm316_vm7, %v227_v38 }
 0x2ba   :  { %v1553_v41 = vpop.f32.mrf.mxu2  ;;  %v1945_v42 = vpop.f32.mrf.mxu3 }
 0x2bb   :  { %2342 = vst [vmem:[%s5747_s5 + $0x290] sm:$0xff] %v1553_v41 }
 0x2bc   :  { %2343 = vst [vmem:[%s5747_s5 + $0x298] sm:$0xff] %v1945_v42 }
 0x2bd   :  { %v772_v44 = vpop.f32.mrf.mxu0  ;;  %v1164_v45 = vpop.f32.mrf.mxu1 }
 0x2be   :  { %2344 = vst [vmem:[%s5747_s5 + $0x2a0] sm:$0xff] %v772_v44  ;;  %v241_v44 = vld [vmem:[%s5746_s4 + $0x190] sm:$0xff] }
 0x2bf   :  { %3052 = vmatmul.msk.f32.gmra.mxu2 %vm316_vm7, %v228_v43  ;;  %3177 = vmatmul.msk.f32.gmra.mxu3 %vm316_vm7, %v228_v43  ;;  %2345 = vst [vmem:[%s5747_s5 + $0x2a8] sm:$0xff] %v1164_v45 }
 0x2c0   :  { %2802 = vmatmul.msk.f32.gmra.mxu0 %vm316_vm7, %v228_v43  ;;  %2927 = vmatmul.msk.f32.gmra.mxu1 %vm316_vm7, %v228_v43 }
 0x2c2   :  { %v1556_v46 = vpop.f32.mrf.mxu2  ;;  %v1948_v47 = vpop.f32.mrf.mxu3 }
 0x2c3   :  { %2346 = vst [vmem:[%s5747_s5 + $0x2b0] sm:$0xff] %v1556_v46 }
 0x2c4   :  { %2347 = vst [vmem:[%s5747_s5 + $0x2b8] sm:$0xff] %v1948_v47 }
 0x2c5   :  { %v775_v49 = vpop.f32.mrf.mxu0  ;;  %v1167_v50 = vpop.f32.mrf.mxu1 }
 0x2c6   :  { %2348 = vst [vmem:[%s5747_s5 + $0x2c0] sm:$0xff] %v775_v49  ;;  %v242_v49 = vld [vmem:[%s5746_s4 + $0x198] sm:$0xff] }
 0x2c7   :  { %3053 = vmatmul.msk.f32.gmra.mxu2 %vm316_vm7, %v229_v48  ;;  %3178 = vmatmul.msk.f32.gmra.mxu3 %vm316_vm7, %v229_v48  ;;  %2349 = vst [vmem:[%s5747_s5 + $0x2c8] sm:$0xff] %v1167_v50 }
 0x2c8   :  { %2803 = vmatmul.msk.f32.gmra.mxu0 %vm316_vm7, %v229_v48  ;;  %2928 = vmatmul.msk.f32.gmra.mxu1 %vm316_vm7, %v229_v48 }
 0x2ca   :  { %v1559_v51 = vpop.f32.mrf.mxu2  ;;  %v1951_v52 = vpop.f32.mrf.mxu3 }
 0x2cb   :  { %2350 = vst [vmem:[%s5747_s5 + $0x2d0] sm:$0xff] %v1559_v51 }
 0x2cc   :  { %2351 = vst [vmem:[%s5747_s5 + $0x2d8] sm:$0xff] %v1951_v52 }
 0x2cd   :  { %v778_v54 = vpop.f32.mrf.mxu0  ;;  %v1170_v55 = vpop.f32.mrf.mxu1 }
 0x2ce   :  { %2352 = vst [vmem:[%s5747_s5 + $0x2e0] sm:$0xff] %v778_v54  ;;  %v243_v54 = vld [vmem:[%s5746_s4 + $0x1a0] sm:$0xff] }
 0x2cf   :  { %3054 = vmatmul.msk.f32.gmra.mxu2 %vm316_vm7, %v230_v53  ;;  %3179 = vmatmul.msk.f32.gmra.mxu3 %vm316_vm7, %v230_v53  ;;  %2353 = vst [vmem:[%s5747_s5 + $0x2e8] sm:$0xff] %v1170_v55 }
 0x2d0   :  { %2804 = vmatmul.msk.f32.gmra.mxu0 %vm316_vm7, %v230_v53  ;;  %2929 = vmatmul.msk.f32.gmra.mxu1 %vm316_vm7, %v230_v53 }
 0x2d2   :  { %v1562_v56 = vpop.f32.mrf.mxu2  ;;  %v1954_v57 = vpop.f32.mrf.mxu3 }
 0x2d3   :  { %2354 = vst [vmem:[%s5747_s5 + $0x2f0] sm:$0xff] %v1562_v56 }
 0x2d4   :  { %2355 = vst [vmem:[%s5747_s5 + $0x2f8] sm:$0xff] %v1954_v57 }
 0x2d5   :  { %v781_v59 = vpop.f32.mrf.mxu0  ;;  %v1173_v60 = vpop.f32.mrf.mxu1 }
 0x2d6   :  { %2356 = vst [vmem:[%s5747_s5 + $0x300] sm:$0xff] %v781_v59  ;;  %v244_v59 = vld [vmem:[%s5746_s4 + $0x1a8] sm:$0xff] }
 0x2d7   :  { %3055 = vmatmul.msk.f32.gmra.mxu2 %vm316_vm7, %v231_v58  ;;  %3180 = vmatmul.msk.f32.gmra.mxu3 %vm316_vm7, %v231_v58  ;;  %2357 = vst [vmem:[%s5747_s5 + $0x308] sm:$0xff] %v1173_v60 }
 0x2d8   :  { %2805 = vmatmul.msk.f32.gmra.mxu0 %vm316_vm7, %v231_v58  ;;  %2930 = vmatmul.msk.f32.gmra.mxu1 %vm316_vm7, %v231_v58 }
 0x2da   :  { %v1565_v61 = vpop.f32.mrf.mxu2  ;;  %v1957_v62 = vpop.f32.mrf.mxu3 }
 0x2db   :  { %2358 = vst [vmem:[%s5747_s5 + $0x310] sm:$0xff] %v1565_v61 }
 0x2dc   :  { %2359 = vst [vmem:[%s5747_s5 + $0x318] sm:$0xff] %v1957_v62 }
 0x2dd   :  { %v784_v0 = vpop.f32.mrf.mxu0  ;;  %v1176_v1 = vpop.f32.mrf.mxu1 }
 0x2de   :  { %2360 = vst [vmem:[%s5747_s5 + $0x320] sm:$0xff] %v784_v0  ;;  %v245_v0 = vld [vmem:[%s5746_s4 + $0x1b0] sm:$0xff] }
 0x2df   :  { %3056 = vmatmul.msk.f32.gmra.mxu2 %vm316_vm7, %v232_v63  ;;  %3181 = vmatmul.msk.f32.gmra.mxu3 %vm316_vm7, %v232_v63  ;;  %2361 = vst [vmem:[%s5747_s5 + $0x328] sm:$0xff] %v1176_v1 }
 0x2e0   :  { %2806 = vmatmul.msk.f32.gmra.mxu0 %vm316_vm7, %v232_v63  ;;  %2931 = vmatmul.msk.f32.gmra.mxu1 %vm316_vm7, %v232_v63 }
 0x2e2   :  { %v1568_v2 = vpop.f32.mrf.mxu2  ;;  %v1960_v3 = vpop.f32.mrf.mxu3 }
 0x2e3   :  { %2362 = vst [vmem:[%s5747_s5 + $0x330] sm:$0xff] %v1568_v2 }
 0x2e4   :  { %2363 = vst [vmem:[%s5747_s5 + $0x338] sm:$0xff] %v1960_v3 }
 0x2e5   :  { %v787_v5 = vpop.f32.mrf.mxu0  ;;  %v1179_v6 = vpop.f32.mrf.mxu1 }
 0x2e6   :  { %2364 = vst [vmem:[%s5747_s5 + $0x340] sm:$0xff] %v787_v5  ;;  %v246_v5 = vld [vmem:[%s5746_s4 + $0x1b8] sm:$0xff] }
 0x2e7   :  { %3057 = vmatmul.msk.f32.gmra.mxu2 %vm316_vm7, %v233_v4  ;;  %3182 = vmatmul.msk.f32.gmra.mxu3 %vm316_vm7, %v233_v4  ;;  %2365 = vst [vmem:[%s5747_s5 + $0x348] sm:$0xff] %v1179_v6 }
 0x2e8   :  { %2807 = vmatmul.msk.f32.gmra.mxu0 %vm316_vm7, %v233_v4  ;;  %2932 = vmatmul.msk.f32.gmra.mxu1 %vm316_vm7, %v233_v4 }
 0x2ea   :  { %v1571_v7 = vpop.f32.mrf.mxu2  ;;  %v1963_v8 = vpop.f32.mrf.mxu3 }
 0x2eb   :  { %2366 = vst [vmem:[%s5747_s5 + $0x350] sm:$0xff] %v1571_v7 }
 0x2ec   :  { %2367 = vst [vmem:[%s5747_s5 + $0x358] sm:$0xff] %v1963_v8 }
 0x2ed   :  { %v790_v10 = vpop.f32.mrf.mxu0  ;;  %v1182_v11 = vpop.f32.mrf.mxu1 }
 0x2ee   :  { %2368 = vst [vmem:[%s5747_s5 + $0x360] sm:$0xff] %v790_v10  ;;  %v247_v10 = vld [vmem:[%s5746_s4 + $0x1c0] sm:$0xff] }
 0x2ef   :  { %3058 = vmatmul.msk.f32.gmra.mxu2 %vm316_vm7, %v234_v9  ;;  %3183 = vmatmul.msk.f32.gmra.mxu3 %vm316_vm7, %v234_v9  ;;  %2369 = vst [vmem:[%s5747_s5 + $0x368] sm:$0xff] %v1182_v11 }
 0x2f0   :  { %2808 = vmatmul.msk.f32.gmra.mxu0 %vm316_vm7, %v234_v9  ;;  %2933 = vmatmul.msk.f32.gmra.mxu1 %vm316_vm7, %v234_v9 }
 0x2f2   :  { %v1574_v12 = vpop.f32.mrf.mxu2  ;;  %v1966_v13 = vpop.f32.mrf.mxu3 }
 0x2f3   :  { %2370 = vst [vmem:[%s5747_s5 + $0x370] sm:$0xff] %v1574_v12 }
 0x2f4   :  { %2371 = vst [vmem:[%s5747_s5 + $0x378] sm:$0xff] %v1966_v13 }
 0x2f5   :  { %v793_v15 = vpop.f32.mrf.mxu0  ;;  %v1185_v16 = vpop.f32.mrf.mxu1 }
 0x2f6   :  { %2372 = vst [vmem:[%s5747_s5 + $0x380] sm:$0xff] %v793_v15  ;;  %v248_v15 = vld [vmem:[%s5746_s4 + $0x1c8] sm:$0xff] }
 0x2f7   :  { %3059 = vmatmul.msk.f32.gmra.mxu2 %vm316_vm7, %v235_v14  ;;  %3184 = vmatmul.msk.f32.gmra.mxu3 %vm316_vm7, %v235_v14  ;;  %2373 = vst [vmem:[%s5747_s5 + $0x388] sm:$0xff] %v1185_v16 }
 0x2f8   :  { %2809 = vmatmul.msk.f32.gmra.mxu0 %vm316_vm7, %v235_v14  ;;  %2934 = vmatmul.msk.f32.gmra.mxu1 %vm316_vm7, %v235_v14 }
 0x2fa   :  { %v1577_v17 = vpop.f32.mrf.mxu2  ;;  %v1969_v18 = vpop.f32.mrf.mxu3 }
 0x2fb   :  { %2374 = vst [vmem:[%s5747_s5 + $0x390] sm:$0xff] %v1577_v17 }
 0x2fc   :  { %2375 = vst [vmem:[%s5747_s5 + $0x398] sm:$0xff] %v1969_v18 }
 0x2fd   :  { %v796_v20 = vpop.f32.mrf.mxu0  ;;  %v1188_v21 = vpop.f32.mrf.mxu1 }
 0x2fe   :  { %2376 = vst [vmem:[%s5747_s5 + $0x3a0] sm:$0xff] %v796_v20  ;;  %v249_v20 = vld [vmem:[%s5746_s4 + $0x1d0] sm:$0xff] }
 0x2ff   :  { %3060 = vmatmul.msk.f32.gmra.mxu2 %vm316_vm7, %v236_v19  ;;  %3185 = vmatmul.msk.f32.gmra.mxu3 %vm316_vm7, %v236_v19  ;;  %2377 = vst [vmem:[%s5747_s5 + $0x3a8] sm:$0xff] %v1188_v21 }
 0x300   :  { %2810 = vmatmul.msk.f32.gmra.mxu0 %vm316_vm7, %v236_v19  ;;  %2935 = vmatmul.msk.f32.gmra.mxu1 %vm316_vm7, %v236_v19 }
 0x302   :  { %v1580_v22 = vpop.f32.mrf.mxu2  ;;  %v1972_v23 = vpop.f32.mrf.mxu3 }
 0x303   :  { %2378 = vst [vmem:[%s5747_s5 + $0x3b0] sm:$0xff] %v1580_v22 }
 0x304   :  { %2379 = vst [vmem:[%s5747_s5 + $0x3b8] sm:$0xff] %v1972_v23 }
 0x305   :  { %v799_v25 = vpop.f32.mrf.mxu0  ;;  %v1191_v26 = vpop.f32.mrf.mxu1 }
 0x306   :  { %2380 = vst [vmem:[%s5747_s5 + $0x3c0] sm:$0xff] %v799_v25  ;;  %v250_v25 = vld [vmem:[%s5746_s4 + $0x1d8] sm:$0xff] }
 0x307   :  { %3061 = vmatmul.msk.f32.gmra.mxu2 %vm316_vm7, %v237_v24  ;;  %3186 = vmatmul.msk.f32.gmra.mxu3 %vm316_vm7, %v237_v24  ;;  %2381 = vst [vmem:[%s5747_s5 + $0x3c8] sm:$0xff] %v1191_v26 }
 0x308   :  { %2811 = vmatmul.msk.f32.gmra.mxu0 %vm316_vm7, %v237_v24  ;;  %2936 = vmatmul.msk.f32.gmra.mxu1 %vm316_vm7, %v237_v24 }
 0x30a   :  { %v1583_v27 = vpop.f32.mrf.mxu2  ;;  %v1975_v28 = vpop.f32.mrf.mxu3 }
 0x30b   :  { %2382 = vst [vmem:[%s5747_s5 + $0x3d0] sm:$0xff] %v1583_v27 }
 0x30c   :  { %2383 = vst [vmem:[%s5747_s5 + $0x3d8] sm:$0xff] %v1975_v28 }
 0x30d   :  { %v802_v30 = vpop.f32.mrf.mxu0  ;;  %v1194_v31 = vpop.f32.mrf.mxu1 }
 0x30e   :  { %2384 = vst [vmem:[%s5747_s5 + $0x3e0] sm:$0xff] %v802_v30  ;;  %v251_v30 = vld [vmem:[%s5746_s4 + $0x1e0] sm:$0xff] }
 0x30f   :  { %3062 = vmatmul.msk.f32.gmra.mxu2 %vm316_vm7, %v238_v29  ;;  %3187 = vmatmul.msk.f32.gmra.mxu3 %vm316_vm7, %v238_v29  ;;  %2385 = vst [vmem:[%s5747_s5 + $0x3e8] sm:$0xff] %v1194_v31 }
 0x310   :  { %2812 = vmatmul.msk.f32.gmra.mxu0 %vm316_vm7, %v238_v29  ;;  %2937 = vmatmul.msk.f32.gmra.mxu1 %vm316_vm7, %v238_v29 }
 0x312   :  { %v1586_v32 = vpop.f32.mrf.mxu2  ;;  %v1978_v33 = vpop.f32.mrf.mxu3 }
 0x313   :  { %2386 = vst [vmem:[%s5747_s5 + $0x3f0] sm:$0xff] %v1586_v32 }
 0x314   :  { %2387 = vst [vmem:[%s5747_s5 + $0x3f8] sm:$0xff] %v1978_v33 }
 0x315   :  { %v805_v35 = vpop.f32.mrf.mxu0  ;;  %v1197_v36 = vpop.f32.mrf.mxu1 }
 0x316   :  { %2388 = vst [vmem:[%s5747_s5 + $0x400] sm:$0xff] %v805_v35  ;;  %v252_v35 = vld [vmem:[%s5746_s4 + $0x1e8] sm:$0xff] }
 0x317   :  { %3063 = vmatmul.msk.f32.gmra.mxu2 %vm316_vm7, %v239_v34  ;;  %3188 = vmatmul.msk.f32.gmra.mxu3 %vm316_vm7, %v239_v34  ;;  %2389 = vst [vmem:[%s5747_s5 + $0x408] sm:$0xff] %v1197_v36 }
 0x318   :  { %2813 = vmatmul.msk.f32.gmra.mxu0 %vm316_vm7, %v239_v34  ;;  %2938 = vmatmul.msk.f32.gmra.mxu1 %vm316_vm7, %v239_v34 }
 0x31a   :  { %v1589_v37 = vpop.f32.mrf.mxu2  ;;  %v1981_v38 = vpop.f32.mrf.mxu3 }
 0x31b   :  { %2390 = vst [vmem:[%s5747_s5 + $0x410] sm:$0xff] %v1589_v37 }
 0x31c   :  { %2391 = vst [vmem:[%s5747_s5 + $0x418] sm:$0xff] %v1981_v38 }
 0x31d   :  { %v808_v40 = vpop.f32.mrf.mxu0  ;;  %v1200_v41 = vpop.f32.mrf.mxu1 }
 0x31e   :  { %2392 = vst [vmem:[%s5747_s5 + $0x420] sm:$0xff] %v808_v40  ;;  %v253_v40 = vld [vmem:[%s5746_s4 + $0x1f0] sm:$0xff] }
 0x31f   :  { %3064 = vmatmul.msk.f32.gmra.mxu2 %vm316_vm7, %v240_v39  ;;  %3189 = vmatmul.msk.f32.gmra.mxu3 %vm316_vm7, %v240_v39  ;;  %2393 = vst [vmem:[%s5747_s5 + $0x428] sm:$0xff] %v1200_v41 }
 0x320   :  { %2814 = vmatmul.msk.f32.gmra.mxu0 %vm316_vm7, %v240_v39  ;;  %2939 = vmatmul.msk.f32.gmra.mxu1 %vm316_vm7, %v240_v39 }
 0x322   :  { %v1592_v42 = vpop.f32.mrf.mxu2  ;;  %v1984_v43 = vpop.f32.mrf.mxu3 }
 0x323   :  { %2394 = vst [vmem:[%s5747_s5 + $0x430] sm:$0xff] %v1592_v42 }
 0x324   :  { %2395 = vst [vmem:[%s5747_s5 + $0x438] sm:$0xff] %v1984_v43 }
 0x325   :  { %v811_v45 = vpop.f32.mrf.mxu0  ;;  %v1203_v46 = vpop.f32.mrf.mxu1 }
 0x326   :  { %2396 = vst [vmem:[%s5747_s5 + $0x440] sm:$0xff] %v811_v45  ;;  %v254_v45 = vld [vmem:[%s5746_s4 + $0x1f8] sm:$0xff] }
 0x327   :  { %3065 = vmatmul.msk.f32.gmra.mxu2 %vm316_vm7, %v241_v44  ;;  %3190 = vmatmul.msk.f32.gmra.mxu3 %vm316_vm7, %v241_v44  ;;  %2397 = vst [vmem:[%s5747_s5 + $0x448] sm:$0xff] %v1203_v46 }
 0x328   :  { %2815 = vmatmul.msk.f32.gmra.mxu0 %vm316_vm7, %v241_v44  ;;  %2940 = vmatmul.msk.f32.gmra.mxu1 %vm316_vm7, %v241_v44 }
 0x32a   :  { %v1595_v47 = vpop.f32.mrf.mxu2  ;;  %v1987_v48 = vpop.f32.mrf.mxu3 }
 0x32b   :  { %2398 = vst [vmem:[%s5747_s5 + $0x450] sm:$0xff] %v1595_v47 }
 0x32c   :  { %2399 = vst [vmem:[%s5747_s5 + $0x458] sm:$0xff] %v1987_v48 }
 0x32d   :  { %v814_v50 = vpop.f32.mrf.mxu0  ;;  %v1206_v51 = vpop.f32.mrf.mxu1 }
 0x32e   :  { %2400 = vst [vmem:[%s5747_s5 + $0x460] sm:$0xff] %v814_v50  ;;  %v255_v50 = vld [vmem:[%s5746_s4 + $0x200] sm:$0xff] }
 0x32f   :  { %3066 = vmatmul.msk.f32.gmra.mxu2 %vm316_vm7, %v242_v49  ;;  %3191 = vmatmul.msk.f32.gmra.mxu3 %vm316_vm7, %v242_v49  ;;  %2401 = vst [vmem:[%s5747_s5 + $0x468] sm:$0xff] %v1206_v51 }
 0x330   :  { %2816 = vmatmul.msk.f32.gmra.mxu0 %vm316_vm7, %v242_v49  ;;  %2941 = vmatmul.msk.f32.gmra.mxu1 %vm316_vm7, %v242_v49 }
 0x332   :  { %v1598_v52 = vpop.f32.mrf.mxu2  ;;  %v1990_v53 = vpop.f32.mrf.mxu3 }
 0x333   :  { %2402 = vst [vmem:[%s5747_s5 + $0x470] sm:$0xff] %v1598_v52 }
 0x334   :  { %2403 = vst [vmem:[%s5747_s5 + $0x478] sm:$0xff] %v1990_v53 }
 0x335   :  { %v817_v55 = vpop.f32.mrf.mxu0  ;;  %v1209_v56 = vpop.f32.mrf.mxu1 }
 0x336   :  { %2404 = vst [vmem:[%s5747_s5 + $0x480] sm:$0xff] %v817_v55  ;;  %v256_v55 = vld [vmem:[%s5746_s4 + $0x208] sm:$0xff] }
 0x337   :  { %3067 = vmatmul.msk.f32.gmra.mxu2 %vm316_vm7, %v243_v54  ;;  %3192 = vmatmul.msk.f32.gmra.mxu3 %vm316_vm7, %v243_v54  ;;  %2405 = vst [vmem:[%s5747_s5 + $0x488] sm:$0xff] %v1209_v56 }
 0x338   :  { %2817 = vmatmul.msk.f32.gmra.mxu0 %vm316_vm7, %v243_v54  ;;  %2942 = vmatmul.msk.f32.gmra.mxu1 %vm316_vm7, %v243_v54 }
 0x33a   :  { %v1601_v57 = vpop.f32.mrf.mxu2  ;;  %v1993_v58 = vpop.f32.mrf.mxu3 }
 0x33b   :  { %2406 = vst [vmem:[%s5747_s5 + $0x490] sm:$0xff] %v1601_v57 }
 0x33c   :  { %2407 = vst [vmem:[%s5747_s5 + $0x498] sm:$0xff] %v1993_v58 }
 0x33d   :  { %v820_v60 = vpop.f32.mrf.mxu0  ;;  %v1212_v61 = vpop.f32.mrf.mxu1 }
 0x33e   :  { %2408 = vst [vmem:[%s5747_s5 + $0x4a0] sm:$0xff] %v820_v60  ;;  %v257_v60 = vld [vmem:[%s5746_s4 + $0x210] sm:$0xff] }
 0x33f   :  { %3068 = vmatmul.msk.f32.gmra.mxu2 %vm316_vm7, %v244_v59  ;;  %3193 = vmatmul.msk.f32.gmra.mxu3 %vm316_vm7, %v244_v59  ;;  %2409 = vst [vmem:[%s5747_s5 + $0x4a8] sm:$0xff] %v1212_v61 }
 0x340   :  { %2818 = vmatmul.msk.f32.gmra.mxu0 %vm316_vm7, %v244_v59  ;;  %2943 = vmatmul.msk.f32.gmra.mxu1 %vm316_vm7, %v244_v59 }
 0x342   :  { %v1604_v62 = vpop.f32.mrf.mxu2  ;;  %v1996_v63 = vpop.f32.mrf.mxu3 }
 0x343   :  { %2410 = vst [vmem:[%s5747_s5 + $0x4b0] sm:$0xff] %v1604_v62 }
 0x344   :  { %2411 = vst [vmem:[%s5747_s5 + $0x4b8] sm:$0xff] %v1996_v63 }
 0x345   :  { %v823_v1 = vpop.f32.mrf.mxu0  ;;  %v1215_v2 = vpop.f32.mrf.mxu1 }
 0x346   :  { %2412 = vst [vmem:[%s5747_s5 + $0x4c0] sm:$0xff] %v823_v1  ;;  %v258_v1 = vld [vmem:[%s5746_s4 + $0x218] sm:$0xff] }
 0x347   :  { %3069 = vmatmul.msk.f32.gmra.mxu2 %vm316_vm7, %v245_v0  ;;  %3194 = vmatmul.msk.f32.gmra.mxu3 %vm316_vm7, %v245_v0  ;;  %2413 = vst [vmem:[%s5747_s5 + $0x4c8] sm:$0xff] %v1215_v2 }
 0x348   :  { %2819 = vmatmul.msk.f32.gmra.mxu0 %vm316_vm7, %v245_v0  ;;  %2944 = vmatmul.msk.f32.gmra.mxu1 %vm316_vm7, %v245_v0 }
 0x34a   :  { %v1607_v3 = vpop.f32.mrf.mxu2  ;;  %v1999_v4 = vpop.f32.mrf.mxu3 }
 0x34b   :  { %2414 = vst [vmem:[%s5747_s5 + $0x4d0] sm:$0xff] %v1607_v3 }
 0x34c   :  { %2415 = vst [vmem:[%s5747_s5 + $0x4d8] sm:$0xff] %v1999_v4 }
 0x34d   :  { %v826_v6 = vpop.f32.mrf.mxu0  ;;  %v1218_v7 = vpop.f32.mrf.mxu1 }
 0x34e   :  { %2416 = vst [vmem:[%s5747_s5 + $0x4e0] sm:$0xff] %v826_v6  ;;  %v259_v6 = vld [vmem:[%s5746_s4 + $0x220] sm:$0xff] }
 0x34f   :  { %3070 = vmatmul.msk.f32.gmra.mxu2 %vm316_vm7, %v246_v5  ;;  %3195 = vmatmul.msk.f32.gmra.mxu3 %vm316_vm7, %v246_v5  ;;  %2417 = vst [vmem:[%s5747_s5 + $0x4e8] sm:$0xff] %v1218_v7 }
 0x350   :  { %2820 = vmatmul.msk.f32.gmra.mxu0 %vm316_vm7, %v246_v5  ;;  %2945 = vmatmul.msk.f32.gmra.mxu1 %vm316_vm7, %v246_v5 }
 0x352   :  { %v1610_v8 = vpop.f32.mrf.mxu2  ;;  %v2002_v9 = vpop.f32.mrf.mxu3 }
 0x353   :  { %2418 = vst [vmem:[%s5747_s5 + $0x4f0] sm:$0xff] %v1610_v8 }
 0x354   :  { %2419 = vst [vmem:[%s5747_s5 + $0x4f8] sm:$0xff] %v2002_v9 }
 0x355   :  { %v829_v11 = vpop.f32.mrf.mxu0  ;;  %v1221_v12 = vpop.f32.mrf.mxu1 }
 0x356   :  { %2420 = vst [vmem:[%s5747_s5 + $0x500] sm:$0xff] %v829_v11  ;;  %v260_v11 = vld [vmem:[%s5746_s4 + $0x228] sm:$0xff] }
 0x357   :  { %3071 = vmatmul.msk.f32.gmra.mxu2 %vm316_vm7, %v247_v10  ;;  %3196 = vmatmul.msk.f32.gmra.mxu3 %vm316_vm7, %v247_v10  ;;  %2421 = vst [vmem:[%s5747_s5 + $0x508] sm:$0xff] %v1221_v12 }
 0x358   :  { %2821 = vmatmul.msk.f32.gmra.mxu0 %vm316_vm7, %v247_v10  ;;  %2946 = vmatmul.msk.f32.gmra.mxu1 %vm316_vm7, %v247_v10 }
 0x35a   :  { %v1613_v13 = vpop.f32.mrf.mxu2  ;;  %v2005_v14 = vpop.f32.mrf.mxu3 }
 0x35b   :  { %2422 = vst [vmem:[%s5747_s5 + $0x510] sm:$0xff] %v1613_v13 }
 0x35c   :  { %2423 = vst [vmem:[%s5747_s5 + $0x518] sm:$0xff] %v2005_v14 }
 0x35d   :  { %v832_v16 = vpop.f32.mrf.mxu0  ;;  %v1224_v17 = vpop.f32.mrf.mxu1 }
 0x35e   :  { %2424 = vst [vmem:[%s5747_s5 + $0x520] sm:$0xff] %v832_v16  ;;  %v261_v16 = vld [vmem:[%s5746_s4 + $0x230] sm:$0xff] }
 0x35f   :  { %3072 = vmatmul.msk.f32.gmra.mxu2 %vm316_vm7, %v248_v15  ;;  %3197 = vmatmul.msk.f32.gmra.mxu3 %vm316_vm7, %v248_v15  ;;  %2425 = vst [vmem:[%s5747_s5 + $0x528] sm:$0xff] %v1224_v17 }
 0x360   :  { %2822 = vmatmul.msk.f32.gmra.mxu0 %vm316_vm7, %v248_v15  ;;  %2947 = vmatmul.msk.f32.gmra.mxu1 %vm316_vm7, %v248_v15 }
 0x362   :  { %v1616_v18 = vpop.f32.mrf.mxu2  ;;  %v2008_v19 = vpop.f32.mrf.mxu3 }
 0x363   :  { %2426 = vst [vmem:[%s5747_s5 + $0x530] sm:$0xff] %v1616_v18 }
 0x364   :  { %2427 = vst [vmem:[%s5747_s5 + $0x538] sm:$0xff] %v2008_v19 }
 0x365   :  { %v835_v21 = vpop.f32.mrf.mxu0  ;;  %v1227_v22 = vpop.f32.mrf.mxu1 }
 0x366   :  { %2428 = vst [vmem:[%s5747_s5 + $0x540] sm:$0xff] %v835_v21  ;;  %v262_v21 = vld [vmem:[%s5746_s4 + $0x238] sm:$0xff] }
 0x367   :  { %3073 = vmatmul.msk.f32.gmra.mxu2 %vm316_vm7, %v249_v20  ;;  %3198 = vmatmul.msk.f32.gmra.mxu3 %vm316_vm7, %v249_v20  ;;  %2429 = vst [vmem:[%s5747_s5 + $0x548] sm:$0xff] %v1227_v22 }
 0x368   :  { %2823 = vmatmul.msk.f32.gmra.mxu0 %vm316_vm7, %v249_v20  ;;  %2948 = vmatmul.msk.f32.gmra.mxu1 %vm316_vm7, %v249_v20 }
 0x36a   :  { %v1619_v23 = vpop.f32.mrf.mxu2  ;;  %v2011_v24 = vpop.f32.mrf.mxu3 }
 0x36b   :  { %2430 = vst [vmem:[%s5747_s5 + $0x550] sm:$0xff] %v1619_v23 }
 0x36c   :  { %2431 = vst [vmem:[%s5747_s5 + $0x558] sm:$0xff] %v2011_v24 }
 0x36d   :  { %v838_v26 = vpop.f32.mrf.mxu0  ;;  %v1230_v27 = vpop.f32.mrf.mxu1 }
 0x36e   :  { %2432 = vst [vmem:[%s5747_s5 + $0x560] sm:$0xff] %v838_v26  ;;  %v263_v26 = vld [vmem:[%s5746_s4 + $0x240] sm:$0xff] }
 0x36f   :  { %3074 = vmatmul.msk.f32.gmra.mxu2 %vm316_vm7, %v250_v25  ;;  %3199 = vmatmul.msk.f32.gmra.mxu3 %vm316_vm7, %v250_v25  ;;  %2433 = vst [vmem:[%s5747_s5 + $0x568] sm:$0xff] %v1230_v27 }
 0x370   :  { %2824 = vmatmul.msk.f32.gmra.mxu0 %vm316_vm7, %v250_v25  ;;  %2949 = vmatmul.msk.f32.gmra.mxu1 %vm316_vm7, %v250_v25 }
 0x372   :  { %v1622_v28 = vpop.f32.mrf.mxu2  ;;  %v2014_v29 = vpop.f32.mrf.mxu3 }
 0x373   :  { %2434 = vst [vmem:[%s5747_s5 + $0x570] sm:$0xff] %v1622_v28 }
 0x374   :  { %2435 = vst [vmem:[%s5747_s5 + $0x578] sm:$0xff] %v2014_v29 }
 0x375   :  { %v841_v31 = vpop.f32.mrf.mxu0  ;;  %v1233_v32 = vpop.f32.mrf.mxu1 }
 0x376   :  { %2436 = vst [vmem:[%s5747_s5 + $0x580] sm:$0xff] %v841_v31  ;;  %v264_v31 = vld [vmem:[%s5746_s4 + $0x248] sm:$0xff] }
 0x377   :  { %3075 = vmatmul.msk.f32.gmra.mxu2 %vm316_vm7, %v251_v30  ;;  %3200 = vmatmul.msk.f32.gmra.mxu3 %vm316_vm7, %v251_v30  ;;  %2437 = vst [vmem:[%s5747_s5 + $0x588] sm:$0xff] %v1233_v32 }
 0x378   :  { %2825 = vmatmul.msk.f32.gmra.mxu0 %vm316_vm7, %v251_v30  ;;  %2950 = vmatmul.msk.f32.gmra.mxu1 %vm316_vm7, %v251_v30 }
 0x37a   :  { %v1625_v33 = vpop.f32.mrf.mxu2  ;;  %v2017_v34 = vpop.f32.mrf.mxu3 }
 0x37b   :  { %2438 = vst [vmem:[%s5747_s5 + $0x590] sm:$0xff] %v1625_v33 }
 0x37c   :  { %2439 = vst [vmem:[%s5747_s5 + $0x598] sm:$0xff] %v2017_v34 }
 0x37d   :  { %v844_v36 = vpop.f32.mrf.mxu0  ;;  %v1236_v37 = vpop.f32.mrf.mxu1 }
 0x37e   :  { %2440 = vst [vmem:[%s5747_s5 + $0x5a0] sm:$0xff] %v844_v36  ;;  %v265_v36 = vld [vmem:[%s5746_s4 + $0x250] sm:$0xff] }
 0x37f   :  { %3076 = vmatmul.msk.f32.gmra.mxu2 %vm316_vm7, %v252_v35  ;;  %3201 = vmatmul.msk.f32.gmra.mxu3 %vm316_vm7, %v252_v35  ;;  %2441 = vst [vmem:[%s5747_s5 + $0x5a8] sm:$0xff] %v1236_v37 }
 0x380   :  { %2826 = vmatmul.msk.f32.gmra.mxu0 %vm316_vm7, %v252_v35  ;;  %2951 = vmatmul.msk.f32.gmra.mxu1 %vm316_vm7, %v252_v35 }
 0x382   :  { %v1628_v38 = vpop.f32.mrf.mxu2  ;;  %v2020_v39 = vpop.f32.mrf.mxu3 }
 0x383   :  { %2442 = vst [vmem:[%s5747_s5 + $0x5b0] sm:$0xff] %v1628_v38 }
 0x384   :  { %2443 = vst [vmem:[%s5747_s5 + $0x5b8] sm:$0xff] %v2020_v39 }
 0x385   :  { %v847_v41 = vpop.f32.mrf.mxu0  ;;  %v1239_v42 = vpop.f32.mrf.mxu1 }
 0x386   :  { %2444 = vst [vmem:[%s5747_s5 + $0x5c0] sm:$0xff] %v847_v41  ;;  %v266_v41 = vld [vmem:[%s5746_s4 + $0x258] sm:$0xff] }
 0x387   :  { %3077 = vmatmul.msk.f32.gmra.mxu2 %vm316_vm7, %v253_v40  ;;  %3202 = vmatmul.msk.f32.gmra.mxu3 %vm316_vm7, %v253_v40  ;;  %2445 = vst [vmem:[%s5747_s5 + $0x5c8] sm:$0xff] %v1239_v42 }
 0x388   :  { %2827 = vmatmul.msk.f32.gmra.mxu0 %vm316_vm7, %v253_v40  ;;  %2952 = vmatmul.msk.f32.gmra.mxu1 %vm316_vm7, %v253_v40 }
 0x38a   :  { %v1631_v43 = vpop.f32.mrf.mxu2  ;;  %v2023_v44 = vpop.f32.mrf.mxu3 }
 0x38b   :  { %2446 = vst [vmem:[%s5747_s5 + $0x5d0] sm:$0xff] %v1631_v43 }
 0x38c   :  { %2447 = vst [vmem:[%s5747_s5 + $0x5d8] sm:$0xff] %v2023_v44 }
 0x38d   :  { %v850_v46 = vpop.f32.mrf.mxu0  ;;  %v1242_v47 = vpop.f32.mrf.mxu1 }
 0x38e   :  { %2448 = vst [vmem:[%s5747_s5 + $0x5e0] sm:$0xff] %v850_v46  ;;  %v267_v46 = vld [vmem:[%s5746_s4 + $0x260] sm:$0xff] }
 0x38f   :  { %3078 = vmatmul.msk.f32.gmra.mxu2 %vm316_vm7, %v254_v45  ;;  %3203 = vmatmul.msk.f32.gmra.mxu3 %vm316_vm7, %v254_v45  ;;  %2449 = vst [vmem:[%s5747_s5 + $0x5e8] sm:$0xff] %v1242_v47 }
 0x390   :  { %2828 = vmatmul.msk.f32.gmra.mxu0 %vm316_vm7, %v254_v45  ;;  %2953 = vmatmul.msk.f32.gmra.mxu1 %vm316_vm7, %v254_v45 }
 0x392   :  { %v1634_v48 = vpop.f32.mrf.mxu2  ;;  %v2026_v49 = vpop.f32.mrf.mxu3 }
 0x393   :  { %2450 = vst [vmem:[%s5747_s5 + $0x5f0] sm:$0xff] %v1634_v48 }
 0x394   :  { %2451 = vst [vmem:[%s5747_s5 + $0x5f8] sm:$0xff] %v2026_v49 }
 0x395   :  { %v853_v51 = vpop.f32.mrf.mxu0  ;;  %v1245_v52 = vpop.f32.mrf.mxu1 }
 0x396   :  { %2452 = vst [vmem:[%s5747_s5 + $0x600] sm:$0xff] %v853_v51  ;;  %v268_v51 = vld [vmem:[%s5746_s4 + $0x268] sm:$0xff] }
 0x397   :  { %3079 = vmatmul.msk.f32.gmra.mxu2 %vm316_vm7, %v255_v50  ;;  %3204 = vmatmul.msk.f32.gmra.mxu3 %vm316_vm7, %v255_v50  ;;  %2453 = vst [vmem:[%s5747_s5 + $0x608] sm:$0xff] %v1245_v52 }
 0x398   :  { %2829 = vmatmul.msk.f32.gmra.mxu0 %vm316_vm7, %v255_v50  ;;  %2954 = vmatmul.msk.f32.gmra.mxu1 %vm316_vm7, %v255_v50 }
 0x39a   :  { %v1637_v53 = vpop.f32.mrf.mxu2  ;;  %v2029_v54 = vpop.f32.mrf.mxu3 }
 0x39b   :  { %2454 = vst [vmem:[%s5747_s5 + $0x610] sm:$0xff] %v1637_v53 }
 0x39c   :  { %2455 = vst [vmem:[%s5747_s5 + $0x618] sm:$0xff] %v2029_v54 }
 0x39d   :  { %v856_v56 = vpop.f32.mrf.mxu0  ;;  %v1248_v57 = vpop.f32.mrf.mxu1 }
 0x39e   :  { %2456 = vst [vmem:[%s5747_s5 + $0x620] sm:$0xff] %v856_v56  ;;  %v269_v56 = vld [vmem:[%s5746_s4 + $0x270] sm:$0xff] }
 0x39f   :  { %3080 = vmatmul.msk.f32.gmra.mxu2 %vm316_vm7, %v256_v55  ;;  %3205 = vmatmul.msk.f32.gmra.mxu3 %vm316_vm7, %v256_v55  ;;  %2457 = vst [vmem:[%s5747_s5 + $0x628] sm:$0xff] %v1248_v57 }
 0x3a0   :  { %2830 = vmatmul.msk.f32.gmra.mxu0 %vm316_vm7, %v256_v55  ;;  %2955 = vmatmul.msk.f32.gmra.mxu1 %vm316_vm7, %v256_v55 }
 0x3a2   :  { %v1640_v58 = vpop.f32.mrf.mxu2  ;;  %v2032_v59 = vpop.f32.mrf.mxu3 }
 0x3a3   :  { %2458 = vst [vmem:[%s5747_s5 + $0x630] sm:$0xff] %v1640_v58 }
 0x3a4   :  { %2459 = vst [vmem:[%s5747_s5 + $0x638] sm:$0xff] %v2032_v59 }
 0x3a5   :  { %v859_v61 = vpop.f32.mrf.mxu0  ;;  %v1251_v62 = vpop.f32.mrf.mxu1 }
 0x3a6   :  { %2460 = vst [vmem:[%s5747_s5 + $0x640] sm:$0xff] %v859_v61  ;;  %v270_v61 = vld [vmem:[%s5746_s4 + $0x278] sm:$0xff] }
 0x3a7   :  { %3081 = vmatmul.msk.f32.gmra.mxu2 %vm316_vm7, %v257_v60  ;;  %3206 = vmatmul.msk.f32.gmra.mxu3 %vm316_vm7, %v257_v60  ;;  %2461 = vst [vmem:[%s5747_s5 + $0x648] sm:$0xff] %v1251_v62 }
 0x3a8   :  { %2831 = vmatmul.msk.f32.gmra.mxu0 %vm316_vm7, %v257_v60  ;;  %2956 = vmatmul.msk.f32.gmra.mxu1 %vm316_vm7, %v257_v60 }
 0x3aa   :  { %v1643_v63 = vpop.f32.mrf.mxu2  ;;  %v2035_v0 = vpop.f32.mrf.mxu3 }
 0x3ab   :  { %2462 = vst [vmem:[%s5747_s5 + $0x650] sm:$0xff] %v1643_v63 }
 0x3ac   :  { %2463 = vst [vmem:[%s5747_s5 + $0x658] sm:$0xff] %v2035_v0 }
 0x3ad   :  { %v862_v2 = vpop.f32.mrf.mxu0  ;;  %v1254_v3 = vpop.f32.mrf.mxu1 }
 0x3ae   :  { %2464 = vst [vmem:[%s5747_s5 + $0x660] sm:$0xff] %v862_v2  ;;  %v271_v2 = vld [vmem:[%s5746_s4 + $0x280] sm:$0xff] }
 0x3af   :  { %3082 = vmatmul.msk.f32.gmra.mxu2 %vm316_vm7, %v258_v1  ;;  %3207 = vmatmul.msk.f32.gmra.mxu3 %vm316_vm7, %v258_v1  ;;  %2465 = vst [vmem:[%s5747_s5 + $0x668] sm:$0xff] %v1254_v3 }
 0x3b0   :  { %2832 = vmatmul.msk.f32.gmra.mxu0 %vm316_vm7, %v258_v1  ;;  %2957 = vmatmul.msk.f32.gmra.mxu1 %vm316_vm7, %v258_v1 }
 0x3b2   :  { %v1646_v4 = vpop.f32.mrf.mxu2  ;;  %v2038_v5 = vpop.f32.mrf.mxu3 }
 0x3b3   :  { %2466 = vst [vmem:[%s5747_s5 + $0x670] sm:$0xff] %v1646_v4 }
 0x3b4   :  { %2467 = vst [vmem:[%s5747_s5 + $0x678] sm:$0xff] %v2038_v5 }
 0x3b5   :  { %v865_v7 = vpop.f32.mrf.mxu0  ;;  %v1257_v8 = vpop.f32.mrf.mxu1 }
 0x3b6   :  { %2468 = vst [vmem:[%s5747_s5 + $0x680] sm:$0xff] %v865_v7  ;;  %v272_v7 = vld [vmem:[%s5746_s4 + $0x288] sm:$0xff] }
 0x3b7   :  { %3083 = vmatmul.msk.f32.gmra.mxu2 %vm316_vm7, %v259_v6  ;;  %3208 = vmatmul.msk.f32.gmra.mxu3 %vm316_vm7, %v259_v6  ;;  %2469 = vst [vmem:[%s5747_s5 + $0x688] sm:$0xff] %v1257_v8 }
 0x3b8   :  { %2833 = vmatmul.msk.f32.gmra.mxu0 %vm316_vm7, %v259_v6  ;;  %2958 = vmatmul.msk.f32.gmra.mxu1 %vm316_vm7, %v259_v6 }
 0x3ba   :  { %v1649_v9 = vpop.f32.mrf.mxu2  ;;  %v2041_v10 = vpop.f32.mrf.mxu3 }
 0x3bb   :  { %2470 = vst [vmem:[%s5747_s5 + $0x690] sm:$0xff] %v1649_v9 }
 0x3bc   :  { %2471 = vst [vmem:[%s5747_s5 + $0x698] sm:$0xff] %v2041_v10 }
 0x3bd   :  { %v868_v12 = vpop.f32.mrf.mxu0  ;;  %v1260_v13 = vpop.f32.mrf.mxu1 }
 0x3be   :  { %2472 = vst [vmem:[%s5747_s5 + $0x6a0] sm:$0xff] %v868_v12  ;;  %v273_v12 = vld [vmem:[%s5746_s4 + $0x290] sm:$0xff] }
 0x3bf   :  { %3084 = vmatmul.msk.f32.gmra.mxu2 %vm316_vm7, %v260_v11  ;;  %3209 = vmatmul.msk.f32.gmra.mxu3 %vm316_vm7, %v260_v11  ;;  %2473 = vst [vmem:[%s5747_s5 + $0x6a8] sm:$0xff] %v1260_v13 }
 0x3c0   :  { %2834 = vmatmul.msk.f32.gmra.mxu0 %vm316_vm7, %v260_v11  ;;  %2959 = vmatmul.msk.f32.gmra.mxu1 %vm316_vm7, %v260_v11 }
 0x3c2   :  { %v1652_v14 = vpop.f32.mrf.mxu2  ;;  %v2044_v15 = vpop.f32.mrf.mxu3 }
 0x3c3   :  { %2474 = vst [vmem:[%s5747_s5 + $0x6b0] sm:$0xff] %v1652_v14 }
 0x3c4   :  { %2475 = vst [vmem:[%s5747_s5 + $0x6b8] sm:$0xff] %v2044_v15 }
 0x3c5   :  { %v871_v17 = vpop.f32.mrf.mxu0  ;;  %v1263_v18 = vpop.f32.mrf.mxu1 }
 0x3c6   :  { %2476 = vst [vmem:[%s5747_s5 + $0x6c0] sm:$0xff] %v871_v17  ;;  %v274_v17 = vld [vmem:[%s5746_s4 + $0x298] sm:$0xff] }
 0x3c7   :  { %3085 = vmatmul.msk.f32.gmra.mxu2 %vm316_vm7, %v261_v16  ;;  %3210 = vmatmul.msk.f32.gmra.mxu3 %vm316_vm7, %v261_v16  ;;  %2477 = vst [vmem:[%s5747_s5 + $0x6c8] sm:$0xff] %v1263_v18 }
 0x3c8   :  { %2835 = vmatmul.msk.f32.gmra.mxu0 %vm316_vm7, %v261_v16  ;;  %2960 = vmatmul.msk.f32.gmra.mxu1 %vm316_vm7, %v261_v16 }
 0x3ca   :  { %v1655_v19 = vpop.f32.mrf.mxu2  ;;  %v2047_v20 = vpop.f32.mrf.mxu3 }
 0x3cb   :  { %2478 = vst [vmem:[%s5747_s5 + $0x6d0] sm:$0xff] %v1655_v19 }
 0x3cc   :  { %2479 = vst [vmem:[%s5747_s5 + $0x6d8] sm:$0xff] %v2047_v20 }
 0x3cd   :  { %v874_v22 = vpop.f32.mrf.mxu0  ;;  %v1266_v23 = vpop.f32.mrf.mxu1 }
 0x3ce   :  { %2480 = vst [vmem:[%s5747_s5 + $0x6e0] sm:$0xff] %v874_v22  ;;  %v275_v22 = vld [vmem:[%s5746_s4 + $0x2a0] sm:$0xff] }
 0x3cf   :  { %3086 = vmatmul.msk.f32.gmra.mxu2 %vm316_vm7, %v262_v21  ;;  %3211 = vmatmul.msk.f32.gmra.mxu3 %vm316_vm7, %v262_v21  ;;  %2481 = vst [vmem:[%s5747_s5 + $0x6e8] sm:$0xff] %v1266_v23 }
 0x3d0   :  { %2836 = vmatmul.msk.f32.gmra.mxu0 %vm316_vm7, %v262_v21  ;;  %2961 = vmatmul.msk.f32.gmra.mxu1 %vm316_vm7, %v262_v21 }
 0x3d2   :  { %v1658_v24 = vpop.f32.mrf.mxu2  ;;  %v2050_v25 = vpop.f32.mrf.mxu3 }
 0x3d3   :  { %2482 = vst [vmem:[%s5747_s5 + $0x6f0] sm:$0xff] %v1658_v24 }
 0x3d4   :  { %2483 = vst [vmem:[%s5747_s5 + $0x6f8] sm:$0xff] %v2050_v25 }
 0x3d5   :  { %v877_v27 = vpop.f32.mrf.mxu0  ;;  %v1269_v28 = vpop.f32.mrf.mxu1 }
 0x3d6   :  { %2484 = vst [vmem:[%s5747_s5 + $0x700] sm:$0xff] %v877_v27  ;;  %v276_v27 = vld [vmem:[%s5746_s4 + $0x2a8] sm:$0xff] }
 0x3d7   :  { %3087 = vmatmul.msk.f32.gmra.mxu2 %vm316_vm7, %v263_v26  ;;  %3212 = vmatmul.msk.f32.gmra.mxu3 %vm316_vm7, %v263_v26  ;;  %2485 = vst [vmem:[%s5747_s5 + $0x708] sm:$0xff] %v1269_v28 }
 0x3d8   :  { %2837 = vmatmul.msk.f32.gmra.mxu0 %vm316_vm7, %v263_v26  ;;  %2962 = vmatmul.msk.f32.gmra.mxu1 %vm316_vm7, %v263_v26 }
 0x3da   :  { %v1661_v29 = vpop.f32.mrf.mxu2  ;;  %v2053_v30 = vpop.f32.mrf.mxu3 }
 0x3db   :  { %2486 = vst [vmem:[%s5747_s5 + $0x710] sm:$0xff] %v1661_v29 }
 0x3dc   :  { %2487 = vst [vmem:[%s5747_s5 + $0x718] sm:$0xff] %v2053_v30 }
 0x3dd   :  { %v880_v32 = vpop.f32.mrf.mxu0  ;;  %v1272_v33 = vpop.f32.mrf.mxu1 }
 0x3de   :  { %2488 = vst [vmem:[%s5747_s5 + $0x720] sm:$0xff] %v880_v32  ;;  %v277_v32 = vld [vmem:[%s5746_s4 + $0x2b0] sm:$0xff] }
 0x3df   :  { %3088 = vmatmul.msk.f32.gmra.mxu2 %vm316_vm7, %v264_v31  ;;  %3213 = vmatmul.msk.f32.gmra.mxu3 %vm316_vm7, %v264_v31  ;;  %2489 = vst [vmem:[%s5747_s5 + $0x728] sm:$0xff] %v1272_v33 }
 0x3e0   :  { %2838 = vmatmul.msk.f32.gmra.mxu0 %vm316_vm7, %v264_v31  ;;  %2963 = vmatmul.msk.f32.gmra.mxu1 %vm316_vm7, %v264_v31 }
 0x3e2   :  { %v1664_v34 = vpop.f32.mrf.mxu2  ;;  %v2056_v35 = vpop.f32.mrf.mxu3 }
 0x3e3   :  { %2490 = vst [vmem:[%s5747_s5 + $0x730] sm:$0xff] %v1664_v34 }
 0x3e4   :  { %2491 = vst [vmem:[%s5747_s5 + $0x738] sm:$0xff] %v2056_v35 }
 0x3e5   :  { %v883_v37 = vpop.f32.mrf.mxu0  ;;  %v1275_v38 = vpop.f32.mrf.mxu1 }
 0x3e6   :  { %2492 = vst [vmem:[%s5747_s5 + $0x740] sm:$0xff] %v883_v37  ;;  %v278_v37 = vld [vmem:[%s5746_s4 + $0x2b8] sm:$0xff] }
 0x3e7   :  { %3089 = vmatmul.msk.f32.gmra.mxu2 %vm316_vm7, %v265_v36  ;;  %3214 = vmatmul.msk.f32.gmra.mxu3 %vm316_vm7, %v265_v36  ;;  %2493 = vst [vmem:[%s5747_s5 + $0x748] sm:$0xff] %v1275_v38 }
 0x3e8   :  { %2839 = vmatmul.msk.f32.gmra.mxu0 %vm316_vm7, %v265_v36  ;;  %2964 = vmatmul.msk.f32.gmra.mxu1 %vm316_vm7, %v265_v36 }
 0x3ea   :  { %v1667_v39 = vpop.f32.mrf.mxu2  ;;  %v2059_v40 = vpop.f32.mrf.mxu3 }
 0x3eb   :  { %2494 = vst [vmem:[%s5747_s5 + $0x750] sm:$0xff] %v1667_v39 }
 0x3ec   :  { %2495 = vst [vmem:[%s5747_s5 + $0x758] sm:$0xff] %v2059_v40 }
 0x3ed   :  { %v886_v42 = vpop.f32.mrf.mxu0  ;;  %v1278_v43 = vpop.f32.mrf.mxu1 }
 0x3ee   :  { %2496 = vst [vmem:[%s5747_s5 + $0x760] sm:$0xff] %v886_v42  ;;  %v279_v42 = vld [vmem:[%s5746_s4 + $0x2c0] sm:$0xff] }
 0x3ef   :  { %3090 = vmatmul.msk.f32.gmra.mxu2 %vm316_vm7, %v266_v41  ;;  %3215 = vmatmul.msk.f32.gmra.mxu3 %vm316_vm7, %v266_v41  ;;  %2497 = vst [vmem:[%s5747_s5 + $0x768] sm:$0xff] %v1278_v43 }
 0x3f0   :  { %2840 = vmatmul.msk.f32.gmra.mxu0 %vm316_vm7, %v266_v41  ;;  %2965 = vmatmul.msk.f32.gmra.mxu1 %vm316_vm7, %v266_v41 }
 0x3f2   :  { %v1670_v44 = vpop.f32.mrf.mxu2  ;;  %v2062_v45 = vpop.f32.mrf.mxu3 }
 0x3f3   :  { %2498 = vst [vmem:[%s5747_s5 + $0x770] sm:$0xff] %v1670_v44 }
 0x3f4   :  { %2499 = vst [vmem:[%s5747_s5 + $0x778] sm:$0xff] %v2062_v45 }
 0x3f5   :  { %v889_v47 = vpop.f32.mrf.mxu0  ;;  %v1281_v48 = vpop.f32.mrf.mxu1 }
 0x3f6   :  { %2500 = vst [vmem:[%s5747_s5 + $0x780] sm:$0xff] %v889_v47  ;;  %v280_v47 = vld [vmem:[%s5746_s4 + $0x2c8] sm:$0xff] }
 0x3f7   :  { %3091 = vmatmul.msk.f32.gmra.mxu2 %vm316_vm7, %v267_v46  ;;  %3216 = vmatmul.msk.f32.gmra.mxu3 %vm316_vm7, %v267_v46  ;;  %2501 = vst [vmem:[%s5747_s5 + $0x788] sm:$0xff] %v1281_v48 }
 0x3f8   :  { %2841 = vmatmul.msk.f32.gmra.mxu0 %vm316_vm7, %v267_v46  ;;  %2966 = vmatmul.msk.f32.gmra.mxu1 %vm316_vm7, %v267_v46 }
 0x3fa   :  { %v1673_v49 = vpop.f32.mrf.mxu2  ;;  %v2065_v50 = vpop.f32.mrf.mxu3 }
 0x3fb   :  { %2502 = vst [vmem:[%s5747_s5 + $0x790] sm:$0xff] %v1673_v49 }
 0x3fc   :  { %2503 = vst [vmem:[%s5747_s5 + $0x798] sm:$0xff] %v2065_v50 }
 0x3fd   :  { %v892_v52 = vpop.f32.mrf.mxu0  ;;  %v1284_v53 = vpop.f32.mrf.mxu1 }
 0x3fe   :  { %2504 = vst [vmem:[%s5747_s5 + $0x7a0] sm:$0xff] %v892_v52  ;;  %v281_v52 = vld [vmem:[%s5746_s4 + $0x2d0] sm:$0xff] }
 0x3ff   :  { %3092 = vmatmul.msk.f32.gmra.mxu2 %vm316_vm7, %v268_v51  ;;  %3217 = vmatmul.msk.f32.gmra.mxu3 %vm316_vm7, %v268_v51  ;;  %2505 = vst [vmem:[%s5747_s5 + $0x7a8] sm:$0xff] %v1284_v53 }
 0x400   :  { %2842 = vmatmul.msk.f32.gmra.mxu0 %vm316_vm7, %v268_v51  ;;  %2967 = vmatmul.msk.f32.gmra.mxu1 %vm316_vm7, %v268_v51 }
 0x402   :  { %v1676_v54 = vpop.f32.mrf.mxu2  ;;  %v2068_v55 = vpop.f32.mrf.mxu3 }
 0x403   :  { %2506 = vst [vmem:[%s5747_s5 + $0x7b0] sm:$0xff] %v1676_v54 }
 0x404   :  { %2507 = vst [vmem:[%s5747_s5 + $0x7b8] sm:$0xff] %v2068_v55 }
 0x405   :  { %v895_v57 = vpop.f32.mrf.mxu0  ;;  %v1287_v58 = vpop.f32.mrf.mxu1 }
 0x406   :  { %2508 = vst [vmem:[%s5747_s5 + $0x7c0] sm:$0xff] %v895_v57  ;;  %v282_v57 = vld [vmem:[%s5746_s4 + $0x2d8] sm:$0xff] }
 0x407   :  { %3093 = vmatmul.msk.f32.gmra.mxu2 %vm316_vm7, %v269_v56  ;;  %3218 = vmatmul.msk.f32.gmra.mxu3 %vm316_vm7, %v269_v56  ;;  %2509 = vst [vmem:[%s5747_s5 + $0x7c8] sm:$0xff] %v1287_v58 }
 0x408   :  { %2843 = vmatmul.msk.f32.gmra.mxu0 %vm316_vm7, %v269_v56  ;;  %2968 = vmatmul.msk.f32.gmra.mxu1 %vm316_vm7, %v269_v56 }
 0x40a   :  { %v1679_v59 = vpop.f32.mrf.mxu2  ;;  %v2071_v60 = vpop.f32.mrf.mxu3 }
 0x40b   :  { %2510 = vst [vmem:[%s5747_s5 + $0x7d0] sm:$0xff] %v1679_v59 }
 0x40c   :  { %2511 = vst [vmem:[%s5747_s5 + $0x7d8] sm:$0xff] %v2071_v60 }
 0x40d   :  { %v898_v62 = vpop.f32.mrf.mxu0  ;;  %v1290_v63 = vpop.f32.mrf.mxu1 }
 0x40e   :  { %2512 = vst [vmem:[%s5747_s5 + $0x7e0] sm:$0xff] %v898_v62  ;;  %v283_v62 = vld [vmem:[%s5746_s4 + $0x2e0] sm:$0xff] }
 0x40f   :  { %3094 = vmatmul.msk.f32.gmra.mxu2 %vm316_vm7, %v270_v61  ;;  %3219 = vmatmul.msk.f32.gmra.mxu3 %vm316_vm7, %v270_v61  ;;  %2513 = vst [vmem:[%s5747_s5 + $0x7e8] sm:$0xff] %v1290_v63 }
 0x410   :  { %2844 = vmatmul.msk.f32.gmra.mxu0 %vm316_vm7, %v270_v61  ;;  %2969 = vmatmul.msk.f32.gmra.mxu1 %vm316_vm7, %v270_v61 }
 0x412   :  { %v1682_v0 = vpop.f32.mrf.mxu2  ;;  %v2074_v1 = vpop.f32.mrf.mxu3 }
 0x413   :  { %2514 = vst [vmem:[%s5747_s5 + $0x7f0] sm:$0xff] %v1682_v0 }
 0x414   :  { %2515 = vst [vmem:[%s5747_s5 + $0x7f8] sm:$0xff] %v2074_v1 }
 0x415   :  { %v901_v3 = vpop.f32.mrf.mxu0  ;;  %v1293_v4 = vpop.f32.mrf.mxu1 }
 0x416   :  { %2516 = vst [vmem:[%s5747_s5 + $0x800] sm:$0xff] %v901_v3  ;;  %v284_v3 = vld [vmem:[%s5746_s4 + $0x2e8] sm:$0xff] }
 0x417   :  { %3095 = vmatmul.msk.f32.gmra.mxu2 %vm316_vm7, %v271_v2  ;;  %3220 = vmatmul.msk.f32.gmra.mxu3 %vm316_vm7, %v271_v2  ;;  %2517 = vst [vmem:[%s5747_s5 + $0x808] sm:$0xff] %v1293_v4 }
 0x418   :  { %2845 = vmatmul.msk.f32.gmra.mxu0 %vm316_vm7, %v271_v2  ;;  %2970 = vmatmul.msk.f32.gmra.mxu1 %vm316_vm7, %v271_v2 }
 0x41a   :  { %v1685_v5 = vpop.f32.mrf.mxu2  ;;  %v2077_v6 = vpop.f32.mrf.mxu3 }
 0x41b   :  { %2518 = vst [vmem:[%s5747_s5 + $0x810] sm:$0xff] %v1685_v5 }
 0x41c   :  { %2519 = vst [vmem:[%s5747_s5 + $0x818] sm:$0xff] %v2077_v6 }
 0x41d   :  { %v904_v8 = vpop.f32.mrf.mxu0  ;;  %v1296_v9 = vpop.f32.mrf.mxu1 }
 0x41e   :  { %2520 = vst [vmem:[%s5747_s5 + $0x820] sm:$0xff] %v904_v8  ;;  %v285_v8 = vld [vmem:[%s5746_s4 + $0x2f0] sm:$0xff] }
 0x41f   :  { %3096 = vmatmul.msk.f32.gmra.mxu2 %vm316_vm7, %v272_v7  ;;  %3221 = vmatmul.msk.f32.gmra.mxu3 %vm316_vm7, %v272_v7  ;;  %2521 = vst [vmem:[%s5747_s5 + $0x828] sm:$0xff] %v1296_v9 }
 0x420   :  { %2846 = vmatmul.msk.f32.gmra.mxu0 %vm316_vm7, %v272_v7  ;;  %2971 = vmatmul.msk.f32.gmra.mxu1 %vm316_vm7, %v272_v7 }
 0x422   :  { %v1688_v10 = vpop.f32.mrf.mxu2  ;;  %v2080_v11 = vpop.f32.mrf.mxu3 }
 0x423   :  { %2522 = vst [vmem:[%s5747_s5 + $0x830] sm:$0xff] %v1688_v10 }
 0x424   :  { %2523 = vst [vmem:[%s5747_s5 + $0x838] sm:$0xff] %v2080_v11 }
 0x425   :  { %v907_v13 = vpop.f32.mrf.mxu0  ;;  %v1299_v14 = vpop.f32.mrf.mxu1 }
 0x426   :  { %2524 = vst [vmem:[%s5747_s5 + $0x840] sm:$0xff] %v907_v13  ;;  %v286_v13 = vld [vmem:[%s5746_s4 + $0x2f8] sm:$0xff] }
 0x427   :  { %3097 = vmatmul.msk.f32.gmra.mxu2 %vm316_vm7, %v273_v12  ;;  %3222 = vmatmul.msk.f32.gmra.mxu3 %vm316_vm7, %v273_v12  ;;  %2525 = vst [vmem:[%s5747_s5 + $0x848] sm:$0xff] %v1299_v14 }
 0x428   :  { %2847 = vmatmul.msk.f32.gmra.mxu0 %vm316_vm7, %v273_v12  ;;  %2972 = vmatmul.msk.f32.gmra.mxu1 %vm316_vm7, %v273_v12 }
 0x42a   :  { %v1691_v15 = vpop.f32.mrf.mxu2  ;;  %v2083_v16 = vpop.f32.mrf.mxu3 }
 0x42b   :  { %2526 = vst [vmem:[%s5747_s5 + $0x850] sm:$0xff] %v1691_v15 }
 0x42c   :  { %2527 = vst [vmem:[%s5747_s5 + $0x858] sm:$0xff] %v2083_v16 }
 0x42d   :  { %v910_v18 = vpop.f32.mrf.mxu0  ;;  %v1302_v19 = vpop.f32.mrf.mxu1 }
 0x42e   :  { %2528 = vst [vmem:[%s5747_s5 + $0x860] sm:$0xff] %v910_v18  ;;  %v287_v18 = vld [vmem:[%s5746_s4 + $0x300] sm:$0xff] }
 0x42f   :  { %3098 = vmatmul.msk.f32.gmra.mxu2 %vm316_vm7, %v274_v17  ;;  %3223 = vmatmul.msk.f32.gmra.mxu3 %vm316_vm7, %v274_v17  ;;  %2529 = vst [vmem:[%s5747_s5 + $0x868] sm:$0xff] %v1302_v19 }
 0x430   :  { %2848 = vmatmul.msk.f32.gmra.mxu0 %vm316_vm7, %v274_v17  ;;  %2973 = vmatmul.msk.f32.gmra.mxu1 %vm316_vm7, %v274_v17 }
 0x432   :  { %v1694_v20 = vpop.f32.mrf.mxu2  ;;  %v2086_v21 = vpop.f32.mrf.mxu3 }
 0x433   :  { %2530 = vst [vmem:[%s5747_s5 + $0x870] sm:$0xff] %v1694_v20 }
 0x434   :  { %2531 = vst [vmem:[%s5747_s5 + $0x878] sm:$0xff] %v2086_v21 }
 0x435   :  { %v913_v23 = vpop.f32.mrf.mxu0  ;;  %v1305_v24 = vpop.f32.mrf.mxu1 }
 0x436   :  { %2532 = vst [vmem:[%s5747_s5 + $0x880] sm:$0xff] %v913_v23  ;;  %v288_v23 = vld [vmem:[%s5746_s4 + $0x308] sm:$0xff] }
 0x437   :  { %3099 = vmatmul.msk.f32.gmra.mxu2 %vm316_vm7, %v275_v22  ;;  %3224 = vmatmul.msk.f32.gmra.mxu3 %vm316_vm7, %v275_v22  ;;  %2533 = vst [vmem:[%s5747_s5 + $0x888] sm:$0xff] %v1305_v24 }
 0x438   :  { %2849 = vmatmul.msk.f32.gmra.mxu0 %vm316_vm7, %v275_v22  ;;  %2974 = vmatmul.msk.f32.gmra.mxu1 %vm316_vm7, %v275_v22 }
 0x43a   :  { %v1697_v25 = vpop.f32.mrf.mxu2  ;;  %v2089_v26 = vpop.f32.mrf.mxu3 }
 0x43b   :  { %2534 = vst [vmem:[%s5747_s5 + $0x890] sm:$0xff] %v1697_v25 }
 0x43c   :  { %2535 = vst [vmem:[%s5747_s5 + $0x898] sm:$0xff] %v2089_v26 }
 0x43d   :  { %v916_v28 = vpop.f32.mrf.mxu0  ;;  %v1308_v29 = vpop.f32.mrf.mxu1 }
 0x43e   :  { %2536 = vst [vmem:[%s5747_s5 + $0x8a0] sm:$0xff] %v916_v28  ;;  %v289_v28 = vld [vmem:[%s5746_s4 + $0x310] sm:$0xff] }
 0x43f   :  { %3100 = vmatmul.msk.f32.gmra.mxu2 %vm316_vm7, %v276_v27  ;;  %3225 = vmatmul.msk.f32.gmra.mxu3 %vm316_vm7, %v276_v27  ;;  %2537 = vst [vmem:[%s5747_s5 + $0x8a8] sm:$0xff] %v1308_v29 }
 0x440   :  { %2850 = vmatmul.msk.f32.gmra.mxu0 %vm316_vm7, %v276_v27  ;;  %2975 = vmatmul.msk.f32.gmra.mxu1 %vm316_vm7, %v276_v27 }
 0x442   :  { %v1700_v30 = vpop.f32.mrf.mxu2  ;;  %v2092_v31 = vpop.f32.mrf.mxu3 }
 0x443   :  { %2538 = vst [vmem:[%s5747_s5 + $0x8b0] sm:$0xff] %v1700_v30 }
 0x444   :  { %2539 = vst [vmem:[%s5747_s5 + $0x8b8] sm:$0xff] %v2092_v31 }
 0x445   :  { %v919_v33 = vpop.f32.mrf.mxu0  ;;  %v1311_v34 = vpop.f32.mrf.mxu1 }
 0x446   :  { %2540 = vst [vmem:[%s5747_s5 + $0x8c0] sm:$0xff] %v919_v33  ;;  %v290_v33 = vld [vmem:[%s5746_s4 + $0x318] sm:$0xff] }
 0x447   :  { %3101 = vmatmul.msk.f32.gmra.mxu2 %vm316_vm7, %v277_v32  ;;  %3226 = vmatmul.msk.f32.gmra.mxu3 %vm316_vm7, %v277_v32  ;;  %2541 = vst [vmem:[%s5747_s5 + $0x8c8] sm:$0xff] %v1311_v34 }
 0x448   :  { %2851 = vmatmul.msk.f32.gmra.mxu0 %vm316_vm7, %v277_v32  ;;  %2976 = vmatmul.msk.f32.gmra.mxu1 %vm316_vm7, %v277_v32 }
 0x44a   :  { %v1703_v35 = vpop.f32.mrf.mxu2  ;;  %v2095_v36 = vpop.f32.mrf.mxu3 }
 0x44b   :  { %2542 = vst [vmem:[%s5747_s5 + $0x8d0] sm:$0xff] %v1703_v35 }
 0x44c   :  { %2543 = vst [vmem:[%s5747_s5 + $0x8d8] sm:$0xff] %v2095_v36 }
 0x44d   :  { %v922_v38 = vpop.f32.mrf.mxu0  ;;  %v1314_v39 = vpop.f32.mrf.mxu1 }
 0x44e   :  { %2544 = vst [vmem:[%s5747_s5 + $0x8e0] sm:$0xff] %v922_v38  ;;  %v291_v38 = vld [vmem:[%s5746_s4 + $0x320] sm:$0xff] }
 0x44f   :  { %3102 = vmatmul.msk.f32.gmra.mxu2 %vm316_vm7, %v278_v37  ;;  %3227 = vmatmul.msk.f32.gmra.mxu3 %vm316_vm7, %v278_v37  ;;  %2545 = vst [vmem:[%s5747_s5 + $0x8e8] sm:$0xff] %v1314_v39 }
 0x450   :  { %2852 = vmatmul.msk.f32.gmra.mxu0 %vm316_vm7, %v278_v37  ;;  %2977 = vmatmul.msk.f32.gmra.mxu1 %vm316_vm7, %v278_v37 }
 0x452   :  { %v1706_v40 = vpop.f32.mrf.mxu2  ;;  %v2098_v41 = vpop.f32.mrf.mxu3 }
 0x453   :  { %2546 = vst [vmem:[%s5747_s5 + $0x8f0] sm:$0xff] %v1706_v40 }
 0x454   :  { %2547 = vst [vmem:[%s5747_s5 + $0x8f8] sm:$0xff] %v2098_v41 }
 0x455   :  { %v925_v43 = vpop.f32.mrf.mxu0  ;;  %v1317_v44 = vpop.f32.mrf.mxu1 }
 0x456   :  { %2548 = vst [vmem:[%s5747_s5 + $0x900] sm:$0xff] %v925_v43  ;;  %v292_v43 = vld [vmem:[%s5746_s4 + $0x328] sm:$0xff] }
 0x457   :  { %3103 = vmatmul.msk.f32.gmra.mxu2 %vm316_vm7, %v279_v42  ;;  %3228 = vmatmul.msk.f32.gmra.mxu3 %vm316_vm7, %v279_v42  ;;  %2549 = vst [vmem:[%s5747_s5 + $0x908] sm:$0xff] %v1317_v44 }
 0x458   :  { %2853 = vmatmul.msk.f32.gmra.mxu0 %vm316_vm7, %v279_v42  ;;  %2978 = vmatmul.msk.f32.gmra.mxu1 %vm316_vm7, %v279_v42 }
 0x45a   :  { %v1709_v45 = vpop.f32.mrf.mxu2  ;;  %v2101_v46 = vpop.f32.mrf.mxu3 }
 0x45b   :  { %2550 = vst [vmem:[%s5747_s5 + $0x910] sm:$0xff] %v1709_v45 }
 0x45c   :  { %2551 = vst [vmem:[%s5747_s5 + $0x918] sm:$0xff] %v2101_v46 }
 0x45d   :  { %v928_v48 = vpop.f32.mrf.mxu0  ;;  %v1320_v49 = vpop.f32.mrf.mxu1 }
 0x45e   :  { %2552 = vst [vmem:[%s5747_s5 + $0x920] sm:$0xff] %v928_v48  ;;  %v293_v48 = vld [vmem:[%s5746_s4 + $0x330] sm:$0xff] }
 0x45f   :  { %3104 = vmatmul.msk.f32.gmra.mxu2 %vm316_vm7, %v280_v47  ;;  %3229 = vmatmul.msk.f32.gmra.mxu3 %vm316_vm7, %v280_v47  ;;  %2553 = vst [vmem:[%s5747_s5 + $0x928] sm:$0xff] %v1320_v49 }
 0x460   :  { %2854 = vmatmul.msk.f32.gmra.mxu0 %vm316_vm7, %v280_v47  ;;  %2979 = vmatmul.msk.f32.gmra.mxu1 %vm316_vm7, %v280_v47 }
 0x462   :  { %v1712_v50 = vpop.f32.mrf.mxu2  ;;  %v2104_v51 = vpop.f32.mrf.mxu3 }
 0x463   :  { %2554 = vst [vmem:[%s5747_s5 + $0x930] sm:$0xff] %v1712_v50 }
 0x464   :  { %2555 = vst [vmem:[%s5747_s5 + $0x938] sm:$0xff] %v2104_v51 }
 0x465   :  { %v931_v53 = vpop.f32.mrf.mxu0  ;;  %v1323_v54 = vpop.f32.mrf.mxu1 }
 0x466   :  { %2556 = vst [vmem:[%s5747_s5 + $0x940] sm:$0xff] %v931_v53  ;;  %v294_v53 = vld [vmem:[%s5746_s4 + $0x338] sm:$0xff] }
 0x467   :  { %3105 = vmatmul.msk.f32.gmra.mxu2 %vm316_vm7, %v281_v52  ;;  %3230 = vmatmul.msk.f32.gmra.mxu3 %vm316_vm7, %v281_v52  ;;  %2557 = vst [vmem:[%s5747_s5 + $0x948] sm:$0xff] %v1323_v54 }
 0x468   :  { %2855 = vmatmul.msk.f32.gmra.mxu0 %vm316_vm7, %v281_v52  ;;  %2980 = vmatmul.msk.f32.gmra.mxu1 %vm316_vm7, %v281_v52 }
 0x46a   :  { %v1715_v55 = vpop.f32.mrf.mxu2  ;;  %v2107_v56 = vpop.f32.mrf.mxu3 }
 0x46b   :  { %2558 = vst [vmem:[%s5747_s5 + $0x950] sm:$0xff] %v1715_v55 }
 0x46c   :  { %2559 = vst [vmem:[%s5747_s5 + $0x958] sm:$0xff] %v2107_v56 }
 0x46d   :  { %v934_v58 = vpop.f32.mrf.mxu0  ;;  %v1326_v59 = vpop.f32.mrf.mxu1 }
 0x46e   :  { %2560 = vst [vmem:[%s5747_s5 + $0x960] sm:$0xff] %v934_v58  ;;  %v295_v58 = vld [vmem:[%s5746_s4 + $0x340] sm:$0xff] }
 0x46f   :  { %3106 = vmatmul.msk.f32.gmra.mxu2 %vm316_vm7, %v282_v57  ;;  %3231 = vmatmul.msk.f32.gmra.mxu3 %vm316_vm7, %v282_v57  ;;  %2561 = vst [vmem:[%s5747_s5 + $0x968] sm:$0xff] %v1326_v59 }
 0x470   :  { %2856 = vmatmul.msk.f32.gmra.mxu0 %vm316_vm7, %v282_v57  ;;  %2981 = vmatmul.msk.f32.gmra.mxu1 %vm316_vm7, %v282_v57 }
 0x472   :  { %v1718_v60 = vpop.f32.mrf.mxu2  ;;  %v2110_v61 = vpop.f32.mrf.mxu3 }
 0x473   :  { %2562 = vst [vmem:[%s5747_s5 + $0x970] sm:$0xff] %v1718_v60 }
 0x474   :  { %2563 = vst [vmem:[%s5747_s5 + $0x978] sm:$0xff] %v2110_v61 }
 0x475   :  { %v937_v63 = vpop.f32.mrf.mxu0  ;;  %v1329_v0 = vpop.f32.mrf.mxu1 }
 0x476   :  { %2564 = vst [vmem:[%s5747_s5 + $0x980] sm:$0xff] %v937_v63  ;;  %v296_v63 = vld [vmem:[%s5746_s4 + $0x348] sm:$0xff] }
 0x477   :  { %3107 = vmatmul.msk.f32.gmra.mxu2 %vm316_vm7, %v283_v62  ;;  %3232 = vmatmul.msk.f32.gmra.mxu3 %vm316_vm7, %v283_v62  ;;  %2565 = vst [vmem:[%s5747_s5 + $0x988] sm:$0xff] %v1329_v0 }
 0x478   :  { %2857 = vmatmul.msk.f32.gmra.mxu0 %vm316_vm7, %v283_v62  ;;  %2982 = vmatmul.msk.f32.gmra.mxu1 %vm316_vm7, %v283_v62 }
 0x47a   :  { %v1721_v1 = vpop.f32.mrf.mxu2  ;;  %v2113_v2 = vpop.f32.mrf.mxu3 }
 0x47b   :  { %2566 = vst [vmem:[%s5747_s5 + $0x990] sm:$0xff] %v1721_v1 }
 0x47c   :  { %2567 = vst [vmem:[%s5747_s5 + $0x998] sm:$0xff] %v2113_v2 }
 0x47d   :  { %v940_v4 = vpop.f32.mrf.mxu0  ;;  %v1332_v5 = vpop.f32.mrf.mxu1 }
 0x47e   :  { %2568 = vst [vmem:[%s5747_s5 + $0x9a0] sm:$0xff] %v940_v4  ;;  %v297_v4 = vld [vmem:[%s5746_s4 + $0x350] sm:$0xff] }
 0x47f   :  { %3108 = vmatmul.msk.f32.gmra.mxu2 %vm316_vm7, %v284_v3  ;;  %3233 = vmatmul.msk.f32.gmra.mxu3 %vm316_vm7, %v284_v3  ;;  %2569 = vst [vmem:[%s5747_s5 + $0x9a8] sm:$0xff] %v1332_v5 }
 0x480   :  { %2858 = vmatmul.msk.f32.gmra.mxu0 %vm316_vm7, %v284_v3  ;;  %2983 = vmatmul.msk.f32.gmra.mxu1 %vm316_vm7, %v284_v3 }
 0x482   :  { %v1724_v6 = vpop.f32.mrf.mxu2  ;;  %v2116_v7 = vpop.f32.mrf.mxu3 }
 0x483   :  { %2570 = vst [vmem:[%s5747_s5 + $0x9b0] sm:$0xff] %v1724_v6 }
 0x484   :  { %2571 = vst [vmem:[%s5747_s5 + $0x9b8] sm:$0xff] %v2116_v7 }
 0x485   :  { %v943_v9 = vpop.f32.mrf.mxu0  ;;  %v1335_v10 = vpop.f32.mrf.mxu1 }
 0x486   :  { %2572 = vst [vmem:[%s5747_s5 + $0x9c0] sm:$0xff] %v943_v9  ;;  %v298_v9 = vld [vmem:[%s5746_s4 + $0x358] sm:$0xff] }
 0x487   :  { %3109 = vmatmul.msk.f32.gmra.mxu2 %vm316_vm7, %v285_v8  ;;  %3234 = vmatmul.msk.f32.gmra.mxu3 %vm316_vm7, %v285_v8  ;;  %2573 = vst [vmem:[%s5747_s5 + $0x9c8] sm:$0xff] %v1335_v10 }
 0x488   :  { %2859 = vmatmul.msk.f32.gmra.mxu0 %vm316_vm7, %v285_v8  ;;  %2984 = vmatmul.msk.f32.gmra.mxu1 %vm316_vm7, %v285_v8 }
 0x48a   :  { %v1727_v11 = vpop.f32.mrf.mxu2  ;;  %v2119_v12 = vpop.f32.mrf.mxu3 }
 0x48b   :  { %2574 = vst [vmem:[%s5747_s5 + $0x9d0] sm:$0xff] %v1727_v11 }
 0x48c   :  { %2575 = vst [vmem:[%s5747_s5 + $0x9d8] sm:$0xff] %v2119_v12 }
 0x48d   :  { %v946_v14 = vpop.f32.mrf.mxu0  ;;  %v1338_v15 = vpop.f32.mrf.mxu1 }
 0x48e   :  { %2576 = vst [vmem:[%s5747_s5 + $0x9e0] sm:$0xff] %v946_v14  ;;  %v299_v14 = vld [vmem:[%s5746_s4 + $0x360] sm:$0xff] }
 0x48f   :  { %3110 = vmatmul.msk.f32.gmra.mxu2 %vm316_vm7, %v286_v13  ;;  %3235 = vmatmul.msk.f32.gmra.mxu3 %vm316_vm7, %v286_v13  ;;  %2577 = vst [vmem:[%s5747_s5 + $0x9e8] sm:$0xff] %v1338_v15 }
 0x490   :  { %2860 = vmatmul.msk.f32.gmra.mxu0 %vm316_vm7, %v286_v13  ;;  %2985 = vmatmul.msk.f32.gmra.mxu1 %vm316_vm7, %v286_v13 }
 0x492   :  { %v1730_v16 = vpop.f32.mrf.mxu2  ;;  %v2122_v17 = vpop.f32.mrf.mxu3 }
 0x493   :  { %2578 = vst [vmem:[%s5747_s5 + $0x9f0] sm:$0xff] %v1730_v16 }
 0x494   :  { %2579 = vst [vmem:[%s5747_s5 + $0x9f8] sm:$0xff] %v2122_v17 }
 0x495   :  { %v949_v19 = vpop.f32.mrf.mxu0  ;;  %v1341_v20 = vpop.f32.mrf.mxu1 }
 0x496   :  { %2580 = vst [vmem:[%s5747_s5 + $0xa00] sm:$0xff] %v949_v19  ;;  %v300_v19 = vld [vmem:[%s5746_s4 + $0x368] sm:$0xff] }
 0x497   :  { %3111 = vmatmul.msk.f32.gmra.mxu2 %vm316_vm7, %v287_v18  ;;  %3236 = vmatmul.msk.f32.gmra.mxu3 %vm316_vm7, %v287_v18  ;;  %2581 = vst [vmem:[%s5747_s5 + $0xa08] sm:$0xff] %v1341_v20 }
 0x498   :  { %2861 = vmatmul.msk.f32.gmra.mxu0 %vm316_vm7, %v287_v18  ;;  %2986 = vmatmul.msk.f32.gmra.mxu1 %vm316_vm7, %v287_v18 }
 0x49a   :  { %v1733_v21 = vpop.f32.mrf.mxu2  ;;  %v2125_v22 = vpop.f32.mrf.mxu3 }
 0x49b   :  { %2582 = vst [vmem:[%s5747_s5 + $0xa10] sm:$0xff] %v1733_v21 }
 0x49c   :  { %2583 = vst [vmem:[%s5747_s5 + $0xa18] sm:$0xff] %v2125_v22 }
 0x49d   :  { %v952_v24 = vpop.f32.mrf.mxu0  ;;  %v1344_v25 = vpop.f32.mrf.mxu1 }
 0x49e   :  { %2584 = vst [vmem:[%s5747_s5 + $0xa20] sm:$0xff] %v952_v24  ;;  %v301_v24 = vld [vmem:[%s5746_s4 + $0x370] sm:$0xff] }
 0x49f   :  { %3112 = vmatmul.msk.f32.gmra.mxu2 %vm316_vm7, %v288_v23  ;;  %3237 = vmatmul.msk.f32.gmra.mxu3 %vm316_vm7, %v288_v23  ;;  %2585 = vst [vmem:[%s5747_s5 + $0xa28] sm:$0xff] %v1344_v25 }
 0x4a0   :  { %2862 = vmatmul.msk.f32.gmra.mxu0 %vm316_vm7, %v288_v23  ;;  %2987 = vmatmul.msk.f32.gmra.mxu1 %vm316_vm7, %v288_v23 }
 0x4a2   :  { %v1736_v26 = vpop.f32.mrf.mxu2  ;;  %v2128_v27 = vpop.f32.mrf.mxu3 }
 0x4a3   :  { %2586 = vst [vmem:[%s5747_s5 + $0xa30] sm:$0xff] %v1736_v26 }
 0x4a4   :  { %2587 = vst [vmem:[%s5747_s5 + $0xa38] sm:$0xff] %v2128_v27 }
 0x4a5   :  { %v955_v29 = vpop.f32.mrf.mxu0  ;;  %v1347_v30 = vpop.f32.mrf.mxu1 }
 0x4a6   :  { %2588 = vst [vmem:[%s5747_s5 + $0xa40] sm:$0xff] %v955_v29  ;;  %v302_v29 = vld [vmem:[%s5746_s4 + $0x378] sm:$0xff] }
 0x4a7   :  { %3113 = vmatmul.msk.f32.gmra.mxu2 %vm316_vm7, %v289_v28  ;;  %3238 = vmatmul.msk.f32.gmra.mxu3 %vm316_vm7, %v289_v28  ;;  %2589 = vst [vmem:[%s5747_s5 + $0xa48] sm:$0xff] %v1347_v30 }
 0x4a8   :  { %2863 = vmatmul.msk.f32.gmra.mxu0 %vm316_vm7, %v289_v28  ;;  %2988 = vmatmul.msk.f32.gmra.mxu1 %vm316_vm7, %v289_v28 }
 0x4aa   :  { %v1739_v31 = vpop.f32.mrf.mxu2  ;;  %v2131_v32 = vpop.f32.mrf.mxu3 }
 0x4ab   :  { %2590 = vst [vmem:[%s5747_s5 + $0xa50] sm:$0xff] %v1739_v31 }
 0x4ac   :  { %2591 = vst [vmem:[%s5747_s5 + $0xa58] sm:$0xff] %v2131_v32 }
 0x4ad   :  { %v958_v34 = vpop.f32.mrf.mxu0  ;;  %v1350_v35 = vpop.f32.mrf.mxu1 }
 0x4ae   :  { %2592 = vst [vmem:[%s5747_s5 + $0xa60] sm:$0xff] %v958_v34  ;;  %v303_v34 = vld [vmem:[%s5746_s4 + $0x380] sm:$0xff] }
 0x4af   :  { %3114 = vmatmul.msk.f32.gmra.mxu2 %vm316_vm7, %v290_v33  ;;  %3239 = vmatmul.msk.f32.gmra.mxu3 %vm316_vm7, %v290_v33  ;;  %2593 = vst [vmem:[%s5747_s5 + $0xa68] sm:$0xff] %v1350_v35 }
 0x4b0   :  { %2864 = vmatmul.msk.f32.gmra.mxu0 %vm316_vm7, %v290_v33  ;;  %2989 = vmatmul.msk.f32.gmra.mxu1 %vm316_vm7, %v290_v33 }
 0x4b2   :  { %v1742_v36 = vpop.f32.mrf.mxu2  ;;  %v2134_v37 = vpop.f32.mrf.mxu3 }
 0x4b3   :  { %2594 = vst [vmem:[%s5747_s5 + $0xa70] sm:$0xff] %v1742_v36 }
 0x4b4   :  { %2595 = vst [vmem:[%s5747_s5 + $0xa78] sm:$0xff] %v2134_v37 }
 0x4b5   :  { %v961_v39 = vpop.f32.mrf.mxu0  ;;  %v1353_v40 = vpop.f32.mrf.mxu1 }
 0x4b6   :  { %2596 = vst [vmem:[%s5747_s5 + $0xa80] sm:$0xff] %v961_v39  ;;  %v304_v39 = vld [vmem:[%s5746_s4 + $0x388] sm:$0xff] }
 0x4b7   :  { %3115 = vmatmul.msk.f32.gmra.mxu2 %vm316_vm7, %v291_v38  ;;  %3240 = vmatmul.msk.f32.gmra.mxu3 %vm316_vm7, %v291_v38  ;;  %2597 = vst [vmem:[%s5747_s5 + $0xa88] sm:$0xff] %v1353_v40 }
 0x4b8   :  { %2865 = vmatmul.msk.f32.gmra.mxu0 %vm316_vm7, %v291_v38  ;;  %2990 = vmatmul.msk.f32.gmra.mxu1 %vm316_vm7, %v291_v38 }
 0x4ba   :  { %v1745_v41 = vpop.f32.mrf.mxu2  ;;  %v2137_v42 = vpop.f32.mrf.mxu3 }
 0x4bb   :  { %2598 = vst [vmem:[%s5747_s5 + $0xa90] sm:$0xff] %v1745_v41 }
 0x4bc   :  { %2599 = vst [vmem:[%s5747_s5 + $0xa98] sm:$0xff] %v2137_v42 }
 0x4bd   :  { %v964_v44 = vpop.f32.mrf.mxu0  ;;  %v1356_v45 = vpop.f32.mrf.mxu1 }
 0x4be   :  { %2600 = vst [vmem:[%s5747_s5 + $0xaa0] sm:$0xff] %v964_v44  ;;  %v305_v44 = vld [vmem:[%s5746_s4 + $0x390] sm:$0xff] }
 0x4bf   :  { %3116 = vmatmul.msk.f32.gmra.mxu2 %vm316_vm7, %v292_v43  ;;  %3241 = vmatmul.msk.f32.gmra.mxu3 %vm316_vm7, %v292_v43  ;;  %2601 = vst [vmem:[%s5747_s5 + $0xaa8] sm:$0xff] %v1356_v45 }
 0x4c0   :  { %2866 = vmatmul.msk.f32.gmra.mxu0 %vm316_vm7, %v292_v43  ;;  %2991 = vmatmul.msk.f32.gmra.mxu1 %vm316_vm7, %v292_v43 }
 0x4c2   :  { %v1748_v46 = vpop.f32.mrf.mxu2  ;;  %v2140_v47 = vpop.f32.mrf.mxu3 }
 0x4c3   :  { %2602 = vst [vmem:[%s5747_s5 + $0xab0] sm:$0xff] %v1748_v46 }
 0x4c4   :  { %2603 = vst [vmem:[%s5747_s5 + $0xab8] sm:$0xff] %v2140_v47 }
 0x4c5   :  { %v967_v49 = vpop.f32.mrf.mxu0  ;;  %v1359_v50 = vpop.f32.mrf.mxu1 }
 0x4c6   :  { %2604 = vst [vmem:[%s5747_s5 + $0xac0] sm:$0xff] %v967_v49  ;;  %v306_v49 = vld [vmem:[%s5746_s4 + $0x398] sm:$0xff] }
 0x4c7   :  { %3117 = vmatmul.msk.f32.gmra.mxu2 %vm316_vm7, %v293_v48  ;;  %3242 = vmatmul.msk.f32.gmra.mxu3 %vm316_vm7, %v293_v48  ;;  %2605 = vst [vmem:[%s5747_s5 + $0xac8] sm:$0xff] %v1359_v50 }
 0x4c8   :  { %2867 = vmatmul.msk.f32.gmra.mxu0 %vm316_vm7, %v293_v48  ;;  %2992 = vmatmul.msk.f32.gmra.mxu1 %vm316_vm7, %v293_v48 }
 0x4ca   :  { %v1751_v51 = vpop.f32.mrf.mxu2  ;;  %v2143_v52 = vpop.f32.mrf.mxu3 }
 0x4cb   :  { %2606 = vst [vmem:[%s5747_s5 + $0xad0] sm:$0xff] %v1751_v51 }
 0x4cc   :  { %2607 = vst [vmem:[%s5747_s5 + $0xad8] sm:$0xff] %v2143_v52 }
 0x4cd   :  { %v970_v54 = vpop.f32.mrf.mxu0  ;;  %v1362_v55 = vpop.f32.mrf.mxu1 }
 0x4ce   :  { %2608 = vst [vmem:[%s5747_s5 + $0xae0] sm:$0xff] %v970_v54  ;;  %v307_v54 = vld [vmem:[%s5746_s4 + $0x3a0] sm:$0xff] }
 0x4cf   :  { %3118 = vmatmul.msk.f32.gmra.mxu2 %vm316_vm7, %v294_v53  ;;  %3243 = vmatmul.msk.f32.gmra.mxu3 %vm316_vm7, %v294_v53  ;;  %2609 = vst [vmem:[%s5747_s5 + $0xae8] sm:$0xff] %v1362_v55 }
 0x4d0   :  { %2868 = vmatmul.msk.f32.gmra.mxu0 %vm316_vm7, %v294_v53  ;;  %2993 = vmatmul.msk.f32.gmra.mxu1 %vm316_vm7, %v294_v53 }
 0x4d2   :  { %v1754_v56 = vpop.f32.mrf.mxu2  ;;  %v2146_v57 = vpop.f32.mrf.mxu3 }
 0x4d3   :  { %2610 = vst [vmem:[%s5747_s5 + $0xaf0] sm:$0xff] %v1754_v56 }
 0x4d4   :  { %2611 = vst [vmem:[%s5747_s5 + $0xaf8] sm:$0xff] %v2146_v57 }
 0x4d5   :  { %v973_v59 = vpop.f32.mrf.mxu0  ;;  %v1365_v60 = vpop.f32.mrf.mxu1 }
 0x4d6   :  { %2612 = vst [vmem:[%s5747_s5 + $0xb00] sm:$0xff] %v973_v59  ;;  %v308_v59 = vld [vmem:[%s5746_s4 + $0x3a8] sm:$0xff] }
 0x4d7   :  { %3119 = vmatmul.msk.f32.gmra.mxu2 %vm316_vm7, %v295_v58  ;;  %3244 = vmatmul.msk.f32.gmra.mxu3 %vm316_vm7, %v295_v58  ;;  %2613 = vst [vmem:[%s5747_s5 + $0xb08] sm:$0xff] %v1365_v60 }
 0x4d8   :  { %2869 = vmatmul.msk.f32.gmra.mxu0 %vm316_vm7, %v295_v58  ;;  %2994 = vmatmul.msk.f32.gmra.mxu1 %vm316_vm7, %v295_v58 }
 0x4da   :  { %v1757_v61 = vpop.f32.mrf.mxu2  ;;  %v2149_v62 = vpop.f32.mrf.mxu3 }
 0x4db   :  { %2614 = vst [vmem:[%s5747_s5 + $0xb10] sm:$0xff] %v1757_v61 }
 0x4dc   :  { %2615 = vst [vmem:[%s5747_s5 + $0xb18] sm:$0xff] %v2149_v62 }
 0x4dd   :  { %v976_v0 = vpop.f32.mrf.mxu0  ;;  %v1368_v1 = vpop.f32.mrf.mxu1 }
 0x4de   :  { %2616 = vst [vmem:[%s5747_s5 + $0xb20] sm:$0xff] %v976_v0  ;;  %v309_v0 = vld [vmem:[%s5746_s4 + $0x3b0] sm:$0xff] }
 0x4df   :  { %3120 = vmatmul.msk.f32.gmra.mxu2 %vm316_vm7, %v296_v63  ;;  %3245 = vmatmul.msk.f32.gmra.mxu3 %vm316_vm7, %v296_v63  ;;  %2617 = vst [vmem:[%s5747_s5 + $0xb28] sm:$0xff] %v1368_v1 }
 0x4e0   :  { %2870 = vmatmul.msk.f32.gmra.mxu0 %vm316_vm7, %v296_v63  ;;  %2995 = vmatmul.msk.f32.gmra.mxu1 %vm316_vm7, %v296_v63 }
 0x4e2   :  { %v1760_v2 = vpop.f32.mrf.mxu2  ;;  %v2152_v3 = vpop.f32.mrf.mxu3 }
 0x4e3   :  { %2618 = vst [vmem:[%s5747_s5 + $0xb30] sm:$0xff] %v1760_v2 }
 0x4e4   :  { %2619 = vst [vmem:[%s5747_s5 + $0xb38] sm:$0xff] %v2152_v3 }
 0x4e5   :  { %v979_v5 = vpop.f32.mrf.mxu0  ;;  %v1371_v6 = vpop.f32.mrf.mxu1 }
 0x4e6   :  { %2620 = vst [vmem:[%s5747_s5 + $0xb40] sm:$0xff] %v979_v5  ;;  %v310_v5 = vld [vmem:[%s5746_s4 + $0x3b8] sm:$0xff] }
 0x4e7   :  { %3121 = vmatmul.msk.f32.gmra.mxu2 %vm316_vm7, %v297_v4  ;;  %3246 = vmatmul.msk.f32.gmra.mxu3 %vm316_vm7, %v297_v4  ;;  %2621 = vst [vmem:[%s5747_s5 + $0xb48] sm:$0xff] %v1371_v6 }
 0x4e8   :  { %2871 = vmatmul.msk.f32.gmra.mxu0 %vm316_vm7, %v297_v4  ;;  %2996 = vmatmul.msk.f32.gmra.mxu1 %vm316_vm7, %v297_v4 }
 0x4ea   :  { %v1763_v7 = vpop.f32.mrf.mxu2  ;;  %v2155_v8 = vpop.f32.mrf.mxu3 }
 0x4eb   :  { %2622 = vst [vmem:[%s5747_s5 + $0xb50] sm:$0xff] %v1763_v7 }
 0x4ec   :  { %2623 = vst [vmem:[%s5747_s5 + $0xb58] sm:$0xff] %v2155_v8 }
 0x4ed   :  { %v982_v10 = vpop.f32.mrf.mxu0  ;;  %v1374_v11 = vpop.f32.mrf.mxu1 }
 0x4ee   :  { %2624 = vst [vmem:[%s5747_s5 + $0xb60] sm:$0xff] %v982_v10  ;;  %v311_v10 = vld [vmem:[%s5746_s4 + $0x3c0] sm:$0xff] }
 0x4ef   :  { %3122 = vmatmul.msk.f32.gmra.mxu2 %vm316_vm7, %v298_v9  ;;  %3247 = vmatmul.msk.f32.gmra.mxu3 %vm316_vm7, %v298_v9  ;;  %2625 = vst [vmem:[%s5747_s5 + $0xb68] sm:$0xff] %v1374_v11 }
 0x4f0   :  { %2872 = vmatmul.msk.f32.gmra.mxu0 %vm316_vm7, %v298_v9  ;;  %2997 = vmatmul.msk.f32.gmra.mxu1 %vm316_vm7, %v298_v9 }
 0x4f2   :  { %v1766_v12 = vpop.f32.mrf.mxu2  ;;  %v2158_v13 = vpop.f32.mrf.mxu3 }
 0x4f3   :  { %2626 = vst [vmem:[%s5747_s5 + $0xb70] sm:$0xff] %v1766_v12 }
 0x4f4   :  { %2627 = vst [vmem:[%s5747_s5 + $0xb78] sm:$0xff] %v2158_v13 }
 0x4f5   :  { %v985_v15 = vpop.f32.mrf.mxu0  ;;  %v1377_v16 = vpop.f32.mrf.mxu1 }
 0x4f6   :  { %2628 = vst [vmem:[%s5747_s5 + $0xb80] sm:$0xff] %v985_v15  ;;  %v312_v15 = vld [vmem:[%s5746_s4 + $0x3c8] sm:$0xff] }
 0x4f7   :  { %3123 = vmatmul.msk.f32.gmra.mxu2 %vm316_vm7, %v299_v14  ;;  %3248 = vmatmul.msk.f32.gmra.mxu3 %vm316_vm7, %v299_v14  ;;  %2629 = vst [vmem:[%s5747_s5 + $0xb88] sm:$0xff] %v1377_v16 }
 0x4f8   :  { %2873 = vmatmul.msk.f32.gmra.mxu0 %vm316_vm7, %v299_v14  ;;  %2998 = vmatmul.msk.f32.gmra.mxu1 %vm316_vm7, %v299_v14 }
 0x4fa   :  { %v1769_v17 = vpop.f32.mrf.mxu2  ;;  %v2161_v18 = vpop.f32.mrf.mxu3 }
 0x4fb   :  { %2630 = vst [vmem:[%s5747_s5 + $0xb90] sm:$0xff] %v1769_v17 }
 0x4fc   :  { %2631 = vst [vmem:[%s5747_s5 + $0xb98] sm:$0xff] %v2161_v18 }
 0x4fd   :  { %v988_v20 = vpop.f32.mrf.mxu0  ;;  %v1380_v21 = vpop.f32.mrf.mxu1 }
 0x4fe   :  { %2632 = vst [vmem:[%s5747_s5 + $0xba0] sm:$0xff] %v988_v20  ;;  %v313_v20 = vld [vmem:[%s5746_s4 + $0x3d0] sm:$0xff] }
 0x4ff   :  { %3124 = vmatmul.msk.f32.gmra.mxu2 %vm316_vm7, %v300_v19  ;;  %3249 = vmatmul.msk.f32.gmra.mxu3 %vm316_vm7, %v300_v19  ;;  %2633 = vst [vmem:[%s5747_s5 + $0xba8] sm:$0xff] %v1380_v21 }
 0x500   :  { %2874 = vmatmul.msk.f32.gmra.mxu0 %vm316_vm7, %v300_v19  ;;  %2999 = vmatmul.msk.f32.gmra.mxu1 %vm316_vm7, %v300_v19 }
 0x502   :  { %v1772_v22 = vpop.f32.mrf.mxu2  ;;  %v2164_v23 = vpop.f32.mrf.mxu3 }
 0x503   :  { %2634 = vst [vmem:[%s5747_s5 + $0xbb0] sm:$0xff] %v1772_v22 }
 0x504   :  { %2635 = vst [vmem:[%s5747_s5 + $0xbb8] sm:$0xff] %v2164_v23 }
 0x505   :  { %v991_v25 = vpop.f32.mrf.mxu0  ;;  %v1383_v26 = vpop.f32.mrf.mxu1 }
 0x506   :  { %2636 = vst [vmem:[%s5747_s5 + $0xbc0] sm:$0xff] %v991_v25  ;;  %v314_v25 = vld [vmem:[%s5746_s4 + $0x3d8] sm:$0xff] }
 0x507   :  { %3125 = vmatmul.msk.f32.gmra.mxu2 %vm316_vm7, %v301_v24  ;;  %3250 = vmatmul.msk.f32.gmra.mxu3 %vm316_vm7, %v301_v24  ;;  %2637 = vst [vmem:[%s5747_s5 + $0xbc8] sm:$0xff] %v1383_v26 }
 0x508   :  { %2875 = vmatmul.msk.f32.gmra.mxu0 %vm316_vm7, %v301_v24  ;;  %3000 = vmatmul.msk.f32.gmra.mxu1 %vm316_vm7, %v301_v24 }
 0x50a   :  { %v1775_v27 = vpop.f32.mrf.mxu2  ;;  %v2167_v28 = vpop.f32.mrf.mxu3 }
 0x50b   :  { %2638 = vst [vmem:[%s5747_s5 + $0xbd0] sm:$0xff] %v1775_v27 }
 0x50c   :  { %2639 = vst [vmem:[%s5747_s5 + $0xbd8] sm:$0xff] %v2167_v28 }
 0x50d   :  { %v994_v30 = vpop.f32.mrf.mxu0  ;;  %v1386_v31 = vpop.f32.mrf.mxu1 }
 0x50e   :  { %2640 = vst [vmem:[%s5747_s5 + $0xbe0] sm:$0xff] %v994_v30  ;;  %v315_v30 = vld [vmem:[%s5746_s4 + $0x3e0] sm:$0xff] }
 0x50f   :  { %3126 = vmatmul.msk.f32.gmra.mxu2 %vm316_vm7, %v302_v29  ;;  %3251 = vmatmul.msk.f32.gmra.mxu3 %vm316_vm7, %v302_v29  ;;  %2641 = vst [vmem:[%s5747_s5 + $0xbe8] sm:$0xff] %v1386_v31 }
 0x510   :  { %2876 = vmatmul.msk.f32.gmra.mxu0 %vm316_vm7, %v302_v29  ;;  %3001 = vmatmul.msk.f32.gmra.mxu1 %vm316_vm7, %v302_v29 }
 0x512   :  { %v1778_v32 = vpop.f32.mrf.mxu2  ;;  %v2170_v33 = vpop.f32.mrf.mxu3 }
 0x513   :  { %2642 = vst [vmem:[%s5747_s5 + $0xbf0] sm:$0xff] %v1778_v32 }
 0x514   :  { %2643 = vst [vmem:[%s5747_s5 + $0xbf8] sm:$0xff] %v2170_v33 }
 0x515   :  { %v997_v35 = vpop.f32.mrf.mxu0  ;;  %v1389_v36 = vpop.f32.mrf.mxu1 }
 0x516   :  { %2644 = vst [vmem:[%s5747_s5 + $0xc00] sm:$0xff] %v997_v35 }
 0x517   :  { %3127 = vmatmul.msk.f32.gmra.mxu2 %vm316_vm7, %v303_v34  ;;  %3252 = vmatmul.msk.f32.gmra.mxu3 %vm316_vm7, %v303_v34  ;;  %2645 = vst [vmem:[%s5747_s5 + $0xc08] sm:$0xff] %v1389_v36 }
 0x518   :  { %2877 = vmatmul.msk.f32.gmra.mxu0 %vm316_vm7, %v303_v34  ;;  %3002 = vmatmul.msk.f32.gmra.mxu1 %vm316_vm7, %v303_v34 }
 0x51a   :  { %v1781_v37 = vpop.f32.mrf.mxu2  ;;  %v2173_v38 = vpop.f32.mrf.mxu3 }
 0x51b   :  { %2646 = vst [vmem:[%s5747_s5 + $0xc10] sm:$0xff] %v1781_v37 }
 0x51c   :  { %2647 = vst [vmem:[%s5747_s5 + $0xc18] sm:$0xff] %v2173_v38 }
 0x51d   :  { %v1000_v40 = vpop.f32.mrf.mxu0  ;;  %v1392_v41 = vpop.f32.mrf.mxu1 }
 0x51e   :  { %2648 = vst [vmem:[%s5747_s5 + $0xc20] sm:$0xff] %v1000_v40 }
 0x51f   :  { %3128 = vmatmul.msk.f32.gmra.mxu2 %vm316_vm7, %v304_v39  ;;  %3253 = vmatmul.msk.f32.gmra.mxu3 %vm316_vm7, %v304_v39  ;;  %2649 = vst [vmem:[%s5747_s5 + $0xc28] sm:$0xff] %v1392_v41 }
 0x520   :  { %2878 = vmatmul.msk.f32.gmra.mxu0 %vm316_vm7, %v304_v39  ;;  %3003 = vmatmul.msk.f32.gmra.mxu1 %vm316_vm7, %v304_v39 }
 0x522   :  { %v1784_v42 = vpop.f32.mrf.mxu2  ;;  %v2176_v43 = vpop.f32.mrf.mxu3 }
 0x523   :  { %2650 = vst [vmem:[%s5747_s5 + $0xc30] sm:$0xff] %v1784_v42 }
 0x524   :  { %2651 = vst [vmem:[%s5747_s5 + $0xc38] sm:$0xff] %v2176_v43 }
 0x525   :  { %v1003_v45 = vpop.f32.mrf.mxu0  ;;  %v1395_v46 = vpop.f32.mrf.mxu1 }
 0x526   :  { %2652 = vst [vmem:[%s5747_s5 + $0xc40] sm:$0xff] %v1003_v45 }
 0x527   :  { %3129 = vmatmul.msk.f32.gmra.mxu2 %vm316_vm7, %v305_v44  ;;  %3254 = vmatmul.msk.f32.gmra.mxu3 %vm316_vm7, %v305_v44  ;;  %2653 = vst [vmem:[%s5747_s5 + $0xc48] sm:$0xff] %v1395_v46 }
 0x528   :  { %2879 = vmatmul.msk.f32.gmra.mxu0 %vm316_vm7, %v305_v44  ;;  %3004 = vmatmul.msk.f32.gmra.mxu1 %vm316_vm7, %v305_v44 }
 0x52a   :  { %v1787_v47 = vpop.f32.mrf.mxu2  ;;  %v2179_v48 = vpop.f32.mrf.mxu3 }
 0x52b   :  { %2654 = vst [vmem:[%s5747_s5 + $0xc50] sm:$0xff] %v1787_v47 }
 0x52c   :  { %2655 = vst [vmem:[%s5747_s5 + $0xc58] sm:$0xff] %v2179_v48 }
 0x52d   :  { %v1006_v50 = vpop.f32.mrf.mxu0  ;;  %v1398_v51 = vpop.f32.mrf.mxu1 }
 0x52e   :  { %2656 = vst [vmem:[%s5747_s5 + $0xc60] sm:$0xff] %v1006_v50 }
 0x52f   :  { %3130 = vmatmul.msk.f32.gmra.mxu2 %vm316_vm7, %v306_v49  ;;  %3255 = vmatmul.msk.f32.gmra.mxu3 %vm316_vm7, %v306_v49  ;;  %2657 = vst [vmem:[%s5747_s5 + $0xc68] sm:$0xff] %v1398_v51 }
 0x530   :  { %2880 = vmatmul.msk.f32.gmra.mxu0 %vm316_vm7, %v306_v49  ;;  %3005 = vmatmul.msk.f32.gmra.mxu1 %vm316_vm7, %v306_v49 }
 0x532   :  { %v1790_v52 = vpop.f32.mrf.mxu2  ;;  %v2182_v53 = vpop.f32.mrf.mxu3 }
 0x533   :  { %2658 = vst [vmem:[%s5747_s5 + $0xc70] sm:$0xff] %v1790_v52 }
 0x534   :  { %2659 = vst [vmem:[%s5747_s5 + $0xc78] sm:$0xff] %v2182_v53 }
 0x535   :  { %v1009_v55 = vpop.f32.mrf.mxu0  ;;  %v1401_v56 = vpop.f32.mrf.mxu1 }
 0x536   :  { %2660 = vst [vmem:[%s5747_s5 + $0xc80] sm:$0xff] %v1009_v55 }
 0x537   :  { %3131 = vmatmul.msk.f32.gmra.mxu2 %vm316_vm7, %v307_v54  ;;  %3256 = vmatmul.msk.f32.gmra.mxu3 %vm316_vm7, %v307_v54  ;;  %2661 = vst [vmem:[%s5747_s5 + $0xc88] sm:$0xff] %v1401_v56 }
 0x538   :  { %2881 = vmatmul.msk.f32.gmra.mxu0 %vm316_vm7, %v307_v54  ;;  %3006 = vmatmul.msk.f32.gmra.mxu1 %vm316_vm7, %v307_v54 }
 0x53a   :  { %v1793_v57 = vpop.f32.mrf.mxu2  ;;  %v2185_v58 = vpop.f32.mrf.mxu3 }
 0x53b   :  { %2662 = vst [vmem:[%s5747_s5 + $0xc90] sm:$0xff] %v1793_v57 }
 0x53c   :  { %2663 = vst [vmem:[%s5747_s5 + $0xc98] sm:$0xff] %v2185_v58 }
 0x53d   :  { %v1012_v60 = vpop.f32.mrf.mxu0  ;;  %v1404_v61 = vpop.f32.mrf.mxu1 }
 0x53e   :  { %2664 = vst [vmem:[%s5747_s5 + $0xca0] sm:$0xff] %v1012_v60 }
 0x53f   :  { %3132 = vmatmul.msk.f32.gmra.mxu2 %vm316_vm7, %v308_v59  ;;  %3257 = vmatmul.msk.f32.gmra.mxu3 %vm316_vm7, %v308_v59  ;;  %2665 = vst [vmem:[%s5747_s5 + $0xca8] sm:$0xff] %v1404_v61 }
 0x540   :  { %2882 = vmatmul.msk.f32.gmra.mxu0 %vm316_vm7, %v308_v59  ;;  %3007 = vmatmul.msk.f32.gmra.mxu1 %vm316_vm7, %v308_v59 }
 0x542   :  { %v1796_v62 = vpop.f32.mrf.mxu2  ;;  %v2188_v63 = vpop.f32.mrf.mxu3 }
 0x543   :  { %2666 = vst [vmem:[%s5747_s5 + $0xcb0] sm:$0xff] %v1796_v62 }
 0x544   :  { %2667 = vst [vmem:[%s5747_s5 + $0xcb8] sm:$0xff] %v2188_v63 }
 0x545   :  { %v1015_v1 = vpop.f32.mrf.mxu0  ;;  %v1407_v2 = vpop.f32.mrf.mxu1 }
 0x546   :  { %2668 = vst [vmem:[%s5747_s5 + $0xcc0] sm:$0xff] %v1015_v1 }
 0x547   :  { %3133 = vmatmul.msk.f32.gmra.mxu2 %vm316_vm7, %v309_v0  ;;  %3258 = vmatmul.msk.f32.gmra.mxu3 %vm316_vm7, %v309_v0  ;;  %2669 = vst [vmem:[%s5747_s5 + $0xcc8] sm:$0xff] %v1407_v2 }
 0x548   :  { %2883 = vmatmul.msk.f32.gmra.mxu0 %vm316_vm7, %v309_v0  ;;  %3008 = vmatmul.msk.f32.gmra.mxu1 %vm316_vm7, %v309_v0 }
 0x54a   :  { %v1799_v3 = vpop.f32.mrf.mxu2  ;;  %v2191_v4 = vpop.f32.mrf.mxu3 }
 0x54b   :  { %2670 = vst [vmem:[%s5747_s5 + $0xcd0] sm:$0xff] %v1799_v3 }
 0x54c   :  { %2671 = vst [vmem:[%s5747_s5 + $0xcd8] sm:$0xff] %v2191_v4 }
 0x54d   :  { %v1018_v6 = vpop.f32.mrf.mxu0  ;;  %v1410_v7 = vpop.f32.mrf.mxu1 }
 0x54e   :  { %2672 = vst [vmem:[%s5747_s5 + $0xce0] sm:$0xff] %v1018_v6 }
 0x54f   :  { %3134 = vmatmul.msk.f32.gmra.mxu2 %vm316_vm7, %v310_v5  ;;  %3259 = vmatmul.msk.f32.gmra.mxu3 %vm316_vm7, %v310_v5  ;;  %2673 = vst [vmem:[%s5747_s5 + $0xce8] sm:$0xff] %v1410_v7 }
 0x550   :  { %2884 = vmatmul.msk.f32.gmra.mxu0 %vm316_vm7, %v310_v5  ;;  %3009 = vmatmul.msk.f32.gmra.mxu1 %vm316_vm7, %v310_v5 }
 0x552   :  { %v1802_v8 = vpop.f32.mrf.mxu2  ;;  %v2194_v9 = vpop.f32.mrf.mxu3 }
 0x553   :  { %2674 = vst [vmem:[%s5747_s5 + $0xcf0] sm:$0xff] %v1802_v8 }
 0x554   :  { %2675 = vst [vmem:[%s5747_s5 + $0xcf8] sm:$0xff] %v2194_v9 }
 0x555   :  { %v1021_v11 = vpop.f32.mrf.mxu0  ;;  %v1413_v12 = vpop.f32.mrf.mxu1 }
 0x556   :  { %2676 = vst [vmem:[%s5747_s5 + $0xd00] sm:$0xff] %v1021_v11 }
 0x557   :  { %3135 = vmatmul.msk.f32.gmra.mxu2 %vm316_vm7, %v311_v10  ;;  %3260 = vmatmul.msk.f32.gmra.mxu3 %vm316_vm7, %v311_v10  ;;  %2677 = vst [vmem:[%s5747_s5 + $0xd08] sm:$0xff] %v1413_v12 }
 0x558   :  { %2885 = vmatmul.msk.f32.gmra.mxu0 %vm316_vm7, %v311_v10  ;;  %3010 = vmatmul.msk.f32.gmra.mxu1 %vm316_vm7, %v311_v10 }
 0x55a   :  { %v1805_v13 = vpop.f32.mrf.mxu2  ;;  %v2197_v14 = vpop.f32.mrf.mxu3 }
 0x55b   :  { %2678 = vst [vmem:[%s5747_s5 + $0xd10] sm:$0xff] %v1805_v13 }
 0x55c   :  { %2679 = vst [vmem:[%s5747_s5 + $0xd18] sm:$0xff] %v2197_v14 }
 0x55d   :  { %v1024_v16 = vpop.f32.mrf.mxu0  ;;  %v1416_v17 = vpop.f32.mrf.mxu1 }
 0x55e   :  { %2680 = vst [vmem:[%s5747_s5 + $0xd20] sm:$0xff] %v1024_v16 }
 0x55f   :  { %3136 = vmatmul.msk.f32.gmra.mxu2 %vm316_vm7, %v312_v15  ;;  %3261 = vmatmul.msk.f32.gmra.mxu3 %vm316_vm7, %v312_v15  ;;  %2681 = vst [vmem:[%s5747_s5 + $0xd28] sm:$0xff] %v1416_v17 }
 0x560   :  { %2886 = vmatmul.msk.f32.gmra.mxu0 %vm316_vm7, %v312_v15  ;;  %3011 = vmatmul.msk.f32.gmra.mxu1 %vm316_vm7, %v312_v15 }
 0x562   :  { %v1808_v18 = vpop.f32.mrf.mxu2  ;;  %v2200_v19 = vpop.f32.mrf.mxu3 }
 0x563   :  { %2682 = vst [vmem:[%s5747_s5 + $0xd30] sm:$0xff] %v1808_v18 }
 0x564   :  { %2683 = vst [vmem:[%s5747_s5 + $0xd38] sm:$0xff] %v2200_v19 }
 0x565   :  { %v1027_v21 = vpop.f32.mrf.mxu0  ;;  %v1419_v22 = vpop.f32.mrf.mxu1 }
 0x566   :  { %2684 = vst [vmem:[%s5747_s5 + $0xd40] sm:$0xff] %v1027_v21 }
 0x567   :  { %3137 = vmatmul.msk.f32.gmra.mxu2 %vm316_vm7, %v313_v20  ;;  %3262 = vmatmul.msk.f32.gmra.mxu3 %vm316_vm7, %v313_v20  ;;  %2685 = vst [vmem:[%s5747_s5 + $0xd48] sm:$0xff] %v1419_v22 }
 0x568   :  { %2887 = vmatmul.msk.f32.gmra.mxu0 %vm316_vm7, %v313_v20  ;;  %3012 = vmatmul.msk.f32.gmra.mxu1 %vm316_vm7, %v313_v20 }
 0x56a   :  { %v1811_v23 = vpop.f32.mrf.mxu2  ;;  %v2203_v24 = vpop.f32.mrf.mxu3 }
 0x56b   :  { %2686 = vst [vmem:[%s5747_s5 + $0xd50] sm:$0xff] %v1811_v23 }
 0x56c   :  { %2687 = vst [vmem:[%s5747_s5 + $0xd58] sm:$0xff] %v2203_v24 }
 0x56d   :  { %v1030_v26 = vpop.f32.mrf.mxu0  ;;  %v1422_v27 = vpop.f32.mrf.mxu1 }
 0x56e   :  { %2688 = vst [vmem:[%s5747_s5 + $0xd60] sm:$0xff] %v1030_v26 }
 0x56f   :  { %3138 = vmatmul.msk.f32.gmra.mxu2 %vm316_vm7, %v314_v25  ;;  %3263 = vmatmul.msk.f32.gmra.mxu3 %vm316_vm7, %v314_v25  ;;  %2689 = vst [vmem:[%s5747_s5 + $0xd68] sm:$0xff] %v1422_v27 }
 0x570   :  { %2888 = vmatmul.msk.f32.gmra.mxu0 %vm316_vm7, %v314_v25  ;;  %3013 = vmatmul.msk.f32.gmra.mxu1 %vm316_vm7, %v314_v25 }
 0x572   :  { %v1814_v28 = vpop.f32.mrf.mxu2  ;;  %v2206_v29 = vpop.f32.mrf.mxu3 }
 0x573   :  { %2690 = vst [vmem:[%s5747_s5 + $0xd70] sm:$0xff] %v1814_v28 }
 0x574   :  { %2691 = vst [vmem:[%s5747_s5 + $0xd78] sm:$0xff] %v2206_v29 }
 0x575   :  { %v1033_v31 = vpop.f32.mrf.mxu0  ;;  %v1425_v32 = vpop.f32.mrf.mxu1 }
 0x576   :  { %2692 = vst [vmem:[%s5747_s5 + $0xd80] sm:$0xff] %v1033_v31 }
 0x577   :  { %3139 = vmatmul.msk.f32.gmra.mxu2 %vm316_vm7, %v315_v30  ;;  %3264 = vmatmul.msk.f32.gmra.mxu3 %vm316_vm7, %v315_v30  ;;  %2693 = vst [vmem:[%s5747_s5 + $0xd88] sm:$0xff] %v1425_v32 }
 0x578   :  { %2889 = vmatmul.msk.f32.gmra.mxu0 %vm316_vm7, %v315_v30  ;;  %3014 = vmatmul.msk.f32.gmra.mxu1 %vm316_vm7, %v315_v30 }
 0x57a   :  { %v1817_v33 = vpop.f32.mrf.mxu2  ;;  %v2209_v34 = vpop.f32.mrf.mxu3 }
 0x57b   :  { %2694 = vst [vmem:[%s5747_s5 + $0xd90] sm:$0xff] %v1817_v33 }
 0x57c   :  { %2695 = vst [vmem:[%s5747_s5 + $0xd98] sm:$0xff] %v2209_v34 }
 0x57d   :  { %v1036_v35 = vpop.f32.mrf.mxu0  ;;  %v1428_v36 = vpop.f32.mrf.mxu1 }
 0x57e   :  { %2696 = vst [vmem:[%s5747_s5 + $0xda0] sm:$0xff] %v1036_v35 }
 0x57f   :  { %2697 = vst [vmem:[%s5747_s5 + $0xda8] sm:$0xff] %v1428_v36 }
 0x582   :  { %v1820_v37 = vpop.f32.mrf.mxu2  ;;  %v2212_v38 = vpop.f32.mrf.mxu3 }
 0x583   :  { %2698 = vst [vmem:[%s5747_s5 + $0xdb0] sm:$0xff] %v1820_v37 }
 0x584   :  { %2699 = vst [vmem:[%s5747_s5 + $0xdb8] sm:$0xff] %v2212_v38 }
 0x585   :  { %v1039_v39 = vpop.f32.mrf.mxu0  ;;  %v1431_v40 = vpop.f32.mrf.mxu1 }
 0x586   :  { %2700 = vst [vmem:[%s5747_s5 + $0xdc0] sm:$0xff] %v1039_v39 }
 0x587   :  { %2701 = vst [vmem:[%s5747_s5 + $0xdc8] sm:$0xff] %v1431_v40 }
 0x58a   :  { %v1823_v41 = vpop.f32.mrf.mxu2  ;;  %v2215_v42 = vpop.f32.mrf.mxu3 }
 0x58b   :  { %2702 = vst [vmem:[%s5747_s5 + $0xdd0] sm:$0xff] %v1823_v41 }
 0x58c   :  { %2703 = vst [vmem:[%s5747_s5 + $0xdd8] sm:$0xff] %v2215_v42 }
 0x58d   :  { %v1042_v43 = vpop.f32.mrf.mxu0  ;;  %v1434_v44 = vpop.f32.mrf.mxu1 }
 0x58e   :  { %2704 = vst [vmem:[%s5747_s5 + $0xde0] sm:$0xff] %v1042_v43 }
 0x58f   :  { %2705 = vst [vmem:[%s5747_s5 + $0xde8] sm:$0xff] %v1434_v44 }
 0x592   :  { %v1826_v45 = vpop.f32.mrf.mxu2  ;;  %v2218_v46 = vpop.f32.mrf.mxu3 }
 0x593   :  { %2706 = vst [vmem:[%s5747_s5 + $0xdf0] sm:$0xff] %v1826_v45 }
 0x594   :  { %2707 = vst [vmem:[%s5747_s5 + $0xdf8] sm:$0xff] %v2218_v46 }
 0x595   :  { %v1045_v47 = vpop.f32.mrf.mxu0  ;;  %v1437_v48 = vpop.f32.mrf.mxu1 }
 0x596   :  { %2708 = vst [vmem:[%s5747_s5 + $0xe00] sm:$0xff] %v1045_v47 }
 0x597   :  { %2709 = vst [vmem:[%s5747_s5 + $0xe08] sm:$0xff] %v1437_v48 }
 0x59a   :  { %v1829_v49 = vpop.f32.mrf.mxu2  ;;  %v2221_v50 = vpop.f32.mrf.mxu3 }
 0x59b   :  { %2710 = vst [vmem:[%s5747_s5 + $0xe10] sm:$0xff] %v1829_v49 }
 0x59c   :  { %2711 = vst [vmem:[%s5747_s5 + $0xe18] sm:$0xff] %v2221_v50 }
 0x59d   :  { %v1048_v51 = vpop.f32.mrf.mxu0  ;;  %v1440_v52 = vpop.f32.mrf.mxu1 }
 0x59e   :  { %2712 = vst [vmem:[%s5747_s5 + $0xe20] sm:$0xff] %v1048_v51 }
 0x59f   :  { %2713 = vst [vmem:[%s5747_s5 + $0xe28] sm:$0xff] %v1440_v52 }
 0x5a2   :  { %v1832_v53 = vpop.f32.mrf.mxu2  ;;  %v2224_v54 = vpop.f32.mrf.mxu3 }
 0x5a3   :  { %2714 = vst [vmem:[%s5747_s5 + $0xe30] sm:$0xff] %v1832_v53 }
 0x5a4   :  { %2715 = vst [vmem:[%s5747_s5 + $0xe38] sm:$0xff] %v2224_v54 }
 0x5a5   :  { %v1051_v55 = vpop.f32.mrf.mxu0  ;;  %v1443_v56 = vpop.f32.mrf.mxu1 }
 0x5a6   :  { %2716 = vst [vmem:[%s5747_s5 + $0xe40] sm:$0xff] %v1051_v55 }
 0x5a7   :  { %2717 = vst [vmem:[%s5747_s5 + $0xe48] sm:$0xff] %v1443_v56 }
 0x5aa   :  { %v1835_v57 = vpop.f32.mrf.mxu2  ;;  %v2227_v58 = vpop.f32.mrf.mxu3 }
 0x5ab   :  { %2718 = vst [vmem:[%s5747_s5 + $0xe50] sm:$0xff] %v1835_v57 }
 0x5ac   :  { %2719 = vst [vmem:[%s5747_s5 + $0xe58] sm:$0xff] %v2227_v58 }
 0x5ad   :  { %v1054_v59 = vpop.f32.mrf.mxu0  ;;  %v1446_v60 = vpop.f32.mrf.mxu1 }
 0x5ae   :  { %2720 = vst [vmem:[%s5747_s5 + $0xe60] sm:$0xff] %v1054_v59 }
 0x5af   :  { %2721 = vst [vmem:[%s5747_s5 + $0xe68] sm:$0xff] %v1446_v60 }
 0x5b2   :  { %v1838_v61 = vpop.f32.mrf.mxu2  ;;  %v2230_v62 = vpop.f32.mrf.mxu3 }
 0x5b3   :  { %2722 = vst [vmem:[%s5747_s5 + $0xe70] sm:$0xff] %v1838_v61 }
 0x5b4   :  { %2723 = vst [vmem:[%s5747_s5 + $0xe78] sm:$0xff] %v2230_v62 }
 0x5b5   :  { %v1057_v63 = vpop.f32.mrf.mxu0  ;;  %v1449_v0 = vpop.f32.mrf.mxu1 }
 0x5b6   :  { %2724 = vst [vmem:[%s5747_s5 + $0xe80] sm:$0xff] %v1057_v63 }
 0x5b7   :  { %2725 = vst [vmem:[%s5747_s5 + $0xe88] sm:$0xff] %v1449_v0 }
 0x5ba   :  { %v1841_v1 = vpop.f32.mrf.mxu2  ;;  %v2233_v2 = vpop.f32.mrf.mxu3 }
 0x5bb   :  { %2726 = vst [vmem:[%s5747_s5 + $0xe90] sm:$0xff] %v1841_v1 }
 0x5bc   :  { %2727 = vst [vmem:[%s5747_s5 + $0xe98] sm:$0xff] %v2233_v2 }
 0x5bd   :  { %v1060_v3 = vpop.f32.mrf.mxu0  ;;  %v1452_v4 = vpop.f32.mrf.mxu1 }
 0x5be   :  { %2728 = vst [vmem:[%s5747_s5 + $0xea0] sm:$0xff] %v1060_v3 }
 0x5bf   :  { %2729 = vst [vmem:[%s5747_s5 + $0xea8] sm:$0xff] %v1452_v4 }
 0x5c2   :  { %v1844_v5 = vpop.f32.mrf.mxu2  ;;  %v2236_v6 = vpop.f32.mrf.mxu3 }
 0x5c3   :  { %2730 = vst [vmem:[%s5747_s5 + $0xeb0] sm:$0xff] %v1844_v5 }
 0x5c4   :  { %2731 = vst [vmem:[%s5747_s5 + $0xeb8] sm:$0xff] %v2236_v6 }
 0x5c5   :  { %v1063_v7 = vpop.f32.mrf.mxu0  ;;  %v1455_v8 = vpop.f32.mrf.mxu1 }
 0x5c6   :  { %2732 = vst [vmem:[%s5747_s5 + $0xec0] sm:$0xff] %v1063_v7 }
 0x5c7   :  { %2733 = vst [vmem:[%s5747_s5 + $0xec8] sm:$0xff] %v1455_v8 }
 0x5ca   :  { %v1847_v9 = vpop.f32.mrf.mxu2  ;;  %v2239_v10 = vpop.f32.mrf.mxu3 }
 0x5cb   :  { %2734 = vst [vmem:[%s5747_s5 + $0xed0] sm:$0xff] %v1847_v9 }
 0x5cc   :  { %2735 = vst [vmem:[%s5747_s5 + $0xed8] sm:$0xff] %v2239_v10 }
 0x5cd   :  { %v1066_v11 = vpop.f32.mrf.mxu0  ;;  %v1458_v12 = vpop.f32.mrf.mxu1 }
 0x5ce   :  { %2736 = vst [vmem:[%s5747_s5 + $0xee0] sm:$0xff] %v1066_v11 }
 0x5cf   :  { %2737 = vst [vmem:[%s5747_s5 + $0xee8] sm:$0xff] %v1458_v12 }
 0x5d2   :  { %v1850_v13 = vpop.f32.mrf.mxu2  ;;  %v2242_v14 = vpop.f32.mrf.mxu3 }
 0x5d3   :  { %2738 = vst [vmem:[%s5747_s5 + $0xef0] sm:$0xff] %v1850_v13 }
 0x5d4   :  { %2739 = vst [vmem:[%s5747_s5 + $0xef8] sm:$0xff] %v2242_v14 }
 0x5d5   :  { %v1069_v15 = vpop.f32.mrf.mxu0  ;;  %v1461_v16 = vpop.f32.mrf.mxu1 }
 0x5d6   :  { %2740 = vst [vmem:[%s5747_s5 + $0xf00] sm:$0xff] %v1069_v15 }
 0x5d7   :  { %2741 = vst [vmem:[%s5747_s5 + $0xf08] sm:$0xff] %v1461_v16 }
 0x5da   :  { %v1853_v17 = vpop.f32.mrf.mxu2  ;;  %v2245_v18 = vpop.f32.mrf.mxu3 }
 0x5db   :  { %2742 = vst [vmem:[%s5747_s5 + $0xf10] sm:$0xff] %v1853_v17 }
 0x5dc   :  { %2743 = vst [vmem:[%s5747_s5 + $0xf18] sm:$0xff] %v2245_v18 }
 0x5dd   :  { %v1072_v19 = vpop.f32.mrf.mxu0  ;;  %v1464_v20 = vpop.f32.mrf.mxu1 }
 0x5de   :  { %2744 = vst [vmem:[%s5747_s5 + $0xf20] sm:$0xff] %v1072_v19 }
 0x5df   :  { %2745 = vst [vmem:[%s5747_s5 + $0xf28] sm:$0xff] %v1464_v20 }
 0x5e2   :  { %v1856_v21 = vpop.f32.mrf.mxu2  ;;  %v2248_v22 = vpop.f32.mrf.mxu3 }
 0x5e3   :  { %2746 = vst [vmem:[%s5747_s5 + $0xf30] sm:$0xff] %v1856_v21 }
 0x5e4   :  { %2747 = vst [vmem:[%s5747_s5 + $0xf38] sm:$0xff] %v2248_v22 }
 0x5e5   :  { %v1075_v23 = vpop.f32.mrf.mxu0  ;;  %v1467_v24 = vpop.f32.mrf.mxu1 }
 0x5e6   :  { %2748 = vst [vmem:[%s5747_s5 + $0xf40] sm:$0xff] %v1075_v23 }
 0x5e7   :  { %2749 = vst [vmem:[%s5747_s5 + $0xf48] sm:$0xff] %v1467_v24 }
 0x5ea   :  { %v1859_v25 = vpop.f32.mrf.mxu2  ;;  %v2251_v26 = vpop.f32.mrf.mxu3 }
 0x5eb   :  { %2750 = vst [vmem:[%s5747_s5 + $0xf50] sm:$0xff] %v1859_v25 }
 0x5ec   :  { %2751 = vst [vmem:[%s5747_s5 + $0xf58] sm:$0xff] %v2251_v26 }
 0x5ed   :  { %v1078_v27 = vpop.f32.mrf.mxu0  ;;  %v1470_v28 = vpop.f32.mrf.mxu1 }
 0x5ee   :  { %2752 = vst [vmem:[%s5747_s5 + $0xf60] sm:$0xff] %v1078_v27 }
 0x5ef   :  { %2753 = vst [vmem:[%s5747_s5 + $0xf68] sm:$0xff] %v1470_v28 }
 0x5f2   :  { %v1862_v29 = vpop.f32.mrf.mxu2  ;;  %v2254_v30 = vpop.f32.mrf.mxu3 }
 0x5f3   :  { %2754 = vst [vmem:[%s5747_s5 + $0xf70] sm:$0xff] %v1862_v29 }
 0x5f4   :  { %2755 = vst [vmem:[%s5747_s5 + $0xf78] sm:$0xff] %v2254_v30 }
 0x5f5   :  { %v1081_v31 = vpop.f32.mrf.mxu0  ;;  %v1473_v32 = vpop.f32.mrf.mxu1 }
 0x5f6   :  { %2756 = vst [vmem:[%s5747_s5 + $0xf80] sm:$0xff] %v1081_v31 }
 0x5f7   :  { %2757 = vst [vmem:[%s5747_s5 + $0xf88] sm:$0xff] %v1473_v32 }
 0x5fa   :  { %v1865_v33 = vpop.f32.mrf.mxu2  ;;  %v2257_v34 = vpop.f32.mrf.mxu3 }
 0x5fb   :  { %2758 = vst [vmem:[%s5747_s5 + $0xf90] sm:$0xff] %v1865_v33 }
 0x5fc   :  { %2759 = vst [vmem:[%s5747_s5 + $0xf98] sm:$0xff] %v2257_v34 }

// kernel: cnn_autoencoder_forward.12
= control target key start
LH: loop header
LB: loop body
LE: loop exit
PB: predicated region body
PF: predicated region fallthrough
CT: control target
= control target key end

     0   :  { %v1329_v0 = vmov 0   ;;  %vm565_vm4 = vcmask 64512   ;;  %s2136_s1 = inlined_call_operand.vmem [shape: f32[8,1], index: 1, kind: input, shape index: {}]   ;;  %s2137_s0 = inlined_call_operand.vmem [shape: f32[8,4352], index: 0, kind: input, shape index: {}]   ;;  %s2138_s3 = inlined_call_operand.vmem [shape: f32[8,1], index: 3, kind: input, shape index: {}]   ;;  %s2139_s2 = inlined_call_operand.vmem [shape: f32[8,1], index: 2, kind: input, shape index: {}]   ;;  %s2140_s4 = inlined_call_operand.vmem [shape: f32[8,8], index: 4, kind: input, shape index: {}]   ;;  %s2141_s5 = inlined_call_operand.vmem [shape: f32[8,4352], index: 5, kind: output, shape index: {}]  }
   0x1   :  { %1324 = vset.pattern.permute.xlu0 %v1329_v0  ;;  %v54_v1 = vld [vmem:[%s2136_s1] sm:$0xff]  ;;  %1325 = vset.pattern.permute.xlu1 %v1329_v0  ;;  %v21_v4 = vld [vmem:[%s2137_s0 + $0x8] sm:$0xff]  ;;  %v22_v7 = vld [vmem:[%s2137_s0 + $0x10] sm:$0xff] }
   0x2   :  { %57 = vperm.xlu0 %1324, %v54_v1   ;;  %1326 = vset.pattern.permute.xlu2 %v1329_v0  ;;  %v20_v3 = vld [vmem:[%s2137_s0] sm:$0xff]  ;;  %v23_v8 = vld [vmem:[%s2137_s0 + $0x18] sm:$0xff]  ;;  %v25_v14 = vld [vmem:[%s2137_s0 + $0x28] sm:$0xff] }
   0x3   :  { %v24_v11 = vld [vmem:[%s2137_s0 + $0x20] sm:$0xff]  ;;  %v26_v17 = vld [vmem:[%s2137_s0 + $0x30] sm:$0xff]  ;;  %v27_v20 = vld [vmem:[%s2137_s0 + $0x38] sm:$0xff] }
   0x4   :  { %v28_v23 = vld [vmem:[%s2137_s0 + $0x40] sm:$0xff]  ;;  %v29_v26 = vld [vmem:[%s2137_s0 + $0x48] sm:$0xff]  ;;  %v30_v29 = vld [vmem:[%s2137_s0 + $0x50] sm:$0xff] }
   0x5   :  { %v31_v32 = vld [vmem:[%s2137_s0 + $0x58] sm:$0xff]  ;;  %v32_v35 = vld [vmem:[%s2137_s0 + $0x60] sm:$0xff]  ;;  %v33_v38 = vld [vmem:[%s2137_s0 + $0x68] sm:$0xff] }
   0x6   :  { %v34_v41 = vld [vmem:[%s2137_s0 + $0x70] sm:$0xff]  ;;  %v35_v44 = vld [vmem:[%s2137_s0 + $0x78] sm:$0xff]  ;;  %v36_v47 = vld [vmem:[%s2137_s0 + $0x80] sm:$0xff] }
   0x7   :  { %v37_v50 = vld [vmem:[%s2137_s0 + $0x88] sm:$0xff]  ;;  %v38_v53 = vld [vmem:[%s2137_s0 + $0x90] sm:$0xff]  ;;  %v39_v56 = vld [vmem:[%s2137_s0 + $0x98] sm:$0xff] }
   0x8   :  { %v40_v59 = vld [vmem:[%s2137_s0 + $0xa0] sm:$0xff]  ;;  %v41_v62 = vld [vmem:[%s2137_s0 + $0xa8] sm:$0xff]  ;;  %v42_v1 = vld [vmem:[%s2137_s0 + $0xb0] sm:$0xff] }
  0x74   :  { %v1364_v2 = vpop.permute.xlu0 %57 }
  0x75   :  { %v1373_v5 = vadd.f32 %v1364_v2, %v20_v3  ;;  %v1376_v6 = vadd.f32 %v1364_v2, %v21_v4  ;;  %v1385_v9 = vadd.f32 %v1364_v2, %v22_v7  ;;  %v1393_v12 = vadd.f32 %v1364_v2, %v23_v8  ;;  %v43_v7 = vld [vmem:[%s2137_s0 + $0xb8] sm:$0xff] }
  0x76   :  { %v1400_v15 = vadd.f32 %v1364_v2, %v24_v11  ;;  %v1407_v18 = vadd.f32 %v1364_v2, %v25_v14  ;;  %v1414_v21 = vadd.f32 %v1364_v2, %v26_v17  ;;  %v1421_v24 = vadd.f32 %v1364_v2, %v27_v20  ;;  %v44_v11 = vld [vmem:[%s2137_s0 + $0xc0] sm:$0xff] }
  0x77   :  { %v267_v10 = vadd.f32 %v1376_v6, %v1373_v5  ;;  %v1428_v27 = vadd.f32 %v1364_v2, %v28_v23  ;;  %v1435_v30 = vadd.f32 %v1364_v2, %v29_v26  ;;  %v1442_v33 = vadd.f32 %v1364_v2, %v30_v29  ;;  %v47_v26 = vld [vmem:[%s2137_s0 + $0xd8] sm:$0xff] }
  0x78   :  { %v1449_v36 = vadd.f32 %v1364_v2, %v31_v32  ;;  %v1456_v39 = vadd.f32 %v1364_v2, %v32_v35  ;;  %v1463_v42 = vadd.f32 %v1364_v2, %v33_v38  ;;  %v1470_v45 = vadd.f32 %v1364_v2, %v34_v41  ;;  %v48_v32 = vld [vmem:[%s2137_s0 + $0xe0] sm:$0xff] }
  0x79   :  { %v268_v13 = vadd.f32 %v267_v10, %v1385_v9  ;;  %v1477_v48 = vadd.f32 %v1364_v2, %v35_v44  ;;  %v1484_v51 = vadd.f32 %v1364_v2, %v36_v47  ;;  %v1491_v54 = vadd.f32 %v1364_v2, %v37_v50  ;;  %v51_v47 = vld [vmem:[%s2137_s0 + $0xf8] sm:$0xff] }
  0x7a   :  { %v1498_v57 = vadd.f32 %v1364_v2, %v38_v53  ;;  %v1505_v60 = vadd.f32 %v1364_v2, %v39_v56  ;;  %v1512_v63 = vadd.f32 %v1364_v2, %v40_v59  ;;  %v1519_v3 = vadd.f32 %v1364_v2, %v41_v62  ;;  %v52_v53 = vld [vmem:[%s2137_s0 + $0x100] sm:$0xff] }
  0x7b   :  { %v269_v16 = vadd.f32 %v268_v13, %v1393_v12  ;;  %v1526_v8 = vadd.f32 %v1364_v2, %v42_v1  ;;  %v1533_v13 = vadd.f32 %v1364_v2, %v43_v7  ;;  %v1540_v17 = vadd.f32 %v1364_v2, %v44_v11 }
  0x7c   :  { %v1568_v38 = vadd.f32 %v1364_v2, %v48_v32  ;;  %v1330_v59 = vmov 0.0   ;;  %v1601_v62 = vadd.f32 %v1364_v2, %v52_v53 }
  0x7d   :  { %v270_v19 = vadd.f32 %v269_v16, %v1400_v15  ;;  %v45_v16 = vld [vmem:[%s2137_s0 + $0xc8] sm:$0xff] }
  0x7e   :  { %v1547_v23 = vadd.f32 %v1364_v2, %v45_v16 }
  0x7f   :  { %v271_v22 = vadd.f32 %v270_v19, %v1407_v18  ;;  %v96_v19 = vlaneseq }
  0x81   :  { %v272_v25 = vadd.f32 %v271_v22, %v1414_v21  ;;  %v46_v22 = vld [vmem:[%s2137_s0 + $0xd0] sm:$0xff]  ;;  %v97_v29 = vand.u32 127, %v96_v19 }
  0x83   :  { %v273_v28 = vadd.f32 %v272_v25, %v1421_v24 }
  0x85   :  { %v274_v31 = vadd.f32 %v273_v28, %v1428_v27  ;;  %v1554_v28 = vadd.f32 %v1364_v2, %v46_v22 }
  0x87   :  { %v275_v34 = vadd.f32 %v274_v31, %v1435_v30 }
  0x89   :  { %v276_v37 = vadd.f32 %v275_v34, %v1442_v33  ;;  %v1561_v34 = vadd.f32 %v1364_v2, %v47_v26 }
  0x8b   :  { %v277_v40 = vadd.f32 %v276_v37, %v1449_v36  ;;  %v49_v37 = vld [vmem:[%s2137_s0 + $0xe8] sm:$0xff] }
  0x8c   :  { %v1575_v44 = vadd.f32 %v1364_v2, %v49_v37 }
  0x8d   :  { %v278_v43 = vadd.f32 %v277_v40, %v1456_v39  ;;  %v130_v40 = vadd.s32 4224, %v97_v29 }
  0x8f   :  { %v279_v46 = vadd.f32 %v278_v43, %v1463_v42  ;;  %v50_v43 = vld [vmem:[%s2137_s0 + $0xf0] sm:$0xff]  ;;  %vm164_vm0 = vcmp.lt.s32.totalorder %v130_v40, 4290 }
  0x90   :  { %v1585_v50 = vadd.f32 %v1364_v2, %v50_v43 }
  0x91   :  { %v280_v49 = vadd.f32 %v279_v46, %v1470_v45 }
  0x93   :  { %v281_v52 = vadd.f32 %v280_v49, %v1477_v48  ;;  %v53_v49 = vld [vmem:[%s2137_s0 + $0x108] sm:$0xff] }
  0x94   :  { %v1595_v56 = vadd.f32 %v1364_v2, %v53_v49 }
  0x95   :  { %v282_v55 = vadd.f32 %v281_v52, %v1484_v51 }
  0x97   :  { %v283_v58 = vadd.f32 %v282_v55, %v1491_v54  ;;  %v1592_v55 = vadd.f32 %v1364_v2, %v51_v47 }
  0x99   :  { %v284_v61 = vadd.f32 %v283_v58, %v1498_v57 }
  0x9b   :  { %v285_v0 = vadd.f32 %v284_v61, %v1505_v60  ;;  %v1598_v61 = vsel %vm164_vm0, 1.0, %v1330_v59 }
  0x9c   :  { %v266_v1 = vmul.f32 %v1598_v61, %v1595_v56 }
  0x9d   :  { %v286_v4 = vadd.f32 %v285_v0, %v1512_v63 }
  0x9f   :  { %v287_v10 = vadd.f32 %v286_v4, %v1519_v3 }
  0xa1   :  { %v288_v14 = vadd.f32 %v287_v10, %v1526_v8 }
  0xa3   :  { %v289_v20 = vadd.f32 %v288_v14, %v1533_v13 }
  0xa5   :  { %v290_v25 = vadd.f32 %v289_v20, %v1540_v17 }
  0xa7   :  { %v291_v31 = vadd.f32 %v290_v25, %v1547_v23 }
  0xa9   :  { %v292_v35 = vadd.f32 %v291_v31, %v1554_v28 }
  0xab   :  { %v293_v41 = vadd.f32 %v292_v35, %v1561_v34 }
  0xad   :  { %v294_v46 = vadd.f32 %v293_v41, %v1568_v38 }
  0xaf   :  { %v295_v52 = vadd.f32 %v294_v46, %v1575_v44 }
  0xb1   :  { %v296_v58 = vadd.f32 %v295_v52, %v1585_v50 }
  0xb3   :  { %v297_v0 = vadd.f32 %v296_v58, %v1592_v55 }
  0xb5   :  { %v298_v4 = vadd.f32 %v297_v0, %v1601_v62 }
  0xb7   :  { %v299_v7 = vadd.f32 %v298_v4, %v266_v1 }
  0xb9   :  { %300 = vadd.xlane.f32.xlu0 %v299_v7 }
 0x12c   :  { %v301_v10 = vpop.xlane.xlu0 %300 }
 0x12d   :  { %v1607_v11 = vmul.f32 0.00023310023, %v301_v10 }
 0x12f   :  { %v1611_v14 = vsub.f32 %v1373_v5, %v1607_v11  ;;  %v1615_v2 = vsub.f32 %v1376_v6, %v1607_v11  ;;  %v1619_v16 = vsub.f32 %v1385_v9, %v1607_v11  ;;  %v1627_v22 = vsub.f32 %v1393_v12, %v1607_v11 }
 0x130   :  { %v1631_v5 = vsub.f32 %v1400_v15, %v1607_v11  ;;  %v1637_v9 = vsub.f32 %v1407_v18, %v1607_v11  ;;  %v1643_v12 = vsub.f32 %v1414_v21, %v1607_v11  ;;  %v1649_v32 = vsub.f32 %v1421_v24, %v1607_v11 }
 0x131   :  { %v371_v19 = vmul.f32 %v1611_v14, %v1611_v14  ;;  %v372_v20 = vmul.f32 %v1615_v2, %v1615_v2  ;;  %v373_v6 = vmul.f32 %v1619_v16, %v1619_v16  ;;  %v374_v26 = vmul.f32 %v1627_v22, %v1627_v22 }
 0x132   :  { %v375_v15 = vmul.f32 %v1631_v5, %v1631_v5  ;;  %v376_v18 = vmul.f32 %v1637_v9, %v1637_v9  ;;  %v1655_v37 = vsub.f32 %v1428_v27, %v1607_v11  ;;  %v377_v21 = vmul.f32 %v1643_v12, %v1643_v12 }
 0x133   :  { %v405_v25 = vadd.f32 %v372_v20, %v371_v19  ;;  %v1661_v41 = vsub.f32 %v1435_v30, %v1607_v11  ;;  %v378_v24 = vmul.f32 %v1649_v32, %v1649_v32  ;;  %v1667_v46 = vsub.f32 %v1442_v33, %v1607_v11 }
 0x134   :  { %v379_v27 = vmul.f32 %v1655_v37, %v1655_v37  ;;  %v1673_v49 = vsub.f32 %v1449_v36, %v1607_v11  ;;  %v1679_v53 = vsub.f32 %v1456_v39, %v1607_v11  ;;  %v1685_v59 = vsub.f32 %v1463_v42, %v1607_v11 }
 0x135   :  { %v406_v29 = vadd.f32 %v405_v25, %v373_v6  ;;  %v380_v30 = vmul.f32 %v1661_v41, %v1661_v41  ;;  %v381_v33 = vmul.f32 %v1667_v46, %v1667_v46  ;;  %v1691_v1 = vsub.f32 %v1470_v45, %v1607_v11 }
 0x136   :  { %v382_v36 = vmul.f32 %v1673_v49, %v1673_v49  ;;  %v383_v39 = vmul.f32 %v1679_v53, %v1679_v53  ;;  %v1697_v7 = vsub.f32 %v1477_v48, %v1607_v11  ;;  %v384_v42 = vmul.f32 %v1685_v59, %v1685_v59 }
 0x137   :  { %v407_v31 = vadd.f32 %v406_v29, %v374_v26  ;;  %v1703_v19 = vsub.f32 %v1484_v51, %v1607_v11  ;;  %v385_v45 = vmul.f32 %v1691_v1, %v1691_v1  ;;  %v1709_v6 = vsub.f32 %v1491_v54, %v1607_v11 }
 0x138   :  { %v386_v48 = vmul.f32 %v1697_v7, %v1697_v7  ;;  %v1715_v26 = vsub.f32 %v1498_v57, %v1607_v11 }
 0x139   :  { %v408_v35 = vadd.f32 %v407_v31, %v375_v15  ;;  %v387_v51 = vmul.f32 %v1703_v19, %v1703_v19  ;;  %v1721_v15 = vsub.f32 %v1505_v60, %v1607_v11  ;;  %v388_v54 = vmul.f32 %v1709_v6, %v1709_v6 }
 0x13a   :  { %v389_v57 = vmul.f32 %v1715_v26, %v1715_v26 }
 0x13b   :  { %v409_v40 = vadd.f32 %v408_v35, %v376_v18  ;;  %v1727_v18 = vsub.f32 %v1512_v63, %v1607_v11  ;;  %v390_v60 = vmul.f32 %v1721_v15, %v1721_v15 }
 0x13d   :  { %v410_v43 = vadd.f32 %v409_v40, %v377_v21  ;;  %v1733_v21 = vsub.f32 %v1519_v3, %v1607_v11  ;;  %v391_v63 = vmul.f32 %v1727_v18, %v1727_v18 }
 0x13f   :  { %v411_v47 = vadd.f32 %v410_v43, %v378_v24  ;;  %v1739_v24 = vsub.f32 %v1526_v8, %v1607_v11  ;;  %v392_v3 = vmul.f32 %v1733_v21, %v1733_v21 }
 0x141   :  { %v412_v52 = vadd.f32 %v411_v47, %v379_v27  ;;  %v1745_v27 = vsub.f32 %v1533_v13, %v1607_v11  ;;  %v393_v8 = vmul.f32 %v1739_v24, %v1739_v24 }
 0x143   :  { %v413_v58 = vadd.f32 %v412_v52, %v380_v30  ;;  %v1751_v30 = vsub.f32 %v1540_v17, %v1607_v11  ;;  %v394_v13 = vmul.f32 %v1745_v27, %v1745_v27 }
 0x145   :  { %v414_v0 = vadd.f32 %v413_v58, %v381_v33  ;;  %v1757_v33 = vsub.f32 %v1547_v23, %v1607_v11  ;;  %v395_v17 = vmul.f32 %v1751_v30, %v1751_v30 }
 0x147   :  { %v415_v4 = vadd.f32 %v414_v0, %v382_v36  ;;  %v1763_v36 = vsub.f32 %v1554_v28, %v1607_v11  ;;  %v396_v23 = vmul.f32 %v1757_v33, %v1757_v33 }
 0x149   :  { %v416_v10 = vadd.f32 %v415_v4, %v383_v39  ;;  %v1769_v39 = vsub.f32 %v1561_v34, %v1607_v11  ;;  %v397_v28 = vmul.f32 %v1763_v36, %v1763_v36 }
 0x14b   :  { %v417_v20 = vadd.f32 %v416_v10, %v384_v42  ;;  %v1775_v42 = vsub.f32 %v1568_v38, %v1607_v11  ;;  %v398_v34 = vmul.f32 %v1769_v39, %v1769_v39 }
 0x14d   :  { %v418_v25 = vadd.f32 %v417_v20, %v385_v45  ;;  %v1781_v45 = vsub.f32 %v1575_v44, %v1607_v11  ;;  %v399_v38 = vmul.f32 %v1775_v42, %v1775_v42  ;;  %v1797_v44 = vsub.f32 %v1595_v56, %v1607_v11 }
 0x14f   :  { %v419_v29 = vadd.f32 %v418_v25, %v386_v48  ;;  %v1787_v48 = vsub.f32 %v1585_v50, %v1607_v11  ;;  %v1803_v50 = vsub.f32 %v1601_v62, %v1607_v11 }
 0x151   :  { %v420_v31 = vadd.f32 %v419_v29, %v387_v51  ;;  %v1793_v51 = vsub.f32 %v1592_v55, %v1607_v11  ;;  %v400_v29 = vmul.f32 %v1781_v45, %v1781_v45  ;;  %v370_v55 = vmul.f32 %v1598_v61, %v1797_v44  ;;  %v94_v61 = vld [vmem:[%s2139_s2] sm:$0xff] }
 0x153   :  { %v421_v35 = vadd.f32 %v420_v31, %v388_v54  ;;  %v401_v31 = vmul.f32 %v1787_v48, %v1787_v48  ;;  %v404_v11 = vmul.f32 %v370_v55, %v370_v55 }
 0x155   :  { %v422_v40 = vadd.f32 %v421_v35, %v389_v57  ;;  %v402_v35 = vmul.f32 %v1793_v51, %v1793_v51 }
 0x157   :  { %v423_v43 = vadd.f32 %v422_v40, %v390_v60  ;;  %v95_v60 = vld [vmem:[%s2138_s3] sm:$0xff]  ;;  %v403_v40 = vmul.f32 %v1803_v50, %v1803_v50 }
 0x158   :  { %527 = vperm.xlu2 %1326, %v95_v60  }
 0x159   :  { %v424_v47 = vadd.f32 %v423_v43, %v391_v63 }
 0x15b   :  { %v425_v52 = vadd.f32 %v424_v47, %v392_v3 }
 0x15d   :  { %v426_v58 = vadd.f32 %v425_v52, %v393_v8 }
 0x15f   :  { %v427_v0 = vadd.f32 %v426_v58, %v394_v13 }
 0x161   :  { %v428_v4 = vadd.f32 %v427_v0, %v395_v17 }
 0x163   :  { %v429_v10 = vadd.f32 %v428_v4, %v396_v23 }
 0x165   :  { %v430_v20 = vadd.f32 %v429_v10, %v397_v28 }
 0x167   :  { %v431_v25 = vadd.f32 %v430_v20, %v398_v34 }
 0x169   :  { %v432_v54 = vadd.f32 %v431_v25, %v399_v38 }
 0x16b   :  { %v433_v57 = vadd.f32 %v432_v54, %v400_v29 }
 0x16d   :  { %v434_v56 = vadd.f32 %v433_v57, %v401_v31 }
 0x16f   :  { %v435_v62 = vadd.f32 %v434_v56, %v402_v35 }
 0x171   :  { %v436_v63 = vadd.f32 %v435_v62, %v403_v40  ;;  %v1856_v40 = vld [vmem:[%s2140_s4] sm:$0xff] }
 0x173   :  { %v437_v43 = vadd.f32 %v436_v63, %v404_v11 }
 0x175   :  { %438 = vadd.xlane.f32.xlu1 %v437_v43 }
 0x18e   :  { %488 = vperm.xlu1 %1325, %v94_v61  }
 0x1b2   :  { %v1825_v34 = vpop.permute.xlu2 %527 }
 0x1e8   :  { %v439_v3 = vpop.xlane.xlu1 %438 }
 0x1e9   :  { %v440_v47 = vmul.f32 0.00023310023, %v439_v3 }
 0x1eb   :  { %v441_v8 = vadd.f32 1e-05, %v440_v47 }
 0x1ed   :  { %1327 = vrsqrt.f32 %v441_v8  ;;  %vm448_vm2 = vweird.f32 %v441_v8 }
 0x1f3   :  { %v1328_v52 = vpop.eup %1327 }
 0x1f4   :  { %v443_v13 = vmul.f32 %v1328_v52, %v441_v8  ;;  %vm449_vm1 = vweird.f32 %v1328_v52 }
 0x1f5   :  { %vm450_vm3 = vmor %vm448_vm2, %vm449_vm1 }
 0x1f6   :  { %v444_v58 = vmul.f32 %v1328_v52, %v443_v13 }
 0x1f8   :  { %v445_v17 = vmul.f32 0.5, %v444_v58 }
 0x1fa   :  { %v446_v0 = vsub.f32 1.5, %v445_v17 }
 0x1fc   :  { %v447_v23 = vmul.f32 %v1328_v52, %v446_v0 }
 0x1fe   :  { %v1819_v4 = vsel %vm450_vm3, %v1328_v52, %v447_v23 }
 0x1ff   :  { %v452_v28 = vmul.f32 %v1819_v4, %v1611_v14  ;;  %v453_v20 = vmul.f32 %v1819_v4, %v1615_v2  ;;  %v454_v38 = vmul.f32 %v1819_v4, %v1619_v16  ;;  %v455_v25 = vmul.f32 %v1819_v4, %v1627_v22 }
 0x200   :  { %v1823_v10 = vpop.permute.xlu1 %488  ;;  %v456_v29 = vmul.f32 %v1819_v4, %v1631_v5  ;;  %v457_v14 = vmul.f32 %v1819_v4, %v1637_v9  ;;  %v458_v31 = vmul.f32 %v1819_v4, %v1643_v12  ;;  %v459_v2 = vmul.f32 %v1819_v4, %v1649_v32 }
 0x201   :  { %v491_v54 = vmul.f32 %v1823_v10, %v452_v28  ;;  %v492_v57 = vmul.f32 %v1823_v10, %v453_v20  ;;  %v493_v16 = vmul.f32 %v1823_v10, %v454_v38  ;;  %v494_v22 = vmul.f32 %v1823_v10, %v455_v25 }
 0x202   :  { %v495_v55 = vmul.f32 %v1823_v10, %v456_v29  ;;  %v496_v35 = vmul.f32 %v1823_v10, %v457_v14  ;;  %v497_v9 = vmul.f32 %v1823_v10, %v458_v31  ;;  %v498_v56 = vmul.f32 %v1823_v10, %v459_v2 }
 0x203   :  { %v530_v5 = vadd.f32 %v1825_v34, %v491_v54  ;;  %v531_v12 = vadd.f32 %v1825_v34, %v492_v57  ;;  %v532_v32 = vadd.f32 %v1825_v34, %v493_v16  ;;  %v533_v60 = vadd.f32 %v1825_v34, %v494_v22 }
 0x204   :  { %v534_v62 = vadd.f32 %v1825_v34, %v495_v55  ;;  %v535_v11 = vadd.f32 %v1825_v34, %v496_v35  ;;  %v536_v63 = vadd.f32 %v1825_v34, %v497_v9  ;;  %v537_v43 = vadd.f32 %v1825_v34, %v498_v56 }
 0x205   :  { %584 = vmatpush.msra.mxu0 %v530_v5  ;;  %v460_v61 = vmul.f32 %v1819_v4, %v1655_v37  ;;  %604 = vmatpush.msra.mxu1 %v531_v12  ;;  %v461_v3 = vmul.f32 %v1819_v4, %v1661_v41  ;;  %v462_v47 = vmul.f32 %v1819_v4, %v1667_v46 }
 0x206   :  { %624 = vmatpush.msra.mxu2 %v532_v32  ;;  %v463_v8 = vmul.f32 %v1819_v4, %v1673_v49  ;;  %644 = vmatpush.msra.mxu3 %v533_v60  ;;  %v464_v37 = vmul.f32 %v1819_v4, %v1679_v53  ;;  %v465_v13 = vmul.f32 %v1819_v4, %v1685_v59 }
 0x207   :  { %1288 = vmatmul.msk.f32.vlgmr.msra.gmra.mxu0 %vm565_vm4, %v1856_v40  ;;  %v499_v52 = vmul.f32 %v1823_v10, %v460_v61  ;;  %1289 = vmatmul.msk.f32.vlgmr.msra.gmra.mxu1 %vm565_vm4, %v1856_v40  ;;  %v500_v41 = vmul.f32 %v1823_v10, %v461_v3  ;;  %v501_v46 = vmul.f32 %v1823_v10, %v462_v47 }
 0x208   :  { %1290 = vmatmul.msk.f32.vlgmr.msra.gmra.mxu2 %vm565_vm4, %v1856_v40  ;;  %v502_v49 = vmul.f32 %v1823_v10, %v463_v8  ;;  %1291 = vmatmul.msk.f32.vlgmr.msra.gmra.mxu3 %vm565_vm4, %v1856_v40  ;;  %v503_v17 = vmul.f32 %v1823_v10, %v464_v37  ;;  %v504_v23 = vmul.f32 %v1823_v10, %v465_v13 }
 0x209   :  { %664 = vmatpush.msrb.mxu0 %v534_v62  ;;  %v538_v53 = vadd.f32 %v1825_v34, %v499_v52  ;;  %684 = vmatpush.msrb.mxu1 %v535_v11  ;;  %v539_v59 = vadd.f32 %v1825_v34, %v500_v41  ;;  %v540_v58 = vadd.f32 %v1825_v34, %v501_v46 }
 0x20a   :  { %704 = vmatpush.msrb.mxu2 %v536_v63  ;;  %724 = vmatpush.msrb.mxu3 %v537_v43  ;;  %v541_v0 = vadd.f32 %v1825_v34, %v502_v49  ;;  %v466_v28 = vmul.f32 %v1819_v4, %v1691_v1  ;;  %v467_v20 = vmul.f32 %v1819_v4, %v1697_v7 }
 0x20b   :  { %744 = vmatpush.msra.mxu0 %v538_v53  ;;  %764 = vmatpush.msra.mxu1 %v539_v59  ;;  %v542_v29 = vadd.f32 %v1825_v34, %v503_v17  ;;  %v543_v54 = vadd.f32 %v1825_v34, %v504_v23  ;;  %v468_v1 = vmul.f32 %v1819_v4, %v1703_v19 }
 0x20c   :  { %784 = vmatpush.msra.mxu2 %v540_v58  ;;  %804 = vmatpush.msra.mxu3 %v541_v0  ;;  %v505_v38 = vmul.f32 %v1823_v10, %v466_v28  ;;  %v506_v25 = vmul.f32 %v1823_v10, %v467_v20  ;;  %v469_v14 = vmul.f32 %v1819_v4, %v1709_v6 }
 0x20d   :  { %v470_v31 = vmul.f32 %v1819_v4, %v1715_v26  ;;  %v471_v2 = vmul.f32 %v1819_v4, %v1721_v15  ;;  %v507_v57 = vmul.f32 %v1823_v10, %v468_v1  ;;  %v472_v55 = vmul.f32 %v1819_v4, %v1727_v18 }
 0x20e   :  { %v544_v7 = vadd.f32 %v1825_v34, %v505_v38  ;;  %v545_v19 = vadd.f32 %v1825_v34, %v506_v25  ;;  %v508_v16 = vmul.f32 %v1823_v10, %v469_v14  ;;  %v473_v15 = vmul.f32 %v1819_v4, %v1733_v21 }
 0x20f   :  { %1292 = vmatmul.msk.f32.vlgmr.msrb.gmra.mxu0 %vm565_vm4, %v1856_v40  ;;  %1293 = vmatmul.msk.f32.vlgmr.msrb.gmra.mxu1 %vm565_vm4, %v1856_v40  ;;  %v509_v6 = vmul.f32 %v1823_v10, %v470_v31  ;;  %v510_v26 = vmul.f32 %v1823_v10, %v471_v2  ;;  %v546_v22 = vadd.f32 %v1825_v34, %v507_v57 }
 0x210   :  { %1294 = vmatmul.msk.f32.vlgmr.msrb.gmra.mxu2 %vm565_vm4, %v1856_v40  ;;  %1295 = vmatmul.msk.f32.vlgmr.msrb.gmra.mxu3 %vm565_vm4, %v1856_v40  ;;  %v547_v5 = vadd.f32 %v1825_v34, %v508_v16  ;;  %v474_v9 = vmul.f32 %v1819_v4, %v1739_v24  ;;  %v475_v21 = vmul.f32 %v1819_v4, %v1745_v27 }
 0x211   :  { %824 = vmatpush.msrb.mxu0 %v542_v29  ;;  %844 = vmatpush.msrb.mxu1 %v543_v54  ;;  %v548_v35 = vadd.f32 %v1825_v34, %v509_v6  ;;  %v549_v18 = vadd.f32 %v1825_v34, %v510_v26  ;;  %v511_v56 = vmul.f32 %v1823_v10, %v472_v55 }
 0x212   :  { %864 = vmatpush.msrb.mxu2 %v544_v7  ;;  %884 = vmatpush.msrb.mxu3 %v545_v19  ;;  %v512_v12 = vmul.f32 %v1823_v10, %v473_v15  ;;  %v513_v32 = vmul.f32 %v1823_v10, %v474_v9  ;;  %v514_v24 = vmul.f32 %v1823_v10, %v475_v21 }
 0x213   :  { %v550_v60 = vadd.f32 %v1825_v34, %v511_v56  ;;  %v476_v62 = vmul.f32 %v1819_v4, %v1751_v30  ;;  %v477_v27 = vmul.f32 %v1819_v4, %v1757_v33  ;;  %v478_v43 = vmul.f32 %v1819_v4, %v1763_v36 }
 0x214   :  { %v551_v11 = vadd.f32 %v1825_v34, %v512_v12  ;;  %v552_v63 = vadd.f32 %v1825_v34, %v513_v32  ;;  %v553_v30 = vadd.f32 %v1825_v34, %v514_v24  ;;  %v479_v33 = vmul.f32 %v1819_v4, %v1769_v39 }
 0x215   :  { %v515_v61 = vmul.f32 %v1823_v10, %v476_v62  ;;  %v516_v3 = vmul.f32 %v1823_v10, %v477_v27  ;;  %v517_v47 = vmul.f32 %v1823_v10, %v478_v43  ;;  %v480_v52 = vmul.f32 %v1819_v4, %v1775_v42 }
 0x216   :  { %v518_v36 = vmul.f32 %v1823_v10, %v479_v33  ;;  %v481_v39 = vmul.f32 %v1819_v4, %v1781_v45  ;;  %v482_v41 = vmul.f32 %v1819_v4, %v1787_v48  ;;  %v483_v46 = vmul.f32 %v1819_v4, %v1793_v51 }
 0x217   :  { %1296 = vmatmul.msk.f32.vlgmr.msra.gmra.mxu0 %vm565_vm4, %v1856_v40  ;;  %1297 = vmatmul.msk.f32.vlgmr.msra.gmra.mxu1 %vm565_vm4, %v1856_v40  ;;  %v554_v8 = vadd.f32 %v1825_v34, %v515_v61  ;;  %v555_v37 = vadd.f32 %v1825_v34, %v516_v3  ;;  %v556_v13 = vadd.f32 %v1825_v34, %v517_v47 }
 0x218   :  { %1298 = vmatmul.msk.f32.vlgmr.msra.gmra.mxu2 %vm565_vm4, %v1856_v40  ;;  %1299 = vmatmul.msk.f32.vlgmr.msra.gmra.mxu3 %vm565_vm4, %v1856_v40  ;;  %v557_v42 = vadd.f32 %v1825_v34, %v518_v36  ;;  %v519_v45 = vmul.f32 %v1823_v10, %v480_v52  ;;  %v520_v49 = vmul.f32 %v1823_v10, %v481_v39 }
 0x219   :  { %904 = vmatpush.msra.mxu0 %v546_v22  ;;  %924 = vmatpush.msra.mxu1 %v547_v5  ;;  %v521_v53 = vmul.f32 %v1823_v10, %v482_v41  ;;  %v522_v48 = vmul.f32 %v1823_v10, %v483_v46  ;;  %v484_v51 = vmul.f32 %v1819_v4, %v1803_v50 }
 0x21a   :  { %944 = vmatpush.msra.mxu2 %v548_v35  ;;  %964 = vmatpush.msra.mxu3 %v549_v18  ;;  %v485_v59 = vmul.f32 %v1819_v4, %v1797_v44  ;;  %v558_v58 = vadd.f32 %v1825_v34, %v519_v45  ;;  %v559_v17 = vadd.f32 %v1825_v34, %v520_v49 }
 0x21b   :  { %v560_v0 = vadd.f32 %v1825_v34, %v521_v53  ;;  %v561_v44 = vadd.f32 %v1825_v34, %v522_v48  ;;  %v523_v50 = vmul.f32 %v1823_v10, %v484_v51 }
 0x21c   :  { %v524_v4 = vmul.f32 %v1823_v10, %v485_v59 }
 0x21d   :  { %v562_v23 = vadd.f32 %v1825_v34, %v523_v50 }
 0x21e   :  { %v563_v28 = vadd.f32 %v1825_v34, %v524_v4 }
 0x21f   :  { %1300 = vmatmul.msk.f32.vlgmr.msrb.gmra.mxu0 %vm565_vm4, %v1856_v40  ;;  %1301 = vmatmul.msk.f32.vlgmr.msrb.gmra.mxu1 %vm565_vm4, %v1856_v40 }
 0x220   :  { %1302 = vmatmul.msk.f32.vlgmr.msrb.gmra.mxu2 %vm565_vm4, %v1856_v40  ;;  %1303 = vmatmul.msk.f32.vlgmr.msrb.gmra.mxu3 %vm565_vm4, %v1856_v40 }
 0x221   :  { %984 = vmatpush.msrb.mxu0 %v550_v60  ;;  %1004 = vmatpush.msrb.mxu1 %v551_v11 }
 0x222   :  { %1024 = vmatpush.msrb.mxu2 %v552_v63  ;;  %1044 = vmatpush.msrb.mxu3 %v553_v30 }
 0x227   :  { %1304 = vmatmul.msk.f32.vlgmr.msra.gmra.mxu0 %vm565_vm4, %v1856_v40  ;;  %1305 = vmatmul.msk.f32.vlgmr.msra.gmra.mxu1 %vm565_vm4, %v1856_v40 }
 0x228   :  { %1306 = vmatmul.msk.f32.vlgmr.msra.gmra.mxu2 %vm565_vm4, %v1856_v40  ;;  %1307 = vmatmul.msk.f32.vlgmr.msra.gmra.mxu3 %vm565_vm4, %v1856_v40 }
 0x229   :  { %1064 = vmatpush.msra.mxu0 %v554_v8  ;;  %1084 = vmatpush.msra.mxu1 %v555_v37 }
 0x22a   :  { %1104 = vmatpush.msra.mxu2 %v556_v13  ;;  %1124 = vmatpush.msra.mxu3 %v557_v42 }
 0x22f   :  { %1308 = vmatmul.msk.f32.vlgmr.msrb.gmra.mxu0 %vm565_vm4, %v1856_v40  ;;  %1309 = vmatmul.msk.f32.vlgmr.msrb.gmra.mxu1 %vm565_vm4, %v1856_v40 }
 0x230   :  { %1310 = vmatmul.msk.f32.vlgmr.msrb.gmra.mxu2 %vm565_vm4, %v1856_v40  ;;  %1311 = vmatmul.msk.f32.vlgmr.msrb.gmra.mxu3 %vm565_vm4, %v1856_v40 }
 0x231   :  { %1144 = vmatpush.msrb.mxu0 %v558_v58  ;;  %1164 = vmatpush.msrb.mxu1 %v559_v17 }
 0x232   :  { %1184 = vmatpush.msrb.mxu2 %v560_v0  ;;  %1204 = vmatpush.msrb.mxu3 %v561_v44 }
 0x237   :  { %1312 = vmatmul.msk.f32.vlgmr.msra.gmra.mxu0 %vm565_vm4, %v1856_v40  ;;  %1313 = vmatmul.msk.f32.vlgmr.msra.gmra.mxu1 %vm565_vm4, %v1856_v40 }
 0x238   :  { %1224 = vmatpush.msra.mxu0 %v562_v23  ;;  %1244 = vmatpush.msra.mxu1 %v563_v28 }
 0x239   :  { %1314 = vmatmul.msk.f32.vlgmr.msra.gmra.mxu2 %vm565_vm4, %v1856_v40  ;;  %1315 = vmatmul.msk.f32.vlgmr.msra.gmra.mxu3 %vm565_vm4, %v1856_v40 }
 0x23f   :  { %1316 = vmatmul.msk.f32.vlgmr.msrb.gmra.mxu0 %vm565_vm4, %v1856_v40  ;;  %1317 = vmatmul.msk.f32.vlgmr.msrb.gmra.mxu1 %vm565_vm4, %v1856_v40 }
 0x241   :  { %1318 = vmatmul.msk.f32.vlgmr.msrb.gmra.mxu2 %vm565_vm4, %v1856_v40  ;;  %1319 = vmatmul.msk.f32.vlgmr.msrb.gmra.mxu3 %vm565_vm4, %v1856_v40 }
 0x247   :  { %1320 = vmatmul.msk.f32.vlgmr.msra.gmra.mxu0 %vm565_vm4, %v1856_v40  ;;  %1321 = vmatmul.msk.f32.vlgmr.msra.gmra.mxu1 %vm565_vm4, %v1856_v40 }
 0x284   :  { %v586_v10 = vpop.f32.mrf.mxu0  ;;  %v606_v34 = vpop.f32.mrf.mxu1 }
 0x285   :  { %1249 = vst [vmem:[%s2141_s5] sm:$0xff] %v586_v10 }
 0x286   :  { %1250 = vst [vmem:[%s2141_s5 + $0x8] sm:$0xff] %v606_v34 }
 0x28b   :  { %v626_v20 = vpop.f32.mrf.mxu2  ;;  %v646_v38 = vpop.f32.mrf.mxu3 }
 0x28c   :  { %1251 = vst [vmem:[%s2141_s5 + $0x10] sm:$0xff] %v626_v20  ;;  %v666_v25 = vpop.f32.mrf.mxu0  ;;  %v686_v40 = vpop.f32.mrf.mxu1 }
 0x28d   :  { %1252 = vst [vmem:[%s2141_s5 + $0x18] sm:$0xff] %v646_v38 }
 0x28e   :  { %1253 = vst [vmem:[%s2141_s5 + $0x20] sm:$0xff] %v666_v25 }
 0x28f   :  { %1254 = vst [vmem:[%s2141_s5 + $0x28] sm:$0xff] %v686_v40 }
 0x293   :  { %v706_v29 = vpop.f32.mrf.mxu2  ;;  %v726_v54 = vpop.f32.mrf.mxu3 }
 0x294   :  { %1255 = vst [vmem:[%s2141_s5 + $0x30] sm:$0xff] %v706_v29  ;;  %v746_v1 = vpop.f32.mrf.mxu0  ;;  %v766_v7 = vpop.f32.mrf.mxu1 }
 0x295   :  { %1256 = vst [vmem:[%s2141_s5 + $0x38] sm:$0xff] %v726_v54 }
 0x296   :  { %1257 = vst [vmem:[%s2141_s5 + $0x40] sm:$0xff] %v746_v1 }
 0x297   :  { %1258 = vst [vmem:[%s2141_s5 + $0x48] sm:$0xff] %v766_v7 }
 0x29b   :  { %v786_v14 = vpop.f32.mrf.mxu2  ;;  %v806_v31 = vpop.f32.mrf.mxu3 }
 0x29c   :  { %1259 = vst [vmem:[%s2141_s5 + $0x50] sm:$0xff] %v786_v14  ;;  %v826_v19 = vpop.f32.mrf.mxu0  ;;  %v846_v2 = vpop.f32.mrf.mxu1 }
 0x29d   :  { %1260 = vst [vmem:[%s2141_s5 + $0x58] sm:$0xff] %v806_v31 }
 0x29e   :  { %1261 = vst [vmem:[%s2141_s5 + $0x60] sm:$0xff] %v826_v19 }
 0x29f   :  { %1262 = vst [vmem:[%s2141_s5 + $0x68] sm:$0xff] %v846_v2 }
 0x2a3   :  { %v866_v57 = vpop.f32.mrf.mxu2  ;;  %v886_v16 = vpop.f32.mrf.mxu3 }
 0x2a4   :  { %1263 = vst [vmem:[%s2141_s5 + $0x70] sm:$0xff] %v866_v57  ;;  %v906_v6 = vpop.f32.mrf.mxu0  ;;  %v926_v26 = vpop.f32.mrf.mxu1 }
 0x2a5   :  { %1264 = vst [vmem:[%s2141_s5 + $0x78] sm:$0xff] %v886_v16 }
 0x2a6   :  { %1265 = vst [vmem:[%s2141_s5 + $0x80] sm:$0xff] %v906_v6 }
 0x2a7   :  { %1266 = vst [vmem:[%s2141_s5 + $0x88] sm:$0xff] %v926_v26 }
 0x2ab   :  { %v946_v22 = vpop.f32.mrf.mxu2  ;;  %v966_v55 = vpop.f32.mrf.mxu3 }
 0x2ac   :  { %1267 = vst [vmem:[%s2141_s5 + $0x90] sm:$0xff] %v946_v22  ;;  %v986_v15 = vpop.f32.mrf.mxu0  ;;  %v1006_v5 = vpop.f32.mrf.mxu1 }
 0x2ad   :  { %1268 = vst [vmem:[%s2141_s5 + $0x98] sm:$0xff] %v966_v55 }
 0x2ae   :  { %1269 = vst [vmem:[%s2141_s5 + $0xa0] sm:$0xff] %v986_v15 }
 0x2af   :  { %1270 = vst [vmem:[%s2141_s5 + $0xa8] sm:$0xff] %v1006_v5 }
 0x2b3   :  { %v1026_v35 = vpop.f32.mrf.mxu2  ;;  %v1046_v9 = vpop.f32.mrf.mxu3 }
 0x2b4   :  { %1271 = vst [vmem:[%s2141_s5 + $0xb0] sm:$0xff] %v1026_v35  ;;  %v1066_v18 = vpop.f32.mrf.mxu0  ;;  %v1086_v21 = vpop.f32.mrf.mxu1 }
 0x2b5   :  { %1272 = vst [vmem:[%s2141_s5 + $0xb8] sm:$0xff] %v1046_v9 }
 0x2b6   :  { %1273 = vst [vmem:[%s2141_s5 + $0xc0] sm:$0xff] %v1066_v18 }
 0x2b7   :  { %1274 = vst [vmem:[%s2141_s5 + $0xc8] sm:$0xff] %v1086_v21 }
 0x2bc   :  { %v1106_v56 = vpop.f32.mrf.mxu2  ;;  %v1146_v12 = vpop.f32.mrf.mxu0 }
 0x2bd   :  { %1275 = vst [vmem:[%s2141_s5 + $0xd0] sm:$0xff] %v1106_v56  ;;  %v1126_v32 = vpop.f32.mrf.mxu3  ;;  %v1166_v24 = vpop.f32.mrf.mxu1 }
 0x2be   :  { %1276 = vst [vmem:[%s2141_s5 + $0xd8] sm:$0xff] %v1126_v32 }
 0x2bf   :  { %1277 = vst [vmem:[%s2141_s5 + $0xe0] sm:$0xff] %v1146_v12 }
 0x2c0   :  { %1278 = vst [vmem:[%s2141_s5 + $0xe8] sm:$0xff] %v1166_v24 }
 0x2c4   :  { %v1186_v60 = vpop.f32.mrf.mxu2  ;;  %v1226_v62 = vpop.f32.mrf.mxu0 }
 0x2c5   :  { %1279 = vst [vmem:[%s2141_s5 + $0xf0] sm:$0xff] %v1186_v60  ;;  %v1206_v27 = vpop.f32.mrf.mxu3  ;;  %v1246_v11 = vpop.f32.mrf.mxu1 }
 0x2c6   :  { %1280 = vst [vmem:[%s2141_s5 + $0xf8] sm:$0xff] %v1206_v27 }
 0x2c7   :  { %1281 = vst [vmem:[%s2141_s5 + $0x100] sm:$0xff] %v1226_v62 }
 0x2c8   :  { %1282 = vst [vmem:[%s2141_s5 + $0x108] sm:$0xff] %v1246_v11 }

// kernel: cnn_autoencoder_forward.13
= control target key start
LH: loop header
LB: loop body
LE: loop exit
PB: predicated region body
PF: predicated region fallthrough
CT: control target
= control target key end

     0   :  { %v2111_v0 = vmov 0   ;;  %vm533_vm0 = vcmask 1040384   ;;  %s3299_s1 = inlined_call_operand.<no memory space> [shape: f32[1,1], index: 1, kind: input, shape index: {}]   ;;  %s3300_s0 = inlined_call_operand.vmem [shape: f32[1,26880], index: 0, kind: input, shape index: {}]   ;;  %s3301_s2 = inlined_call_operand.<no memory space> [shape: f32[1,1], index: 2, kind: input, shape index: {}]   ;;  %s3302_s3 = inlined_call_operand.<no memory space> [shape: f32[1,1], index: 3, kind: input, shape index: {}]   ;;  %s3303_s4 = inlined_call_operand.vmem [shape: f32[1,26880], index: 4, kind: output, shape index: {}]  }
   0x1   :  { %2052 = vset.pattern.permute.xlu0 %v2111_v0  ;;  %v9_v1 = vstv %s3299_s1  ;;  %2053 = vset.pattern.permute.xlu1 %v2111_v0  ;;  %v28_v3 = vld [vmem:[%s3300_s0 + $0x28] sm:$0xff]  ;;  %v29_v5 = vld [vmem:[%s3300_s0 + $0x30] sm:$0xff]  ;;  %v30_v6 = vld [vmem:[%s3300_s0 + $0x38] sm:$0xff] }
   0x2   :  { %10 = vst [vmem:[#allocation2] sm:$0x1] %v9_v1  ;;  %2054 = vset.pattern.permute.xlu2 %v2111_v0  ;;  %v31_v7 = vld [vmem:[%s3300_s0 + $0x40] sm:$0xff]  ;;  %v32_v8 = vld [vmem:[%s3300_s0 + $0x48] sm:$0xff]  ;;  %v33_v9 = vld [vmem:[%s3300_s0 + $0x50] sm:$0xff] }
   0x3   :  { %v34_v10 = vld [vmem:[%s3300_s0 + $0x58] sm:$0xff]  ;;  %v35_v12 = vld [vmem:[%s3300_s0 + $0x60] sm:$0xff]  ;;  %v36_v13 = vld [vmem:[%s3300_s0 + $0x68] sm:$0xff] }
   0x4   :  { %v37_v14 = vld [vmem:[%s3300_s0 + $0x70] sm:$0xff]  ;;  %v38_v15 = vld [vmem:[%s3300_s0 + $0x78] sm:$0xff]  ;;  %v39_v16 = vld [vmem:[%s3300_s0 + $0x80] sm:$0xff] }
   0x5   :  { %v40_v17 = vld [vmem:[%s3300_s0 + $0x88] sm:$0xff]  ;;  %v41_v18 = vld [vmem:[%s3300_s0 + $0x90] sm:$0xff]  ;;  %v42_v19 = vld [vmem:[%s3300_s0 + $0x98] sm:$0xff] }
   0x6   :  { %v43_v20 = vld [vmem:[%s3300_s0 + $0xa0] sm:$0xff]  ;;  %v44_v24 = vld [vmem:[%s3300_s0 + $0xa8] sm:$0xff]  ;;  %v45_v25 = vld [vmem:[%s3300_s0 + $0xb0] sm:$0xff] }
   0x7   :  { %v46_v26 = vld [vmem:[%s3300_s0 + $0xb8] sm:$0xff]  ;;  %v47_v31 = vld [vmem:[%s3300_s0 + $0xc0] sm:$0xff]  ;;  %v48_v32 = vld [vmem:[%s3300_s0 + $0xc8] sm:$0xff] }
   0x8   :  { %v49_v33 = vld [vmem:[%s3300_s0 + $0xd0] sm:$0x3]  ;;  %v23_v49 = vld [vmem:[%s3300_s0] sm:$0xff]  ;;  %v24_v60 = vld [vmem:[%s3300_s0 + $0x8] sm:$0xff] }
   0x9   :  { %v50_v2 = vld [vmem:[#allocation2] sm:$0x1] }
   0xa   :  { %53 = vperm.xlu0 %2052, %v50_v2  }
  0x7c   :  { %v54_v4 = vpop.permute.xlu0 %53 }
  0x7d   :  { %v2161_v11 = vperm.slane %v54_v4, 0 }
  0x7f   :  { %v2191_v21 = vadd.f32 %v2161_v11, %v28_v3  ;;  %v2194_v22 = vadd.f32 %v2161_v11, %v29_v5  ;;  %v2197_v23 = vadd.f32 %v2161_v11, %v30_v6  ;;  %v2209_v27 = vadd.f32 %v2161_v11, %v31_v7 }
  0x80   :  { %v2212_v28 = vadd.f32 %v2161_v11, %v32_v8  ;;  %v2215_v29 = vadd.f32 %v2161_v11, %v33_v9  ;;  %v2218_v30 = vadd.f32 %v2161_v11, %v34_v10  ;;  %v2230_v34 = vadd.f32 %v2161_v11, %v35_v12 }
  0x81   :  { %v2233_v35 = vadd.f32 %v2161_v11, %v36_v13  ;;  %v2236_v36 = vadd.f32 %v2161_v11, %v37_v14  ;;  %v2239_v37 = vadd.f32 %v2161_v11, %v38_v15  ;;  %v2242_v38 = vadd.f32 %v2161_v11, %v39_v16 }
  0x82   :  { %v2245_v39 = vadd.f32 %v2161_v11, %v40_v17  ;;  %v2248_v40 = vadd.f32 %v2161_v11, %v41_v18  ;;  %v2251_v41 = vadd.f32 %v2161_v11, %v42_v19  ;;  %v2254_v42 = vadd.f32 %v2161_v11, %v43_v20 }
  0x83   :  { %v2257_v43 = vadd.f32 %v2161_v11, %v44_v24  ;;  %v2260_v44 = vadd.f32 %v2161_v11, %v45_v25  ;;  %v2263_v45 = vadd.f32 %v2161_v11, %v46_v26  ;;  %v2266_v46 = vadd.f32 %v2161_v11, %v47_v31  ;;  %v25_v26 = vld [vmem:[%s3300_s0 + $0x10] sm:$0xff] }
  0x84   :  { %v2269_v47 = vadd.f32 %v2161_v11, %v48_v32  ;;  %v2272_v48 = vadd.f32 %v2161_v11, %v49_v33  ;;  %v2278_v50 = vadd.f32 %v2161_v11, %v23_v49  ;;  %v2294_v1 = vadd.f32 %v2161_v11, %v24_v60 }
  0x86   :  { %v113_v51 = vperm.slane %v2278_v50, 0  ;;  %v114_v52 = vperm.slane %v2278_v50, 1  ;;  %v115_v53 = vperm.slane %v2278_v50, 2  ;;  %v116_v54 = vperm.slane %v2278_v50, 3 }
  0x87   :  { %v117_v58 = vperm.slane %v2278_v50, 4  ;;  %v118_v62 = vperm.slane %v2278_v50, 5  ;;  %v119_v2 = vperm.slane %v2278_v50, 6  ;;  %v120_v5 = vperm.slane %v2278_v50, 7 }
  0x88   :  { %v534_v55 = vsel %vm533_vm0, %v113_v51, 0.0  ;;  %v535_v56 = vsel %vm533_vm0, %v114_v52, 0.0  ;;  %v537_v59 = vsel %vm533_vm0, %v115_v53, 0.0  ;;  %v539_v63 = vsel %vm533_vm0, %v116_v54, 0.0 }
  0x89   :  { %v536_v57 = vadd.f32 %v535_v56, %v534_v55  ;;  %v541_v3 = vsel %vm533_vm0, %v117_v58, 0.0  ;;  %v543_v6 = vsel %vm533_vm0, %v118_v62, 0.0  ;;  %v121_v8 = vperm.slane %v2294_v1, 0 }
  0x8a   :  { %v545_v9 = vsel %vm533_vm0, %v119_v2, 0.0  ;;  %v122_v12 = vperm.slane %v2294_v1, 1  ;;  %v547_v13 = vsel %vm533_vm0, %v120_v5, 0.0  ;;  %v123_v15 = vperm.slane %v2294_v1, 2 }
  0x8b   :  { %v538_v61 = vadd.f32 %v537_v59, %v536_v57  ;;  %v549_v16 = vsel %vm533_vm0, %v121_v8, 0.0  ;;  %v124_v18 = vperm.slane %v2294_v1, 3  ;;  %v125_v24 = vperm.slane %v2294_v1, 4 }
  0x8c   :  { %v551_v19 = vsel %vm533_vm0, %v122_v12, 0.0  ;;  %v553_v25 = vsel %vm533_vm0, %v123_v15, 0.0  ;;  %v126_v32 = vperm.slane %v2294_v1, 5  ;;  %v2316_v51 = vadd.f32 %v2161_v11, %v25_v26 }
  0x8d   :  { %v540_v0 = vadd.f32 %v539_v63, %v538_v61  ;;  %v555_v33 = vsel %vm533_vm0, %v124_v18, 0.0  ;;  %v127_v52 = vperm.slane %v2294_v1, 6  ;;  %v557_v53 = vsel %vm533_vm0, %v125_v24, 0.0 }
  0x8e   :  { %v128_v55 = vperm.slane %v2294_v1, 7  ;;  %v559_v56 = vsel %vm533_vm0, %v126_v32, 0.0  ;;  %v129_v58 = vperm.slane %v2316_v51, 0  ;;  %v130_v61 = vperm.slane %v2316_v51, 1 }
  0x8f   :  { %v542_v4 = vadd.f32 %v541_v3, %v540_v0  ;;  %v561_v59 = vsel %vm533_vm0, %v127_v52, 0.0  ;;  %v131_v0 = vperm.slane %v2316_v51, 2  ;;  %v134_v12 = vperm.slane %v2316_v51, 5 }
  0x90   :  { %v563_v62 = vsel %vm533_vm0, %v128_v55, 0.0  ;;  %v565_v2 = vsel %vm533_vm0, %v129_v58, 0.0  ;;  %v567_v5 = vsel %vm533_vm0, %v130_v61, 0.0 }
  0x91   :  { %v544_v7 = vadd.f32 %v543_v6, %v542_v4  ;;  %v132_v4 = vperm.slane %v2316_v51, 3  ;;  %v569_v8 = vsel %vm533_vm0, %v131_v0, 0.0 }
  0x93   :  { %v546_v10 = vadd.f32 %v545_v9, %v544_v7  ;;  %v133_v7 = vperm.slane %v2316_v51, 4  ;;  %v26_v9 = vld [vmem:[%s3300_s0 + $0x18] sm:$0xff] }
  0x94   :  { %v2338_v15 = vadd.f32 %v2161_v11, %v26_v9 }
  0x95   :  { %v548_v14 = vadd.f32 %v547_v13, %v546_v10  ;;  %v571_v13 = vsel %vm533_vm0, %v132_v4, 0.0 }
  0x96   :  { %v138_v32 = vperm.slane %v2338_v15, 1  ;;  %v139_v52 = vperm.slane %v2338_v15, 2  ;;  %v140_v55 = vperm.slane %v2338_v15, 3  ;;  %v141_v58 = vperm.slane %v2338_v15, 4 }
  0x97   :  { %v550_v17 = vadd.f32 %v549_v16, %v548_v14  ;;  %v135_v16 = vperm.slane %v2316_v51, 6 }
  0x98   :  { %v589_v4 = vsel %vm533_vm0, %v141_v58, 0.0  ;;  %v153_v58 = vperm.slane %v2191_v21, 0 }
  0x99   :  { %v552_v20 = vadd.f32 %v551_v19, %v550_v17  ;;  %v573_v17 = vsel %vm533_vm0, %v133_v7, 0.0  ;;  %v136_v19 = vperm.slane %v2316_v51, 7  ;;  %v577_v26 = vsel %vm533_vm0, %v135_v16, 0.0 }
  0x9b   :  { %v554_v31 = vadd.f32 %v553_v25, %v552_v20  ;;  %v575_v20 = vsel %vm533_vm0, %v134_v12, 0.0  ;;  %v137_v25 = vperm.slane %v2338_v15, 0 }
  0x9d   :  { %v556_v49 = vadd.f32 %v555_v33, %v554_v31  ;;  %v579_v33 = vsel %vm533_vm0, %v136_v19, 0.0 }
  0x9f   :  { %v558_v54 = vadd.f32 %v557_v53, %v556_v49  ;;  %v581_v53 = vsel %vm533_vm0, %v137_v25, 0.0 }
  0xa1   :  { %v560_v57 = vadd.f32 %v559_v56, %v558_v54  ;;  %v583_v56 = vsel %vm533_vm0, %v138_v32, 0.0 }
  0xa3   :  { %v562_v60 = vadd.f32 %v561_v59, %v560_v57  ;;  %v585_v59 = vsel %vm533_vm0, %v139_v52, 0.0 }
  0xa5   :  { %v564_v63 = vadd.f32 %v563_v62, %v562_v60  ;;  %v27_v60 = vld [vmem:[%s3300_s0 + $0x20] sm:$0xff]  ;;  %v142_v62 = vperm.slane %v2338_v15, 5 }
  0xa7   :  { %v566_v3 = vadd.f32 %v565_v2, %v564_v63  ;;  %v587_v63 = vsel %vm533_vm0, %v140_v55, 0.0  ;;  %v2360_v2 = vadd.f32 %v2161_v11, %v27_v60  ;;  %v591_v7 = vsel %vm533_vm0, %v142_v62, 0.0 }
  0xa9   :  { %v568_v6 = vadd.f32 %v567_v5, %v566_v3  ;;  %v143_v3 = vperm.slane %v2338_v15, 6  ;;  %v145_v9 = vperm.slane %v2360_v2, 0  ;;  %v147_v16 = vperm.slane %v2360_v2, 2 }
  0xaa   :  { %v148_v19 = vperm.slane %v2360_v2, 3  ;;  %v149_v25 = vperm.slane %v2360_v2, 4  ;;  %v150_v32 = vperm.slane %v2360_v2, 5  ;;  %v151_v52 = vperm.slane %v2360_v2, 6 }
  0xab   :  { %v570_v10 = vadd.f32 %v569_v8, %v568_v6  ;;  %v144_v6 = vperm.slane %v2338_v15, 7  ;;  %v152_v55 = vperm.slane %v2360_v2, 7 }
  0xad   :  { %v572_v14 = vadd.f32 %v571_v13, %v570_v10  ;;  %v593_v10 = vsel %vm533_vm0, %v143_v3, 0.0  ;;  %v146_v13 = vperm.slane %v2360_v2, 1  ;;  %v595_v11 = vsel %vm533_vm0, %v144_v6, 0.0 }
  0xae   :  { %v611_v62 = vsel %vm533_vm0, %v152_v55, 0.0  ;;  %v613_v3 = vsel %vm533_vm0, %v153_v58, 0.0 }
  0xaf   :  { %v574_v18 = vadd.f32 %v573_v17, %v572_v14  ;;  %v597_v17 = vsel %vm533_vm0, %v145_v9, 0.0 }
  0xb1   :  { %v576_v24 = vadd.f32 %v575_v20, %v574_v18  ;;  %v599_v20 = vsel %vm533_vm0, %v146_v13, 0.0 }
  0xb3   :  { %v578_v31 = vadd.f32 %v577_v26, %v576_v24  ;;  %v601_v26 = vsel %vm533_vm0, %v147_v16, 0.0 }
  0xb5   :  { %v580_v49 = vadd.f32 %v579_v33, %v578_v31  ;;  %v603_v33 = vsel %vm533_vm0, %v148_v19, 0.0 }
  0xb7   :  { %v582_v54 = vadd.f32 %v581_v53, %v580_v49  ;;  %v605_v53 = vsel %vm533_vm0, %v149_v25, 0.0 }
  0xb9   :  { %v584_v57 = vadd.f32 %v583_v56, %v582_v54  ;;  %v607_v56 = vsel %vm533_vm0, %v150_v32, 0.0 }
  0xbb   :  { %v586_v61 = vadd.f32 %v585_v59, %v584_v57  ;;  %v609_v59 = vsel %vm533_vm0, %v151_v52, 0.0 }
  0xbd   :  { %v588_v0 = vadd.f32 %v587_v63, %v586_v61  ;;  %v154_v61 = vperm.slane %v2191_v21, 1 }
  0xbf   :  { %v590_v5 = vadd.f32 %v589_v4, %v588_v0  ;;  %v155_v0 = vperm.slane %v2191_v21, 2  ;;  %v615_v6 = vsel %vm533_vm0, %v154_v61, 0.0 }
  0xc1   :  { %v592_v8 = vadd.f32 %v591_v7, %v590_v5  ;;  %v156_v5 = vperm.slane %v2191_v21, 3  ;;  %v617_v9 = vsel %vm533_vm0, %v155_v0, 0.0 }
  0xc3   :  { %v594_v12 = vadd.f32 %v593_v10, %v592_v8  ;;  %v157_v8 = vperm.slane %v2191_v21, 4  ;;  %v619_v13 = vsel %vm533_vm0, %v156_v5, 0.0 }
  0xc5   :  { %v596_v14 = vadd.f32 %v595_v11, %v594_v12  ;;  %v158_v12 = vperm.slane %v2191_v21, 5  ;;  %v621_v16 = vsel %vm533_vm0, %v157_v8, 0.0 }
  0xc7   :  { %v598_v18 = vadd.f32 %v597_v17, %v596_v14  ;;  %v159_v14 = vperm.slane %v2191_v21, 6  ;;  %v623_v19 = vsel %vm533_vm0, %v158_v12, 0.0 }
  0xc9   :  { %v600_v24 = vadd.f32 %v599_v20, %v598_v18  ;;  %v160_v18 = vperm.slane %v2191_v21, 7  ;;  %v625_v25 = vsel %vm533_vm0, %v159_v14, 0.0 }
  0xcb   :  { %v602_v31 = vadd.f32 %v601_v26, %v600_v24  ;;  %v161_v24 = vperm.slane %v2194_v22, 0  ;;  %v627_v32 = vsel %vm533_vm0, %v160_v18, 0.0 }
  0xcd   :  { %v604_v49 = vadd.f32 %v603_v33, %v602_v31  ;;  %v162_v31 = vperm.slane %v2194_v22, 1  ;;  %v629_v52 = vsel %vm533_vm0, %v161_v24, 0.0 }
  0xcf   :  { %v606_v54 = vadd.f32 %v605_v53, %v604_v49  ;;  %v163_v49 = vperm.slane %v2194_v22, 2  ;;  %v631_v55 = vsel %vm533_vm0, %v162_v31, 0.0 }
  0xd1   :  { %v608_v57 = vadd.f32 %v607_v56, %v606_v54  ;;  %v164_v54 = vperm.slane %v2194_v22, 3  ;;  %v633_v58 = vsel %vm533_vm0, %v163_v49, 0.0 }
  0xd3   :  { %v610_v60 = vadd.f32 %v609_v59, %v608_v57  ;;  %v165_v57 = vperm.slane %v2194_v22, 4  ;;  %v635_v61 = vsel %vm533_vm0, %v164_v54, 0.0 }
  0xd5   :  { %v612_v63 = vadd.f32 %v611_v62, %v610_v60  ;;  %v166_v60 = vperm.slane %v2194_v22, 5  ;;  %v637_v0 = vsel %vm533_vm0, %v165_v57, 0.0 }
  0xd7   :  { %v614_v4 = vadd.f32 %v613_v3, %v612_v63  ;;  %v167_v63 = vperm.slane %v2194_v22, 6  ;;  %v639_v5 = vsel %vm533_vm0, %v166_v60, 0.0 }
  0xd9   :  { %v616_v7 = vadd.f32 %v615_v6, %v614_v4  ;;  %v168_v4 = vperm.slane %v2194_v22, 7  ;;  %v641_v8 = vsel %vm533_vm0, %v167_v63, 0.0 }
  0xdb   :  { %v618_v10 = vadd.f32 %v617_v9, %v616_v7  ;;  %v169_v7 = vperm.slane %v2197_v23, 0  ;;  %v643_v12 = vsel %vm533_vm0, %v168_v4, 0.0 }
  0xdd   :  { %v620_v11 = vadd.f32 %v619_v13, %v618_v10  ;;  %v170_v10 = vperm.slane %v2197_v23, 1  ;;  %v645_v14 = vsel %vm533_vm0, %v169_v7, 0.0 }
  0xdf   :  { %v622_v17 = vadd.f32 %v621_v16, %v620_v11  ;;  %v171_v11 = vperm.slane %v2197_v23, 2  ;;  %v647_v18 = vsel %vm533_vm0, %v170_v10, 0.0 }
  0xe1   :  { %v624_v20 = vadd.f32 %v623_v19, %v622_v17  ;;  %v172_v17 = vperm.slane %v2197_v23, 3  ;;  %v649_v24 = vsel %vm533_vm0, %v171_v11, 0.0 }
  0xe3   :  { %v626_v26 = vadd.f32 %v625_v25, %v624_v20  ;;  %v173_v20 = vperm.slane %v2197_v23, 4  ;;  %v651_v31 = vsel %vm533_vm0, %v172_v17, 0.0 }
  0xe5   :  { %v628_v33 = vadd.f32 %v627_v32, %v626_v26  ;;  %v174_v26 = vperm.slane %v2197_v23, 5  ;;  %v653_v49 = vsel %vm533_vm0, %v173_v20, 0.0 }
  0xe7   :  { %v630_v53 = vadd.f32 %v629_v52, %v628_v33  ;;  %v175_v33 = vperm.slane %v2197_v23, 6  ;;  %v655_v54 = vsel %vm533_vm0, %v174_v26, 0.0 }
  0xe9   :  { %v632_v56 = vadd.f32 %v631_v55, %v630_v53  ;;  %v176_v53 = vperm.slane %v2197_v23, 7  ;;  %v657_v57 = vsel %vm533_vm0, %v175_v33, 0.0 }
  0xeb   :  { %v634_v59 = vadd.f32 %v633_v58, %v632_v56  ;;  %v177_v56 = vperm.slane %v2209_v27, 0  ;;  %v659_v60 = vsel %vm533_vm0, %v176_v53, 0.0 }
  0xed   :  { %v636_v62 = vadd.f32 %v635_v61, %v634_v59  ;;  %v178_v59 = vperm.slane %v2209_v27, 1  ;;  %v661_v63 = vsel %vm533_vm0, %v177_v56, 0.0 }
  0xef   :  { %v638_v3 = vadd.f32 %v637_v0, %v636_v62  ;;  %v179_v62 = vperm.slane %v2209_v27, 2  ;;  %v663_v4 = vsel %vm533_vm0, %v178_v59, 0.0 }
  0xf1   :  { %v640_v6 = vadd.f32 %v639_v5, %v638_v3  ;;  %v180_v3 = vperm.slane %v2209_v27, 3  ;;  %v665_v7 = vsel %vm533_vm0, %v179_v62, 0.0 }
  0xf3   :  { %v642_v9 = vadd.f32 %v641_v8, %v640_v6  ;;  %v181_v6 = vperm.slane %v2209_v27, 4  ;;  %v667_v10 = vsel %vm533_vm0, %v180_v3, 0.0 }
  0xf5   :  { %v644_v13 = vadd.f32 %v643_v12, %v642_v9  ;;  %v182_v9 = vperm.slane %v2209_v27, 5  ;;  %v669_v11 = vsel %vm533_vm0, %v181_v6, 0.0 }
  0xf7   :  { %v646_v16 = vadd.f32 %v645_v14, %v644_v13  ;;  %v183_v13 = vperm.slane %v2209_v27, 6  ;;  %v671_v17 = vsel %vm533_vm0, %v182_v9, 0.0 }
  0xf9   :  { %v648_v19 = vadd.f32 %v647_v18, %v646_v16  ;;  %v184_v16 = vperm.slane %v2209_v27, 7  ;;  %v673_v20 = vsel %vm533_vm0, %v183_v13, 0.0 }
  0xfb   :  { %v650_v25 = vadd.f32 %v649_v24, %v648_v19  ;;  %v185_v19 = vperm.slane %v2212_v28, 0  ;;  %v675_v26 = vsel %vm533_vm0, %v184_v16, 0.0 }
  0xfd   :  { %v652_v32 = vadd.f32 %v651_v31, %v650_v25  ;;  %v186_v25 = vperm.slane %v2212_v28, 1  ;;  %v677_v33 = vsel %vm533_vm0, %v185_v19, 0.0 }
  0xff   :  { %v654_v52 = vadd.f32 %v653_v49, %v652_v32  ;;  %v187_v32 = vperm.slane %v2212_v28, 2  ;;  %v679_v53 = vsel %vm533_vm0, %v186_v25, 0.0 }
 0x101   :  { %v656_v55 = vadd.f32 %v655_v54, %v654_v52  ;;  %v188_v52 = vperm.slane %v2212_v28, 3  ;;  %v681_v56 = vsel %vm533_vm0, %v187_v32, 0.0 }
 0x103   :  { %v658_v58 = vadd.f32 %v657_v57, %v656_v55  ;;  %v189_v55 = vperm.slane %v2212_v28, 4  ;;  %v683_v59 = vsel %vm533_vm0, %v188_v52, 0.0 }
 0x105   :  { %v660_v61 = vadd.f32 %v659_v60, %v658_v58  ;;  %v190_v58 = vperm.slane %v2212_v28, 5  ;;  %v685_v62 = vsel %vm533_vm0, %v189_v55, 0.0 }
 0x107   :  { %v662_v0 = vadd.f32 %v661_v63, %v660_v61  ;;  %v191_v61 = vperm.slane %v2212_v28, 6  ;;  %v687_v3 = vsel %vm533_vm0, %v190_v58, 0.0 }
 0x109   :  { %v664_v5 = vadd.f32 %v663_v4, %v662_v0  ;;  %v192_v0 = vperm.slane %v2212_v28, 7  ;;  %v689_v6 = vsel %vm533_vm0, %v191_v61, 0.0 }
 0x10b   :  { %v666_v8 = vadd.f32 %v665_v7, %v664_v5  ;;  %v193_v5 = vperm.slane %v2215_v29, 0  ;;  %v691_v9 = vsel %vm533_vm0, %v192_v0, 0.0 }
 0x10d   :  { %v668_v12 = vadd.f32 %v667_v10, %v666_v8  ;;  %v194_v8 = vperm.slane %v2215_v29, 1  ;;  %v693_v13 = vsel %vm533_vm0, %v193_v5, 0.0 }
 0x10f   :  { %v670_v14 = vadd.f32 %v669_v11, %v668_v12  ;;  %v195_v12 = vperm.slane %v2215_v29, 2  ;;  %v695_v16 = vsel %vm533_vm0, %v194_v8, 0.0 }
 0x111   :  { %v672_v18 = vadd.f32 %v671_v17, %v670_v14  ;;  %v196_v14 = vperm.slane %v2215_v29, 3  ;;  %v697_v19 = vsel %vm533_vm0, %v195_v12, 0.0 }
 0x113   :  { %v674_v24 = vadd.f32 %v673_v20, %v672_v18  ;;  %v197_v18 = vperm.slane %v2215_v29, 4  ;;  %v699_v25 = vsel %vm533_vm0, %v196_v14, 0.0 }
 0x115   :  { %v676_v31 = vadd.f32 %v675_v26, %v674_v24  ;;  %v198_v24 = vperm.slane %v2215_v29, 5  ;;  %v701_v32 = vsel %vm533_vm0, %v197_v18, 0.0 }
 0x117   :  { %v678_v49 = vadd.f32 %v677_v33, %v676_v31  ;;  %v199_v31 = vperm.slane %v2215_v29, 6  ;;  %v703_v52 = vsel %vm533_vm0, %v198_v24, 0.0 }
 0x119   :  { %v680_v54 = vadd.f32 %v679_v53, %v678_v49  ;;  %v200_v49 = vperm.slane %v2215_v29, 7  ;;  %v705_v55 = vsel %vm533_vm0, %v199_v31, 0.0 }
 0x11b   :  { %v682_v57 = vadd.f32 %v681_v56, %v680_v54  ;;  %v201_v54 = vperm.slane %v2218_v30, 0  ;;  %v707_v58 = vsel %vm533_vm0, %v200_v49, 0.0 }
 0x11d   :  { %v684_v60 = vadd.f32 %v683_v59, %v682_v57  ;;  %v202_v57 = vperm.slane %v2218_v30, 1  ;;  %v709_v61 = vsel %vm533_vm0, %v201_v54, 0.0 }
 0x11f   :  { %v686_v63 = vadd.f32 %v685_v62, %v684_v60  ;;  %v203_v60 = vperm.slane %v2218_v30, 2  ;;  %v711_v0 = vsel %vm533_vm0, %v202_v57, 0.0 }
 0x121   :  { %v688_v4 = vadd.f32 %v687_v3, %v686_v63  ;;  %v204_v63 = vperm.slane %v2218_v30, 3  ;;  %v713_v5 = vsel %vm533_vm0, %v203_v60, 0.0 }
 0x123   :  { %v690_v7 = vadd.f32 %v689_v6, %v688_v4  ;;  %v205_v4 = vperm.slane %v2218_v30, 4  ;;  %v715_v8 = vsel %vm533_vm0, %v204_v63, 0.0 }
 0x125   :  { %v692_v10 = vadd.f32 %v691_v9, %v690_v7  ;;  %v206_v7 = vperm.slane %v2218_v30, 5  ;;  %v717_v12 = vsel %vm533_vm0, %v205_v4, 0.0 }
 0x127   :  { %v694_v11 = vadd.f32 %v693_v13, %v692_v10  ;;  %v207_v10 = vperm.slane %v2218_v30, 6  ;;  %v719_v14 = vsel %vm533_vm0, %v206_v7, 0.0 }
 0x129   :  { %v696_v17 = vadd.f32 %v695_v16, %v694_v11  ;;  %v208_v11 = vperm.slane %v2218_v30, 7  ;;  %v721_v18 = vsel %vm533_vm0, %v207_v10, 0.0 }
 0x12b   :  { %v698_v20 = vadd.f32 %v697_v19, %v696_v17  ;;  %v209_v17 = vperm.slane %v2230_v34, 0  ;;  %v723_v24 = vsel %vm533_vm0, %v208_v11, 0.0 }
 0x12d   :  { %v700_v26 = vadd.f32 %v699_v25, %v698_v20  ;;  %v210_v20 = vperm.slane %v2230_v34, 1  ;;  %v725_v31 = vsel %vm533_vm0, %v209_v17, 0.0 }
 0x12f   :  { %v702_v33 = vadd.f32 %v701_v32, %v700_v26  ;;  %v211_v26 = vperm.slane %v2230_v34, 2  ;;  %v727_v49 = vsel %vm533_vm0, %v210_v20, 0.0 }
 0x131   :  { %v704_v53 = vadd.f32 %v703_v52, %v702_v33  ;;  %v212_v33 = vperm.slane %v2230_v34, 3  ;;  %v729_v54 = vsel %vm533_vm0, %v211_v26, 0.0 }
 0x133   :  { %v706_v56 = vadd.f32 %v705_v55, %v704_v53  ;;  %v213_v53 = vperm.slane %v2230_v34, 4  ;;  %v731_v57 = vsel %vm533_vm0, %v212_v33, 0.0 }
 0x135   :  { %v708_v59 = vadd.f32 %v707_v58, %v706_v56  ;;  %v214_v56 = vperm.slane %v2230_v34, 5  ;;  %v733_v60 = vsel %vm533_vm0, %v213_v53, 0.0 }
 0x137   :  { %v710_v62 = vadd.f32 %v709_v61, %v708_v59  ;;  %v215_v59 = vperm.slane %v2230_v34, 6  ;;  %v735_v63 = vsel %vm533_vm0, %v214_v56, 0.0 }
 0x139   :  { %v712_v3 = vadd.f32 %v711_v0, %v710_v62  ;;  %v216_v62 = vperm.slane %v2230_v34, 7  ;;  %v737_v4 = vsel %vm533_vm0, %v215_v59, 0.0 }
 0x13b   :  { %v714_v6 = vadd.f32 %v713_v5, %v712_v3  ;;  %v217_v3 = vperm.slane %v2233_v35, 0  ;;  %v739_v7 = vsel %vm533_vm0, %v216_v62, 0.0 }
 0x13d   :  { %v716_v9 = vadd.f32 %v715_v8, %v714_v6  ;;  %v218_v6 = vperm.slane %v2233_v35, 1  ;;  %v741_v10 = vsel %vm533_vm0, %v217_v3, 0.0 }
 0x13f   :  { %v718_v13 = vadd.f32 %v717_v12, %v716_v9  ;;  %v219_v9 = vperm.slane %v2233_v35, 2  ;;  %v743_v11 = vsel %vm533_vm0, %v218_v6, 0.0 }
 0x141   :  { %v720_v16 = vadd.f32 %v719_v14, %v718_v13  ;;  %v220_v13 = vperm.slane %v2233_v35, 3  ;;  %v745_v17 = vsel %vm533_vm0, %v219_v9, 0.0 }
 0x143   :  { %v722_v19 = vadd.f32 %v721_v18, %v720_v16  ;;  %v221_v16 = vperm.slane %v2233_v35, 4  ;;  %v747_v20 = vsel %vm533_vm0, %v220_v13, 0.0 }
 0x145   :  { %v724_v25 = vadd.f32 %v723_v24, %v722_v19  ;;  %v222_v19 = vperm.slane %v2233_v35, 5  ;;  %v749_v26 = vsel %vm533_vm0, %v221_v16, 0.0 }
 0x147   :  { %v726_v32 = vadd.f32 %v725_v31, %v724_v25  ;;  %v223_v25 = vperm.slane %v2233_v35, 6  ;;  %v751_v33 = vsel %vm533_vm0, %v222_v19, 0.0 }
 0x149   :  { %v728_v52 = vadd.f32 %v727_v49, %v726_v32  ;;  %v224_v32 = vperm.slane %v2233_v35, 7  ;;  %v753_v53 = vsel %vm533_vm0, %v223_v25, 0.0 }
 0x14b   :  { %v730_v55 = vadd.f32 %v729_v54, %v728_v52  ;;  %v225_v52 = vperm.slane %v2236_v36, 0  ;;  %v755_v56 = vsel %vm533_vm0, %v224_v32, 0.0 }
 0x14d   :  { %v732_v58 = vadd.f32 %v731_v57, %v730_v55  ;;  %v226_v55 = vperm.slane %v2236_v36, 1  ;;  %v757_v59 = vsel %vm533_vm0, %v225_v52, 0.0 }
 0x14f   :  { %v734_v61 = vadd.f32 %v733_v60, %v732_v58  ;;  %v227_v58 = vperm.slane %v2236_v36, 2  ;;  %v759_v62 = vsel %vm533_vm0, %v226_v55, 0.0 }
 0x151   :  { %v736_v0 = vadd.f32 %v735_v63, %v734_v61  ;;  %v228_v61 = vperm.slane %v2236_v36, 3  ;;  %v761_v3 = vsel %vm533_vm0, %v227_v58, 0.0 }
 0x153   :  { %v738_v5 = vadd.f32 %v737_v4, %v736_v0  ;;  %v229_v0 = vperm.slane %v2236_v36, 4  ;;  %v763_v6 = vsel %vm533_vm0, %v228_v61, 0.0 }
 0x155   :  { %v740_v8 = vadd.f32 %v739_v7, %v738_v5  ;;  %v230_v5 = vperm.slane %v2236_v36, 5  ;;  %v765_v9 = vsel %vm533_vm0, %v229_v0, 0.0 }
 0x157   :  { %v742_v12 = vadd.f32 %v741_v10, %v740_v8  ;;  %v231_v8 = vperm.slane %v2236_v36, 6  ;;  %v767_v13 = vsel %vm533_vm0, %v230_v5, 0.0 }
 0x159   :  { %v744_v14 = vadd.f32 %v743_v11, %v742_v12  ;;  %v232_v12 = vperm.slane %v2236_v36, 7  ;;  %v769_v16 = vsel %vm533_vm0, %v231_v8, 0.0 }
 0x15b   :  { %v746_v18 = vadd.f32 %v745_v17, %v744_v14  ;;  %v233_v14 = vperm.slane %v2239_v37, 0  ;;  %v771_v19 = vsel %vm533_vm0, %v232_v12, 0.0 }
 0x15d   :  { %v748_v24 = vadd.f32 %v747_v20, %v746_v18  ;;  %v234_v18 = vperm.slane %v2239_v37, 1  ;;  %v773_v25 = vsel %vm533_vm0, %v233_v14, 0.0 }
 0x15f   :  { %v750_v31 = vadd.f32 %v749_v26, %v748_v24  ;;  %v235_v24 = vperm.slane %v2239_v37, 2  ;;  %v775_v32 = vsel %vm533_vm0, %v234_v18, 0.0 }
 0x161   :  { %v752_v49 = vadd.f32 %v751_v33, %v750_v31  ;;  %v236_v31 = vperm.slane %v2239_v37, 3  ;;  %v777_v52 = vsel %vm533_vm0, %v235_v24, 0.0 }
 0x163   :  { %v754_v54 = vadd.f32 %v753_v53, %v752_v49  ;;  %v237_v49 = vperm.slane %v2239_v37, 4  ;;  %v779_v55 = vsel %vm533_vm0, %v236_v31, 0.0 }
 0x165   :  { %v756_v57 = vadd.f32 %v755_v56, %v754_v54  ;;  %v238_v54 = vperm.slane %v2239_v37, 5  ;;  %v781_v58 = vsel %vm533_vm0, %v237_v49, 0.0 }
 0x167   :  { %v758_v60 = vadd.f32 %v757_v59, %v756_v57  ;;  %v239_v57 = vperm.slane %v2239_v37, 6  ;;  %v783_v61 = vsel %vm533_vm0, %v238_v54, 0.0 }
 0x169   :  { %v760_v63 = vadd.f32 %v759_v62, %v758_v60  ;;  %v240_v60 = vperm.slane %v2239_v37, 7  ;;  %v785_v0 = vsel %vm533_vm0, %v239_v57, 0.0 }
 0x16b   :  { %v762_v4 = vadd.f32 %v761_v3, %v760_v63  ;;  %v241_v63 = vperm.slane %v2242_v38, 0  ;;  %v787_v5 = vsel %vm533_vm0, %v240_v60, 0.0 }
 0x16d   :  { %v764_v7 = vadd.f32 %v763_v6, %v762_v4  ;;  %v242_v4 = vperm.slane %v2242_v38, 1  ;;  %v789_v8 = vsel %vm533_vm0, %v241_v63, 0.0 }
 0x16f   :  { %v766_v10 = vadd.f32 %v765_v9, %v764_v7  ;;  %v243_v7 = vperm.slane %v2242_v38, 2  ;;  %v791_v12 = vsel %vm533_vm0, %v242_v4, 0.0 }
 0x171   :  { %v768_v11 = vadd.f32 %v767_v13, %v766_v10  ;;  %v244_v10 = vperm.slane %v2242_v38, 3  ;;  %v793_v14 = vsel %vm533_vm0, %v243_v7, 0.0 }
 0x173   :  { %v770_v17 = vadd.f32 %v769_v16, %v768_v11  ;;  %v245_v11 = vperm.slane %v2242_v38, 4  ;;  %v795_v18 = vsel %vm533_vm0, %v244_v10, 0.0 }
 0x175   :  { %v772_v20 = vadd.f32 %v771_v19, %v770_v17  ;;  %v246_v17 = vperm.slane %v2242_v38, 5  ;;  %v797_v24 = vsel %vm533_vm0, %v245_v11, 0.0 }
 0x177   :  { %v774_v26 = vadd.f32 %v773_v25, %v772_v20  ;;  %v247_v20 = vperm.slane %v2242_v38, 6  ;;  %v799_v31 = vsel %vm533_vm0, %v246_v17, 0.0 }
 0x179   :  { %v776_v33 = vadd.f32 %v775_v32, %v774_v26  ;;  %v248_v26 = vperm.slane %v2242_v38, 7  ;;  %v801_v49 = vsel %vm533_vm0, %v247_v20, 0.0 }
 0x17b   :  { %v778_v53 = vadd.f32 %v777_v52, %v776_v33  ;;  %v249_v33 = vperm.slane %v2245_v39, 0  ;;  %v803_v54 = vsel %vm533_vm0, %v248_v26, 0.0 }
 0x17d   :  { %v780_v56 = vadd.f32 %v779_v55, %v778_v53  ;;  %v250_v53 = vperm.slane %v2245_v39, 1  ;;  %v805_v57 = vsel %vm533_vm0, %v249_v33, 0.0 }
 0x17f   :  { %v782_v59 = vadd.f32 %v781_v58, %v780_v56  ;;  %v251_v56 = vperm.slane %v2245_v39, 2  ;;  %v807_v60 = vsel %vm533_vm0, %v250_v53, 0.0 }
 0x181   :  { %v784_v62 = vadd.f32 %v783_v61, %v782_v59  ;;  %v252_v59 = vperm.slane %v2245_v39, 3  ;;  %v809_v63 = vsel %vm533_vm0, %v251_v56, 0.0 }
 0x183   :  { %v786_v3 = vadd.f32 %v785_v0, %v784_v62  ;;  %v253_v62 = vperm.slane %v2245_v39, 4  ;;  %v811_v4 = vsel %vm533_vm0, %v252_v59, 0.0 }
 0x185   :  { %v788_v6 = vadd.f32 %v787_v5, %v786_v3  ;;  %v254_v3 = vperm.slane %v2245_v39, 5  ;;  %v813_v7 = vsel %vm533_vm0, %v253_v62, 0.0 }
 0x187   :  { %v790_v9 = vadd.f32 %v789_v8, %v788_v6  ;;  %v255_v6 = vperm.slane %v2245_v39, 6  ;;  %v815_v10 = vsel %vm533_vm0, %v254_v3, 0.0 }
 0x189   :  { %v792_v13 = vadd.f32 %v791_v12, %v790_v9  ;;  %v256_v9 = vperm.slane %v2245_v39, 7  ;;  %v817_v11 = vsel %vm533_vm0, %v255_v6, 0.0 }
 0x18b   :  { %v794_v16 = vadd.f32 %v793_v14, %v792_v13  ;;  %v257_v13 = vperm.slane %v2248_v40, 0  ;;  %v819_v17 = vsel %vm533_vm0, %v256_v9, 0.0 }
 0x18d   :  { %v796_v19 = vadd.f32 %v795_v18, %v794_v16  ;;  %v258_v16 = vperm.slane %v2248_v40, 1  ;;  %v821_v20 = vsel %vm533_vm0, %v257_v13, 0.0 }
 0x18f   :  { %v798_v25 = vadd.f32 %v797_v24, %v796_v19  ;;  %v259_v19 = vperm.slane %v2248_v40, 2  ;;  %v823_v26 = vsel %vm533_vm0, %v258_v16, 0.0 }
 0x191   :  { %v800_v32 = vadd.f32 %v799_v31, %v798_v25  ;;  %v260_v25 = vperm.slane %v2248_v40, 3  ;;  %v825_v33 = vsel %vm533_vm0, %v259_v19, 0.0 }
 0x193   :  { %v802_v52 = vadd.f32 %v801_v49, %v800_v32  ;;  %v261_v32 = vperm.slane %v2248_v40, 4  ;;  %v827_v53 = vsel %vm533_vm0, %v260_v25, 0.0 }
 0x195   :  { %v804_v55 = vadd.f32 %v803_v54, %v802_v52  ;;  %v262_v52 = vperm.slane %v2248_v40, 5  ;;  %v829_v56 = vsel %vm533_vm0, %v261_v32, 0.0 }
 0x197   :  { %v806_v58 = vadd.f32 %v805_v57, %v804_v55  ;;  %v263_v55 = vperm.slane %v2248_v40, 6  ;;  %v831_v59 = vsel %vm533_vm0, %v262_v52, 0.0 }
 0x199   :  { %v808_v61 = vadd.f32 %v807_v60, %v806_v58  ;;  %v264_v58 = vperm.slane %v2248_v40, 7  ;;  %v833_v62 = vsel %vm533_vm0, %v263_v55, 0.0 }
 0x19b   :  { %v810_v0 = vadd.f32 %v809_v63, %v808_v61  ;;  %v265_v61 = vperm.slane %v2251_v41, 0  ;;  %v835_v3 = vsel %vm533_vm0, %v264_v58, 0.0 }
 0x19d   :  { %v812_v5 = vadd.f32 %v811_v4, %v810_v0  ;;  %v266_v0 = vperm.slane %v2251_v41, 1  ;;  %v837_v6 = vsel %vm533_vm0, %v265_v61, 0.0 }
 0x19f   :  { %v814_v8 = vadd.f32 %v813_v7, %v812_v5  ;;  %v267_v5 = vperm.slane %v2251_v41, 2  ;;  %v839_v9 = vsel %vm533_vm0, %v266_v0, 0.0 }
 0x1a1   :  { %v816_v12 = vadd.f32 %v815_v10, %v814_v8  ;;  %v268_v8 = vperm.slane %v2251_v41, 3  ;;  %v841_v13 = vsel %vm533_vm0, %v267_v5, 0.0 }
 0x1a3   :  { %v818_v14 = vadd.f32 %v817_v11, %v816_v12  ;;  %v269_v12 = vperm.slane %v2251_v41, 4  ;;  %v843_v16 = vsel %vm533_vm0, %v268_v8, 0.0 }
 0x1a5   :  { %v820_v18 = vadd.f32 %v819_v17, %v818_v14  ;;  %v270_v14 = vperm.slane %v2251_v41, 5  ;;  %v845_v19 = vsel %vm533_vm0, %v269_v12, 0.0 }
 0x1a7   :  { %v822_v24 = vadd.f32 %v821_v20, %v820_v18  ;;  %v271_v18 = vperm.slane %v2251_v41, 6  ;;  %v847_v25 = vsel %vm533_vm0, %v270_v14, 0.0 }
 0x1a9   :  { %v824_v31 = vadd.f32 %v823_v26, %v822_v24  ;;  %v272_v24 = vperm.slane %v2251_v41, 7  ;;  %v849_v32 = vsel %vm533_vm0, %v271_v18, 0.0 }
 0x1ab   :  { %v826_v49 = vadd.f32 %v825_v33, %v824_v31  ;;  %v273_v31 = vperm.slane %v2254_v42, 0  ;;  %v851_v52 = vsel %vm533_vm0, %v272_v24, 0.0 }
 0x1ad   :  { %v828_v54 = vadd.f32 %v827_v53, %v826_v49  ;;  %v274_v49 = vperm.slane %v2254_v42, 1  ;;  %v853_v55 = vsel %vm533_vm0, %v273_v31, 0.0 }
 0x1af   :  { %v830_v57 = vadd.f32 %v829_v56, %v828_v54  ;;  %v275_v54 = vperm.slane %v2254_v42, 2  ;;  %v855_v58 = vsel %vm533_vm0, %v274_v49, 0.0 }
 0x1b1   :  { %v832_v60 = vadd.f32 %v831_v59, %v830_v57  ;;  %v276_v57 = vperm.slane %v2254_v42, 3  ;;  %v857_v61 = vsel %vm533_vm0, %v275_v54, 0.0 }
 0x1b3   :  { %v834_v63 = vadd.f32 %v833_v62, %v832_v60  ;;  %v277_v60 = vperm.slane %v2254_v42, 4  ;;  %v859_v0 = vsel %vm533_vm0, %v276_v57, 0.0 }
 0x1b5   :  { %v836_v4 = vadd.f32 %v835_v3, %v834_v63  ;;  %v278_v63 = vperm.slane %v2254_v42, 5  ;;  %v861_v5 = vsel %vm533_vm0, %v277_v60, 0.0 }
 0x1b7   :  { %v838_v7 = vadd.f32 %v837_v6, %v836_v4  ;;  %v279_v4 = vperm.slane %v2254_v42, 6  ;;  %v863_v8 = vsel %vm533_vm0, %v278_v63, 0.0 }
 0x1b9   :  { %v840_v10 = vadd.f32 %v839_v9, %v838_v7  ;;  %v280_v7 = vperm.slane %v2254_v42, 7  ;;  %v865_v12 = vsel %vm533_vm0, %v279_v4, 0.0 }
 0x1bb   :  { %v842_v11 = vadd.f32 %v841_v13, %v840_v10  ;;  %v281_v10 = vperm.slane %v2257_v43, 0  ;;  %v867_v14 = vsel %vm533_vm0, %v280_v7, 0.0 }
 0x1bd   :  { %v844_v17 = vadd.f32 %v843_v16, %v842_v11  ;;  %v282_v11 = vperm.slane %v2257_v43, 1  ;;  %v869_v18 = vsel %vm533_vm0, %v281_v10, 0.0 }
 0x1bf   :  { %v846_v20 = vadd.f32 %v845_v19, %v844_v17  ;;  %v283_v17 = vperm.slane %v2257_v43, 2  ;;  %v871_v24 = vsel %vm533_vm0, %v282_v11, 0.0 }
 0x1c1   :  { %v848_v26 = vadd.f32 %v847_v25, %v846_v20  ;;  %v284_v20 = vperm.slane %v2257_v43, 3  ;;  %v873_v31 = vsel %vm533_vm0, %v283_v17, 0.0 }
 0x1c3   :  { %v850_v33 = vadd.f32 %v849_v32, %v848_v26  ;;  %v285_v26 = vperm.slane %v2257_v43, 4  ;;  %v875_v49 = vsel %vm533_vm0, %v284_v20, 0.0 }
 0x1c5   :  { %v852_v53 = vadd.f32 %v851_v52, %v850_v33  ;;  %v286_v33 = vperm.slane %v2257_v43, 5  ;;  %v877_v54 = vsel %vm533_vm0, %v285_v26, 0.0 }
 0x1c7   :  { %v854_v56 = vadd.f32 %v853_v55, %v852_v53  ;;  %v287_v53 = vperm.slane %v2257_v43, 6  ;;  %v879_v57 = vsel %vm533_vm0, %v286_v33, 0.0 }
 0x1c9   :  { %v856_v59 = vadd.f32 %v855_v58, %v854_v56  ;;  %v288_v56 = vperm.slane %v2257_v43, 7  ;;  %v881_v60 = vsel %vm533_vm0, %v287_v53, 0.0 }
 0x1cb   :  { %v858_v62 = vadd.f32 %v857_v61, %v856_v59  ;;  %v289_v59 = vperm.slane %v2260_v44, 0  ;;  %v883_v63 = vsel %vm533_vm0, %v288_v56, 0.0 }
 0x1cd   :  { %v860_v3 = vadd.f32 %v859_v0, %v858_v62  ;;  %v290_v62 = vperm.slane %v2260_v44, 1  ;;  %v885_v4 = vsel %vm533_vm0, %v289_v59, 0.0 }
 0x1cf   :  { %v862_v6 = vadd.f32 %v861_v5, %v860_v3  ;;  %v291_v3 = vperm.slane %v2260_v44, 2  ;;  %v887_v7 = vsel %vm533_vm0, %v290_v62, 0.0 }
 0x1d1   :  { %v864_v9 = vadd.f32 %v863_v8, %v862_v6  ;;  %v292_v6 = vperm.slane %v2260_v44, 3  ;;  %v889_v10 = vsel %vm533_vm0, %v291_v3, 0.0 }
 0x1d3   :  { %v866_v13 = vadd.f32 %v865_v12, %v864_v9  ;;  %v293_v9 = vperm.slane %v2260_v44, 4  ;;  %v891_v11 = vsel %vm533_vm0, %v292_v6, 0.0 }
 0x1d5   :  { %v868_v16 = vadd.f32 %v867_v14, %v866_v13  ;;  %v294_v13 = vperm.slane %v2260_v44, 5  ;;  %v893_v17 = vsel %vm533_vm0, %v293_v9, 0.0 }
 0x1d7   :  { %v870_v19 = vadd.f32 %v869_v18, %v868_v16  ;;  %v295_v16 = vperm.slane %v2260_v44, 6  ;;  %v895_v20 = vsel %vm533_vm0, %v294_v13, 0.0 }
 0x1d9   :  { %v872_v25 = vadd.f32 %v871_v24, %v870_v19  ;;  %v296_v19 = vperm.slane %v2260_v44, 7  ;;  %v897_v26 = vsel %vm533_vm0, %v295_v16, 0.0 }
 0x1db   :  { %v874_v32 = vadd.f32 %v873_v31, %v872_v25  ;;  %v297_v25 = vperm.slane %v2263_v45, 0  ;;  %v899_v33 = vsel %vm533_vm0, %v296_v19, 0.0 }
 0x1dd   :  { %v876_v52 = vadd.f32 %v875_v49, %v874_v32  ;;  %v298_v32 = vperm.slane %v2263_v45, 1  ;;  %v901_v53 = vsel %vm533_vm0, %v297_v25, 0.0 }
 0x1df   :  { %v878_v55 = vadd.f32 %v877_v54, %v876_v52  ;;  %v299_v52 = vperm.slane %v2263_v45, 2  ;;  %v903_v56 = vsel %vm533_vm0, %v298_v32, 0.0 }
 0x1e1   :  { %v880_v58 = vadd.f32 %v879_v57, %v878_v55  ;;  %v300_v55 = vperm.slane %v2263_v45, 3  ;;  %v905_v59 = vsel %vm533_vm0, %v299_v52, 0.0 }
 0x1e3   :  { %v882_v61 = vadd.f32 %v881_v60, %v880_v58  ;;  %v301_v58 = vperm.slane %v2263_v45, 4  ;;  %v907_v62 = vsel %vm533_vm0, %v300_v55, 0.0 }
 0x1e5   :  { %v884_v0 = vadd.f32 %v883_v63, %v882_v61  ;;  %v302_v61 = vperm.slane %v2263_v45, 5  ;;  %v909_v3 = vsel %vm533_vm0, %v301_v58, 0.0 }
 0x1e7   :  { %v886_v5 = vadd.f32 %v885_v4, %v884_v0  ;;  %v303_v0 = vperm.slane %v2263_v45, 6  ;;  %v911_v6 = vsel %vm533_vm0, %v302_v61, 0.0 }
 0x1e9   :  { %v888_v8 = vadd.f32 %v887_v7, %v886_v5  ;;  %v304_v5 = vperm.slane %v2263_v45, 7  ;;  %v913_v9 = vsel %vm533_vm0, %v303_v0, 0.0 }
 0x1eb   :  { %v890_v12 = vadd.f32 %v889_v10, %v888_v8  ;;  %v305_v8 = vperm.slane %v2266_v46, 0  ;;  %v915_v13 = vsel %vm533_vm0, %v304_v5, 0.0 }
 0x1ed   :  { %v892_v14 = vadd.f32 %v891_v11, %v890_v12  ;;  %v306_v12 = vperm.slane %v2266_v46, 1  ;;  %v917_v16 = vsel %vm533_vm0, %v305_v8, 0.0 }
 0x1ef   :  { %v894_v18 = vadd.f32 %v893_v17, %v892_v14  ;;  %v307_v14 = vperm.slane %v2266_v46, 2  ;;  %v919_v19 = vsel %vm533_vm0, %v306_v12, 0.0 }
 0x1f1   :  { %v896_v24 = vadd.f32 %v895_v20, %v894_v18  ;;  %v308_v18 = vperm.slane %v2266_v46, 3  ;;  %v921_v25 = vsel %vm533_vm0, %v307_v14, 0.0 }
 0x1f3   :  { %v898_v31 = vadd.f32 %v897_v26, %v896_v24  ;;  %v309_v24 = vperm.slane %v2266_v46, 4  ;;  %v923_v32 = vsel %vm533_vm0, %v308_v18, 0.0 }
 0x1f5   :  { %v900_v49 = vadd.f32 %v899_v33, %v898_v31  ;;  %v310_v31 = vperm.slane %v2266_v46, 5  ;;  %v925_v52 = vsel %vm533_vm0, %v309_v24, 0.0 }
 0x1f7   :  { %v902_v54 = vadd.f32 %v901_v53, %v900_v49  ;;  %v311_v49 = vperm.slane %v2266_v46, 6  ;;  %v927_v55 = vsel %vm533_vm0, %v310_v31, 0.0 }
 0x1f9   :  { %v904_v57 = vadd.f32 %v903_v56, %v902_v54  ;;  %v312_v54 = vperm.slane %v2266_v46, 7  ;;  %v929_v58 = vsel %vm533_vm0, %v311_v49, 0.0 }
 0x1fb   :  { %v906_v60 = vadd.f32 %v905_v59, %v904_v57  ;;  %v313_v57 = vperm.slane %v2269_v47, 0  ;;  %v931_v61 = vsel %vm533_vm0, %v312_v54, 0.0 }
 0x1fd   :  { %v908_v63 = vadd.f32 %v907_v62, %v906_v60  ;;  %v314_v60 = vperm.slane %v2269_v47, 1  ;;  %v933_v0 = vsel %vm533_vm0, %v313_v57, 0.0 }
 0x1ff   :  { %v910_v4 = vadd.f32 %v909_v3, %v908_v63  ;;  %v315_v63 = vperm.slane %v2269_v47, 2  ;;  %v935_v5 = vsel %vm533_vm0, %v314_v60, 0.0 }
 0x201   :  { %v912_v7 = vadd.f32 %v911_v6, %v910_v4  ;;  %v316_v4 = vperm.slane %v2269_v47, 3  ;;  %v937_v8 = vsel %vm533_vm0, %v315_v63, 0.0 }
 0x203   :  { %v914_v10 = vadd.f32 %v913_v9, %v912_v7  ;;  %v317_v7 = vperm.slane %v2269_v47, 4  ;;  %v939_v12 = vsel %vm533_vm0, %v316_v4, 0.0 }
 0x205   :  { %v916_v11 = vadd.f32 %v915_v13, %v914_v10  ;;  %v318_v10 = vperm.slane %v2269_v47, 5  ;;  %v941_v14 = vsel %vm533_vm0, %v317_v7, 0.0 }
 0x207   :  { %v918_v17 = vadd.f32 %v917_v16, %v916_v11  ;;  %v319_v11 = vperm.slane %v2269_v47, 6  ;;  %v943_v18 = vsel %vm533_vm0, %v318_v10, 0.0 }
 0x209   :  { %v920_v20 = vadd.f32 %v919_v19, %v918_v17  ;;  %v320_v17 = vperm.slane %v2269_v47, 7  ;;  %v945_v24 = vsel %vm533_vm0, %v319_v11, 0.0 }
 0x20b   :  { %v922_v26 = vadd.f32 %v921_v25, %v920_v20  ;;  %v321_v20 = vperm.slane %v2272_v48, 0  ;;  %v947_v31 = vsel %vm533_vm0, %v320_v17, 0.0 }
 0x20d   :  { %v924_v33 = vadd.f32 %v923_v32, %v922_v26  ;;  %v322_v26 = vperm.slane %v2272_v48, 1 }
 0x20f   :  { %v926_v53 = vadd.f32 %v925_v52, %v924_v33  ;;  %v949_v33 = vsel %vm533_vm0, %v321_v20, 0.0  ;;  %v951_v52 = vsel %vm533_vm0, %v322_v26, 0.0 }
 0x211   :  { %v928_v56 = vadd.f32 %v927_v55, %v926_v53 }
 0x213   :  { %v930_v59 = vadd.f32 %v929_v58, %v928_v56 }
 0x215   :  { %v932_v62 = vadd.f32 %v931_v61, %v930_v59 }
 0x217   :  { %v934_v3 = vadd.f32 %v933_v0, %v932_v62 }
 0x219   :  { %v936_v6 = vadd.f32 %v935_v5, %v934_v3 }
 0x21b   :  { %v938_v9 = vadd.f32 %v937_v8, %v936_v6 }
 0x21d   :  { %v940_v13 = vadd.f32 %v939_v12, %v938_v9 }
 0x21f   :  { %v942_v16 = vadd.f32 %v941_v14, %v940_v13 }
 0x221   :  { %v944_v19 = vadd.f32 %v943_v18, %v942_v16 }
 0x223   :  { %v946_v25 = vadd.f32 %v945_v24, %v944_v19 }
 0x225   :  { %v948_v32 = vadd.f32 %v947_v31, %v946_v25 }
 0x227   :  { %v950_v49 = vadd.f32 %v949_v33, %v948_v32 }
 0x229   :  { %v952_v53 = vadd.f32 %v951_v52, %v950_v49 }
 0x22b   :  { %953 = vadd.xlane.f32.xlu0 %v952_v53 }
 0x29e   :  { %v954_v54 = vpop.xlane.xlu0 %953 }
 0x29f   :  { %v955_v55 = vmul.f32 3.7202382e-05, %v954_v54 }
 0x2a1   :  { %v2724_v56 = vperm.slane %v955_v55, 0 }
 0x2a3   :  { %v2728_v57 = vsub.f32 %v2278_v50, %v2724_v56  ;;  %v2736_v4 = vsub.f32 %v2294_v1, %v2724_v56  ;;  %v2750_v53 = vsub.f32 %v2316_v51, %v2724_v56 }
 0x2a5   :  { %v986_v58 = vmul.f32 %v2728_v57, %v2728_v57  ;;  %v987_v10 = vmul.f32 %v2736_v4, %v2736_v4 }
 0x2a7   :  { %v1040_v59 = vperm.slane %v986_v58, 0  ;;  %v1041_v60 = vperm.slane %v986_v58, 1  ;;  %v1042_v61 = vperm.slane %v986_v58, 2  ;;  %v1043_v62 = vperm.slane %v986_v58, 3 }
 0x2a8   :  { %v1044_v5 = vperm.slane %v986_v58, 4  ;;  %v1045_v7 = vperm.slane %v986_v58, 5  ;;  %v1046_v12 = vperm.slane %v986_v58, 6  ;;  %v1047_v14 = vperm.slane %v986_v58, 7 }
 0x2a9   :  { %v1460_v63 = vsel %vm533_vm0, %v1040_v59, 0.0  ;;  %v1461_v0 = vsel %vm533_vm0, %v1041_v60, 0.0  ;;  %v1463_v50 = vsel %vm533_vm0, %v1042_v61, 0.0  ;;  %v1465_v8 = vsel %vm533_vm0, %v1043_v62, 0.0 }
 0x2aa   :  { %v1462_v3 = vadd.f32 %v1461_v0, %v1460_v63  ;;  %v1467_v13 = vsel %vm533_vm0, %v1044_v5, 0.0  ;;  %v1469_v16 = vsel %vm533_vm0, %v1045_v7, 0.0  ;;  %v1048_v17 = vperm.slane %v987_v10, 0 }
 0x2ab   :  { %v1471_v18 = vsel %vm533_vm0, %v1046_v12, 0.0  ;;  %v1049_v20 = vperm.slane %v987_v10, 1  ;;  %v1473_v24 = vsel %vm533_vm0, %v1047_v14, 0.0  ;;  %v1050_v26 = vperm.slane %v987_v10, 2 }
 0x2ac   :  { %v1464_v6 = vadd.f32 %v1463_v50, %v1462_v3  ;;  %v1475_v31 = vsel %vm533_vm0, %v1048_v17, 0.0  ;;  %v1051_v33 = vperm.slane %v987_v10, 3  ;;  %v1052_v54 = vperm.slane %v987_v10, 4 }
 0x2ad   :  { %v1477_v49 = vsel %vm533_vm0, %v1049_v20, 0.0  ;;  %v1479_v55 = vsel %vm533_vm0, %v1050_v26, 0.0  ;;  %v1053_v59 = vperm.slane %v987_v10, 5  ;;  %v988_v62 = vmul.f32 %v2750_v53, %v2750_v53 }
 0x2ae   :  { %v1466_v9 = vadd.f32 %v1465_v8, %v1464_v6  ;;  %v1481_v60 = vsel %vm533_vm0, %v1051_v33, 0.0  ;;  %v1054_v63 = vperm.slane %v987_v10, 6  ;;  %v1483_v0 = vsel %vm533_vm0, %v1052_v54, 0.0 }
 0x2af   :  { %v1055_v5 = vperm.slane %v987_v10, 7  ;;  %v1485_v50 = vsel %vm533_vm0, %v1053_v59, 0.0  ;;  %v1056_v6 = vperm.slane %v988_v62, 0  ;;  %v2764_v10 = vsub.f32 %v2338_v15, %v2724_v56 }
 0x2b0   :  { %v1468_v11 = vadd.f32 %v1467_v13, %v1466_v9  ;;  %v1487_v7 = vsel %vm533_vm0, %v1054_v63, 0.0  ;;  %v1057_v9 = vperm.slane %v988_v62, 1  ;;  %v1062_v33 = vperm.slane %v988_v62, 6 }
 0x2b1   :  { %v1489_v12 = vsel %vm533_vm0, %v1055_v5, 0.0  ;;  %v1491_v14 = vsel %vm533_vm0, %v1056_v6, 0.0  ;;  %v1063_v54 = vperm.slane %v988_v62, 7 }
 0x2b2   :  { %v1470_v1 = vadd.f32 %v1469_v16, %v1468_v11  ;;  %v1058_v11 = vperm.slane %v988_v62, 2  ;;  %v1493_v17 = vsel %vm533_vm0, %v1057_v9, 0.0  ;;  %v1503_v59 = vsel %vm533_vm0, %v1062_v33, 0.0 }
 0x2b3   :  { %v1505_v63 = vsel %vm533_vm0, %v1063_v54, 0.0 }
 0x2b4   :  { %v1472_v19 = vadd.f32 %v1471_v18, %v1470_v1  ;;  %v1059_v1 = vperm.slane %v988_v62, 3  ;;  %v1495_v20 = vsel %vm533_vm0, %v1058_v11, 0.0 }
 0x2b6   :  { %v1474_v25 = vadd.f32 %v1473_v24, %v1472_v19  ;;  %v1060_v19 = vperm.slane %v988_v62, 4  ;;  %v1497_v26 = vsel %vm533_vm0, %v1059_v1, 0.0 }
 0x2b8   :  { %v1476_v32 = vadd.f32 %v1475_v31, %v1474_v25  ;;  %v1061_v25 = vperm.slane %v988_v62, 5  ;;  %v2778_v62 = vsub.f32 %v2360_v2, %v2724_v56 }
 0x2ba   :  { %v1478_v52 = vadd.f32 %v1477_v49, %v1476_v32  ;;  %v989_v32 = vmul.f32 %v2764_v10, %v2764_v10  ;;  %v1499_v49 = vsel %vm533_vm0, %v1060_v19, 0.0 }
 0x2bc   :  { %v1480_v58 = vadd.f32 %v1479_v55, %v1478_v52  ;;  %v1501_v55 = vsel %vm533_vm0, %v1061_v25, 0.0  ;;  %v1070_v1 = vperm.slane %v989_v32, 6  ;;  %v1071_v19 = vperm.slane %v989_v32, 7 }
 0x2be   :  { %v1482_v61 = vadd.f32 %v1481_v60, %v1480_v58  ;;  %v1064_v58 = vperm.slane %v989_v32, 0  ;;  %v1519_v25 = vsel %vm533_vm0, %v1070_v1, 0.0  ;;  %v1521_v33 = vsel %vm533_vm0, %v1071_v19, 0.0 }
 0x2c0   :  { %v1484_v3 = vadd.f32 %v1483_v0, %v1482_v61  ;;  %v1065_v61 = vperm.slane %v989_v32, 1  ;;  %v1507_v5 = vsel %vm533_vm0, %v1064_v58, 0.0 }
 0x2c2   :  { %v1486_v51 = vadd.f32 %v1485_v50, %v1484_v3  ;;  %v1066_v3 = vperm.slane %v989_v32, 2  ;;  %v1509_v6 = vsel %vm533_vm0, %v1065_v61, 0.0 }
 0x2c4   :  { %v1488_v8 = vadd.f32 %v1487_v7, %v1486_v51  ;;  %v1067_v51 = vperm.slane %v989_v32, 3  ;;  %v1511_v9 = vsel %vm533_vm0, %v1066_v3, 0.0 }
 0x2c6   :  { %v1490_v13 = vadd.f32 %v1489_v12, %v1488_v8  ;;  %v1068_v8 = vperm.slane %v989_v32, 4  ;;  %v1513_v11 = vsel %vm533_vm0, %v1067_v51, 0.0 }
 0x2c8   :  { %v1492_v16 = vadd.f32 %v1491_v14, %v1490_v13  ;;  %v1069_v13 = vperm.slane %v989_v32, 5  ;;  %v2792_v32 = vsub.f32 %v2191_v21, %v2724_v56 }
 0x2ca   :  { %v1494_v18 = vadd.f32 %v1493_v17, %v1492_v16  ;;  %v990_v16 = vmul.f32 %v2778_v62, %v2778_v62  ;;  %v1515_v17 = vsel %vm533_vm0, %v1068_v8, 0.0 }
 0x2cc   :  { %v1496_v24 = vadd.f32 %v1495_v20, %v1494_v18  ;;  %v1517_v20 = vsel %vm533_vm0, %v1069_v13, 0.0  ;;  %v1078_v51 = vperm.slane %v990_v16, 6  ;;  %v1079_v8 = vperm.slane %v990_v16, 7 }
 0x2ce   :  { %v1498_v31 = vadd.f32 %v1497_v26, %v1496_v24  ;;  %v1072_v24 = vperm.slane %v990_v16, 0  ;;  %v1535_v13 = vsel %vm533_vm0, %v1078_v51, 0.0  ;;  %v1537_v1 = vsel %vm533_vm0, %v1079_v8, 0.0 }
 0x2d0   :  { %v1500_v52 = vadd.f32 %v1499_v49, %v1498_v31  ;;  %v1073_v31 = vperm.slane %v990_v16, 1  ;;  %v1523_v54 = vsel %vm533_vm0, %v1072_v24, 0.0 }
 0x2d2   :  { %v1502_v15 = vadd.f32 %v1501_v55, %v1500_v52  ;;  %v1074_v52 = vperm.slane %v990_v16, 2  ;;  %v1525_v58 = vsel %vm533_vm0, %v1073_v31, 0.0 }
 0x2d4   :  { %v1504_v60 = vadd.f32 %v1503_v59, %v1502_v15  ;;  %v1075_v15 = vperm.slane %v990_v16, 3  ;;  %v1527_v61 = vsel %vm533_vm0, %v1074_v52, 0.0 }
 0x2d6   :  { %v1506_v0 = vadd.f32 %v1505_v63, %v1504_v60  ;;  %v1076_v60 = vperm.slane %v990_v16, 4  ;;  %v1529_v3 = vsel %vm533_vm0, %v1075_v15, 0.0 }
 0x2d8   :  { %v1508_v50 = vadd.f32 %v1507_v5, %v1506_v0  ;;  %v1077_v0 = vperm.slane %v990_v16, 5  ;;  %v2806_v16 = vsub.f32 %v2194_v22, %v2724_v56 }
 0x2da   :  { %v1510_v7 = vadd.f32 %v1509_v6, %v1508_v50  ;;  %v991_v50 = vmul.f32 %v2792_v32, %v2792_v32  ;;  %v1531_v6 = vsel %vm533_vm0, %v1076_v60, 0.0 }
 0x2dc   :  { %v1512_v12 = vadd.f32 %v1511_v9, %v1510_v7  ;;  %v1533_v9 = vsel %vm533_vm0, %v1077_v0, 0.0  ;;  %v1086_v15 = vperm.slane %v991_v50, 6  ;;  %v1087_v60 = vperm.slane %v991_v50, 7 }
 0x2de   :  { %v1514_v14 = vadd.f32 %v1513_v11, %v1512_v12  ;;  %v1080_v12 = vperm.slane %v991_v50, 0  ;;  %v1551_v0 = vsel %vm533_vm0, %v1086_v15, 0.0  ;;  %v1553_v51 = vsel %vm533_vm0, %v1087_v60, 0.0 }
 0x2e0   :  { %v1516_v18 = vadd.f32 %v1515_v17, %v1514_v14  ;;  %v1081_v14 = vperm.slane %v991_v50, 1  ;;  %v1539_v19 = vsel %vm533_vm0, %v1080_v12, 0.0 }
 0x2e2   :  { %v1518_v2 = vadd.f32 %v1517_v20, %v1516_v18  ;;  %v1082_v18 = vperm.slane %v991_v50, 2  ;;  %v1541_v24 = vsel %vm533_vm0, %v1081_v14, 0.0 }
 0x2e4   :  { %v1520_v26 = vadd.f32 %v1519_v25, %v1518_v2  ;;  %v1083_v2 = vperm.slane %v991_v50, 3  ;;  %v1543_v31 = vsel %vm533_vm0, %v1082_v18, 0.0 }
 0x2e6   :  { %v1522_v49 = vadd.f32 %v1521_v33, %v1520_v26  ;;  %v1084_v26 = vperm.slane %v991_v50, 4  ;;  %v1545_v52 = vsel %vm533_vm0, %v1083_v2, 0.0 }
 0x2e8   :  { %v1524_v55 = vadd.f32 %v1523_v54, %v1522_v49  ;;  %v1085_v49 = vperm.slane %v991_v50, 5  ;;  %v2820_v50 = vsub.f32 %v2197_v23, %v2724_v56 }
 0x2ea   :  { %v1526_v59 = vadd.f32 %v1525_v58, %v1524_v55  ;;  %v992_v55 = vmul.f32 %v2806_v16, %v2806_v16  ;;  %v1547_v58 = vsel %vm533_vm0, %v1084_v26, 0.0 }
 0x2ec   :  { %v1528_v63 = vadd.f32 %v1527_v61, %v1526_v59  ;;  %v1549_v61 = vsel %vm533_vm0, %v1085_v49, 0.0  ;;  %v1094_v2 = vperm.slane %v992_v55, 6  ;;  %v1095_v26 = vperm.slane %v992_v55, 7 }
 0x2ee   :  { %v1530_v5 = vadd.f32 %v1529_v3, %v1528_v63  ;;  %v1088_v63 = vperm.slane %v992_v55, 0  ;;  %v1567_v49 = vsel %vm533_vm0, %v1094_v2, 0.0  ;;  %v1569_v15 = vsel %vm533_vm0, %v1095_v26, 0.0 }
 0x2f0   :  { %v1532_v7 = vadd.f32 %v1531_v6, %v1530_v5  ;;  %v1089_v5 = vperm.slane %v992_v55, 1  ;;  %v1555_v8 = vsel %vm533_vm0, %v1088_v63, 0.0 }
 0x2f2   :  { %v1534_v21 = vadd.f32 %v1533_v9, %v1532_v7  ;;  %v1090_v7 = vperm.slane %v992_v55, 2  ;;  %v1557_v12 = vsel %vm533_vm0, %v1089_v5, 0.0 }
 0x2f4   :  { %v1536_v11 = vadd.f32 %v1535_v13, %v1534_v21  ;;  %v1091_v21 = vperm.slane %v992_v55, 3  ;;  %v1559_v14 = vsel %vm533_vm0, %v1090_v7, 0.0 }
 0x2f6   :  { %v1538_v17 = vadd.f32 %v1537_v1, %v1536_v11  ;;  %v1092_v11 = vperm.slane %v992_v55, 4  ;;  %v1561_v18 = vsel %vm533_vm0, %v1091_v21, 0.0 }
 0x2f8   :  { %v1540_v20 = vadd.f32 %v1539_v19, %v1538_v17  ;;  %v1093_v17 = vperm.slane %v992_v55, 5  ;;  %v2834_v55 = vsub.f32 %v2209_v27, %v2724_v56 }
 0x2fa   :  { %v1542_v25 = vadd.f32 %v1541_v24, %v1540_v20  ;;  %v993_v20 = vmul.f32 %v2820_v50, %v2820_v50  ;;  %v1563_v24 = vsel %vm533_vm0, %v1092_v11, 0.0 }
 0x2fc   :  { %v1544_v33 = vadd.f32 %v1543_v31, %v1542_v25  ;;  %v1565_v31 = vsel %vm533_vm0, %v1093_v17, 0.0  ;;  %v1102_v21 = vperm.slane %v993_v20, 6  ;;  %v1103_v11 = vperm.slane %v993_v20, 7 }
 0x2fe   :  { %v1546_v54 = vadd.f32 %v1545_v52, %v1544_v33  ;;  %v1096_v33 = vperm.slane %v993_v20, 0  ;;  %v1583_v17 = vsel %vm533_vm0, %v1102_v21, 0.0  ;;  %v1585_v2 = vsel %vm533_vm0, %v1103_v11, 0.0 }
 0x300   :  { %v1548_v59 = vadd.f32 %v1547_v58, %v1546_v54  ;;  %v1097_v54 = vperm.slane %v993_v20, 1  ;;  %v1571_v60 = vsel %vm533_vm0, %v1096_v33, 0.0 }
 0x302   :  { %v1550_v22 = vadd.f32 %v1549_v61, %v1548_v59  ;;  %v1098_v59 = vperm.slane %v993_v20, 2  ;;  %v1573_v63 = vsel %vm533_vm0, %v1097_v54, 0.0 }
 0x304   :  { %v1552_v3 = vadd.f32 %v1551_v0, %v1550_v22  ;;  %v1099_v22 = vperm.slane %v993_v20, 3  ;;  %v1575_v5 = vsel %vm533_vm0, %v1098_v59, 0.0 }
 0x306   :  { %v1554_v6 = vadd.f32 %v1553_v51, %v1552_v3  ;;  %v1100_v3 = vperm.slane %v993_v20, 4  ;;  %v1577_v7 = vsel %vm533_vm0, %v1099_v22, 0.0 }
 0x308   :  { %v1556_v9 = vadd.f32 %v1555_v8, %v1554_v6  ;;  %v1101_v6 = vperm.slane %v993_v20, 5  ;;  %v2848_v20 = vsub.f32 %v2212_v28, %v2724_v56 }
 0x30a   :  { %v1558_v13 = vadd.f32 %v1557_v12, %v1556_v9  ;;  %v994_v9 = vmul.f32 %v2834_v55, %v2834_v55  ;;  %v1579_v12 = vsel %vm533_vm0, %v1100_v3, 0.0 }
 0x30c   :  { %v1560_v1 = vadd.f32 %v1559_v14, %v1558_v13  ;;  %v1581_v14 = vsel %vm533_vm0, %v1101_v6, 0.0  ;;  %v1110_v22 = vperm.slane %v994_v9, 6  ;;  %v1111_v3 = vperm.slane %v994_v9, 7 }
 0x30e   :  { %v1562_v19 = vadd.f32 %v1561_v18, %v1560_v1  ;;  %v1104_v1 = vperm.slane %v994_v9, 0  ;;  %v1599_v6 = vsel %vm533_vm0, %v1110_v22, 0.0  ;;  %v1601_v21 = vsel %vm533_vm0, %v1111_v3, 0.0 }
 0x310   :  { %v1564_v25 = vadd.f32 %v1563_v24, %v1562_v19  ;;  %v1105_v19 = vperm.slane %v994_v9, 1  ;;  %v1587_v26 = vsel %vm533_vm0, %v1104_v1, 0.0 }
 0x312   :  { %v1566_v23 = vadd.f32 %v1565_v31, %v1564_v25  ;;  %v1106_v25 = vperm.slane %v994_v9, 2  ;;  %v1589_v33 = vsel %vm533_vm0, %v1105_v19, 0.0 }
 0x314   :  { %v1568_v52 = vadd.f32 %v1567_v49, %v1566_v23  ;;  %v1107_v23 = vperm.slane %v994_v9, 3  ;;  %v1591_v54 = vsel %vm533_vm0, %v1106_v25, 0.0 }
 0x316   :  { %v1570_v58 = vadd.f32 %v1569_v15, %v1568_v52  ;;  %v1108_v52 = vperm.slane %v994_v9, 4  ;;  %v1593_v59 = vsel %vm533_vm0, %v1107_v23, 0.0 }
 0x318   :  { %v1572_v61 = vadd.f32 %v1571_v60, %v1570_v58  ;;  %v1109_v58 = vperm.slane %v994_v9, 5  ;;  %v2862_v9 = vsub.f32 %v2215_v29, %v2724_v56 }
 0x31a   :  { %v1574_v0 = vadd.f32 %v1573_v63, %v1572_v61  ;;  %v995_v61 = vmul.f32 %v2848_v20, %v2848_v20  ;;  %v1595_v63 = vsel %vm533_vm0, %v1108_v52, 0.0 }
 0x31c   :  { %v1576_v51 = vadd.f32 %v1575_v5, %v1574_v0  ;;  %v1597_v5 = vsel %vm533_vm0, %v1109_v58, 0.0  ;;  %v1118_v23 = vperm.slane %v995_v61, 6  ;;  %v1119_v52 = vperm.slane %v995_v61, 7 }
 0x31e   :  { %v1578_v8 = vadd.f32 %v1577_v7, %v1576_v51  ;;  %v1112_v51 = vperm.slane %v995_v61, 0  ;;  %v1615_v58 = vsel %vm533_vm0, %v1118_v23, 0.0  ;;  %v1617_v22 = vsel %vm533_vm0, %v1119_v52, 0.0 }
 0x320   :  { %v1580_v13 = vadd.f32 %v1579_v12, %v1578_v8  ;;  %v1113_v8 = vperm.slane %v995_v61, 1  ;;  %v1603_v11 = vsel %vm533_vm0, %v1112_v51, 0.0 }
 0x322   :  { %v1582_v27 = vadd.f32 %v1581_v14, %v1580_v13  ;;  %v1114_v13 = vperm.slane %v995_v61, 2  ;;  %v1605_v1 = vsel %vm533_vm0, %v1113_v8, 0.0 }
 0x324   :  { %v1584_v18 = vadd.f32 %v1583_v17, %v1582_v27  ;;  %v1115_v27 = vperm.slane %v995_v61, 3  ;;  %v1607_v19 = vsel %vm533_vm0, %v1114_v13, 0.0 }
 0x326   :  { %v1586_v24 = vadd.f32 %v1585_v2, %v1584_v18  ;;  %v1116_v18 = vperm.slane %v995_v61, 4  ;;  %v1609_v25 = vsel %vm533_vm0, %v1115_v27, 0.0 }
 0x328   :  { %v1588_v31 = vadd.f32 %v1587_v26, %v1586_v24  ;;  %v1117_v24 = vperm.slane %v995_v61, 5  ;;  %v2876_v61 = vsub.f32 %v2218_v30, %v2724_v56 }
 0x32a   :  { %v1590_v49 = vadd.f32 %v1589_v33, %v1588_v31  ;;  %v996_v31 = vmul.f32 %v2862_v9, %v2862_v9  ;;  %v1611_v33 = vsel %vm533_vm0, %v1116_v18, 0.0 }
 0x32c   :  { %v1592_v15 = vadd.f32 %v1591_v54, %v1590_v49  ;;  %v1613_v54 = vsel %vm533_vm0, %v1117_v24, 0.0  ;;  %v1126_v27 = vperm.slane %v996_v31, 6  ;;  %v1127_v18 = vperm.slane %v996_v31, 7 }
 0x32e   :  { %v1594_v60 = vadd.f32 %v1593_v59, %v1592_v15  ;;  %v1120_v15 = vperm.slane %v996_v31, 0  ;;  %v1631_v24 = vsel %vm533_vm0, %v1126_v27, 0.0  ;;  %v1633_v23 = vsel %vm533_vm0, %v1127_v18, 0.0 }
 0x330   :  { %v1596_v0 = vadd.f32 %v1595_v63, %v1594_v60  ;;  %v1121_v60 = vperm.slane %v996_v31, 1  ;;  %v1619_v3 = vsel %vm533_vm0, %v1120_v15, 0.0 }
 0x332   :  { %v1598_v28 = vadd.f32 %v1597_v5, %v1596_v0  ;;  %v1122_v0 = vperm.slane %v996_v31, 2  ;;  %v1621_v51 = vsel %vm533_vm0, %v1121_v60, 0.0 }
 0x334   :  { %v1600_v7 = vadd.f32 %v1599_v6, %v1598_v28  ;;  %v1123_v28 = vperm.slane %v996_v31, 3  ;;  %v1623_v8 = vsel %vm533_vm0, %v1122_v0, 0.0 }
 0x336   :  { %v1602_v12 = vadd.f32 %v1601_v21, %v1600_v7  ;;  %v1124_v7 = vperm.slane %v996_v31, 4  ;;  %v1625_v13 = vsel %vm533_vm0, %v1123_v28, 0.0 }
 0x338   :  { %v1604_v14 = vadd.f32 %v1603_v11, %v1602_v12  ;;  %v1125_v12 = vperm.slane %v996_v31, 5  ;;  %v2890_v31 = vsub.f32 %v2230_v34, %v2724_v56 }
 0x33a   :  { %v1606_v17 = vadd.f32 %v1605_v1, %v1604_v14  ;;  %v997_v14 = vmul.f32 %v2876_v61, %v2876_v61  ;;  %v1627_v1 = vsel %vm533_vm0, %v1124_v7, 0.0 }
 0x33c   :  { %v1608_v2 = vadd.f32 %v1607_v19, %v1606_v17  ;;  %v1629_v19 = vsel %vm533_vm0, %v1125_v12, 0.0  ;;  %v1134_v28 = vperm.slane %v997_v14, 6  ;;  %v1135_v7 = vperm.slane %v997_v14, 7 }
 0x33e   :  { %v1610_v26 = vadd.f32 %v1609_v25, %v1608_v2  ;;  %v1128_v2 = vperm.slane %v997_v14, 0  ;;  %v1647_v12 = vsel %vm533_vm0, %v1134_v28, 0.0  ;;  %v1649_v27 = vsel %vm533_vm0, %v1135_v7, 0.0 }
 0x340   :  { %v1612_v49 = vadd.f32 %v1611_v33, %v1610_v26  ;;  %v1129_v26 = vperm.slane %v997_v14, 1  ;;  %v1635_v52 = vsel %vm533_vm0, %v1128_v2, 0.0 }
 0x342   :  { %v1614_v29 = vadd.f32 %v1613_v54, %v1612_v49  ;;  %v1130_v49 = vperm.slane %v997_v14, 2  ;;  %v1637_v15 = vsel %vm533_vm0, %v1129_v26, 0.0 }
 0x344   :  { %v1616_v59 = vadd.f32 %v1615_v58, %v1614_v29  ;;  %v1131_v29 = vperm.slane %v997_v14, 3  ;;  %v1639_v60 = vsel %vm533_vm0, %v1130_v49, 0.0 }
 0x346   :  { %v1618_v63 = vadd.f32 %v1617_v22, %v1616_v59  ;;  %v1132_v59 = vperm.slane %v997_v14, 4  ;;  %v1641_v0 = vsel %vm533_vm0, %v1131_v29, 0.0 }
 0x348   :  { %v1620_v5 = vadd.f32 %v1619_v3, %v1618_v63  ;;  %v1133_v63 = vperm.slane %v997_v14, 5  ;;  %v2904_v14 = vsub.f32 %v2233_v35, %v2724_v56 }
 0x34a   :  { %v1622_v6 = vadd.f32 %v1621_v51, %v1620_v5  ;;  %v998_v5 = vmul.f32 %v2890_v31, %v2890_v31  ;;  %v1643_v51 = vsel %vm533_vm0, %v1132_v59, 0.0 }
 0x34c   :  { %v1624_v21 = vadd.f32 %v1623_v8, %v1622_v6  ;;  %v1645_v8 = vsel %vm533_vm0, %v1133_v63, 0.0  ;;  %v1142_v29 = vperm.slane %v998_v5, 6  ;;  %v1143_v59 = vperm.slane %v998_v5, 7 }
 0x34e   :  { %v1626_v11 = vadd.f32 %v1625_v13, %v1624_v21  ;;  %v1136_v21 = vperm.slane %v998_v5, 0  ;;  %v1663_v63 = vsel %vm533_vm0, %v1142_v29, 0.0  ;;  %v1665_v28 = vsel %vm533_vm0, %v1143_v59, 0.0 }
 0x350   :  { %v1628_v17 = vadd.f32 %v1627_v1, %v1626_v11  ;;  %v1137_v11 = vperm.slane %v998_v5, 1  ;;  %v1651_v18 = vsel %vm533_vm0, %v1136_v21, 0.0 }
 0x352   :  { %v1630_v30 = vadd.f32 %v1629_v19, %v1628_v17  ;;  %v1138_v17 = vperm.slane %v998_v5, 2  ;;  %v1653_v2 = vsel %vm533_vm0, %v1137_v11, 0.0 }
 0x354   :  { %v1632_v25 = vadd.f32 %v1631_v24, %v1630_v30  ;;  %v1139_v30 = vperm.slane %v998_v5, 3  ;;  %v1655_v26 = vsel %vm533_vm0, %v1138_v17, 0.0 }
 0x356   :  { %v1634_v33 = vadd.f32 %v1633_v23, %v1632_v25  ;;  %v1140_v25 = vperm.slane %v998_v5, 4  ;;  %v1657_v49 = vsel %vm533_vm0, %v1139_v30, 0.0 }
 0x358   :  { %v1636_v54 = vadd.f32 %v1635_v52, %v1634_v33  ;;  %v1141_v33 = vperm.slane %v998_v5, 5  ;;  %v2918_v5 = vsub.f32 %v2236_v36, %v2724_v56 }
 0x35a   :  { %v1638_v58 = vadd.f32 %v1637_v15, %v1636_v54  ;;  %v999_v54 = vmul.f32 %v2904_v14, %v2904_v14  ;;  %v1659_v15 = vsel %vm533_vm0, %v1140_v25, 0.0 }
 0x35c   :  { %v1640_v22 = vadd.f32 %v1639_v60, %v1638_v58  ;;  %v1661_v60 = vsel %vm533_vm0, %v1141_v33, 0.0  ;;  %v1150_v30 = vperm.slane %v999_v54, 6  ;;  %v1151_v25 = vperm.slane %v999_v54, 7 }
 0x35e   :  { %v1642_v3 = vadd.f32 %v1641_v0, %v1640_v22  ;;  %v1144_v22 = vperm.slane %v999_v54, 0  ;;  %v1679_v33 = vsel %vm533_vm0, %v1150_v30, 0.0  ;;  %v1681_v29 = vsel %vm533_vm0, %v1151_v25, 0.0 }
 0x360   :  { %v1644_v6 = vadd.f32 %v1643_v51, %v1642_v3  ;;  %v1145_v3 = vperm.slane %v999_v54, 1  ;;  %v1667_v7 = vsel %vm533_vm0, %v1144_v22, 0.0 }
 0x362   :  { %v1646_v34 = vadd.f32 %v1645_v8, %v1644_v6  ;;  %v1146_v6 = vperm.slane %v999_v54, 2  ;;  %v1669_v21 = vsel %vm533_vm0, %v1145_v3, 0.0 }
 0x364   :  { %v1648_v13 = vadd.f32 %v1647_v12, %v1646_v34  ;;  %v1147_v34 = vperm.slane %v999_v54, 3  ;;  %v1671_v11 = vsel %vm533_vm0, %v1146_v6, 0.0 }
 0x366   :  { %v1650_v1 = vadd.f32 %v1649_v27, %v1648_v13  ;;  %v1148_v13 = vperm.slane %v999_v54, 4  ;;  %v1673_v17 = vsel %vm533_vm0, %v1147_v34, 0.0 }
 0x368   :  { %v1652_v19 = vadd.f32 %v1651_v18, %v1650_v1  ;;  %v1149_v1 = vperm.slane %v999_v54, 5  ;;  %v2932_v54 = vsub.f32 %v2239_v37, %v2724_v56 }
 0x36a   :  { %v1654_v24 = vadd.f32 %v1653_v2, %v1652_v19  ;;  %v1000_v19 = vmul.f32 %v2918_v5, %v2918_v5  ;;  %v1675_v2 = vsel %vm533_vm0, %v1148_v13, 0.0 }
 0x36c   :  { %v1656_v23 = vadd.f32 %v1655_v26, %v1654_v24  ;;  %v1677_v26 = vsel %vm533_vm0, %v1149_v1, 0.0  ;;  %v1158_v34 = vperm.slane %v1000_v19, 6  ;;  %v1159_v13 = vperm.slane %v1000_v19, 7 }
 0x36e   :  { %v1658_v52 = vadd.f32 %v1657_v49, %v1656_v23  ;;  %v1152_v23 = vperm.slane %v1000_v19, 0  ;;  %v1695_v1 = vsel %vm533_vm0, %v1158_v34, 0.0  ;;  %v1697_v30 = vsel %vm533_vm0, %v1159_v13, 0.0 }
 0x370   :  { %v1660_v58 = vadd.f32 %v1659_v15, %v1658_v52  ;;  %v1153_v52 = vperm.slane %v1000_v19, 1  ;;  %v1683_v59 = vsel %vm533_vm0, %v1152_v23, 0.0 }
 0x372   :  { %v1662_v35 = vadd.f32 %v1661_v60, %v1660_v58  ;;  %v1154_v58 = vperm.slane %v1000_v19, 2  ;;  %v1685_v22 = vsel %vm533_vm0, %v1153_v52, 0.0 }
 0x374   :  { %v1664_v0 = vadd.f32 %v1663_v63, %v1662_v35  ;;  %v1155_v35 = vperm.slane %v1000_v19, 3  ;;  %v1687_v3 = vsel %vm533_vm0, %v1154_v58, 0.0 }
 0x376   :  { %v1666_v51 = vadd.f32 %v1665_v28, %v1664_v0  ;;  %v1156_v0 = vperm.slane %v1000_v19, 4  ;;  %v1689_v6 = vsel %vm533_vm0, %v1155_v35, 0.0 }
 0x378   :  { %v1668_v8 = vadd.f32 %v1667_v7, %v1666_v51  ;;  %v1157_v51 = vperm.slane %v1000_v19, 5  ;;  %v2946_v19 = vsub.f32 %v2242_v38, %v2724_v56 }
 0x37a   :  { %v1670_v12 = vadd.f32 %v1669_v21, %v1668_v8  ;;  %v1001_v8 = vmul.f32 %v2932_v54, %v2932_v54  ;;  %v1691_v21 = vsel %vm533_vm0, %v1156_v0, 0.0 }
 0x37c   :  { %v1672_v27 = vadd.f32 %v1671_v11, %v1670_v12  ;;  %v1693_v11 = vsel %vm533_vm0, %v1157_v51, 0.0  ;;  %v1166_v35 = vperm.slane %v1001_v8, 6  ;;  %v1167_v0 = vperm.slane %v1001_v8, 7 }
 0x37e   :  { %v1674_v18 = vadd.f32 %v1673_v17, %v1672_v27  ;;  %v1160_v27 = vperm.slane %v1001_v8, 0  ;;  %v1711_v51 = vsel %vm533_vm0, %v1166_v35, 0.0  ;;  %v1713_v34 = vsel %vm533_vm0, %v1167_v0, 0.0 }
 0x380   :  { %v1676_v24 = vadd.f32 %v1675_v2, %v1674_v18  ;;  %v1161_v18 = vperm.slane %v1001_v8, 1  ;;  %v1699_v25 = vsel %vm533_vm0, %v1160_v27, 0.0 }
 0x382   :  { %v1678_v36 = vadd.f32 %v1677_v26, %v1676_v24  ;;  %v1162_v24 = vperm.slane %v1001_v8, 2  ;;  %v1701_v23 = vsel %vm533_vm0, %v1161_v18, 0.0 }
 0x384   :  { %v1680_v49 = vadd.f32 %v1679_v33, %v1678_v36  ;;  %v1163_v36 = vperm.slane %v1001_v8, 3  ;;  %v1703_v52 = vsel %vm533_vm0, %v1162_v24, 0.0 }
 0x386   :  { %v1682_v15 = vadd.f32 %v1681_v29, %v1680_v49  ;;  %v1164_v49 = vperm.slane %v1001_v8, 4  ;;  %v1705_v58 = vsel %vm533_vm0, %v1163_v36, 0.0 }
 0x388   :  { %v1684_v60 = vadd.f32 %v1683_v59, %v1682_v15  ;;  %v1165_v15 = vperm.slane %v1001_v8, 5  ;;  %v2960_v8 = vsub.f32 %v2245_v39, %v2724_v56 }
 0x38a   :  { %v1686_v63 = vadd.f32 %v1685_v22, %v1684_v60  ;;  %v1002_v60 = vmul.f32 %v2946_v19, %v2946_v19  ;;  %v1707_v22 = vsel %vm533_vm0, %v1164_v49, 0.0 }
 0x38c   :  { %v1688_v28 = vadd.f32 %v1687_v3, %v1686_v63  ;;  %v1709_v3 = vsel %vm533_vm0, %v1165_v15, 0.0  ;;  %v1174_v36 = vperm.slane %v1002_v60, 6  ;;  %v1175_v49 = vperm.slane %v1002_v60, 7 }
 0x38e   :  { %v1690_v7 = vadd.f32 %v1689_v6, %v1688_v28  ;;  %v1168_v28 = vperm.slane %v1002_v60, 0  ;;  %v1727_v15 = vsel %vm533_vm0, %v1174_v36, 0.0  ;;  %v1729_v35 = vsel %vm533_vm0, %v1175_v49, 0.0 }
 0x390   :  { %v1692_v12 = vadd.f32 %v1691_v21, %v1690_v7  ;;  %v1169_v7 = vperm.slane %v1002_v60, 1  ;;  %v1715_v13 = vsel %vm533_vm0, %v1168_v28, 0.0 }
 0x392   :  { %v1694_v37 = vadd.f32 %v1693_v11, %v1692_v12  ;;  %v1170_v12 = vperm.slane %v1002_v60, 2  ;;  %v1717_v27 = vsel %vm533_vm0, %v1169_v7, 0.0 }
 0x394   :  { %v1696_v17 = vadd.f32 %v1695_v1, %v1694_v37  ;;  %v1171_v37 = vperm.slane %v1002_v60, 3  ;;  %v1719_v18 = vsel %vm533_vm0, %v1170_v12, 0.0 }
 0x396   :  { %v1698_v2 = vadd.f32 %v1697_v30, %v1696_v17  ;;  %v1172_v17 = vperm.slane %v1002_v60, 4  ;;  %v1721_v24 = vsel %vm533_vm0, %v1171_v37, 0.0 }
 0x398   :  { %v1700_v26 = vadd.f32 %v1699_v25, %v1698_v2  ;;  %v1173_v2 = vperm.slane %v1002_v60, 5  ;;  %v2974_v60 = vsub.f32 %v2248_v40, %v2724_v56 }
 0x39a   :  { %v1702_v33 = vadd.f32 %v1701_v23, %v1700_v26  ;;  %v1003_v26 = vmul.f32 %v2960_v8, %v2960_v8  ;;  %v1723_v23 = vsel %vm533_vm0, %v1172_v17, 0.0 }
 0x39c   :  { %v1704_v29 = vadd.f32 %v1703_v52, %v1702_v33  ;;  %v1725_v52 = vsel %vm533_vm0, %v1173_v2, 0.0  ;;  %v1182_v37 = vperm.slane %v1003_v26, 6  ;;  %v1183_v17 = vperm.slane %v1003_v26, 7 }
 0x39e   :  { %v1706_v59 = vadd.f32 %v1705_v58, %v1704_v29  ;;  %v1176_v29 = vperm.slane %v1003_v26, 0  ;;  %v1743_v2 = vsel %vm533_vm0, %v1182_v37, 0.0  ;;  %v1745_v36 = vsel %vm533_vm0, %v1183_v17, 0.0 }
 0x3a0   :  { %v1708_v63 = vadd.f32 %v1707_v22, %v1706_v59  ;;  %v1177_v59 = vperm.slane %v1003_v26, 1  ;;  %v1731_v0 = vsel %vm533_vm0, %v1176_v29, 0.0 }
 0x3a2   :  { %v1710_v38 = vadd.f32 %v1709_v3, %v1708_v63  ;;  %v1178_v63 = vperm.slane %v1003_v26, 2  ;;  %v1733_v28 = vsel %vm533_vm0, %v1177_v59, 0.0 }
 0x3a4   :  { %v1712_v6 = vadd.f32 %v1711_v51, %v1710_v38  ;;  %v1179_v38 = vperm.slane %v1003_v26, 3  ;;  %v1735_v7 = vsel %vm533_vm0, %v1178_v63, 0.0 }
 0x3a6   :  { %v1714_v21 = vadd.f32 %v1713_v34, %v1712_v6  ;;  %v1180_v6 = vperm.slane %v1003_v26, 4  ;;  %v1737_v12 = vsel %vm533_vm0, %v1179_v38, 0.0 }
 0x3a8   :  { %v1716_v11 = vadd.f32 %v1715_v13, %v1714_v21  ;;  %v1181_v21 = vperm.slane %v1003_v26, 5  ;;  %v2988_v26 = vsub.f32 %v2251_v41, %v2724_v56 }
 0x3aa   :  { %v1718_v1 = vadd.f32 %v1717_v27, %v1716_v11  ;;  %v1004_v11 = vmul.f32 %v2974_v60, %v2974_v60  ;;  %v1739_v27 = vsel %vm533_vm0, %v1180_v6, 0.0 }
 0x3ac   :  { %v1720_v30 = vadd.f32 %v1719_v18, %v1718_v1  ;;  %v1741_v18 = vsel %vm533_vm0, %v1181_v21, 0.0  ;;  %v1190_v38 = vperm.slane %v1004_v11, 6  ;;  %v1191_v6 = vperm.slane %v1004_v11, 7 }
 0x3ae   :  { %v1722_v25 = vadd.f32 %v1721_v24, %v1720_v30  ;;  %v1184_v30 = vperm.slane %v1004_v11, 0  ;;  %v1759_v21 = vsel %vm533_vm0, %v1190_v38, 0.0  ;;  %v1761_v37 = vsel %vm533_vm0, %v1191_v6, 0.0 }
 0x3b0   :  { %v1724_v33 = vadd.f32 %v1723_v23, %v1722_v25  ;;  %v1185_v25 = vperm.slane %v1004_v11, 1  ;;  %v1747_v49 = vsel %vm533_vm0, %v1184_v30, 0.0 }
 0x3b2   :  { %v1726_v39 = vadd.f32 %v1725_v52, %v1724_v33  ;;  %v1186_v33 = vperm.slane %v1004_v11, 2  ;;  %v1749_v29 = vsel %vm533_vm0, %v1185_v25, 0.0 }
 0x3b4   :  { %v1728_v58 = vadd.f32 %v1727_v15, %v1726_v39  ;;  %v1187_v39 = vperm.slane %v1004_v11, 3  ;;  %v1751_v59 = vsel %vm533_vm0, %v1186_v33, 0.0 }
 0x3b6   :  { %v1730_v22 = vadd.f32 %v1729_v35, %v1728_v58  ;;  %v1188_v58 = vperm.slane %v1004_v11, 4  ;;  %v1753_v63 = vsel %vm533_vm0, %v1187_v39, 0.0 }
 0x3b8   :  { %v1732_v3 = vadd.f32 %v1731_v0, %v1730_v22  ;;  %v1189_v22 = vperm.slane %v1004_v11, 5  ;;  %v3002_v11 = vsub.f32 %v2254_v42, %v2724_v56 }
 0x3ba   :  { %v1734_v51 = vadd.f32 %v1733_v28, %v1732_v3  ;;  %v1005_v3 = vmul.f32 %v2988_v26, %v2988_v26  ;;  %v1755_v28 = vsel %vm533_vm0, %v1188_v58, 0.0 }
 0x3bc   :  { %v1736_v34 = vadd.f32 %v1735_v7, %v1734_v51  ;;  %v1757_v7 = vsel %vm533_vm0, %v1189_v22, 0.0  ;;  %v1198_v39 = vperm.slane %v1005_v3, 6  ;;  %v1199_v58 = vperm.slane %v1005_v3, 7 }
 0x3be   :  { %v1738_v13 = vadd.f32 %v1737_v12, %v1736_v34  ;;  %v1192_v34 = vperm.slane %v1005_v3, 0  ;;  %v1775_v22 = vsel %vm533_vm0, %v1198_v39, 0.0  ;;  %v1777_v38 = vsel %vm533_vm0, %v1199_v58, 0.0 }
 0x3c0   :  { %v1740_v1 = vadd.f32 %v1739_v27, %v1738_v13  ;;  %v1193_v13 = vperm.slane %v1005_v3, 1  ;;  %v1763_v17 = vsel %vm533_vm0, %v1192_v34, 0.0 }
 0x3c2   :  { %v1742_v40 = vadd.f32 %v1741_v18, %v1740_v1  ;;  %v1194_v1 = vperm.slane %v1005_v3, 2  ;;  %v1765_v30 = vsel %vm533_vm0, %v1193_v13, 0.0 }
 0x3c4   :  { %v1744_v24 = vadd.f32 %v1743_v2, %v1742_v40  ;;  %v1195_v40 = vperm.slane %v1005_v3, 3  ;;  %v1767_v25 = vsel %vm533_vm0, %v1194_v1, 0.0 }
 0x3c6   :  { %v1746_v23 = vadd.f32 %v1745_v36, %v1744_v24  ;;  %v1196_v24 = vperm.slane %v1005_v3, 4  ;;  %v1769_v33 = vsel %vm533_vm0, %v1195_v40, 0.0 }
 0x3c8   :  { %v1748_v52 = vadd.f32 %v1747_v49, %v1746_v23  ;;  %v1197_v23 = vperm.slane %v1005_v3, 5  ;;  %v3016_v3 = vsub.f32 %v2257_v43, %v2724_v56 }
 0x3ca   :  { %v1750_v15 = vadd.f32 %v1749_v29, %v1748_v52  ;;  %v1006_v52 = vmul.f32 %v3002_v11, %v3002_v11  ;;  %v1771_v29 = vsel %vm533_vm0, %v1196_v24, 0.0 }
 0x3cc   :  { %v1752_v35 = vadd.f32 %v1751_v59, %v1750_v15  ;;  %v1773_v59 = vsel %vm533_vm0, %v1197_v23, 0.0  ;;  %v1206_v40 = vperm.slane %v1006_v52, 6  ;;  %v1207_v24 = vperm.slane %v1006_v52, 7 }
 0x3ce   :  { %v1754_v0 = vadd.f32 %v1753_v63, %v1752_v35  ;;  %v1200_v35 = vperm.slane %v1006_v52, 0  ;;  %v1791_v23 = vsel %vm533_vm0, %v1206_v40, 0.0  ;;  %v1793_v39 = vsel %vm533_vm0, %v1207_v24, 0.0 }
 0x3d0   :  { %v1756_v51 = vadd.f32 %v1755_v28, %v1754_v0  ;;  %v1201_v0 = vperm.slane %v1006_v52, 1  ;;  %v1779_v6 = vsel %vm533_vm0, %v1200_v35, 0.0 }
 0x3d2   :  { %v1758_v41 = vadd.f32 %v1757_v7, %v1756_v51  ;;  %v1202_v51 = vperm.slane %v1006_v52, 2  ;;  %v1781_v34 = vsel %vm533_vm0, %v1201_v0, 0.0 }
 0x3d4   :  { %v1760_v12 = vadd.f32 %v1759_v21, %v1758_v41  ;;  %v1203_v41 = vperm.slane %v1006_v52, 3  ;;  %v1783_v13 = vsel %vm533_vm0, %v1202_v51, 0.0 }
 0x3d6   :  { %v1762_v27 = vadd.f32 %v1761_v37, %v1760_v12  ;;  %v1204_v12 = vperm.slane %v1006_v52, 4  ;;  %v1785_v1 = vsel %vm533_vm0, %v1203_v41, 0.0 }
 0x3d8   :  { %v1764_v18 = vadd.f32 %v1763_v17, %v1762_v27  ;;  %v1205_v27 = vperm.slane %v1006_v52, 5  ;;  %v3030_v52 = vsub.f32 %v2260_v44, %v2724_v56 }
 0x3da   :  { %v1766_v2 = vadd.f32 %v1765_v30, %v1764_v18  ;;  %v1007_v18 = vmul.f32 %v3016_v3, %v3016_v3  ;;  %v1787_v30 = vsel %vm533_vm0, %v1204_v12, 0.0 }
 0x3dc   :  { %v1768_v36 = vadd.f32 %v1767_v25, %v1766_v2  ;;  %v1789_v25 = vsel %vm533_vm0, %v1205_v27, 0.0  ;;  %v1214_v41 = vperm.slane %v1007_v18, 6  ;;  %v1215_v12 = vperm.slane %v1007_v18, 7 }
 0x3de   :  { %v1770_v49 = vadd.f32 %v1769_v33, %v1768_v36  ;;  %v1208_v36 = vperm.slane %v1007_v18, 0  ;;  %v1807_v27 = vsel %vm533_vm0, %v1214_v41, 0.0  ;;  %v1809_v40 = vsel %vm533_vm0, %v1215_v12, 0.0 }
 0x3e0   :  { %v1772_v15 = vadd.f32 %v1771_v29, %v1770_v49  ;;  %v1209_v49 = vperm.slane %v1007_v18, 1  ;;  %v1795_v58 = vsel %vm533_vm0, %v1208_v36, 0.0 }
 0x3e2   :  { %v1774_v42 = vadd.f32 %v1773_v59, %v1772_v15  ;;  %v1210_v15 = vperm.slane %v1007_v18, 2  ;;  %v1797_v35 = vsel %vm533_vm0, %v1209_v49, 0.0 }
 0x3e4   :  { %v1776_v63 = vadd.f32 %v1775_v22, %v1774_v42  ;;  %v1211_v42 = vperm.slane %v1007_v18, 3  ;;  %v1799_v0 = vsel %vm533_vm0, %v1210_v15, 0.0 }
 0x3e6   :  { %v1778_v28 = vadd.f32 %v1777_v38, %v1776_v63  ;;  %v1212_v63 = vperm.slane %v1007_v18, 4  ;;  %v1801_v51 = vsel %vm533_vm0, %v1211_v42, 0.0 }
 0x3e8   :  { %v1780_v7 = vadd.f32 %v1779_v6, %v1778_v28  ;;  %v1213_v28 = vperm.slane %v1007_v18, 5  ;;  %v3044_v18 = vsub.f32 %v2263_v45, %v2724_v56 }
 0x3ea   :  { %v1782_v21 = vadd.f32 %v1781_v34, %v1780_v7  ;;  %v1008_v7 = vmul.f32 %v3030_v52, %v3030_v52  ;;  %v1803_v34 = vsel %vm533_vm0, %v1212_v63, 0.0 }
 0x3ec   :  { %v1784_v37 = vadd.f32 %v1783_v13, %v1782_v21  ;;  %v1805_v13 = vsel %vm533_vm0, %v1213_v28, 0.0  ;;  %v1222_v42 = vperm.slane %v1008_v7, 6  ;;  %v1223_v63 = vperm.slane %v1008_v7, 7 }
 0x3ee   :  { %v1786_v17 = vadd.f32 %v1785_v1, %v1784_v37  ;;  %v1216_v37 = vperm.slane %v1008_v7, 0  ;;  %v1823_v28 = vsel %vm533_vm0, %v1222_v42, 0.0  ;;  %v1825_v41 = vsel %vm533_vm0, %v1223_v63, 0.0 }
 0x3f0   :  { %v1788_v2 = vadd.f32 %v1787_v30, %v1786_v17  ;;  %v1217_v17 = vperm.slane %v1008_v7, 1  ;;  %v1811_v24 = vsel %vm533_vm0, %v1216_v37, 0.0 }
 0x3f2   :  { %v1790_v43 = vadd.f32 %v1789_v25, %v1788_v2  ;;  %v1218_v2 = vperm.slane %v1008_v7, 2  ;;  %v1813_v36 = vsel %vm533_vm0, %v1217_v17, 0.0 }
 0x3f4   :  { %v1792_v33 = vadd.f32 %v1791_v23, %v1790_v43  ;;  %v1219_v43 = vperm.slane %v1008_v7, 3  ;;  %v1815_v49 = vsel %vm533_vm0, %v1218_v2, 0.0 }
 0x3f6   :  { %v1794_v29 = vadd.f32 %v1793_v39, %v1792_v33  ;;  %v1220_v33 = vperm.slane %v1008_v7, 4  ;;  %v1817_v15 = vsel %vm533_vm0, %v1219_v43, 0.0 }
 0x3f8   :  { %v1796_v59 = vadd.f32 %v1795_v58, %v1794_v29  ;;  %v1221_v29 = vperm.slane %v1008_v7, 5  ;;  %v3058_v7 = vsub.f32 %v2266_v46, %v2724_v56 }
 0x3fa   :  { %v1798_v22 = vadd.f32 %v1797_v35, %v1796_v59  ;;  %v1009_v59 = vmul.f32 %v3044_v18, %v3044_v18  ;;  %v1819_v35 = vsel %vm533_vm0, %v1220_v33, 0.0 }
 0x3fc   :  { %v1800_v38 = vadd.f32 %v1799_v0, %v1798_v22  ;;  %v1821_v0 = vsel %vm533_vm0, %v1221_v29, 0.0  ;;  %v1230_v43 = vperm.slane %v1009_v59, 6  ;;  %v1231_v33 = vperm.slane %v1009_v59, 7 }
 0x3fe   :  { %v1802_v6 = vadd.f32 %v1801_v51, %v1800_v38  ;;  %v1224_v38 = vperm.slane %v1009_v59, 0  ;;  %v1839_v29 = vsel %vm533_vm0, %v1230_v43, 0.0  ;;  %v1841_v42 = vsel %vm533_vm0, %v1231_v33, 0.0 }
 0x400   :  { %v1804_v21 = vadd.f32 %v1803_v34, %v1802_v6  ;;  %v1225_v6 = vperm.slane %v1009_v59, 1  ;;  %v1827_v12 = vsel %vm533_vm0, %v1224_v38, 0.0 }
 0x402   :  { %v1806_v44 = vadd.f32 %v1805_v13, %v1804_v21  ;;  %v1226_v21 = vperm.slane %v1009_v59, 2  ;;  %v1829_v37 = vsel %vm533_vm0, %v1225_v6, 0.0 }
 0x404   :  { %v1808_v1 = vadd.f32 %v1807_v27, %v1806_v44  ;;  %v1227_v44 = vperm.slane %v1009_v59, 3  ;;  %v1831_v17 = vsel %vm533_vm0, %v1226_v21, 0.0 }
 0x406   :  { %v1810_v30 = vadd.f32 %v1809_v40, %v1808_v1  ;;  %v1228_v1 = vperm.slane %v1009_v59, 4  ;;  %v1833_v2 = vsel %vm533_vm0, %v1227_v44, 0.0 }
 0x408   :  { %v1812_v25 = vadd.f32 %v1811_v24, %v1810_v30  ;;  %v1229_v30 = vperm.slane %v1009_v59, 5  ;;  %v3072_v59 = vsub.f32 %v2269_v47, %v2724_v56 }
 0x40a   :  { %v1814_v23 = vadd.f32 %v1813_v36, %v1812_v25  ;;  %v1010_v25 = vmul.f32 %v3058_v7, %v3058_v7  ;;  %v1835_v36 = vsel %vm533_vm0, %v1228_v1, 0.0  ;;  %v1011_v44 = vmul.f32 %v3072_v59, %v3072_v59 }
 0x40c   :  { %v1816_v39 = vadd.f32 %v1815_v49, %v1814_v23  ;;  %v1837_v49 = vsel %vm533_vm0, %v1229_v30, 0.0  ;;  %v1237_v21 = vperm.slane %v1010_v25, 5  ;;  %v1239_v1 = vperm.slane %v1010_v25, 7 }
 0x40d   :  { %v1240_v30 = vperm.slane %v1011_v44, 0  ;;  %v1241_v43 = vperm.slane %v1011_v44, 1  ;;  %v1242_v33 = vperm.slane %v1011_v44, 2 }
 0x40e   :  { %v1818_v58 = vadd.f32 %v1817_v15, %v1816_v39  ;;  %v1232_v39 = vperm.slane %v1010_v25, 0 }
 0x410   :  { %v1820_v22 = vadd.f32 %v1819_v35, %v1818_v58  ;;  %v1233_v58 = vperm.slane %v1010_v25, 1  ;;  %v1843_v63 = vsel %vm533_vm0, %v1232_v39, 0.0  ;;  %v1243_v39 = vperm.slane %v1011_v44, 3 }
 0x412   :  { %v1822_v45 = vadd.f32 %v1821_v0, %v1820_v22  ;;  %v1234_v22 = vperm.slane %v1010_v25, 2  ;;  %v1845_v38 = vsel %vm533_vm0, %v1233_v58, 0.0  ;;  %v1244_v58 = vperm.slane %v1011_v44, 4 }
 0x414   :  { %v1824_v51 = vadd.f32 %v1823_v28, %v1822_v45  ;;  %v1235_v45 = vperm.slane %v1010_v25, 3  ;;  %v1847_v6 = vsel %vm533_vm0, %v1234_v22, 0.0  ;;  %v1245_v22 = vperm.slane %v1011_v44, 5 }
 0x416   :  { %v1826_v34 = vadd.f32 %v1825_v41, %v1824_v51  ;;  %v1236_v51 = vperm.slane %v1010_v25, 4 }
 0x418   :  { %v1828_v13 = vadd.f32 %v1827_v12, %v1826_v34  ;;  %v11_v34 = vstv %s3301_s2  ;;  %v1849_v12 = vsel %vm533_vm0, %v1235_v45, 0.0  ;;  %v1851_v47 = vsel %vm533_vm0, %v1236_v51, 0.0 }
 0x419   :  { %12 = vst [vmem:[#allocation3] sm:$0x1] %v11_v34 }
 0x41a   :  { %v1830_v27 = vadd.f32 %v1829_v37, %v1828_v13  ;;  %v1238_v37 = vperm.slane %v1010_v25, 6  ;;  %v3089_v25 = vsub.f32 %v2272_v48, %v2724_v56 }
 0x41c   :  { %v1832_v40 = vadd.f32 %v1831_v17, %v1830_v27  ;;  %v1853_v17 = vsel %vm533_vm0, %v1237_v21, 0.0  ;;  %v1012_v45 = vmul.f32 %v3089_v25, %v3089_v25 }
 0x41e   :  { %v1834_v24 = vadd.f32 %v1833_v2, %v1832_v40  ;;  %v1855_v2 = vsel %vm533_vm0, %v1238_v37, 0.0  ;;  %v1248_v56 = vperm.slane %v1012_v45, 0  ;;  %v13_v37 = vstv %s3302_s3 }
 0x41f   :  { %14 = vst [vmem:[#allocation4] sm:$0x1] %v13_v37 }
 0x420   :  { %v1836_v23 = vadd.f32 %v1835_v36, %v1834_v24  ;;  %v1857_v36 = vsel %vm533_vm0, %v1239_v1, 0.0 }
 0x422   :  { %v1838_v46 = vadd.f32 %v1837_v49, %v1836_v23  ;;  %v1859_v49 = vsel %vm533_vm0, %v1240_v30, 0.0  ;;  %v84_v30 = vld [vmem:[#allocation3] sm:$0x1] }
 0x424   :  { %v1840_v15 = vadd.f32 %v1839_v29, %v1838_v46  ;;  %v1861_v29 = vsel %vm533_vm0, %v1241_v43, 0.0 }
 0x426   :  { %v1842_v35 = vadd.f32 %v1841_v42, %v1840_v15  ;;  %v1863_v42 = vsel %vm533_vm0, %v1242_v33, 0.0 }
 0x428   :  { %v1844_v0 = vadd.f32 %v1843_v63, %v1842_v35  ;;  %v1865_v63 = vsel %vm533_vm0, %v1243_v39, 0.0 }
 0x42a   :  { %v1846_v28 = vadd.f32 %v1845_v38, %v1844_v0  ;;  %v1246_v38 = vperm.slane %v1011_v44, 6 }
 0x42c   :  { %v1848_v41 = vadd.f32 %v1847_v6, %v1846_v28  ;;  %v1867_v28 = vsel %vm533_vm0, %v1244_v58, 0.0  ;;  %v1247_v6 = vperm.slane %v1011_v44, 7  ;;  %v1871_v34 = vsel %vm533_vm0, %v1246_v38, 0.0 }
 0x42e   :  { %v1850_v13 = vadd.f32 %v1849_v12, %v1848_v41  ;;  %v1869_v41 = vsel %vm533_vm0, %v1245_v22, 0.0  ;;  %v1249_v12 = vperm.slane %v1012_v45, 1 }
 0x430   :  { %v1852_v27 = vadd.f32 %v1851_v47, %v1850_v13  ;;  %v1873_v13 = vsel %vm533_vm0, %v1247_v6, 0.0  ;;  %v1877_v44 = vsel %vm533_vm0, %v1249_v12, 0.0 }
 0x432   :  { %v1854_v40 = vadd.f32 %v1853_v17, %v1852_v27  ;;  %v1875_v27 = vsel %vm533_vm0, %v1248_v56, 0.0 }
 0x434   :  { %v1856_v24 = vadd.f32 %v1855_v2, %v1854_v40  ;;  %v85_v40 = vld [vmem:[#allocation4] sm:$0x1] }
 0x435   :  { %1958 = vperm.xlu2 %2054, %v85_v40  }
 0x436   :  { %v1858_v23 = vadd.f32 %v1857_v36, %v1856_v24 }
 0x438   :  { %v1860_v46 = vadd.f32 %v1859_v49, %v1858_v23 }
 0x43a   :  { %v1862_v15 = vadd.f32 %v1861_v29, %v1860_v46 }
 0x43c   :  { %v1864_v35 = vadd.f32 %v1863_v42, %v1862_v15 }
 0x43e   :  { %v1866_v0 = vadd.f32 %v1865_v63, %v1864_v35 }
 0x440   :  { %v1868_v51 = vadd.f32 %v1867_v28, %v1866_v0 }
 0x442   :  { %v1870_v48 = vadd.f32 %v1869_v41, %v1868_v51 }
 0x444   :  { %v1872_v21 = vadd.f32 %v1871_v34, %v1870_v48 }
 0x446   :  { %v1874_v47 = vadd.f32 %v1873_v13, %v1872_v21 }
 0x448   :  { %v1876_v1 = vadd.f32 %v1875_v27, %v1874_v47 }
 0x44a   :  { %v1878_v17 = vadd.f32 %v1877_v44, %v1876_v1 }
 0x44c   :  { %1879 = vadd.xlane.f32.xlu1 %v1878_v17 }
 0x465   :  { %1925 = vperm.xlu1 %2053, %v84_v30  }
 0x48f   :  { %v1959_v22 = vpop.permute.xlu2 %1958 }
 0x490   :  { %v3119_v51 = vperm.slane %v1959_v22, 0 }
 0x4bf   :  { %v1880_v2 = vpop.xlane.xlu1 %1879 }
 0x4c0   :  { %v1881_v24 = vmul.f32 3.7202382e-05, %v1880_v2 }
 0x4c2   :  { %v1882_v43 = vadd.f32 1e-05, %v1881_v24 }
 0x4c4   :  { %2055 = vrsqrt.f32 %v1882_v43  ;;  %vm1889_vm2 = vweird.f32 %v1882_v43 }
 0x4ca   :  { %v2056_v36 = vpop.eup %2055 }
 0x4cb   :  { %v1884_v23 = vmul.f32 %v2056_v36, %v1882_v43  ;;  %vm1890_vm1 = vweird.f32 %v2056_v36 }
 0x4cc   :  { %vm1891_vm3 = vmor %vm1889_vm2, %vm1890_vm1 }
 0x4cd   :  { %v1885_v33 = vmul.f32 %v2056_v36, %v1884_v23 }
 0x4cf   :  { %v1886_v49 = vmul.f32 0.5, %v1885_v33 }
 0x4d1   :  { %v1887_v46 = vsub.f32 1.5, %v1886_v49 }
 0x4d3   :  { %v1888_v39 = vmul.f32 %v2056_v36, %v1887_v46 }
 0x4d5   :  { %v1892_v29 = vsel %vm1891_vm3, %v2056_v36, %v1888_v39 }
 0x4d6   :  { %v3104_v15 = vperm.slane %v1892_v29, 0 }
 0x4d7   :  { %v1926_v58 = vpop.permute.xlu1 %1925 }
 0x4d8   :  { %v1896_v42 = vmul.f32 %v3104_v15, %v2728_v57  ;;  %v3108_v35 = vperm.slane %v1926_v58, 0  ;;  %v1897_v63 = vmul.f32 %v3104_v15, %v2736_v4  ;;  %v1898_v0 = vmul.f32 %v3104_v15, %v2750_v53 }
 0x4d9   :  { %v1899_v45 = vmul.f32 %v3104_v15, %v2764_v10  ;;  %v1900_v38 = vmul.f32 %v3104_v15, %v2778_v62  ;;  %v1901_v57 = vmul.f32 %v3104_v15, %v2792_v32  ;;  %v1902_v4 = vmul.f32 %v3104_v15, %v2806_v16 }
 0x4da   :  { %v1929_v28 = vmul.f32 %v3108_v35, %v1896_v42  ;;  %v1930_v6 = vmul.f32 %v3108_v35, %v1897_v63  ;;  %v1931_v53 = vmul.f32 %v3108_v35, %v1898_v0  ;;  %v1903_v10 = vmul.f32 %v3104_v15, %v2820_v50 }
 0x4db   :  { %v1932_v41 = vmul.f32 %v3108_v35, %v1899_v45  ;;  %v1904_v62 = vmul.f32 %v3104_v15, %v2834_v55  ;;  %v1933_v48 = vmul.f32 %v3108_v35, %v1900_v38  ;;  %v1905_v32 = vmul.f32 %v3104_v15, %v2848_v20 }
 0x4dc   :  { %v1962_v56 = vadd.f32 %v3119_v51, %v1929_v28  ;;  %v1934_v34 = vmul.f32 %v3108_v35, %v1901_v57  ;;  %v1963_v16 = vadd.f32 %v3119_v51, %v1930_v6  ;;  %v1906_v21 = vmul.f32 %v3104_v15, %v2862_v9 }
 0x4dd   :  { %v1935_v50 = vmul.f32 %v3108_v35, %v1902_v4  ;;  %v1964_v12 = vadd.f32 %v3119_v51, %v1931_v53  ;;  %v1907_v55 = vmul.f32 %v3104_v15, %v2876_v61  ;;  %v1936_v13 = vmul.f32 %v3108_v35, %v1903_v10 }
 0x4de   :  { %v1965_v37 = vadd.f32 %v3119_v51, %v1932_v41  ;;  %v1908_v20 = vmul.f32 %v3104_v15, %v2890_v31  ;;  %v1937_v47 = vmul.f32 %v3108_v35, %v1904_v62  ;;  %v1966_v27 = vadd.f32 %v3119_v51, %v1933_v48 }
 0x4df   :  { %2057 = vtanh.f32 %v1962_v56  ;;  %v1909_v9 = vmul.f32 %v3104_v15, %v2904_v14  ;;  %v1938_v1 = vmul.f32 %v3108_v35, %v1905_v32  ;;  %v1967_v44 = vadd.f32 %v3119_v51, %v1934_v34 }
 0x4e0   :  { %2059 = vtanh.f32 %v1963_v16  ;;  %v1910_v61 = vmul.f32 %v3104_v15, %v2918_v5  ;;  %v1939_v17 = vmul.f32 %v3108_v35, %v1906_v21  ;;  %v1968_v31 = vadd.f32 %v3119_v51, %v1935_v50 }
 0x4e1   :  { %2061 = vtanh.f32 %v1964_v12  ;;  %v1911_v40 = vmul.f32 %v3104_v15, %v2932_v54  ;;  %v1940_v30 = vmul.f32 %v3108_v35, %v1907_v55  ;;  %v1969_v14 = vadd.f32 %v3119_v51, %v1936_v13 }
 0x4e2   :  { %2063 = vtanh.f32 %v1965_v37  ;;  %v1912_v2 = vmul.f32 %v3104_v15, %v2946_v19  ;;  %v1941_v24 = vmul.f32 %v3108_v35, %v1908_v20  ;;  %v1970_v5 = vadd.f32 %v3119_v51, %v1937_v47 }
 0x4e3   :  { %2065 = vtanh.f32 %v1966_v27  ;;  %v1913_v43 = vmul.f32 %v3104_v15, %v2960_v8  ;;  %v1942_v36 = vmul.f32 %v3108_v35, %v1909_v9  ;;  %v1971_v54 = vadd.f32 %v3119_v51, %v1938_v1 }
 0x4e4   :  { %2067 = vtanh.f32 %v1967_v44  ;;  %v1914_v33 = vmul.f32 %v3104_v15, %v2974_v60  ;;  %v1943_v49 = vmul.f32 %v3108_v35, %v1910_v61  ;;  %v1972_v19 = vadd.f32 %v3119_v51, %v1939_v17 }
 0x4e5   :  { %v2058_v23 = vpop.eup %2057  ;;  %2069 = vtanh.f32 %v1968_v31  ;;  %v1915_v39 = vmul.f32 %v3104_v15, %v2988_v26  ;;  %v1944_v8 = vmul.f32 %v3108_v35, %v1911_v40  ;;  %v1973_v29 = vadd.f32 %v3119_v51, %v1940_v30 }
 0x4e6   :  { %v2060_v46 = vpop.eup %2059  ;;  %2071 = vtanh.f32 %v1969_v14  ;;  %2016 = vst [vmem:[%s3303_s4] sm:$0xff] %v2058_v23  ;;  %v1916_v60 = vmul.f32 %v3104_v15, %v3002_v11  ;;  %v1945_v42 = vmul.f32 %v3108_v35, %v1912_v2  ;;  %v1974_v22 = vadd.f32 %v3119_v51, %v1941_v24 }
 0x4e7   :  { %v2062_v58 = vpop.eup %2061  ;;  %2073 = vtanh.f32 %v1970_v5  ;;  %2017 = vst [vmem:[%s3303_s4 + $0x8] sm:$0xff] %v2060_v46  ;;  %v1917_v63 = vmul.f32 %v3104_v15, %v3016_v3  ;;  %v1946_v0 = vmul.f32 %v3108_v35, %v1913_v43  ;;  %v1975_v45 = vadd.f32 %v3119_v51, %v1942_v36 }
 0x4e8   :  { %v2064_v26 = vpop.eup %2063  ;;  %2075 = vtanh.f32 %v1971_v54  ;;  %2018 = vst [vmem:[%s3303_s4 + $0x10] sm:$0xff] %v2062_v58  ;;  %v1918_v38 = vmul.f32 %v3104_v15, %v3030_v52  ;;  %v1947_v28 = vmul.f32 %v3108_v35, %v1914_v33  ;;  %v1976_v57 = vadd.f32 %v3119_v51, %v1943_v49 }
 0x4e9   :  { %v2066_v11 = vpop.eup %2065  ;;  %2077 = vtanh.f32 %v1972_v19  ;;  %2019 = vst [vmem:[%s3303_s4 + $0x18] sm:$0xff] %v2064_v26  ;;  %v1919_v6 = vmul.f32 %v3104_v15, %v3044_v18  ;;  %v1948_v4 = vmul.f32 %v3108_v35, %v1915_v39  ;;  %v1977_v53 = vadd.f32 %v3119_v51, %v1944_v8 }
 0x4ea   :  { %v2068_v3 = vpop.eup %2067  ;;  %2079 = vtanh.f32 %v1973_v29  ;;  %2020 = vst [vmem:[%s3303_s4 + $0x20] sm:$0xff] %v2066_v11  ;;  %v1920_v10 = vmul.f32 %v3104_v15, %v3058_v7  ;;  %v1949_v41 = vmul.f32 %v3108_v35, %v1916_v60  ;;  %v1978_v62 = vadd.f32 %v3119_v51, %v1945_v42 }
 0x4eb   :  { %v2070_v52 = vpop.eup %2069  ;;  %2081 = vtanh.f32 %v1974_v22  ;;  %2021 = vst [vmem:[%s3303_s4 + $0x28] sm:$0xff] %v2068_v3  ;;  %v1921_v48 = vmul.f32 %v3104_v15, %v3072_v59  ;;  %v1950_v56 = vmul.f32 %v3108_v35, %v1917_v63  ;;  %v1979_v32 = vadd.f32 %v3119_v51, %v1946_v0 }
 0x4ec   :  { %v2072_v18 = vpop.eup %2071  ;;  %2083 = vtanh.f32 %v1975_v45  ;;  %2022 = vst [vmem:[%s3303_s4 + $0x30] sm:$0xff] %v2070_v52  ;;  %v1922_v34 = vmul.f32 %v3104_v15, %v3089_v25  ;;  %v1951_v16 = vmul.f32 %v3108_v35, %v1918_v38  ;;  %v1980_v21 = vadd.f32 %v3119_v51, %v1947_v28 }
 0x4ed   :  { %v2074_v7 = vpop.eup %2073  ;;  %2085 = vtanh.f32 %v1976_v57  ;;  %2023 = vst [vmem:[%s3303_s4 + $0x38] sm:$0xff] %v2072_v18  ;;  %v1952_v50 = vmul.f32 %v3108_v35, %v1919_v6  ;;  %v1981_v12 = vadd.f32 %v3119_v51, %v1948_v4  ;;  %v1953_v15 = vmul.f32 %v3108_v35, %v1920_v10 }
 0x4ee   :  { %v2076_v59 = vpop.eup %2075  ;;  %2087 = vtanh.f32 %v1977_v53  ;;  %2024 = vst [vmem:[%s3303_s4 + $0x40] sm:$0xff] %v2074_v7  ;;  %v1982_v55 = vadd.f32 %v3119_v51, %v1949_v41  ;;  %v1954_v37 = vmul.f32 %v3108_v35, %v1921_v48  ;;  %v1983_v20 = vadd.f32 %v3119_v51, %v1950_v56 }
 0x4ef   :  { %v2078_v25 = vpop.eup %2077  ;;  %2089 = vtanh.f32 %v1978_v62  ;;  %2025 = vst [vmem:[%s3303_s4 + $0x48] sm:$0xff] %v2076_v59  ;;  %v1955_v27 = vmul.f32 %v3108_v35, %v1922_v34  ;;  %v1984_v9 = vadd.f32 %v3119_v51, %v1951_v16  ;;  %v1985_v44 = vadd.f32 %v3119_v51, %v1952_v50 }
 0x4f0   :  { %v2080_v13 = vpop.eup %2079  ;;  %2091 = vtanh.f32 %v1979_v32  ;;  %2026 = vst [vmem:[%s3303_s4 + $0x50] sm:$0xff] %v2078_v25  ;;  %v1986_v17 = vadd.f32 %v3119_v51, %v1953_v15  ;;  %v1987_v31 = vadd.f32 %v3119_v51, %v1954_v37  ;;  %v2042_v5 = vlaneseq }
 0x4f1   :  { %v2082_v47 = vpop.eup %2081  ;;  %2093 = vtanh.f32 %v1980_v21  ;;  %2027 = vst [vmem:[%s3303_s4 + $0x58] sm:$0xff] %v2080_v13  ;;  %v1988_v30 = vadd.f32 %v3119_v51, %v1955_v27 }
 0x4f2   :  { %v2084_v1 = vpop.eup %2083  ;;  %2095 = vtanh.f32 %v1981_v12  ;;  %2028 = vst [vmem:[%s3303_s4 + $0x60] sm:$0xff] %v2082_v47  ;;  %vm2044_vm4 = vcmp.lt.s32.totalorder %v2042_v5, 256 }
 0x4f3   :  { %v2086_v61 = vpop.eup %2085  ;;  %2097 = vtanh.f32 %v1982_v55  ;;  %2029 = vst [vmem:[%s3303_s4 + $0x68] sm:$0xff] %v2084_v1 }
 0x4f4   :  { %v2088_v35 = vpop.eup %2087  ;;  %2099 = vtanh.f32 %v1983_v20  ;;  %2030 = vst [vmem:[%s3303_s4 + $0x70] sm:$0xff] %v2086_v61 }
 0x4f5   :  { %v2090_v40 = vpop.eup %2089  ;;  %2101 = vtanh.f32 %v1984_v9  ;;  %2031 = vst [vmem:[%s3303_s4 + $0x78] sm:$0xff] %v2088_v35 }
 0x4f6   :  { %v2092_v14 = vpop.eup %2091  ;;  %2103 = vtanh.f32 %v1985_v44  ;;  %2032 = vst [vmem:[%s3303_s4 + $0x80] sm:$0xff] %v2090_v40 }
 0x4f7   :  { %v2094_v2 = vpop.eup %2093  ;;  %2105 = vtanh.f32 %v1986_v17  ;;  %2033 = vst [vmem:[%s3303_s4 + $0x88] sm:$0xff] %v2092_v14 }
 0x4f8   :  { %v2096_v24 = vpop.eup %2095  ;;  %2107 = vtanh.f32 %v1987_v31  ;;  %2034 = vst [vmem:[%s3303_s4 + $0x90] sm:$0xff] %v2094_v2 }
 0x4f9   :  { %v2098_v51 = vpop.eup %2097  ;;  %2109 = vtanh.f32 %v1988_v30  ;;  %2035 = vst [vmem:[%s3303_s4 + $0x98] sm:$0xff] %v2096_v24 }
 0x4fa   :  { %v2100_v43 = vpop.eup %2099  ;;  %2036 = vst [vmem:[%s3303_s4 + $0xa0] sm:$0xff] %v2098_v51 }
 0x4fb   :  { %v2102_v36 = vpop.eup %2101  ;;  %2037 = vst [vmem:[%s3303_s4 + $0xa8] sm:$0xff] %v2100_v43 }
 0x4fc   :  { %v2104_v54 = vpop.eup %2103  ;;  %2038 = vst [vmem:[%s3303_s4 + $0xb0] sm:$0xff] %v2102_v36 }
 0x4fd   :  { %v2106_v23 = vpop.eup %2105  ;;  %2039 = vst [vmem:[%s3303_s4 + $0xb8] sm:$0xff] %v2104_v54 }
 0x4fe   :  { %v2108_v33 = vpop.eup %2107  ;;  %2040 = vst [vmem:[%s3303_s4 + $0xc0] sm:$0xff] %v2106_v23 }
 0x4ff   :  { %v2110_v49 = vpop.eup %2109  ;;  %2041 = vst [vmem:[%s3303_s4 + $0xc8] sm:$0xff] %v2108_v33 }
 0x500   :  { %2046 = vst.msk [vmem:[%s3303_s4 + $0xd0] sm:$0x3] %vm2044_vm4, %v2110_v49 }

</bundles_post_ra>
